<compile_context>
chip_gen: v6e
topology: v6e:2x2x1
jax: 0.10.0
libtpu: 0.0.40
codegen_flags: <defaults>
</compile_context>

<pallas_src>
import functools

import jax
import jax.numpy as jnp
import numpy as np
from jax.experimental import pallas as pl
from jax.experimental.pallas import tpu as pltpu

ALPHA = 0.2  # LeakyReLU negative slope (module default)


def _default_score_dtype():
    """bf16 score/exp path on chips with bf16 VPU/EUP (v6e+); f32 otherwise."""
    try:
        kind = jax.devices()[0].device_kind.lower()
    except Exception:
        return jnp.float32
    for tag in ("v2", "v3", "v4", "v5"):   # no bf16 VPU/EUP on these
        if tag in kind:
            return jnp.float32
    return jnp.bfloat16


def gat_multihead_kernel(blk_ref, fetch_ref,             # scalar prefetch (SMEM)
                         s1_ref, s2t_ref, adj_ref, x_ref,
                         o_ref,
                         acc_ref, rows_ref, m_ref):
    qi = pl.program_id(0)
    ki = pl.program_id(1)
    nk = pl.num_programs(1)
    n_head = acc_ref.shape[0]

    @pl.when(ki == 0)
    def _init():
        acc_ref[...] = jnp.zeros_like(acc_ref)
        rows_ref[...] = jnp.zeros_like(rows_ref)
        # running max clamped at 0 -> exp arguments always <= 0, no -inf needed.
        m_ref[...] = jnp.zeros_like(m_ref)

    @pl.when(blk_ref[qi * nk + ki] != 0)   # skip adjacency tiles with no edges
    def _compute():
        adj_nz = adj_ref[...] != 0                       # (tq, tkv) bool (int8 in HBM)
        x_kv = x_ref[...]                                # (tkv, F)  bf16
        s1 = s1_ref[...]                                 # (tq, n_head) score dtype
        s2 = s2t_ref[...]                                # (n_head, tkv) score dtype
        sdt = s1.dtype
        zero = jnp.zeros((), sdt)
        # Tiny static unroll over heads; per-head state lives in VMEM scratch.
        for k in range(n_head):
            logits = s1[:, k:k + 1] + s2[k:k + 1, :]     # (tq, tkv)
            # leaky-ReLU as one max (identical math for 0 < ALPHA < 1).
            lrelu = jnp.maximum(logits, ALPHA * logits)
            m_old = m_ref[k]                             # (tq, 1) f32
            m_new = jnp.maximum(
                m_old, jnp.max(lrelu, axis=1, keepdims=True).astype(jnp.float32))
            e = jnp.where(adj_nz, jnp.exp(lrelu - m_new.astype(sdt)), zero)
            scale = jnp.exp(m_old - m_new)               # <= 1; == 1 if max unchanged
            rows_ref[k] = scale * rows_ref[k] + \
                jnp.sum(e.astype(jnp.float32), axis=1, keepdims=True)

            @pl.when(jnp.any(m_new > m_old))             # skip (tq,F) rescale in steady state
            def _rescale():
                acc_ref[k] = scale * acc_ref[k]

            acc_ref[k] = acc_ref[k] + jnp.dot(
                e.astype(jnp.bfloat16), x_kv, preferred_element_type=jnp.float32)
            m_ref[k] = m_new

    @pl.when(ki == nk - 1)
    def _finalize():
        inv_heads = jnp.float32(1.0 / n_head)            # fold mean over heads
        out = jnp.zeros(o_ref.shape, jnp.float32)
        for k in range(n_head):
            # reference denom = sum_j e_ij + 1e-10; ours is scaled by exp(-m):
            denom = rows_ref[k] + 1e-10 * jnp.exp(-m_ref[k])
            denom = jnp.maximum(denom, 1e-30)            # guard exp(-m) underflow
            out = out + acc_ref[k] * (inv_heads / denom) # exact divide, once per row tile
        o_ref[...] = out                                 # single (tq, F) store


@functools.partial(jax.jit, static_argnames=("tq", "tkv", "score_dtype"))
def graph_multihead_att(x, adj, W, a, *, tq=512, tkv=256, score_dtype=None):
    """x: (N, F) f32, adj: (N, N) 0/1, W: (n_head, F), a: (n_head, 2F).

    tq=512, tkv=256 is a good default on v6e/v7x; on v5e prefer tkv=128
    (native MXU K) and keep tq large — tq is the knob that reduces HBM re-reads.
    """
    if score_dtype is None:
        score_dtype = _default_score_dtype()

    N, F = x.shape
    n_head = W.shape[0]

    # Fused per-head attention vectors: logit_ij = x_i.(W*a1) + x_j.(W*a2)
    wa1 = W * a[:, :F]                                    # (n_head, F)
    wa2 = W * a[:, F:]                                    # (n_head, F)
    s1 = jnp.dot(x, wa1.T).astype(score_dtype)            # (N, n_head)
    s2t = jnp.dot(wa2, x.T).astype(score_dtype)           # (n_head, N)

    # Pad to tile multiples; F padded to a multiple of 128 for lane-dense output.
    nq = pl.cdiv(N, tq)
    nk = pl.cdiv(N, tkv)
    nq_p, nk_p = nq * tq, nk * tkv
    fp = pl.cdiv(F, 128) * 128

    x_p = jnp.pad(x, ((0, nk_p - N), (0, fp - F))).astype(jnp.bfloat16)
    adj_b = jnp.pad(adj != 0, ((0, nq_p - N), (0, nk_p - N)))
    adj_i8 = adj_b.astype(jnp.int8)
    s1_p = jnp.pad(s1, ((0, nq_p - N), (0, 0)))
    s2t_p = jnp.pad(s2t, ((0, 0), (0, nk_p - N)))

    # Per-(row-tile, kv-tile) "has any edge" table, plus the kv block index to
    # actually fetch: ki for non-empty tiles, otherwise the most recent
    # non-empty ki in the row (repeating the index skips the DMA entirely).
    blk2d = jnp.any(adj_b.reshape(nq, tq, nk, tkv), axis=(1, 3))      # (nq, nk)
    blk = blk2d.astype(jnp.int32).reshape(-1)                         # (nq*nk,)
    ki_iota = jnp.broadcast_to(jnp.arange(nk, dtype=jnp.int32)[None, :], (nq, nk))
    fetch2d = jax.lax.cummax(jnp.where(blk2d, ki_iota, jnp.int32(-1)), axis=1)
    fetch = jnp.maximum(fetch2d, 0).astype(jnp.int32).reshape(-1)     # (nq*nk,)

    sbytes = jnp.dtype(score_dtype).itemsize
    cost = pl.CostEstimate(
        flops=int(n_head * nq_p * nk_p * (2 * fp + 6)),
        transcendentals=int(n_head * nq_p * nk_p),
        bytes_accessed=int(nq_p * nk_p                     # adj (int8)
                           + nq * nk_p * fp * 2            # x re-read per row tile
                           + nq_p * n_head * sbytes
                           + nq * nk_p * n_head * sbytes
                           + nq_p * fp * 4),                # output
    )

    out_p = pl.pallas_call(
        gat_multihead_kernel,
        out_shape=jax.ShapeDtypeStruct((nq_p, fp), jnp.float32),
        grid_spec=pltpu.PrefetchScalarGridSpec(
            num_scalar_prefetch=2,
            grid=(nq, nk),
            in_specs=[
                pl.BlockSpec((tq, n_head), lambda qi, ki, blk, fetch: (qi, 0)),    # S1
                pl.BlockSpec((n_head, tkv), lambda qi, ki, blk, fetch: (0, ki)),   # S2T
                pl.BlockSpec((tq, tkv),                                            # adj (int8)
                             lambda qi, ki, blk, fetch: (qi, fetch[qi * nk + ki])),
                pl.BlockSpec((tkv, fp),                                            # x (bf16)
                             lambda qi, ki, blk, fetch: (fetch[qi * nk + ki], 0)),
            ],
            out_specs=pl.BlockSpec((tq, fp), lambda qi, ki, blk, fetch: (qi, 0)),
            scratch_shapes=[
                pltpu.VMEM((n_head, tq, fp), jnp.float32),   # acc
                pltpu.VMEM((n_head, tq, 1), jnp.float32),    # row sums
                pltpu.VMEM((n_head, tq, 1), jnp.float32),    # running max
            ],
        ),
        compiler_params=pltpu.CompilerParams(
            dimension_semantics=("parallel", "arbitrary"),
            vmem_limit_bytes=56 * 1024 * 1024,   # fits v7x 64 MiB/TC, raises v5e/v6e defaults
        ),
        cost_estimate=cost,
    )(blk, fetch, s1_p, s2t_p, adj_i8, x_p)

    return out_p[:N, :F]


def reference_jax(x, adj, W, a):
    """Pure-JAX f32 port of GraphMultiHeadAttLayer.forward for validation."""
    N, F = x.shape
    outs = []
    for k in range(W.shape[0]):
        h = x * W[k]
        s1 = h @ a[k, :F]
        s2 = h @ a[k, F:]
        logits = s1[:, None] + s2[None, :]
        lrelu = jnp.where(logits >= 0, logits, ALPHA * logits)
        e = jnp.exp(lrelu) * adj
        rowsum = e.sum(axis=1, keepdims=True) + 1e-10
        outs.append((e @ x) / rowsum)
    return jnp.mean(jnp.stack(outs, axis=-1), axis=-1)


if __name__ == "__main__":
    # Small deterministic problem: N nodes, F features (lane-dense), 2 heads.
    N, F, n_head = 512, 128, 2
    in_features = out_features = F

    key = jax.random.PRNGKey(0)
    kx, kadj, ka = jax.random.split(key, 3)

    x = jax.random.normal(kx, (N, F), dtype=jnp.float32)

    # Sparse-ish 0/1 adjacency (stand-in for the COO edge list).  Zero the
    # top-right quadrant so at least one (row-tile, kv-tile) block is empty
    # (exercises compute- and DMA-skip), and add an isolated node (row 7).
    adj = (jax.random.uniform(kadj, (N, N)) < 0.05).astype(jnp.float32)
    adj = adj.at[: N // 2, N // 2:].set(0.0)
    adj = adj.at[7, :].set(0.0)

    # Parameter init matching the module: W = ones, a ~ U(-stdv, stdv) per head.
    W = jnp.ones((n_head, out_features), dtype=jnp.float32)
    stdv = 1.0 / np.sqrt(in_features * 2)
    a = jax.random.uniform(ka, (n_head, 2 * out_features),
                           minval=-stdv, maxval=stdv, dtype=jnp.float32)

    # tq=256 here (instead of the 512 default) so the demo exercises a 2x2 grid:
    # row-parallel axis, multi-step kv accumulation, and the empty-block skip.
    out = graph_multihead_att(x, adj, W, a, tq=256, tkv=256)
    out = jax.block_until_ready(out)

    ref = reference_jax(x, adj, W, a)
    # bf16 MXU operands (+ bf16 score path on v6e/v7x) -> compare against the
    # f32 reference with a bf16-appropriate tolerance.
    np.testing.assert_allclose(np.asarray(out), np.asarray(ref),
                               rtol=2e-2, atol=2e-2)
    assert np.isfinite(np.asarray(out)).all()

    print("KERNEL_OK")
</pallas_src>

<mosaic_0001>
module attributes {stable_mosaic.version = 11 : i64} {
  func.func @gat_multihead_kernel(%arg0: i32, %arg1: i32, %arg2: memref<4xi32, #tpu.memory_space<smem>>, %arg3: memref<4xi32, #tpu.memory_space<smem>>, %arg4: memref<256x2xbf16, #tpu.memory_space<vmem>>, %arg5: memref<2x256xbf16, #tpu.memory_space<vmem>>, %arg6: memref<256x256xi8, #tpu.memory_space<vmem>>, %arg7: memref<256x128xbf16, #tpu.memory_space<vmem>>, %arg8: memref<256x128xf32, #tpu.memory_space<vmem>>, %arg9: memref<2x256x128xf32, #tpu.memory_space<vmem>>, %arg10: memref<2x256x1xf32, #tpu.memory_space<vmem>>, %arg11: memref<2x256x1xf32, #tpu.memory_space<vmem>>) attributes {dimension_semantics = [#tpu.dimension_semantics<parallel>, #tpu.dimension_semantics<arbitrary>], iteration_bounds = array<i64: 2, 2>, scalar_prefetch = 2 : i64, scratch_operands = 3 : i64, tpu.core_type = #tpu.core_type<tc>, window_params = [{transform_indices = @transform_0, window_bounds = array<i64: 256, 2>}, {transform_indices = @transform_1, window_bounds = array<i64: 2, 256>}, {transform_indices = @transform_2, window_bounds = array<i64: 256, 256>}, {transform_indices = @transform_3, window_bounds = array<i64: 256, 128>}, {transform_indices = @transform_4, window_bounds = array<i64: 256, 128>}]} {
    %c0_i32 = arith.constant 0 : i32
    %0 = arith.cmpi eq, %arg1, %c0_i32 : i32
    %1 = arith.extui %0 : i1 to i32
    %c0_i32_0 = arith.constant 0 : i32
    %2 = arith.cmpi ne, %1, %c0_i32_0 : i32
    scf.if %2 {
      %cst = arith.constant 0.000000e+00 : f32
      %13 = vector.broadcast %cst : f32 to vector<2x256x128xf32>
      %c0 = arith.constant 0 : index
      %c0_4 = arith.constant 0 : index
      %c0_5 = arith.constant 0 : index
      %14 = vector.load %arg9[%c0, %c0_4, %c0_5] : memref<2x256x128xf32, #tpu.memory_space<vmem>>, vector<2x256x128xf32>
      tpu.vector_store %arg9[%c0, %c0_4, %c0_5], %13 {strides = array<i32>} : memref<2x256x128xf32, #tpu.memory_space<vmem>>, vector<2x256x128xf32>,
      %cst_6 = arith.constant 0.000000e+00 : f32
      %15 = vector.broadcast %cst_6 : f32 to vector<2x256x1xf32>
      %c0_7 = arith.constant 0 : index
      %c0_8 = arith.constant 0 : index
      %c0_9 = arith.constant 0 : index
      %16 = vector.load %arg10[%c0_7, %c0_8, %c0_9] : memref<2x256x1xf32, #tpu.memory_space<vmem>>, vector<2x256x1xf32>
      tpu.vector_store %arg10[%c0_7, %c0_8, %c0_9], %15 {strides = array<i32>} : memref<2x256x1xf32, #tpu.memory_space<vmem>>, vector<2x256x1xf32>,
      %cst_10 = arith.constant 0.000000e+00 : f32
      %17 = vector.broadcast %cst_10 : f32 to vector<2x256x1xf32>
      %c0_11 = arith.constant 0 : index
      %c0_12 = arith.constant 0 : index
      %c0_13 = arith.constant 0 : index
      %18 = vector.load %arg11[%c0_11, %c0_12, %c0_13] : memref<2x256x1xf32, #tpu.memory_space<vmem>>, vector<2x256x1xf32>
      tpu.vector_store %arg11[%c0_11, %c0_12, %c0_13], %17 {strides = array<i32>} : memref<2x256x1xf32, #tpu.memory_space<vmem>>, vector<2x256x1xf32>,
    } else {
    }
    %c2_i32 = arith.constant 2 : i32
    %3 = arith.muli %arg0, %c2_i32 : i32
    %4 = arith.addi %3, %arg1 : i32
    %5 = arith.index_cast %4 : i32 to index
    %6 = memref.load %arg2[%5] : memref<4xi32, #tpu.memory_space<smem>>
    %c0_i32_1 = arith.constant 0 : i32
    %7 = arith.cmpi ne, %6, %c0_i32_1 : i32
    %8 = arith.extui %7 : i1 to i32
    %c0_i32_2 = arith.constant 0 : i32
    %9 = arith.cmpi ne, %8, %c0_i32_2 : i32
    scf.if %9 {
      %c0 = arith.constant 0 : index
      %c0_4 = arith.constant 0 : index
      %13 = vector.load %arg6[%c0, %c0_4] : memref<256x256xi8, #tpu.memory_space<vmem>>, vector<256x256xi8>
      %c0_i8 = arith.constant 0 : i8
      %14 = vector.broadcast %c0_i8 : i8 to vector<256x256xi8>
      %15 = arith.cmpi ne, %13, %14 : vector<256x256xi8>
      %c0_5 = arith.constant 0 : index
      %c0_6 = arith.constant 0 : index
      %16 = vector.load %arg7[%c0_5, %c0_6] : memref<256x128xbf16, #tpu.memory_space<vmem>>, vector<256x128xbf16>
      %c0_7 = arith.constant 0 : index
      %c0_8 = arith.constant 0 : index
      %17 = vector.load %arg4[%c0_7, %c0_8] : memref<256x2xbf16, #tpu.memory_space<vmem>>, vector<256x2xbf16>
      %c0_9 = arith.constant 0 : index
      %c0_10 = arith.constant 0 : index
      %18 = vector.load %arg5[%c0_9, %c0_10] : memref<2x256xbf16, #tpu.memory_space<vmem>>, vector<2x256xbf16>
      %19 = vector.extract_strided_slice %17 {offsets = [0, 0], sizes = [256, 1], strides = [1, 1]} : vector<256x2xbf16> to vector<256x1xbf16>
      %20 = vector.extract_strided_slice %18 {offsets = [0, 0], sizes = [1, 256], strides = [1, 1]} : vector<2x256xbf16> to vector<1x256xbf16>
      %21 = vector.broadcast %19 : vector<256x1xbf16> to vector<256x256xbf16>
      %22 = vector.broadcast %20 : vector<1x256xbf16> to vector<256x256xbf16>
      %23 = arith.addf %21, %22 : vector<256x256xbf16>
      %cst = arith.constant 2.001950e-01 : bf16
      %24 = vector.broadcast %cst : bf16 to vector<256x256xbf16>
      %25 = arith.mulf %24, %23 : vector<256x256xbf16>
      %26 = arith.maximumf %23, %25 : vector<256x256xbf16>
      %c0_11 = arith.constant 0 : index
      %c0_12 = arith.constant 0 : index
      %c0_13 = arith.constant 0 : index
      %27 = vector.load %arg11[%c0_11, %c0_12, %c0_13] : memref<2x256x1xf32, #tpu.memory_space<vmem>>, vector<1x256x1xf32>
      %28 = vector.shape_cast %27 : vector<1x256x1xf32> to vector<256x1xf32>
      %cst_14 = arith.constant dense<0xFF80> : vector<256xbf16>
      %29 = vector.multi_reduction <maximumf>, %26, %cst_14 [1] : vector<256x256xbf16> to vector<256xbf16>
      %30 = vector.shape_cast %29 : vector<256xbf16> to vector<256x1xbf16>
      %31 = arith.extf %30 : vector<256x1xbf16> to vector<256x1xf32>
      %32 = arith.maximumf %28, %31 : vector<256x1xf32>
      %33 = arith.truncf %32 : vector<256x1xf32> to vector<256x1xbf16>
      %34 = vector.broadcast %33 : vector<256x1xbf16> to vector<256x256xbf16>
      %35 = arith.subf %26, %34 : vector<256x256xbf16>
      %36 = math.exp %35 : vector<256x256xbf16>
      %cst_15 = arith.constant 0.000000e+00 : bf16
      %37 = vector.broadcast %cst_15 : bf16 to vector<256x256xbf16>
      %38 = arith.select %15, %36, %37 : vector<256x256xi1>, vector<256x256xbf16>
      %39 = arith.subf %28, %32 : vector<256x1xf32>
      %40 = math.exp %39 : vector<256x1xf32>
      %c0_16 = arith.constant 0 : index
      %c0_17 = arith.constant 0 : index
      %c0_18 = arith.constant 0 : index
      %41 = vector.load %arg10[%c0_16, %c0_17, %c0_18] : memref<2x256x1xf32, #tpu.memory_space<vmem>>, vector<1x256x1xf32>
      %42 = vector.shape_cast %41 : vector<1x256x1xf32> to vector<256x1xf32>
      %43 = arith.mulf %40, %42 : vector<256x1xf32>
      %44 = arith.extf %38 : vector<256x256xbf16> to vector<256x256xf32>
      %cst_19 = arith.constant dense<0.000000e+00> : vector<256xf32>
      %45 = vector.multi_reduction <add>, %44, %cst_19 [1] : vector<256x256xf32> to vector<256xf32>
      %46 = vector.shape_cast %45 : vector<256xf32> to vector<256x1xf32>
      %47 = arith.addf %43, %46 : vector<256x1xf32>
      %c0_20 = arith.constant 0 : index
      %c0_21 = arith.constant 0 : index
      %c0_22 = arith.constant 0 : index
      %48 = vector.load %arg10[%c0_20, %c0_21, %c0_22] : memref<2x256x1xf32, #tpu.memory_space<vmem>>, vector<1x256x1xf32>
      %49 = vector.shape_cast %48 : vector<1x256x1xf32> to vector<256x1xf32>
      %50 = vector.shape_cast %47 : vector<256x1xf32> to vector<1x256x1xf32>
      tpu.vector_store %arg10[%c0_20, %c0_21, %c0_22], %50 {strides = array<i32>} : memref<2x256x1xf32, #tpu.memory_space<vmem>>, vector<1x256x1xf32>,
      %51 = arith.cmpf ogt, %32, %28 : vector<256x1xf32>
      %cst_23 = arith.constant 1.000000e+00 : f32
      %cst_24 = arith.constant 0.000000e+00 : f32
      %52 = vector.broadcast %cst_23 : f32 to vector<256x1xf32>
      %53 = vector.broadcast %cst_24 : f32 to vector<256x1xf32>
      %54 = arith.select %51, %52, %53 : vector<256x1xi1>, vector<256x1xf32>
      %55 = vector.shape_cast %54 : vector<256x1xf32> to vector<1x256x1xf32>
      %cst_25 = arith.constant dense<0xFF800000> : vector<1xf32>
      %56 = vector.multi_reduction <maximumf>, %55, %cst_25 [1, 2] : vector<1x256x1xf32> to vector<1xf32>
      %57 = vector.shape_cast %56 : vector<1xf32> to vector<1x1x1xf32>
      %58 = vector.extract %57[0, 0, 0] : f32 from vector<1x1x1xf32>
      %cst_26 = arith.constant 0.000000e+00 : f32
      %59 = arith.cmpf ogt, %58, %cst_26 : f32
      %60 = arith.extui %59 : i1 to i32
      %c0_i32_27 = arith.constant 0 : i32
      %61 = arith.cmpi ne, %60, %c0_i32_27 : i32
      scf.if %61 {
        %c0_65 = arith.constant 0 : index
        %c0_66 = arith.constant 0 : index
        %c0_67 = arith.constant 0 : index
        %125 = vector.load %arg9[%c0_65, %c0_66, %c0_67] : memref<2x256x128xf32, #tpu.memory_space<vmem>>, vector<1x256x128xf32>
        %126 = vector.shape_cast %125 : vector<1x256x128xf32> to vector<256x128xf32>
        %127 = vector.broadcast %40 : vector<256x1xf32> to vector<256x128xf32>
        %128 = arith.mulf %127, %126 : vector<256x128xf32>
        %c0_68 = arith.constant 0 : index
        %c0_69 = arith.constant 0 : index
        %c0_70 = arith.constant 0 : index
        %129 = vector.load %arg9[%c0_68, %c0_69, %c0_70] : memref<2x256x128xf32, #tpu.memory_space<vmem>>, vector<1x256x128xf32>
        %130 = vector.shape_cast %129 : vector<1x256x128xf32> to vector<256x128xf32>
        %131 = vector.shape_cast %128 : vector<256x128xf32> to vector<1x256x128xf32>
        tpu.vector_store %arg9[%c0_68, %c0_69, %c0_70], %131 {strides = array<i32>} : memref<2x256x128xf32, #tpu.memory_space<vmem>>, vector<1x256x128xf32>,
      } else {
      }
      %c0_28 = arith.constant 0 : index
      %c0_29 = arith.constant 0 : index
      %c0_30 = arith.constant 0 : index
      %62 = vector.load %arg9[%c0_28, %c0_29, %c0_30] : memref<2x256x128xf32, #tpu.memory_space<vmem>>, vector<1x256x128xf32>
      %63 = vector.shape_cast %62 : vector<1x256x128xf32> to vector<256x128xf32>
      %cst_31 = arith.constant dense<0.000000e+00> : vector<256x128xf32>
      %64 = tpu.matmul %38, %16, %cst_31 {dimension_numbers = #tpu.dot_dimension_numbers<[1], [0], [0], [1], [0, 0, 1, 1], [], []>} : vector<256x256xbf16>, vector<256x128xbf16>, vector<256x128xf32> -> vector<256x128xf32>
      %65 = arith.addf %63, %64 : vector<256x128xf32>
      %c0_32 = arith.constant 0 : index
      %c0_33 = arith.constant 0 : index
      %c0_34 = arith.constant 0 : index
      %66 = vector.load %arg9[%c0_32, %c0_33, %c0_34] : memref<2x256x128xf32, #tpu.memory_space<vmem>>, vector<1x256x128xf32>
      %67 = vector.shape_cast %66 : vector<1x256x128xf32> to vector<256x128xf32>
      %68 = vector.shape_cast %65 : vector<256x128xf32> to vector<1x256x128xf32>
      tpu.vector_store %arg9[%c0_32, %c0_33, %c0_34], %68 {strides = array<i32>} : memref<2x256x128xf32, #tpu.memory_space<vmem>>, vector<1x256x128xf32>,
      %c0_35 = arith.constant 0 : index
      %c0_36 = arith.constant 0 : index
      %c0_37 = arith.constant 0 : index
      %69 = vector.load %arg11[%c0_35, %c0_36, %c0_37] : memref<2x256x1xf32, #tpu.memory_space<vmem>>, vector<1x256x1xf32>
      %70 = vector.shape_cast %69 : vector<1x256x1xf32> to vector<256x1xf32>
      %71 = vector.shape_cast %32 : vector<256x1xf32> to vector<1x256x1xf32>
      tpu.vector_store %arg11[%c0_35, %c0_36, %c0_37], %71 {strides = array<i32>} : memref<2x256x1xf32, #tpu.memory_space<vmem>>, vector<1x256x1xf32>,
      %72 = vector.extract_strided_slice %17 {offsets = [0, 1], sizes = [256, 1], strides = [1, 1]} : vector<256x2xbf16> to vector<256x1xbf16>
      %73 = vector.extract_strided_slice %18 {offsets = [1, 0], sizes = [1, 256], strides = [1, 1]} : vector<2x256xbf16> to vector<1x256xbf16>
      %74 = vector.broadcast %72 : vector<256x1xbf16> to vector<256x256xbf16>
      %75 = vector.broadcast %73 : vector<1x256xbf16> to vector<256x256xbf16>
      %76 = arith.addf %74, %75 : vector<256x256xbf16>
      %cst_38 = arith.constant 2.001950e-01 : bf16
      %77 = vector.broadcast %cst_38 : bf16 to vector<256x256xbf16>
      %78 = arith.mulf %77, %76 : vector<256x256xbf16>
      %79 = arith.maximumf %76, %78 : vector<256x256xbf16>
      %c1 = arith.constant 1 : index
      %c0_39 = arith.constant 0 : index
      %c0_40 = arith.constant 0 : index
      %80 = vector.load %arg11[%c1, %c0_39, %c0_40] : memref<2x256x1xf32, #tpu.memory_space<vmem>>, vector<1x256x1xf32>
      %81 = vector.shape_cast %80 : vector<1x256x1xf32> to vector<256x1xf32>
      %cst_41 = arith.constant dense<0xFF80> : vector<256xbf16>
      %82 = vector.multi_reduction <maximumf>, %79, %cst_41 [1] : vector<256x256xbf16> to vector<256xbf16>
      %83 = vector.shape_cast %82 : vector<256xbf16> to vector<256x1xbf16>
      %84 = arith.extf %83 : vector<256x1xbf16> to vector<256x1xf32>
      %85 = arith.maximumf %81, %84 : vector<256x1xf32>
      %86 = arith.truncf %85 : vector<256x1xf32> to vector<256x1xbf16>
      %87 = vector.broadcast %86 : vector<256x1xbf16> to vector<256x256xbf16>
      %88 = arith.subf %79, %87 : vector<256x256xbf16>
      %89 = math.exp %88 : vector<256x256xbf16>
      %cst_42 = arith.constant 0.000000e+00 : bf16
      %90 = vector.broadcast %cst_42 : bf16 to vector<256x256xbf16>
      %91 = arith.select %15, %89, %90 : vector<256x256xi1>, vector<256x256xbf16>
      %92 = arith.subf %81, %85 : vector<256x1xf32>
      %93 = math.exp %92 : vector<256x1xf32>
      %c1_43 = arith.constant 1 : index
      %c0_44 = arith.constant 0 : index
      %c0_45 = arith.constant 0 : index
      %94 = vector.load %arg10[%c1_43, %c0_44, %c0_45] : memref<2x256x1xf32, #tpu.memory_space<vmem>>, vector<1x256x1xf32>
      %95 = vector.shape_cast %94 : vector<1x256x1xf32> to vector<256x1xf32>
      %96 = arith.mulf %93, %95 : vector<256x1xf32>
      %97 = arith.extf %91 : vector<256x256xbf16> to vector<256x256xf32>
      %cst_46 = arith.constant dense<0.000000e+00> : vector<256xf32>
      %98 = vector.multi_reduction <add>, %97, %cst_46 [1] : vector<256x256xf32> to vector<256xf32>
      %99 = vector.shape_cast %98 : vector<256xf32> to vector<256x1xf32>
      %100 = arith.addf %96, %99 : vector<256x1xf32>
      %c1_47 = arith.constant 1 : index
      %c0_48 = arith.constant 0 : index
      %c0_49 = arith.constant 0 : index
      %101 = vector.load %arg10[%c1_47, %c0_48, %c0_49] : memref<2x256x1xf32, #tpu.memory_space<vmem>>, vector<1x256x1xf32>
      %102 = vector.shape_cast %101 : vector<1x256x1xf32> to vector<256x1xf32>
      %103 = vector.shape_cast %100 : vector<256x1xf32> to vector<1x256x1xf32>
      tpu.vector_store %arg10[%c1_47, %c0_48, %c0_49], %103 {strides = array<i32>} : memref<2x256x1xf32, #tpu.memory_space<vmem>>, vector<1x256x1xf32>,
      %104 = arith.cmpf ogt, %85, %81 : vector<256x1xf32>
      %cst_50 = arith.constant 1.000000e+00 : f32
      %cst_51 = arith.constant 0.000000e+00 : f32
      %105 = vector.broadcast %cst_50 : f32 to vector<256x1xf32>
      %106 = vector.broadcast %cst_51 : f32 to vector<256x1xf32>
      %107 = arith.select %104, %105, %106 : vector<256x1xi1>, vector<256x1xf32>
      %108 = vector.shape_cast %107 : vector<256x1xf32> to vector<1x256x1xf32>
      %cst_52 = arith.constant dense<0xFF800000> : vector<1xf32>
      %109 = vector.multi_reduction <maximumf>, %108, %cst_52 [1, 2] : vector<1x256x1xf32> to vector<1xf32>
      %110 = vector.shape_cast %109 : vector<1xf32> to vector<1x1x1xf32>
      %111 = vector.extract %110[0, 0, 0] : f32 from vector<1x1x1xf32>
      %cst_53 = arith.constant 0.000000e+00 : f32
      %112 = arith.cmpf ogt, %111, %cst_53 : f32
      %113 = arith.extui %112 : i1 to i32
      %c0_i32_54 = arith.constant 0 : i32
      %114 = arith.cmpi ne, %113, %c0_i32_54 : i32
      scf.if %114 {
        %c1_65 = arith.constant 1 : index
        %c0_66 = arith.constant 0 : index
        %c0_67 = arith.constant 0 : index
        %125 = vector.load %arg9[%c1_65, %c0_66, %c0_67] : memref<2x256x128xf32, #tpu.memory_space<vmem>>, vector<1x256x128xf32>
        %126 = vector.shape_cast %125 : vector<1x256x128xf32> to vector<256x128xf32>
        %127 = vector.broadcast %93 : vector<256x1xf32> to vector<256x128xf32>
        %128 = arith.mulf %127, %126 : vector<256x128xf32>
        %c1_68 = arith.constant 1 : index
        %c0_69 = arith.constant 0 : index
        %c0_70 = arith.constant 0 : index
        %129 = vector.load %arg9[%c1_68, %c0_69, %c0_70] : memref<2x256x128xf32, #tpu.memory_space<vmem>>, vector<1x256x128xf32>
        %130 = vector.shape_cast %129 : vector<1x256x128xf32> to vector<256x128xf32>
        %131 = vector.shape_cast %128 : vector<256x128xf32> to vector<1x256x128xf32>
        tpu.vector_store %arg9[%c1_68, %c0_69, %c0_70], %131 {strides = array<i32>} : memref<2x256x128xf32, #tpu.memory_space<vmem>>, vector<1x256x128xf32>,
      } else {
      }
      %c1_55 = arith.constant 1 : index
      %c0_56 = arith.constant 0 : index
      %c0_57 = arith.constant 0 : index
      %115 = vector.load %arg9[%c1_55, %c0_56, %c0_57] : memref<2x256x128xf32, #tpu.memory_space<vmem>>, vector<1x256x128xf32>
      %116 = vector.shape_cast %115 : vector<1x256x128xf32> to vector<256x128xf32>
      %cst_58 = arith.constant dense<0.000000e+00> : vector<256x128xf32>
      %117 = tpu.matmul %91, %16, %cst_58 {dimension_numbers = #tpu.dot_dimension_numbers<[1], [0], [0], [1], [0, 0, 1, 1], [], []>} : vector<256x256xbf16>, vector<256x128xbf16>, vector<256x128xf32> -> vector<256x128xf32>
      %118 = arith.addf %116, %117 : vector<256x128xf32>
      %c1_59 = arith.constant 1 : index
      %c0_60 = arith.constant 0 : index
      %c0_61 = arith.constant 0 : index
      %119 = vector.load %arg9[%c1_59, %c0_60, %c0_61] : memref<2x256x128xf32, #tpu.memory_space<vmem>>, vector<1x256x128xf32>
      %120 = vector.shape_cast %119 : vector<1x256x128xf32> to vector<256x128xf32>
      %121 = vector.shape_cast %118 : vector<256x128xf32> to vector<1x256x128xf32>
      tpu.vector_store %arg9[%c1_59, %c0_60, %c0_61], %121 {strides = array<i32>} : memref<2x256x128xf32, #tpu.memory_space<vmem>>, vector<1x256x128xf32>,
      %c1_62 = arith.constant 1 : index
      %c0_63 = arith.constant 0 : index
      %c0_64 = arith.constant 0 : index
      %122 = vector.load %arg11[%c1_62, %c0_63, %c0_64] : memref<2x256x1xf32, #tpu.memory_space<vmem>>, vector<1x256x1xf32>
      %123 = vector.shape_cast %122 : vector<1x256x1xf32> to vector<256x1xf32>
      %124 = vector.shape_cast %85 : vector<256x1xf32> to vector<1x256x1xf32>
      tpu.vector_store %arg11[%c1_62, %c0_63, %c0_64], %124 {strides = array<i32>} : memref<2x256x1xf32, #tpu.memory_space<vmem>>, vector<1x256x1xf32>,
    } else {
    }
    %c1_i32 = arith.constant 1 : i32
    %10 = arith.cmpi eq, %arg1, %c1_i32 : i32
    %11 = arith.extui %10 : i1 to i32
    %c0_i32_3 = arith.constant 0 : i32
    %12 = arith.cmpi ne, %11, %c0_i32_3 : i32
    scf.if %12 {
      %cst = arith.constant 0.000000e+00 : f32
      %13 = vector.broadcast %cst : f32 to vector<256x128xf32>
      %c0 = arith.constant 0 : index
      %c0_4 = arith.constant 0 : index
      %c0_5 = arith.constant 0 : index
      %14 = vector.load %arg10[%c0, %c0_4, %c0_5] : memref<2x256x1xf32, #tpu.memory_space<vmem>>, vector<1x256x1xf32>
      %15 = vector.shape_cast %14 : vector<1x256x1xf32> to vector<256x1xf32>
      %c0_6 = arith.constant 0 : index
      %c0_7 = arith.constant 0 : index
      %c0_8 = arith.constant 0 : index
      %16 = vector.load %arg11[%c0_6, %c0_7, %c0_8] : memref<2x256x1xf32, #tpu.memory_space<vmem>>, vector<1x256x1xf32>
      %17 = vector.shape_cast %16 : vector<1x256x1xf32> to vector<256x1xf32>
      %cst_9 = arith.constant 0.000000e+00 : f32
      %18 = vector.broadcast %cst_9 : f32 to vector<256x1xf32>
      %19 = arith.subf %18, %17 : vector<256x1xf32>
      %20 = math.exp %19 : vector<256x1xf32>
      %cst_10 = arith.constant 1.000000e-10 : f32
      %21 = vector.broadcast %cst_10 : f32 to vector<256x1xf32>
      %22 = arith.mulf %21, %20 : vector<256x1xf32>
      %23 = arith.addf %15, %22 : vector<256x1xf32>
      %cst_11 = arith.constant 1.000000e-30 : f32
      %24 = vector.broadcast %cst_11 : f32 to vector<256x1xf32>
      %25 = arith.maximumf %23, %24 : vector<256x1xf32>
      %c0_12 = arith.constant 0 : index
      %c0_13 = arith.constant 0 : index
      %c0_14 = arith.constant 0 : index
      %26 = vector.load %arg9[%c0_12, %c0_13, %c0_14] : memref<2x256x128xf32, #tpu.memory_space<vmem>>, vector<1x256x128xf32>
      %27 = vector.shape_cast %26 : vector<1x256x128xf32> to vector<256x128xf32>
      %cst_15 = arith.constant 5.000000e-01 : f32
      %28 = vector.broadcast %cst_15 : f32 to vector<256x1xf32>
      %29 = arith.divf %28, %25 : vector<256x1xf32>
      %30 = vector.broadcast %29 : vector<256x1xf32> to vector<256x128xf32>
      %31 = arith.mulf %27, %30 : vector<256x128xf32>
      %32 = arith.addf %13, %31 : vector<256x128xf32>
      %c1 = arith.constant 1 : index
      %c0_16 = arith.constant 0 : index
      %c0_17 = arith.constant 0 : index
      %33 = vector.load %arg10[%c1, %c0_16, %c0_17] : memref<2x256x1xf32, #tpu.memory_space<vmem>>, vector<1x256x1xf32>
      %34 = vector.shape_cast %33 : vector<1x256x1xf32> to vector<256x1xf32>
      %c1_18 = arith.constant 1 : index
      %c0_19 = arith.constant 0 : index
      %c0_20 = arith.constant 0 : index
      %35 = vector.load %arg11[%c1_18, %c0_19, %c0_20] : memref<2x256x1xf32, #tpu.memory_space<vmem>>, vector<1x256x1xf32>
      %36 = vector.shape_cast %35 : vector<1x256x1xf32> to vector<256x1xf32>
      %cst_21 = arith.constant 0.000000e+00 : f32
      %37 = vector.broadcast %cst_21 : f32 to vector<256x1xf32>
      %38 = arith.subf %37, %36 : vector<256x1xf32>
      %39 = math.exp %38 : vector<256x1xf32>
      %cst_22 = arith.constant 1.000000e-10 : f32
      %40 = vector.broadcast %cst_22 : f32 to vector<256x1xf32>
      %41 = arith.mulf %40, %39 : vector<256x1xf32>
      %42 = arith.addf %34, %41 : vector<256x1xf32>
      %cst_23 = arith.constant 1.000000e-30 : f32
      %43 = vector.broadcast %cst_23 : f32 to vector<256x1xf32>
      %44 = arith.maximumf %42, %43 : vector<256x1xf32>
      %c1_24 = arith.constant 1 : index
      %c0_25 = arith.constant 0 : index
      %c0_26 = arith.constant 0 : index
      %45 = vector.load %arg9[%c1_24, %c0_25, %c0_26] : memref<2x256x128xf32, #tpu.memory_space<vmem>>, vector<1x256x128xf32>
      %46 = vector.shape_cast %45 : vector<1x256x128xf32> to vector<256x128xf32>
      %cst_27 = arith.constant 5.000000e-01 : f32
      %47 = vector.broadcast %cst_27 : f32 to vector<256x1xf32>
      %48 = arith.divf %47, %44 : vector<256x1xf32>
      %49 = vector.broadcast %48 : vector<256x1xf32> to vector<256x128xf32>
      %50 = arith.mulf %46, %49 : vector<256x128xf32>
      %51 = arith.addf %32, %50 : vector<256x128xf32>
      %c0_28 = arith.constant 0 : index
      %c0_29 = arith.constant 0 : index
      %52 = vector.load %arg8[%c0_28, %c0_29] : memref<256x128xf32, #tpu.memory_space<vmem>>, vector<256x128xf32>
      tpu.vector_store %arg8[%c0_28, %c0_29], %51 {strides = array<i32>} : memref<256x128xf32, #tpu.memory_space<vmem>>, vector<256x128xf32>,
    } else {
    }
    return
  }
  func.func @transform_0(%arg0: i32, %arg1: i32, %arg2: memref<4xi32, #tpu.memory_space<smem>>, %arg3: memref<4xi32, #tpu.memory_space<smem>>) -> (i32, i32) {
    %c0_i32 = arith.constant 0 : i32
    %c0_i32_0 = arith.constant 0 : i32
    return %arg0, %c0_i32 : i32, i32
  }
  func.func @transform_1(%arg0: i32, %arg1: i32, %arg2: memref<4xi32, #tpu.memory_space<smem>>, %arg3: memref<4xi32, #tpu.memory_space<smem>>) -> (i32, i32) {
    %c0_i32 = arith.constant 0 : i32
    %c0_i32_0 = arith.constant 0 : i32
    return %c0_i32, %arg1 : i32, i32
  }
  func.func @transform_2(%arg0: i32, %arg1: i32, %arg2: memref<4xi32, #tpu.memory_space<smem>>, %arg3: memref<4xi32, #tpu.memory_space<smem>>) -> (i32, i32) {
    %c2_i32 = arith.constant 2 : i32
    %0 = arith.muli %arg0, %c2_i32 : i32
    %1 = arith.addi %0, %arg1 : i32
    %2 = arith.index_cast %1 : i32 to index
    %3 = memref.load %arg3[%2] : memref<4xi32, #tpu.memory_space<smem>>
    %c0_i32 = arith.constant 0 : i32
    return %arg0, %3 : i32, i32
  }
  func.func @transform_3(%arg0: i32, %arg1: i32, %arg2: memref<4xi32, #tpu.memory_space<smem>>, %arg3: memref<4xi32, #tpu.memory_space<smem>>) -> (i32, i32) {
    %c2_i32 = arith.constant 2 : i32
    %0 = arith.muli %arg0, %c2_i32 : i32
    %1 = arith.addi %0, %arg1 : i32
    %2 = arith.index_cast %1 : i32 to index
    %3 = memref.load %arg3[%2] : memref<4xi32, #tpu.memory_space<smem>>
    %c0_i32 = arith.constant 0 : i32
    %c0_i32_0 = arith.constant 0 : i32
    return %3, %c0_i32 : i32, i32
  }
  func.func @transform_4(%arg0: i32, %arg1: i32, %arg2: memref<4xi32, #tpu.memory_space<smem>>, %arg3: memref<4xi32, #tpu.memory_space<smem>>) -> (i32, i32) {
    %c0_i32 = arith.constant 0 : i32
    %c0_i32_0 = arith.constant 0 : i32
    return %arg0, %c0_i32 : i32, i32
  }
}

</mosaic_0001>

<bundles_post_ra>
// kernel: graph_multihead_att.1
= control target key start
LH: loop header
LB: loop body
LE: loop exit
PB: predicated region body
PF: predicated region fallthrough
CT: control target
= control target key end

     0   :  { %s12822_s0 = inlined_call_operand.vmem [shape: s32[4], index: 0, kind: input, shape index: {}]   ;;  %s12823_s2 = inlined_call_operand.vmem [shape: bf16[512,2], index: 2, kind: input, shape index: {}]   ;;  %s12824_s3 = inlined_call_operand.vmem [shape: bf16[2,512], index: 3, kind: input, shape index: {}]   ;;  %s12825_s4 = inlined_call_operand.vmem [shape: s8[512,512], index: 4, kind: input, shape index: {}]   ;;  %s12826_s5 = inlined_call_operand.vmem [shape: bf16[512,128], index: 5, kind: input, shape index: {}]   ;;  %s12827_s6 = inlined_call_operand.hbm [shape: f32[512,128], index: 6, kind: output, shape index: {}]   ;;  %s12828_s1 = inlined_call_operand.vmem [shape: s32[4], index: 1, kind: input, shape index: {}]  }
   0x1   :  { %13163 = sst [smem:[#allocation200_spill]] %s12825_s4  ;;  %s11_s23 = sshll.u32 %s12822_s0, 4  ;;  %s12_s23 = int_to_ptr.vmem [resolvable:$true] %s11_s23 }
   0x2   :  { %s15_s26 = sshll.u32 %s12828_s1, 4  ;;  %s8552_s27 = scalar_lea.vmem %s12_s23, 16  ;;  %s16_s26 = int_to_ptr.vmem [resolvable:$true] %s15_s26 }
   0x3   :  { %p8553_p0 = scmp.ne.s32.totalorder %s12_s23, %s8552_s27  ;;  %p8557_p1 = scmp.lt.s32.totalorder %s12_s23, %s12_s23 }
   0x4   :  { %p8558_p2 = scmp.lt.s32.totalorder %s8552_s27, %s8552_s27 }
   0x6   :  { %p8559_p3 = por %p8558_p2, %p8557_p1 }
   0x8   :  { %p8560_p4 = pnand %p8559_p3, %p8553_p0 }
   0xa   :  { %8563 = shalt.err (!%p8560_p4)  }
   0xb   :  { %s8688_s28 = smov [#allocation6]   ;;  %s8564_s29 = scalar_lea.vmem %s16_s26, 16 }
   0xc   :  { %14 = dma.vmem_to_smem %s12_s23, 16, %s8688_s28, [#allocation5] }
   0xd   :  { %p8565_p5 = scmp.ne.s32.totalorder %s16_s26, %s8564_s29  ;;  %p8569_p6 = scmp.lt.s32.totalorder %s16_s26, %s16_s26 }
   0xe   :  { %p8570_p7 = scmp.lt.s32.totalorder %s8564_s29, %s8564_s29 }
  0x10   :  { %p8571_p8 = por %p8570_p7, %p8569_p6 }
  0x12   :  { %p8572_p9 = pnand %p8571_p8, %p8565_p5 }
  0x14   :  { %8575 = shalt.err (!%p8572_p9)  }
  0x15   :  { %s8689_s0 = smov [#allocation7]  }
  0x16   :  { %18 = dma.vmem_to_smem %s16_s26, 16, %s8689_s0, [#allocation5] }
  0x17   :  { %8642 = dma.done.wait [#allocation5], 32 }
  0x18   :  { %8643 = vsyncadd [#allocation5], 4294967264 }
  0x19   :  { %20 = sfence }
  0x1a   :  { %21 = vsyncpa [#allocation10], 0 }
  0x1b   :  { %23 = vsyncpa [#allocation10 + $0x1], 0  ;;  %s8744_s1 = smov 0   ;;  %s8746_s30 = smov 0  }
  0x1c   :  { %s8748_s7 = smov 0   ;;  %s8750_s8 = smov 0  }
  0x1d   :  { %s8752_s9 = smov 0   ;;  %s8754_s10 = smov 0  }
  0x1e   :  { %s8756_s11 = smov 0   ;;  %s8758_s12 = smov 0  }
  0x1f   :  { %s8760_s13 = smov 0   ;;  %s8762_s14 = smov 0  }
  0x20 LB: > { %13164 = sst [smem:[#allocation13_spill]] %s8678_s12  ;;  %s7518_s15 = sadd.s32 4294967295, %s8686_s14   ;;  %s8686_s14 = sphi %s8762_s14, %s29_s14   ;;  %s8682_s13 = sphi %s8760_s13, %s13950_s13   ;;  %s8678_s12 = sphi %s8758_s12, %s13949_s12   ;;  %s8674_s11 = sphi %s8756_s11, %s13948_s11   ;;  %s8670_s10 = sphi %s8754_s10, %s13947_s10   ;;  %s8666_s9 = sphi %s8752_s9, %s13955_s9   ;;  %s8662_s8 = sphi %s8750_s8, %s13954_s8   ;;  %s8658_s7 = sphi %s8748_s7, %s13953_s7   ;;  %s8654_s30 = sphi %s8746_s30, %s13952_s30   ;;  %s8650_s1 = sphi %s8744_s1, %s13951_s1  }
  0x21   : > { %13165 = sst [smem:[#allocation14_spill]] %s8682_s13  ;;  %s38_s16 = sadd.s32 1, %s8678_s12 }
  0x22   : > { %s41_s17 = sadd.s32 1, %s8682_s13  ;;  %p39_p10 = scmp.ge.s32.totalorder %s38_s16, 2 }
  0x23   : > { %s7520_s18 = sshll.u32 %s8682_s13, 1  ;;  %s7519_s19 = sadd.s32 4294967294, %s8686_s14  }
  0x24   : > { %s98_s20 = sadd.s32 %s8678_s12, %s7520_s18  ;;  %s13957_s16 = smov (%p39_p10, %s38_s16), 0 }
  0x25   : > { %13166 = sst [smem:[#allocation15_spill]] %s13957_s16  ;;  %s13959_s17 = smov (!%p39_p10, %s41_s17), %s8682_s13 }
  0x26   : > { %s99_s21 = sld [smem:[#allocation7 + %s98_s20]]  ;;  %p115_p11 = scmp.ne.s32.totalorder %s8666_s9, %s8662_s8 }
  0x27   : > { %p43_p12 = scmp.ge.s32.totalorder %s13959_s17, 2  ;;  %p116_p13 = scmp.eq.s32.totalorder %s8686_s14, 0 }
  0x28   : > { %s166_s22 = sadd.s32 1, %s8658_s7  ;;  %p176_p0 = scmp.ne.s32.totalorder %s8658_s7, %s8654_s30 }
  0x29   : > { %s13961_s17 = smov (%p43_p12, %s13959_s17), 0  ;;  %p8811_p1 = por %p116_p13, %p115_p11 }
  0x2a   : > { %13167 = sst [smem:[#allocation16_spill]] %s13961_s17  ;;  %p177_p2 = scmp.eq.s32.totalorder %s7518_s15, 3 }
  0x2b   : > { %s7521_s24 = sshll.u32 %s13961_s17, 1  ;;  %s103_s25 = ssub.s32 %s8682_s13, %s13961_s17 }
  0x2c   : > { %s101_s26 = sadd.s32 %s7521_s24, %s13957_s16  ;;  %p164_p3 = scmp.eq.s32.totalorder %s103_s25, 0 }
  0x2d   : > { %s102_s27 = sld [smem:[#allocation7 + %s101_s26]]  ;;  %p8819_p4 = por %p177_p2, %p176_p0 }
  0x2e   : > { %s8824_s29 = scalar_select %p164_p3, %s8658_s7, %s166_s22  }
  0x2f   : > { %p182_p5 = scmp.ne.s32.totalorder %s8654_s30, %s8650_s1  ;;  %p183_p6 = scmp.eq.s32.totalorder %s7519_s19, 3 }
  0x30   : > { %13170 = sst [smem:[#allocation17_spill]] %s8824_s29  ;;  %s108_s15 = sadd.s32 1, %s8666_s9 }
  0x31   : > { %p8828_p7 = por %p183_p6, %p182_p5  ;;  %p7525_p9 = scmp.ge.s32.totalorder %s8686_s14, 4 }
  0x33   : > { %s104_s18 = ssub.s32 %s99_s21, %s102_s27 }
  0x34   : > { %s105_s12 = sor.u32 %s104_s18, %s103_s25 }
  0x35   : > { %p106_p8 = scmp.eq.s32.totalorder %s105_s12, 0  ;;  %199 = sbr.rel (%p7525_p9) target bundleno = 77 (0x4d), region = 16 }
  0x37   : > { %s8834_s17 = scalar_select %p106_p8, %s8666_s9, %s108_s15  }
  0x39   : > { %13172 = sst [smem:[#allocation18_spill]] %s8834_s17 }
  0x3a   : > { %219 = sbr.rel (!%p8811_p1) target bundleno = 77 (0x4d), region = 28  ;;  %s226_s22 = sld [smem:[#allocation7 + %s98_s20]] (%p8811_p1) }
  0x3b   : > { %s221_s19 = sand.u32 (%p8811_p1), 1, %s8666_s9   ;;  %s7697_s24 = sshll.u32 (%p8811_p1), %s8682_s13, 5 }
  0x3c   : > { %s7526_s26 = sshll.u32 (%p8811_p1), %s221_s19, 7  ;;  %s13173_s4 = sld [smem:[#allocation200_spill]] (%p8811_p1) }
  0x3d   : > { %s223_s20 = scalar_lea.vmem (%p8811_p1), [#allocation8], %s7526_s26 }
  0x40   : > { %s7529_s16 = sshll.u32 %s226_s22, 1 }
  0x41   : > { %s230_s29 = sadd.s32 %s7697_s24, %s7529_s16 }
  0x42   : > { %s7531_s21 = sshll.u32 %s230_s29, 3 }
  0x43   : > { %s8844_s12 = scalar_lea.vmem %s13173_s4, %s7531_s21 }
  0x44   : > { %v245_v0 = vld [vmem:[%s8844_s12] sm:$0xff]  ;;  %v247_v1 = vld [vmem:[%s8844_s12 + $0x8] sm:$0xff] }
  0x45   : > { %v249_v2 = vld [vmem:[%s8844_s12 + $0x20] sm:$0xff]  ;;  %246 = vst [vmem:[%s223_s20] sm:$0xff] %v245_v0  ;;  %248 = vst [vmem:[%s223_s20 + $0x8] sm:$0xff] %v247_v1  ;;  %v251_v3 = vld [vmem:[%s8844_s12 + $0x28] sm:$0xff] }
  0x46   : > { %250 = vst [vmem:[%s223_s20 + $0x10] sm:$0xff] %v249_v2  ;;  %v253_v4 = vld [vmem:[%s8844_s12 + $0x40] sm:$0xff]  ;;  %v255_v5 = vld [vmem:[%s8844_s12 + $0x48] sm:$0xff]  ;;  %252 = vst [vmem:[%s223_s20 + $0x18] sm:$0xff] %v251_v3 }
  0x47   : > { %254 = vst [vmem:[%s223_s20 + $0x20] sm:$0xff] %v253_v4  ;;  %256 = vst [vmem:[%s223_s20 + $0x28] sm:$0xff] %v255_v5  ;;  %v257_v6 = vld [vmem:[%s8844_s12 + $0x60] sm:$0xff]  ;;  %v259_v7 = vld [vmem:[%s8844_s12 + $0x68] sm:$0xff] }
  0x48   : > { %v261_v8 = vld [vmem:[%s8844_s12 + $0x80] sm:$0xff]  ;;  %258 = vst [vmem:[%s223_s20 + $0x30] sm:$0xff] %v257_v6  ;;  %260 = vst [vmem:[%s223_s20 + $0x38] sm:$0xff] %v259_v7  ;;  %v263_v9 = vld [vmem:[%s8844_s12 + $0x88] sm:$0xff] }
  0x49   : > { %262 = vst [vmem:[%s223_s20 + $0x40] sm:$0xff] %v261_v8  ;;  %v265_v10 = vld [vmem:[%s8844_s12 + $0xa0] sm:$0xff]  ;;  %v267_v11 = vld [vmem:[%s8844_s12 + $0xa8] sm:$0xff]  ;;  %264 = vst [vmem:[%s223_s20 + $0x48] sm:$0xff] %v263_v9 }
  0x4a   : > { %266 = vst [vmem:[%s223_s20 + $0x50] sm:$0xff] %v265_v10  ;;  %268 = vst [vmem:[%s223_s20 + $0x58] sm:$0xff] %v267_v11  ;;  %v269_v12 = vld [vmem:[%s8844_s12 + $0xc0] sm:$0xff]  ;;  %v271_v13 = vld [vmem:[%s8844_s12 + $0xc8] sm:$0xff] }
  0x4b   : > { %v273_v14 = vld [vmem:[%s8844_s12 + $0xe0] sm:$0xff]  ;;  %270 = vst [vmem:[%s223_s20 + $0x60] sm:$0xff] %v269_v12  ;;  %272 = vst [vmem:[%s223_s20 + $0x68] sm:$0xff] %v271_v13  ;;  %v275_v15 = vld [vmem:[%s8844_s12 + $0xe8] sm:$0xff] }
  0x4c   : > { %274 = vst [vmem:[%s223_s20 + $0x70] sm:$0xff] %v273_v14  ;;  %276 = vst [vmem:[%s223_s20 + $0x78] sm:$0xff] %v275_v15 }
  0x4d PF: > { %p7532_p10 = scmp.ge.s32.totalorder %s8686_s14, 1  ;;  %p296_p11 = scmp.lt.s32.totalorder %s8686_s14, 5 }
  0x4f   : > { %p297_p12 = pnand %p7532_p10, %p296_p11 }
  0x50   : > { %s303_s16 = sand.u32 (!%p297_p12), 1, %s8662_s8   ;;  %s12832_s23 = sand.u32 (!%p297_p12), 1, %s8654_s30  }
  0x51   : > { %300 = sbr.rel (%p297_p12) target bundleno = 2592 (0xa20), region = 55  ;;  %s7533_s29 = sshll.u32 (!%p297_p12), %s303_s16, 7 }
  0x52   : > { %s7534_s18 = sshll.u32 (!%p297_p12), %s12832_s23, 8  ;;  %s7535_s15 = sshll.u32 (!%p297_p12), %s8674_s11, 5 }
  0x53   : > { %s7537_s22 = sshll.u32 (!%p297_p12), %s8670_s10, 1  ;;  %p346_p13 = scmp.lt.s32.totalorder (!%p297_p12), %s7535_s15, 63 }
  0x54   : > { %p352_p0 = scmp.lt.s32.totalorder (!%p297_p12), %s7537_s22, 3  ;;  %s7538_s19 = sshll.u32 (!%p297_p12), %s8674_s11, 1 }
  0x55   : > { %s8874_s26 = sadd.s32 (!%p297_p12), %s8670_s10, %s7538_s19  ;;  %s8891_s19 = scalar_lea.vmem (!%p297_p12), [#allocation8], %s7533_s29 }
  0x56   : > { %s13963_s15 = smov (!%p346_p13, %s7535_s15), 63  ;;  %s13965_s22 = smov (!%p352_p0, %s7537_s22), 3 }
  0x57   : > { %s7536_s24 = sshll.u32 %s13963_s15, 2  ;;  %s354_s20 = scalar_lea.vmem %s12824_s3, %s13965_s22 }
  0x58   : > { %s8879_s8 = scalar_lea.vmem %s12823_s2, %s7536_s24  ;;  %s363_s16 = sld [smem:[#allocation7 + %s8874_s26]] }
  0x59   : > { %s8893_s21 = scalar_lea.vmem [#allocation9], %s7534_s18  ;;  %p7541_p2 = scmp.ne.s32.totalorder %s8670_s10, 0 }
  0x5e   : > { %s7539_s23 = sshll.u32 %s363_s16, 5 }
  0x5f   : > { %p365_p1 = scmp.lt.s32.totalorder %s7539_s23, 63  ;;  %382 = sbr.rel (%p7541_p2) target bundleno = 197 (0xc5), region = 63 }
  0x61   : > { %s13967_s23 = smov (!%p365_p1, %s7539_s23), 63 }
  0x62   : > { %s7540_s4 = sshll.u32 %s13967_s23, 2 }
  0x63   : > { %s8889_s15 = scalar_lea.vmem %s12826_s5, %s7540_s4 }
  0x64   : > { %vm447_vm0 = vcmask 7168   ;;  %v8690_v16 = vmov 0.0  }
  0x65   : > { %383 = vst [vmem:[#allocation2 + $0xb0] sm:$0xff] %v8690_v16  ;;  %384 = vst [vmem:[#allocation2 + $0x1b0] sm:$0xff] %v8690_v16 }
  0x66   : > { %385 = vst [vmem:[#allocation2 + $0xd8] sm:$0xff] %v8690_v16  ;;  %386 = vst [vmem:[#allocation2 + $0x18] sm:$0xff] %v8690_v16 }
  0x67   : > { %387 = vst [vmem:[#allocation2 + $0x50] sm:$0xff] %v8690_v16  ;;  %388 = vst [vmem:[#allocation2 + $0x168] sm:$0xff] %v8690_v16 }
  0x68   : > { %389 = vst [vmem:[#allocation2 + $0x130] sm:$0xff] %v8690_v16  ;;  %390 = vst [vmem:[#allocation2 + $0x48] sm:$0xff] %v8690_v16 }
  0x69   : > { %391 = vst [vmem:[#allocation2 + $0x180] sm:$0xff] %v8690_v16  ;;  %392 = vst [vmem:[#allocation2 + $0x110] sm:$0xff] %v8690_v16 }
  0x6a   : > { %393 = vst [vmem:[#allocation2 + $0x118] sm:$0xff] %v8690_v16  ;;  %394 = vst [vmem:[#allocation2 + $0x98] sm:$0xff] %v8690_v16 }
  0x6b   : > { %395 = vst [vmem:[#allocation2 + $0x120] sm:$0xff] %v8690_v16  ;;  %396 = vst [vmem:[#allocation2 + $0x150] sm:$0xff] %v8690_v16 }
  0x6c   : > { %397 = vst [vmem:[#allocation2 + $0x108] sm:$0xff] %v8690_v16  ;;  %398 = vst [vmem:[#allocation2 + $0x60] sm:$0xff] %v8690_v16 }
  0x6d   : > { %399 = vst [vmem:[#allocation2 + $0xe0] sm:$0xff] %v8690_v16  ;;  %400 = vst [vmem:[#allocation2 + $0x188] sm:$0xff] %v8690_v16 }
  0x6e   : > { %401 = vst [vmem:[#allocation2 + $0x138] sm:$0xff] %v8690_v16  ;;  %402 = vst [vmem:[#allocation2 + $0x140] sm:$0xff] %v8690_v16 }
  0x6f   : > { %403 = vst [vmem:[#allocation2 + $0x80] sm:$0xff] %v8690_v16  ;;  %404 = vst [vmem:[#allocation2 + $0x1a8] sm:$0xff] %v8690_v16 }
  0x70   : > { %405 = vst [vmem:[#allocation2 + $0x1b8] sm:$0xff] %v8690_v16  ;;  %406 = vst [vmem:[#allocation2 + $0x28] sm:$0xff] %v8690_v16 }
  0x71   : > { %407 = vst [vmem:[#allocation2 + $0x1e8] sm:$0xff] %v8690_v16  ;;  %408 = vst [vmem:[#allocation2 + $0xf8] sm:$0xff] %v8690_v16 }
  0x72   : > { %409 = vst [vmem:[#allocation2 + $0x160] sm:$0xff] %v8690_v16  ;;  %410 = vst [vmem:[#allocation2 + $0x30] sm:$0xff] %v8690_v16 }
  0x73   : > { %411 = vst [vmem:[#allocation2 + $0x1e0] sm:$0xff] %v8690_v16  ;;  %412 = vst [vmem:[#allocation2] sm:$0xff] %v8690_v16 }
  0x74   : > { %413 = vst [vmem:[#allocation2 + $0xf0] sm:$0xff] %v8690_v16  ;;  %414 = vst [vmem:[#allocation2 + $0x8] sm:$0xff] %v8690_v16 }
  0x75   : > { %415 = vst [vmem:[#allocation2 + $0x148] sm:$0xff] %v8690_v16  ;;  %416 = vst [vmem:[#allocation2 + $0x1d0] sm:$0xff] %v8690_v16 }
  0x76   : > { %417 = vst [vmem:[#allocation2 + $0x100] sm:$0xff] %v8690_v16  ;;  %418 = vst [vmem:[#allocation2 + $0xc8] sm:$0xff] %v8690_v16 }
  0x77   : > { %419 = vst [vmem:[#allocation2 + $0x40] sm:$0xff] %v8690_v16  ;;  %420 = vst [vmem:[#allocation2 + $0x1f8] sm:$0xff] %v8690_v16 }
  0x78   : > { %421 = vst [vmem:[#allocation2 + $0x20] sm:$0xff] %v8690_v16  ;;  %422 = vst [vmem:[#allocation2 + $0x128] sm:$0xff] %v8690_v16 }
  0x79   : > { %423 = vst [vmem:[#allocation2 + $0x1a0] sm:$0xff] %v8690_v16  ;;  %424 = vst [vmem:[#allocation2 + $0x1f0] sm:$0xff] %v8690_v16 }
  0x7a   : > { %425 = vst [vmem:[#allocation2 + $0xe8] sm:$0xff] %v8690_v16  ;;  %426 = vst [vmem:[#allocation2 + $0x78] sm:$0xff] %v8690_v16 }
  0x7b   : > { %427 = vst [vmem:[#allocation2 + $0x70] sm:$0xff] %v8690_v16  ;;  %428 = vst [vmem:[#allocation2 + $0x90] sm:$0xff] %v8690_v16 }
  0x7c   : > { %429 = vst [vmem:[#allocation2 + $0x1d8] sm:$0xff] %v8690_v16  ;;  %430 = vst [vmem:[#allocation2 + $0xd0] sm:$0xff] %v8690_v16 }
  0x7d   : > { %431 = vst [vmem:[#allocation2 + $0xb8] sm:$0xff] %v8690_v16  ;;  %432 = vst [vmem:[#allocation2 + $0x88] sm:$0xff] %v8690_v16 }
  0x7e   : > { %433 = vst [vmem:[#allocation2 + $0xa8] sm:$0xff] %v8690_v16  ;;  %434 = vst [vmem:[#allocation2 + $0x1c8] sm:$0xff] %v8690_v16 }
  0x7f   : > { %435 = vst [vmem:[#allocation2 + $0x170] sm:$0xff] %v8690_v16  ;;  %436 = vst [vmem:[#allocation2 + $0x178] sm:$0xff] %v8690_v16 }
  0x80   : > { %437 = vst [vmem:[#allocation2 + $0x68] sm:$0xff] %v8690_v16  ;;  %438 = vst [vmem:[#allocation2 + $0x190] sm:$0xff] %v8690_v16 }
  0x81   : > { %439 = vst [vmem:[#allocation2 + $0x198] sm:$0xff] %v8690_v16  ;;  %440 = vst [vmem:[#allocation2 + $0x38] sm:$0xff] %v8690_v16 }
  0x82   : > { %441 = vst [vmem:[#allocation2 + $0xc0] sm:$0xff] %v8690_v16  ;;  %442 = vst [vmem:[#allocation2 + $0x1c0] sm:$0xff] %v8690_v16 }
  0x83   : > { %443 = vst [vmem:[#allocation2 + $0x158] sm:$0xff] %v8690_v16  ;;  %444 = vst [vmem:[#allocation2 + $0x10] sm:$0xff] %v8690_v16 }
  0x84   : > { %445 = vst [vmem:[#allocation2 + $0x58] sm:$0xff] %v8690_v16  ;;  %446 = vst [vmem:[#allocation2 + $0xa0] sm:$0xff] %v8690_v16 }
  0x85   : > { %448 = vst.msk [vmem:[#allocation3] sm:$0xff] %vm447_vm0, %v8690_v16  ;;  %449 = vst.msk [vmem:[#allocation3 + $0x8] sm:$0xff] %vm447_vm0, %v8690_v16 }
  0x86   : > { %450 = vst.msk [vmem:[#allocation3 + $0x10] sm:$0xff] %vm447_vm0, %v8690_v16  ;;  %451 = vst.msk [vmem:[#allocation3 + $0x18] sm:$0xff] %vm447_vm0, %v8690_v16 }
  0x87   : > { %452 = vst.msk [vmem:[#allocation3 + $0x20] sm:$0xff] %vm447_vm0, %v8690_v16  ;;  %453 = vst.msk [vmem:[#allocation3 + $0x28] sm:$0xff] %vm447_vm0, %v8690_v16 }
  0x88   : > { %454 = vst.msk [vmem:[#allocation3 + $0x30] sm:$0xff] %vm447_vm0, %v8690_v16  ;;  %455 = vst.msk [vmem:[#allocation3 + $0x38] sm:$0xff] %vm447_vm0, %v8690_v16 }
  0x89   : > { %456 = vst.msk [vmem:[#allocation3 + $0x40] sm:$0xff] %vm447_vm0, %v8690_v16  ;;  %457 = vst.msk [vmem:[#allocation3 + $0x48] sm:$0xff] %vm447_vm0, %v8690_v16 }
  0x8a   : > { %458 = vst.msk [vmem:[#allocation3 + $0x50] sm:$0xff] %vm447_vm0, %v8690_v16  ;;  %459 = vst.msk [vmem:[#allocation3 + $0x58] sm:$0xff] %vm447_vm0, %v8690_v16 }
  0x8b   : > { %460 = vst.msk [vmem:[#allocation3 + $0x60] sm:$0xff] %vm447_vm0, %v8690_v16  ;;  %461 = vst.msk [vmem:[#allocation3 + $0x68] sm:$0xff] %vm447_vm0, %v8690_v16 }
  0x8c   : > { %462 = vst.msk [vmem:[#allocation3 + $0x70] sm:$0xff] %vm447_vm0, %v8690_v16  ;;  %463 = vst.msk [vmem:[#allocation3 + $0x78] sm:$0xff] %vm447_vm0, %v8690_v16 }
  0x8d   : > { %464 = vst.msk [vmem:[#allocation3 + $0x80] sm:$0xff] %vm447_vm0, %v8690_v16  ;;  %465 = vst.msk [vmem:[#allocation3 + $0x88] sm:$0xff] %vm447_vm0, %v8690_v16 }
  0x8e   : > { %466 = vst.msk [vmem:[#allocation3 + $0x90] sm:$0xff] %vm447_vm0, %v8690_v16  ;;  %467 = vst.msk [vmem:[#allocation3 + $0x98] sm:$0xff] %vm447_vm0, %v8690_v16 }
  0x8f   : > { %468 = vst.msk [vmem:[#allocation3 + $0xa0] sm:$0xff] %vm447_vm0, %v8690_v16  ;;  %469 = vst.msk [vmem:[#allocation3 + $0xa8] sm:$0xff] %vm447_vm0, %v8690_v16 }
  0x90   : > { %470 = vst.msk [vmem:[#allocation3 + $0xb0] sm:$0xff] %vm447_vm0, %v8690_v16  ;;  %471 = vst.msk [vmem:[#allocation3 + $0xb8] sm:$0xff] %vm447_vm0, %v8690_v16 }
  0x91   : > { %472 = vst.msk [vmem:[#allocation3 + $0xc0] sm:$0xff] %vm447_vm0, %v8690_v16  ;;  %473 = vst.msk [vmem:[#allocation3 + $0xc8] sm:$0xff] %vm447_vm0, %v8690_v16 }
  0x92   : > { %474 = vst.msk [vmem:[#allocation3 + $0xd0] sm:$0xff] %vm447_vm0, %v8690_v16  ;;  %475 = vst.msk [vmem:[#allocation3 + $0xd8] sm:$0xff] %vm447_vm0, %v8690_v16 }
  0x93   : > { %476 = vst.msk [vmem:[#allocation3 + $0xe0] sm:$0xff] %vm447_vm0, %v8690_v16  ;;  %477 = vst.msk [vmem:[#allocation3 + $0xe8] sm:$0xff] %vm447_vm0, %v8690_v16 }
  0x94   : > { %478 = vst.msk [vmem:[#allocation3 + $0xf0] sm:$0xff] %vm447_vm0, %v8690_v16  ;;  %479 = vst.msk [vmem:[#allocation3 + $0xf8] sm:$0xff] %vm447_vm0, %v8690_v16 }
  0x95   : > { %480 = vst.msk [vmem:[#allocation3 + $0x100] sm:$0xff] %vm447_vm0, %v8690_v16  ;;  %481 = vst.msk [vmem:[#allocation3 + $0x108] sm:$0xff] %vm447_vm0, %v8690_v16 }
  0x96   : > { %482 = vst.msk [vmem:[#allocation3 + $0x110] sm:$0xff] %vm447_vm0, %v8690_v16  ;;  %483 = vst.msk [vmem:[#allocation3 + $0x118] sm:$0xff] %vm447_vm0, %v8690_v16 }
  0x97   : > { %484 = vst.msk [vmem:[#allocation3 + $0x120] sm:$0xff] %vm447_vm0, %v8690_v16  ;;  %485 = vst.msk [vmem:[#allocation3 + $0x128] sm:$0xff] %vm447_vm0, %v8690_v16 }
  0x98   : > { %486 = vst.msk [vmem:[#allocation3 + $0x130] sm:$0xff] %vm447_vm0, %v8690_v16  ;;  %487 = vst.msk [vmem:[#allocation3 + $0x138] sm:$0xff] %vm447_vm0, %v8690_v16 }
  0x99   : > { %488 = vst.msk [vmem:[#allocation3 + $0x140] sm:$0xff] %vm447_vm0, %v8690_v16  ;;  %489 = vst.msk [vmem:[#allocation3 + $0x148] sm:$0xff] %vm447_vm0, %v8690_v16 }
  0x9a   : > { %490 = vst.msk [vmem:[#allocation3 + $0x150] sm:$0xff] %vm447_vm0, %v8690_v16  ;;  %491 = vst.msk [vmem:[#allocation3 + $0x158] sm:$0xff] %vm447_vm0, %v8690_v16 }
  0x9b   : > { %492 = vst.msk [vmem:[#allocation3 + $0x160] sm:$0xff] %vm447_vm0, %v8690_v16  ;;  %493 = vst.msk [vmem:[#allocation3 + $0x168] sm:$0xff] %vm447_vm0, %v8690_v16 }
  0x9c   : > { %494 = vst.msk [vmem:[#allocation3 + $0x170] sm:$0xff] %vm447_vm0, %v8690_v16  ;;  %495 = vst.msk [vmem:[#allocation3 + $0x178] sm:$0xff] %vm447_vm0, %v8690_v16 }
  0x9d   : > { %496 = vst.msk [vmem:[#allocation3 + $0x180] sm:$0xff] %vm447_vm0, %v8690_v16  ;;  %497 = vst.msk [vmem:[#allocation3 + $0x188] sm:$0xff] %vm447_vm0, %v8690_v16 }
  0x9e   : > { %498 = vst.msk [vmem:[#allocation3 + $0x190] sm:$0xff] %vm447_vm0, %v8690_v16  ;;  %499 = vst.msk [vmem:[#allocation3 + $0x198] sm:$0xff] %vm447_vm0, %v8690_v16 }
  0x9f   : > { %500 = vst.msk [vmem:[#allocation3 + $0x1a0] sm:$0xff] %vm447_vm0, %v8690_v16  ;;  %501 = vst.msk [vmem:[#allocation3 + $0x1a8] sm:$0xff] %vm447_vm0, %v8690_v16 }
  0xa0   : > { %502 = vst.msk [vmem:[#allocation3 + $0x1b0] sm:$0xff] %vm447_vm0, %v8690_v16  ;;  %503 = vst.msk [vmem:[#allocation3 + $0x1b8] sm:$0xff] %vm447_vm0, %v8690_v16 }
  0xa1   : > { %504 = vst.msk [vmem:[#allocation3 + $0x1c0] sm:$0xff] %vm447_vm0, %v8690_v16  ;;  %505 = vst.msk [vmem:[#allocation3 + $0x1c8] sm:$0xff] %vm447_vm0, %v8690_v16 }
  0xa2   : > { %506 = vst.msk [vmem:[#allocation3 + $0x1d0] sm:$0xff] %vm447_vm0, %v8690_v16  ;;  %507 = vst.msk [vmem:[#allocation3 + $0x1d8] sm:$0xff] %vm447_vm0, %v8690_v16 }
  0xa3   : > { %508 = vst.msk [vmem:[#allocation3 + $0x1e0] sm:$0xff] %vm447_vm0, %v8690_v16  ;;  %509 = vst.msk [vmem:[#allocation3 + $0x1e8] sm:$0xff] %vm447_vm0, %v8690_v16 }
  0xa4   : > { %510 = vst.msk [vmem:[#allocation3 + $0x1f0] sm:$0xff] %vm447_vm0, %v8690_v16  ;;  %511 = vst.msk [vmem:[#allocation3 + $0x1f8] sm:$0xff] %vm447_vm0, %v8690_v16 }
  0xa5   : > { %512 = vst.msk [vmem:[#allocation4] sm:$0xff] %vm447_vm0, %v8690_v16  ;;  %513 = vst.msk [vmem:[#allocation4 + $0x8] sm:$0xff] %vm447_vm0, %v8690_v16 }
  0xa6   : > { %514 = vst.msk [vmem:[#allocation4 + $0x10] sm:$0xff] %vm447_vm0, %v8690_v16  ;;  %515 = vst.msk [vmem:[#allocation4 + $0x18] sm:$0xff] %vm447_vm0, %v8690_v16 }
  0xa7   : > { %516 = vst.msk [vmem:[#allocation4 + $0x20] sm:$0xff] %vm447_vm0, %v8690_v16  ;;  %517 = vst.msk [vmem:[#allocation4 + $0x28] sm:$0xff] %vm447_vm0, %v8690_v16 }
  0xa8   : > { %518 = vst.msk [vmem:[#allocation4 + $0x30] sm:$0xff] %vm447_vm0, %v8690_v16  ;;  %519 = vst.msk [vmem:[#allocation4 + $0x38] sm:$0xff] %vm447_vm0, %v8690_v16 }
  0xa9   : > { %520 = vst.msk [vmem:[#allocation4 + $0x40] sm:$0xff] %vm447_vm0, %v8690_v16  ;;  %521 = vst.msk [vmem:[#allocation4 + $0x48] sm:$0xff] %vm447_vm0, %v8690_v16 }
  0xaa   : > { %522 = vst.msk [vmem:[#allocation4 + $0x50] sm:$0xff] %vm447_vm0, %v8690_v16  ;;  %523 = vst.msk [vmem:[#allocation4 + $0x58] sm:$0xff] %vm447_vm0, %v8690_v16 }
  0xab   : > { %524 = vst.msk [vmem:[#allocation4 + $0x60] sm:$0xff] %vm447_vm0, %v8690_v16  ;;  %525 = vst.msk [vmem:[#allocation4 + $0x68] sm:$0xff] %vm447_vm0, %v8690_v16 }
  0xac   : > { %526 = vst.msk [vmem:[#allocation4 + $0x70] sm:$0xff] %vm447_vm0, %v8690_v16  ;;  %527 = vst.msk [vmem:[#allocation4 + $0x78] sm:$0xff] %vm447_vm0, %v8690_v16 }
  0xad   : > { %528 = vst.msk [vmem:[#allocation4 + $0x80] sm:$0xff] %vm447_vm0, %v8690_v16  ;;  %529 = vst.msk [vmem:[#allocation4 + $0x88] sm:$0xff] %vm447_vm0, %v8690_v16 }
  0xae   : > { %530 = vst.msk [vmem:[#allocation4 + $0x90] sm:$0xff] %vm447_vm0, %v8690_v16  ;;  %531 = vst.msk [vmem:[#allocation4 + $0x98] sm:$0xff] %vm447_vm0, %v8690_v16 }
  0xaf   : > { %532 = vst.msk [vmem:[#allocation4 + $0xa0] sm:$0xff] %vm447_vm0, %v8690_v16  ;;  %533 = vst.msk [vmem:[#allocation4 + $0xa8] sm:$0xff] %vm447_vm0, %v8690_v16 }
  0xb0   : > { %534 = vst.msk [vmem:[#allocation4 + $0xb0] sm:$0xff] %vm447_vm0, %v8690_v16  ;;  %535 = vst.msk [vmem:[#allocation4 + $0xb8] sm:$0xff] %vm447_vm0, %v8690_v16 }
  0xb1   : > { %536 = vst.msk [vmem:[#allocation4 + $0xc0] sm:$0xff] %vm447_vm0, %v8690_v16  ;;  %537 = vst.msk [vmem:[#allocation4 + $0xc8] sm:$0xff] %vm447_vm0, %v8690_v16 }
  0xb2   : > { %538 = vst.msk [vmem:[#allocation4 + $0xd0] sm:$0xff] %vm447_vm0, %v8690_v16  ;;  %539 = vst.msk [vmem:[#allocation4 + $0xd8] sm:$0xff] %vm447_vm0, %v8690_v16 }
  0xb3   : > { %540 = vst.msk [vmem:[#allocation4 + $0xe0] sm:$0xff] %vm447_vm0, %v8690_v16  ;;  %541 = vst.msk [vmem:[#allocation4 + $0xe8] sm:$0xff] %vm447_vm0, %v8690_v16 }
  0xb4   : > { %542 = vst.msk [vmem:[#allocation4 + $0xf0] sm:$0xff] %vm447_vm0, %v8690_v16  ;;  %543 = vst.msk [vmem:[#allocation4 + $0xf8] sm:$0xff] %vm447_vm0, %v8690_v16 }
  0xb5   : > { %544 = vst.msk [vmem:[#allocation4 + $0x100] sm:$0xff] %vm447_vm0, %v8690_v16  ;;  %545 = vst.msk [vmem:[#allocation4 + $0x108] sm:$0xff] %vm447_vm0, %v8690_v16 }
  0xb6   : > { %546 = vst.msk [vmem:[#allocation4 + $0x110] sm:$0xff] %vm447_vm0, %v8690_v16  ;;  %547 = vst.msk [vmem:[#allocation4 + $0x118] sm:$0xff] %vm447_vm0, %v8690_v16 }
  0xb7   : > { %548 = vst.msk [vmem:[#allocation4 + $0x120] sm:$0xff] %vm447_vm0, %v8690_v16  ;;  %549 = vst.msk [vmem:[#allocation4 + $0x128] sm:$0xff] %vm447_vm0, %v8690_v16 }
  0xb8   : > { %550 = vst.msk [vmem:[#allocation4 + $0x130] sm:$0xff] %vm447_vm0, %v8690_v16  ;;  %551 = vst.msk [vmem:[#allocation4 + $0x138] sm:$0xff] %vm447_vm0, %v8690_v16 }
  0xb9   : > { %552 = vst.msk [vmem:[#allocation4 + $0x140] sm:$0xff] %vm447_vm0, %v8690_v16  ;;  %553 = vst.msk [vmem:[#allocation4 + $0x148] sm:$0xff] %vm447_vm0, %v8690_v16 }
  0xba   : > { %554 = vst.msk [vmem:[#allocation4 + $0x150] sm:$0xff] %vm447_vm0, %v8690_v16  ;;  %555 = vst.msk [vmem:[#allocation4 + $0x158] sm:$0xff] %vm447_vm0, %v8690_v16 }
  0xbb   : > { %556 = vst.msk [vmem:[#allocation4 + $0x160] sm:$0xff] %vm447_vm0, %v8690_v16  ;;  %557 = vst.msk [vmem:[#allocation4 + $0x168] sm:$0xff] %vm447_vm0, %v8690_v16 }
  0xbc   : > { %558 = vst.msk [vmem:[#allocation4 + $0x170] sm:$0xff] %vm447_vm0, %v8690_v16  ;;  %559 = vst.msk [vmem:[#allocation4 + $0x178] sm:$0xff] %vm447_vm0, %v8690_v16 }
  0xbd   : > { %560 = vst.msk [vmem:[#allocation4 + $0x180] sm:$0xff] %vm447_vm0, %v8690_v16  ;;  %561 = vst.msk [vmem:[#allocation4 + $0x188] sm:$0xff] %vm447_vm0, %v8690_v16 }
  0xbe   : > { %562 = vst.msk [vmem:[#allocation4 + $0x190] sm:$0xff] %vm447_vm0, %v8690_v16  ;;  %563 = vst.msk [vmem:[#allocation4 + $0x198] sm:$0xff] %vm447_vm0, %v8690_v16 }
  0xbf   : > { %564 = vst.msk [vmem:[#allocation4 + $0x1a0] sm:$0xff] %vm447_vm0, %v8690_v16  ;;  %565 = vst.msk [vmem:[#allocation4 + $0x1a8] sm:$0xff] %vm447_vm0, %v8690_v16 }
  0xc0   : > { %566 = vst.msk [vmem:[#allocation4 + $0x1b0] sm:$0xff] %vm447_vm0, %v8690_v16  ;;  %567 = vst.msk [vmem:[#allocation4 + $0x1b8] sm:$0xff] %vm447_vm0, %v8690_v16 }
  0xc1   : > { %568 = vst.msk [vmem:[#allocation4 + $0x1c0] sm:$0xff] %vm447_vm0, %v8690_v16  ;;  %569 = vst.msk [vmem:[#allocation4 + $0x1c8] sm:$0xff] %vm447_vm0, %v8690_v16 }
  0xc2   : > { %570 = vst.msk [vmem:[#allocation4 + $0x1d0] sm:$0xff] %vm447_vm0, %v8690_v16  ;;  %571 = vst.msk [vmem:[#allocation4 + $0x1d8] sm:$0xff] %vm447_vm0, %v8690_v16 }
  0xc3   : > { %572 = vst.msk [vmem:[#allocation4 + $0x1e0] sm:$0xff] %vm447_vm0, %v8690_v16  ;;  %573 = vst.msk [vmem:[#allocation4 + $0x1e8] sm:$0xff] %vm447_vm0, %v8690_v16 }
  0xc4   : > { %574 = vst.msk [vmem:[#allocation4 + $0x1f0] sm:$0xff] %vm447_vm0, %v8690_v16  ;;  %575 = vst.msk [vmem:[#allocation4 + $0x1f8] sm:$0xff] %vm447_vm0, %v8690_v16 }
  0xc5 PF: > { %s578_s4 = sld [smem:[#allocation6 + %s8874_s26]] }
  0xcb   : > { %p7543_p3 = scmp.eq.s32.totalorder %s578_s4, 0 }
  0xcd   : > { %582 = sbr.rel (%p7543_p3) target bundleno = 2265 (0x8d9), region = 67 }
  0xd2   : > { %v9218_v17 = vld [vmem:[%s8879_s8 + $0x8] sm:$0xf]  ;;  %v9221_v18 = vld [vmem:[%s8879_s8] sm:$0xf]  ;;  %v12834_v19 = vmov 0   ;;  %v688_v50 = vlaneseq  ;;  %vm2707_vm5 = vcmask 7168  }
  0xd3   : > { %13174 = vst [vmem:[#allocation19_spill] sm:$0xff] %v9218_v17  ;;  %13175 = vst [vmem:[#allocation20_spill] sm:$0xff] %v9221_v18  ;;  %8029 = vset.pattern.permute.xlu1 %v12834_v19  ;;  %8028 = vset.pattern.permute.xlu0 %v12834_v19  ;;  %v9228_v20 = vld [vmem:[%s8879_s8 + $0xc] sm:$0xf]  ;;  %v9231_v21 = vld [vmem:[%s8879_s8 + $0x4] sm:$0xf] }
  0xd4   : > { %706 = vperm.xlu1 %8029, %v9218_v17   ;;  %682 = vperm.xlu0 %8028, %v9221_v18   ;;  %13176 = vst [vmem:[#allocation21_spill] sm:$0xff] %v9228_v20  ;;  %13177 = vst [vmem:[#allocation22_spill] sm:$0xff] %v9231_v21  ;;  %v9236_v22 = vld [vmem:[%s8879_s8 + $0x14] sm:$0xf]  ;;  %v9239_v23 = vld [vmem:[%s8879_s8 + $0x10] sm:$0xf] }
  0xd5   : > { %13178 = vst [vmem:[#allocation23_spill] sm:$0xff] %v9236_v22  ;;  %13179 = vst [vmem:[#allocation24_spill] sm:$0xff] %v9239_v23  ;;  %v9244_v24 = vld [vmem:[%s8879_s8 + $0x1c] sm:$0xf]  ;;  %v9247_v25 = vld [vmem:[%s8879_s8 + $0x18] sm:$0xf] }
  0xd6   : > { %13180 = vst [vmem:[#allocation25_spill] sm:$0xff] %v9244_v24  ;;  %13181 = vst [vmem:[#allocation26_spill] sm:$0xff] %v9247_v25  ;;  %v9252_v26 = vld [vmem:[%s8879_s8 + $0x24] sm:$0xf]  ;;  %v9255_v27 = vld [vmem:[%s8879_s8 + $0x20] sm:$0xf] }
  0xd7   : > { %13182 = vst [vmem:[#allocation27_spill] sm:$0xff] %v9252_v26  ;;  %13183 = vst [vmem:[#allocation28_spill] sm:$0xff] %v9255_v27  ;;  %v9260_v28 = vld [vmem:[%s8879_s8 + $0x2c] sm:$0xf]  ;;  %v9263_v29 = vld [vmem:[%s8879_s8 + $0x28] sm:$0xf] }
  0xd8   : > { %718 = vperm.xlu1 %8029, %v9228_v20   ;;  %694 = vperm.xlu0 %8028, %v9231_v21   ;;  %13184 = vst [vmem:[#allocation29_spill] sm:$0xff] %v9260_v28  ;;  %13185 = vst [vmem:[#allocation30_spill] sm:$0xff] %v9263_v29  ;;  %v9268_v30 = vld [vmem:[%s8879_s8 + $0x34] sm:$0xf]  ;;  %v9271_v31 = vld [vmem:[%s8879_s8 + $0x30] sm:$0xf] }
  0xd9   : > { %13186 = vst [vmem:[#allocation31_spill] sm:$0xff] %v9268_v30  ;;  %13187 = vst [vmem:[#allocation32_spill] sm:$0xff] %v9271_v31  ;;  %v9276_v32 = vld [vmem:[%s8879_s8 + $0x3c] sm:$0xf]  ;;  %v9279_v33 = vld [vmem:[%s8879_s8 + $0x38] sm:$0xf] }
  0xda   : > { %13188 = vst [vmem:[#allocation33_spill] sm:$0xff] %v9276_v32  ;;  %13189 = vst [vmem:[#allocation34_spill] sm:$0xff] %v9279_v33  ;;  %v9284_v34 = vld [vmem:[%s8879_s8 + $0x44] sm:$0xf]  ;;  %v9287_v35 = vld [vmem:[%s8879_s8 + $0x40] sm:$0xf] }
  0xdb   : > { %13190 = vst [vmem:[#allocation35_spill] sm:$0xff] %v9284_v34  ;;  %13191 = vst [vmem:[#allocation36_spill] sm:$0xff] %v9287_v35  ;;  %v9292_v36 = vld [vmem:[%s8879_s8 + $0x4c] sm:$0xf]  ;;  %v9295_v37 = vld [vmem:[%s8879_s8 + $0x48] sm:$0xf] }
  0xdc   : > { %742 = vperm.xlu1 %8029, %v9236_v22   ;;  %730 = vperm.xlu0 %8028, %v9239_v23   ;;  %13192 = vst [vmem:[#allocation37_spill] sm:$0xff] %v9292_v36  ;;  %13193 = vst [vmem:[#allocation38_spill] sm:$0xff] %v9295_v37  ;;  %v9300_v38 = vld [vmem:[%s8879_s8 + $0x54] sm:$0xf]  ;;  %v9303_v39 = vld [vmem:[%s8879_s8 + $0x50] sm:$0xf] }
  0xdd   : > { %13194 = vst [vmem:[#allocation39_spill] sm:$0xff] %v9300_v38  ;;  %13195 = vst [vmem:[#allocation40_spill] sm:$0xff] %v9303_v39  ;;  %v9308_v40 = vld [vmem:[%s8879_s8 + $0x5c] sm:$0xf]  ;;  %v9311_v41 = vld [vmem:[%s8879_s8 + $0x58] sm:$0xf] }
  0xde   : > { %13196 = vst [vmem:[#allocation41_spill] sm:$0xff] %v9308_v40  ;;  %13197 = vst [vmem:[#allocation42_spill] sm:$0xff] %v9311_v41  ;;  %v9316_v42 = vld [vmem:[%s8879_s8 + $0x64] sm:$0xf]  ;;  %v9319_v43 = vld [vmem:[%s8879_s8 + $0x60] sm:$0xf] }
  0xdf   : > { %13198 = vst [vmem:[#allocation43_spill] sm:$0xff] %v9316_v42  ;;  %13199 = vst [vmem:[#allocation44_spill] sm:$0xff] %v9319_v43  ;;  %v9324_v44 = vld [vmem:[%s8879_s8 + $0x6c] sm:$0xf]  ;;  %v9327_v45 = vld [vmem:[%s8879_s8 + $0x68] sm:$0xf] }
  0xe0   : > { %766 = vperm.xlu1 %8029, %v9244_v24   ;;  %754 = vperm.xlu0 %8028, %v9247_v25   ;;  %13200 = vst [vmem:[#allocation45_spill] sm:$0xff] %v9324_v44  ;;  %13201 = vst [vmem:[#allocation46_spill] sm:$0xff] %v9327_v45  ;;  %v9332_v46 = vld [vmem:[%s8879_s8 + $0x74] sm:$0xf]  ;;  %v9335_v47 = vld [vmem:[%s8879_s8 + $0x70] sm:$0xf] }
  0xe1   : > { %13202 = vst [vmem:[#allocation47_spill] sm:$0xff] %v9332_v46  ;;  %13203 = vst [vmem:[#allocation48_spill] sm:$0xff] %v9335_v47  ;;  %v9340_v48 = vld [vmem:[%s8879_s8 + $0x7c] sm:$0xf]  ;;  %v9343_v49 = vld [vmem:[%s8879_s8 + $0x78] sm:$0xf] }
  0xe2   : > { %13204 = vst [vmem:[#allocation49_spill] sm:$0xff] %v9340_v48  ;;  %13205 = vst [vmem:[#allocation50_spill] sm:$0xff] %v9343_v49  ;;  %v8692_v51 = vmov 1966171168   ;;  %v9347_v53 = vshrl.u32 %v688_v50, 7  ;;  %v9681_v17 = vld [vmem:[#allocation4 + $0x50] sm:$0xff] }
  0xe3   : > { %v1074_v52 = vunpack.c.l.s4 %v8692_v51  ;;  %v7544_v55 = vld.sshfl [vmem:[%s354_s20] sm:$0x11 pattern:$0x75316420]  ;;  %v8693_v60 = vmov 839922192  }
  0xe4   : > { %790 = vperm.xlu1 %8029, %v9252_v26   ;;  %778 = vperm.xlu0 %8028, %v9255_v27   ;;  %v1072_v56 = vcombine.high %v7544_v55, %v7544_v55  ;;  %v686_v61 = vunpack.c.l.s4 %v8693_v60  ;;  %v9362_v63 = vsub.s32 0, %v9347_v53  ;;  %13237 = vst [vmem:[#allocation82_spill] sm:$0xff] %v9681_v17 }
  0xe5   : > { %v1075_v54 = vunpack.c.0.s8 %v1074_v52 }
  0xe6   : > { %13208 = vst [vmem:[#allocation53_spill] sm:$0xff] %v9362_v63  ;;  %v687_v1 = vunpack.c.0.s8 %v686_v61 }
  0xe7   : > { %v1078_v57 = vsub.s32 %v1075_v54, %v9347_v53 }
  0xe8   : > { %814 = vperm.xlu1 %8029, %v9260_v28   ;;  %802 = vperm.xlu0 %8028, %v9263_v29   ;;  %v9369_v4 = vsub.s32 %v687_v1, %v9347_v53  ;;  %v9612_v28 = vld [vmem:[#allocation4 + $0x28] sm:$0xff] }
  0xe9   : > { %v9355_v58 = vrot.slane %v7544_v55, %v1078_v57  ;;  %v9357_v59 = vrot.slane %v1072_v56, %v1078_v57  ;;  %13232 = vst [vmem:[#allocation77_spill] sm:$0xff] %v9612_v28 }
  0xeb   : > { %13206 = vst [vmem:[#allocation51_spill] sm:$0xff] %v9355_v58  ;;  %13207 = vst [vmem:[#allocation52_spill] sm:$0xff] %v9357_v59  ;;  %v1088_v62 = vpack.i.b16 %v9355_v58, %v9355_v58  ;;  %v1095_v0 = vpack.i.b16 %v9357_v59, %v9357_v59 }
  0xec   : > { %838 = vperm.xlu1 %8029, %v9268_v30   ;;  %826 = vperm.xlu0 %8028, %v9271_v31  }
  0xed   : > { %v1093_v2 = vrot.slane %v1088_v62, %v9362_v63  ;;  %v1100_v3 = vrot.slane %v1095_v0, %v9362_v63 }
  0xef   : > { %v9371_v5 = vcombine.low %v1093_v2, %v1100_v3 }
  0xf0   : > { %862 = vperm.xlu1 %8029, %v9276_v32   ;;  %850 = vperm.xlu0 %8028, %v9279_v33  }
  0xf4   : > { %886 = vperm.xlu1 %8029, %v9284_v34   ;;  %874 = vperm.xlu0 %8028, %v9287_v35  }
  0xf8   : > { %910 = vperm.xlu1 %8029, %v9292_v36   ;;  %898 = vperm.xlu0 %8028, %v9295_v37  }
  0xfc   : > { %934 = vperm.xlu1 %8029, %v9300_v38   ;;  %922 = vperm.xlu0 %8028, %v9303_v39  }
 0x100   : > { %958 = vperm.xlu1 %8029, %v9308_v40   ;;  %946 = vperm.xlu0 %8028, %v9311_v41  }
 0x104   : > { %982 = vperm.xlu1 %8029, %v9316_v42   ;;  %970 = vperm.xlu0 %8028, %v9319_v43  }
 0x108   : > { %1006 = vperm.xlu1 %8029, %v9324_v44   ;;  %994 = vperm.xlu0 %8028, %v9327_v45  }
 0x10c   : > { %1030 = vperm.xlu1 %8029, %v9332_v46   ;;  %1018 = vperm.xlu0 %8028, %v9335_v47  }
 0x110   : > { %1054 = vperm.xlu1 %8029, %v9340_v48   ;;  %1042 = vperm.xlu0 %8028, %v9343_v49  }
 0x14f   : > { %v707_v6 = vpop.permute.xlu1 %706  ;;  %v683_v7 = vpop.permute.xlu0 %682 }
 0x150   : > { %v715_v8 = vrot.slane %v707_v6, %v9369_v4  ;;  %v691_v9 = vrot.slane %v683_v7, %v9369_v4 }
 0x152   : > { %v1109_v10 = vadd.bf16 %v9371_v5, %v715_v8  ;;  %v1107_v11 = vadd.bf16 %v9371_v5, %v691_v9 }
 0x153   : > { %v719_v12 = vpop.permute.xlu1 %718  ;;  %v695_v13 = vpop.permute.xlu0 %694 }
 0x154   : > { %v727_v14 = vrot.slane %v719_v12, %v9369_v4  ;;  %v703_v15 = vrot.slane %v695_v13, %v9369_v4  ;;  %v1141_v51 = vmul.bf16 1045249613, %v1109_v10  ;;  %v1139_v52 = vmul.bf16 1045249613, %v1107_v11 }
 0x156   : > { %v1110_v16 = vadd.bf16 %v9371_v5, %v727_v14  ;;  %v1108_v50 = vadd.bf16 %v9371_v5, %v703_v15  ;;  %v9389_v3 = vmax.bf16 %v1141_v51, %v1109_v10  ;;  %v9391_v6 = vmax.bf16 %v1139_v52, %v1107_v11 }
 0x157   : > { %v743_v54 = vpop.permute.xlu1 %742  ;;  %v731_v55 = vpop.permute.xlu0 %730 }
 0x158   : > { %v1142_v56 = vmul.bf16 1045249613, %v1110_v16  ;;  %v1140_v57 = vmul.bf16 1045249613, %v1108_v50  ;;  %v751_v60 = vrot.slane %v743_v54, %v9369_v4  ;;  %v739_v61 = vrot.slane %v731_v55, %v9369_v4 }
 0x15a   : > { %v9383_v62 = vmax.bf16 %v1142_v56, %v1110_v16  ;;  %v9385_v0 = vmax.bf16 %v1140_v57, %v1108_v50  ;;  %v1112_v1 = vadd.bf16 %v9371_v5, %v751_v60  ;;  %v1111_v2 = vadd.bf16 %v9371_v5, %v739_v61 }
 0x15b   : > { %v767_v7 = vpop.permute.xlu1 %766  ;;  %v755_v8 = vpop.permute.xlu0 %754 }
 0x15c   : > { %v1144_v9 = vmul.bf16 1045249613, %v1112_v1  ;;  %v1143_v12 = vmul.bf16 1045249613, %v1111_v2  ;;  %v775_v13 = vrot.slane %v767_v7, %v9369_v4  ;;  %v763_v14 = vrot.slane %v755_v8, %v9369_v4 }
 0x15d   : > { %v7548_v15 = vcombine.low %v9389_v3, %v9383_v62  ;;  %v7549_v16 = vcombine.high %v9389_v3, %v9383_v62  ;;  %v7546_v10 = vcombine.low %v9391_v6, %v9385_v0  ;;  %v7547_v11 = vcombine.high %v9391_v6, %v9385_v0 }
 0x15e   : > { %v1114_v50 = vadd.bf16 %v9371_v5, %v775_v13  ;;  %v1113_v51 = vadd.bf16 %v9371_v5, %v763_v14  ;;  %v9405_v52 = vmax.bf16 %v1144_v9, %v1112_v1  ;;  %v9407_v54 = vmax.bf16 %v1143_v12, %v1111_v2 }
 0x15f   : > { %v791_v55 = vpop.permute.xlu1 %790  ;;  %v779_v56 = vpop.permute.xlu0 %778  ;;  %v1398_v57 = vmax.bf16 %v7549_v16, %v7548_v15  ;;  %v1395_v60 = vmax.bf16 %v7547_v11, %v7546_v10 }
 0x160   : > { %v1146_v61 = vmul.bf16 1045249613, %v1114_v50  ;;  %v1145_v7 = vmul.bf16 1045249613, %v1113_v51  ;;  %v799_v8 = vrot.slane %v791_v55, %v9369_v4  ;;  %v787_v19 = vrot.slane %v779_v56, %v9369_v4 }
 0x161   : > { %1399 = vmax.xlane.bf16.xlu1 %v1398_v57  ;;  %1396 = vmax.xlane.bf16.xlu0 %v1395_v60  ;;  %v7550_v14 = vcombine.low %v9407_v54, %v9405_v52  ;;  %v7551_v15 = vcombine.high %v9407_v54, %v9405_v52 }
 0x162   : > { %v9411_v63 = vmax.bf16 %v1146_v61, %v1114_v50  ;;  %v9413_v13 = vmax.bf16 %v1145_v7, %v1113_v51  ;;  %v1116_v1 = vadd.bf16 %v9371_v5, %v799_v8  ;;  %v1115_v2 = vadd.bf16 %v9371_v5, %v787_v19 }
 0x163   : > { %v815_v9 = vpop.permute.xlu1 %814  ;;  %v803_v12 = vpop.permute.xlu0 %802  ;;  %v1401_v8 = vmax.bf16 %v7551_v15, %v7550_v14 }
 0x164   : > { %v1148_v16 = vmul.bf16 1045249613, %v1116_v1  ;;  %v1147_v10 = vmul.bf16 1045249613, %v1115_v2  ;;  %v823_v11 = vrot.slane %v815_v9, %v9369_v4  ;;  %v811_v50 = vrot.slane %v803_v12, %v9369_v4 }
 0x165   : > { %v7552_v51 = vcombine.low %v9413_v13, %v9411_v63  ;;  %v7553_v19 = vcombine.high %v9413_v13, %v9411_v63 }
 0x166   : > { %v1118_v55 = vadd.bf16 %v9371_v5, %v823_v11  ;;  %v1117_v56 = vadd.bf16 %v9371_v5, %v811_v50  ;;  %v9429_v57 = vmax.bf16 %v1148_v16, %v1116_v1  ;;  %v9431_v60 = vmax.bf16 %v1147_v10, %v1115_v2 }
 0x167   : > { %v839_v61 = vpop.permute.xlu1 %838  ;;  %v827_v7 = vpop.permute.xlu0 %826  ;;  %v1404_v9 = vmax.bf16 %v7553_v19, %v7552_v51 }
 0x168   : > { %v1150_v59 = vmul.bf16 1045249613, %v1118_v55  ;;  %v1149_v12 = vmul.bf16 1045249613, %v1117_v56  ;;  %v847_v58 = vrot.slane %v839_v61, %v9369_v4  ;;  %v835_v49 = vrot.slane %v827_v7, %v9369_v4 }
 0x169   : > { %1402 = vmax.xlane.bf16.xlu0 %v1401_v8  ;;  %1405 = vmax.xlane.bf16.xlu1 %v1404_v9  ;;  %v7554_v14 = vcombine.low %v9431_v60, %v9429_v57  ;;  %v7555_v15 = vcombine.high %v9431_v60, %v9429_v57 }
 0x16a   : > { %v9435_v48 = vmax.bf16 %v1150_v59, %v1118_v55  ;;  %v9437_v11 = vmax.bf16 %v1149_v12, %v1117_v56  ;;  %v1120_v1 = vadd.bf16 %v9371_v5, %v847_v58  ;;  %v1119_v2 = vadd.bf16 %v9371_v5, %v835_v49 }
 0x16b   : > { %v863_v16 = vpop.permute.xlu1 %862  ;;  %v851_v10 = vpop.permute.xlu0 %850  ;;  %v1407_v12 = vmax.bf16 %v7555_v15, %v7554_v14 }
 0x16c   : > { %v1152_v50 = vmul.bf16 1045249613, %v1120_v1  ;;  %v1151_v51 = vmul.bf16 1045249613, %v1119_v2  ;;  %v871_v19 = vrot.slane %v863_v16, %v9369_v4  ;;  %v859_v59 = vrot.slane %v851_v10, %v9369_v4 }
 0x16d   : > { %v7556_v55 = vcombine.low %v9437_v11, %v9435_v48  ;;  %v7557_v49 = vcombine.high %v9437_v11, %v9435_v48 }
 0x16e   : > { %v1122_v58 = vadd.bf16 %v9371_v5, %v871_v19  ;;  %v1121_v56 = vadd.bf16 %v9371_v5, %v859_v59  ;;  %v9453_v61 = vmax.bf16 %v1152_v50, %v1120_v1  ;;  %v9455_v7 = vmax.bf16 %v1151_v51, %v1119_v2 }
 0x16f   : > { %v887_v8 = vpop.permute.xlu1 %886  ;;  %v875_v9 = vpop.permute.xlu0 %874  ;;  %v1410_v16 = vmax.bf16 %v7557_v49, %v7556_v55 }
 0x170   : > { %v1154_v47 = vmul.bf16 1045249613, %v1122_v58  ;;  %v1153_v10 = vmul.bf16 1045249613, %v1121_v56  ;;  %v895_v46 = vrot.slane %v887_v8, %v9369_v4  ;;  %v883_v45 = vrot.slane %v875_v9, %v9369_v4 }
 0x171   : > { %1408 = vmax.xlane.bf16.xlu0 %v1407_v12  ;;  %1411 = vmax.xlane.bf16.xlu1 %v1410_v16  ;;  %v7558_v14 = vcombine.low %v9455_v7, %v9453_v61  ;;  %v7559_v15 = vcombine.high %v9455_v7, %v9453_v61 }
 0x172   : > { %v9459_v44 = vmax.bf16 %v1154_v47, %v1122_v58  ;;  %v9461_v19 = vmax.bf16 %v1153_v10, %v1121_v56  ;;  %v1124_v1 = vadd.bf16 %v9371_v5, %v895_v46  ;;  %v1123_v2 = vadd.bf16 %v9371_v5, %v883_v45 }
 0x173   : > { %v911_v50 = vpop.permute.xlu1 %910  ;;  %v899_v51 = vpop.permute.xlu0 %898  ;;  %v1413_v10 = vmax.bf16 %v7559_v15, %v7558_v14 }
 0x174   : > { %v1156_v59 = vmul.bf16 1045249613, %v1124_v1  ;;  %v1155_v55 = vmul.bf16 1045249613, %v1123_v2  ;;  %v919_v49 = vrot.slane %v911_v50, %v9369_v4  ;;  %v907_v47 = vrot.slane %v899_v51, %v9369_v4 }
 0x175   : > { %v7560_v58 = vcombine.low %v9461_v19, %v9459_v44  ;;  %v7561_v45 = vcombine.high %v9461_v19, %v9459_v44 }
 0x176   : > { %v1126_v46 = vadd.bf16 %v9371_v5, %v919_v49  ;;  %v1125_v56 = vadd.bf16 %v9371_v5, %v907_v47  ;;  %v9477_v8 = vmax.bf16 %v1156_v59, %v1124_v1  ;;  %v9479_v9 = vmax.bf16 %v1155_v55, %v1123_v2 }
 0x177   : > { %v935_v12 = vpop.permute.xlu1 %934  ;;  %v923_v16 = vpop.permute.xlu0 %922  ;;  %v1416_v50 = vmax.bf16 %v7561_v45, %v7560_v58 }
 0x178   : > { %v1158_v43 = vmul.bf16 1045249613, %v1126_v46  ;;  %v1157_v51 = vmul.bf16 1045249613, %v1125_v56  ;;  %v943_v42 = vrot.slane %v935_v12, %v9369_v4  ;;  %v931_v41 = vrot.slane %v923_v16, %v9369_v4 }
 0x179   : > { %1414 = vmax.xlane.bf16.xlu0 %v1413_v10  ;;  %1417 = vmax.xlane.bf16.xlu1 %v1416_v50  ;;  %v7562_v14 = vcombine.low %v9479_v9, %v9477_v8  ;;  %v7563_v15 = vcombine.high %v9479_v9, %v9477_v8 }
 0x17a   : > { %v9483_v40 = vmax.bf16 %v1158_v43, %v1126_v46  ;;  %v9485_v49 = vmax.bf16 %v1157_v51, %v1125_v56  ;;  %v1128_v1 = vadd.bf16 %v9371_v5, %v943_v42  ;;  %v1127_v2 = vadd.bf16 %v9371_v5, %v931_v41 }
 0x17b   : > { %v959_v59 = vpop.permute.xlu1 %958  ;;  %v947_v55 = vpop.permute.xlu0 %946  ;;  %v1419_v51 = vmax.bf16 %v7563_v15, %v7562_v14 }
 0x17c   : > { %v1160_v47 = vmul.bf16 1045249613, %v1128_v1  ;;  %v1159_v58 = vmul.bf16 1045249613, %v1127_v2  ;;  %v967_v45 = vrot.slane %v959_v59, %v9369_v4  ;;  %v955_v43 = vrot.slane %v947_v55, %v9369_v4 }
 0x17d   : > { %v7564_v46 = vcombine.low %v9485_v49, %v9483_v40  ;;  %v7565_v41 = vcombine.high %v9485_v49, %v9483_v40 }
 0x17e   : > { %v1130_v42 = vadd.bf16 %v9371_v5, %v967_v45  ;;  %v1129_v56 = vadd.bf16 %v9371_v5, %v955_v43  ;;  %v9501_v12 = vmax.bf16 %v1160_v47, %v1128_v1  ;;  %v9503_v16 = vmax.bf16 %v1159_v58, %v1127_v2 }
 0x17f   : > { %v983_v10 = vpop.permute.xlu1 %982  ;;  %v971_v50 = vpop.permute.xlu0 %970  ;;  %v1422_v59 = vmax.bf16 %v7565_v41, %v7564_v46 }
 0x180   : > { %13209 = vst [vmem:[#allocation54_spill] sm:$0xff] %v9501_v12  ;;  %13210 = vst [vmem:[#allocation55_spill] sm:$0xff] %v9503_v16  ;;  %v1162_v39 = vmul.bf16 1045249613, %v1130_v42  ;;  %v1161_v55 = vmul.bf16 1045249613, %v1129_v56  ;;  %v991_v38 = vrot.slane %v983_v10, %v9369_v4  ;;  %v979_v37 = vrot.slane %v971_v50, %v9369_v4 }
 0x181   : > { %1420 = vmax.xlane.bf16.xlu0 %v1419_v51  ;;  %1423 = vmax.xlane.bf16.xlu1 %v1422_v59  ;;  %v7566_v14 = vcombine.low %v9503_v16, %v9501_v12  ;;  %v7567_v15 = vcombine.high %v9503_v16, %v9501_v12 }
 0x182   : > { %v9507_v36 = vmax.bf16 %v1162_v39, %v1130_v42  ;;  %v9509_v45 = vmax.bf16 %v1161_v55, %v1129_v56  ;;  %v1132_v1 = vadd.bf16 %v9371_v5, %v991_v38  ;;  %v1131_v2 = vadd.bf16 %v9371_v5, %v979_v37 }
 0x183   : > { %v1007_v47 = vpop.permute.xlu1 %1006  ;;  %v995_v58 = vpop.permute.xlu0 %994  ;;  %v1425_v55 = vmax.bf16 %v7567_v15, %v7566_v14 }
 0x184   : > { %13211 = vst [vmem:[#allocation56_spill] sm:$0xff] %v9507_v36  ;;  %13212 = vst [vmem:[#allocation57_spill] sm:$0xff] %v9509_v45  ;;  %v1164_v43 = vmul.bf16 1045249613, %v1132_v1  ;;  %v1163_v46 = vmul.bf16 1045249613, %v1131_v2  ;;  %v1015_v41 = vrot.slane %v1007_v47, %v9369_v4  ;;  %v1003_v39 = vrot.slane %v995_v58, %v9369_v4 }
 0x185   : > { %v7568_v42 = vcombine.low %v9509_v45, %v9507_v36  ;;  %v7569_v37 = vcombine.high %v9509_v45, %v9507_v36 }
 0x186   : > { %v1134_v38 = vadd.bf16 %v9371_v5, %v1015_v41  ;;  %v1133_v56 = vadd.bf16 %v9371_v5, %v1003_v39  ;;  %v9525_v10 = vmax.bf16 %v1164_v43, %v1132_v1  ;;  %v9527_v50 = vmax.bf16 %v1163_v46, %v1131_v2 }
 0x187   : > { %v1031_v51 = vpop.permute.xlu1 %1030  ;;  %v1019_v59 = vpop.permute.xlu0 %1018  ;;  %v1428_v47 = vmax.bf16 %v7569_v37, %v7568_v42 }
 0x188   : > { %13213 = vst [vmem:[#allocation58_spill] sm:$0xff] %v9525_v10  ;;  %13214 = vst [vmem:[#allocation59_spill] sm:$0xff] %v9527_v50  ;;  %v1166_v35 = vmul.bf16 1045249613, %v1134_v38  ;;  %v1165_v58 = vmul.bf16 1045249613, %v1133_v56  ;;  %v1039_v34 = vrot.slane %v1031_v51, %v9369_v4  ;;  %v1027_v33 = vrot.slane %v1019_v59, %v9369_v4 }
 0x189   : > { %1426 = vmax.xlane.bf16.xlu0 %v1425_v55  ;;  %1429 = vmax.xlane.bf16.xlu1 %v1428_v47  ;;  %v7570_v14 = vcombine.low %v9527_v50, %v9525_v10  ;;  %v7571_v15 = vcombine.high %v9527_v50, %v9525_v10 }
 0x18a   : > { %v9531_v32 = vmax.bf16 %v1166_v35, %v1134_v38  ;;  %v9533_v41 = vmax.bf16 %v1165_v58, %v1133_v56  ;;  %v1136_v1 = vadd.bf16 %v9371_v5, %v1039_v34  ;;  %v1135_v2 = vadd.bf16 %v9371_v5, %v1027_v33 }
 0x18b   : > { %v1055_v43 = vpop.permute.xlu1 %1054  ;;  %v1043_v46 = vpop.permute.xlu0 %1042  ;;  %v1431_v55 = vmax.bf16 %v7571_v15, %v7570_v14 }
 0x18c   : > { %13215 = vst [vmem:[#allocation60_spill] sm:$0xff] %v9531_v32  ;;  %13216 = vst [vmem:[#allocation61_spill] sm:$0xff] %v9533_v41  ;;  %v1168_v39 = vmul.bf16 1045249613, %v1136_v1  ;;  %v1167_v42 = vmul.bf16 1045249613, %v1135_v2  ;;  %v1063_v37 = vrot.slane %v1055_v43, %v9369_v4  ;;  %v1051_v35 = vrot.slane %v1043_v46, %v9369_v4 }
 0x18d   : > { %v7572_v38 = vcombine.low %v9533_v41, %v9531_v32  ;;  %v7573_v33 = vcombine.high %v9533_v41, %v9531_v32 }
 0x18e   : > { %v1138_v34 = vadd.bf16 %v9371_v5, %v1063_v37  ;;  %v1137_v56 = vadd.bf16 %v9371_v5, %v1051_v35  ;;  %v9549_v51 = vmax.bf16 %v1168_v39, %v1136_v1  ;;  %v9551_v59 = vmax.bf16 %v1167_v42, %v1135_v2  ;;  %v9565_v39 = vld [vmem:[#allocation4 + $0x10] sm:$0xff]  ;;  %v9567_v42 = vld [vmem:[#allocation4 + $0x18] sm:$0xff]  ;;  %v9569_v35 = vld [vmem:[#allocation4] sm:$0xff] }
 0x18f   : > { %v1434_v47 = vmax.bf16 %v7573_v33, %v7572_v38  ;;  %13221 = vst [vmem:[#allocation66_spill] sm:$0xff] %v9565_v39  ;;  %13222 = vst [vmem:[#allocation67_spill] sm:$0xff] %v9567_v42  ;;  %v9571_v38 = vld [vmem:[#allocation4 + $0x8] sm:$0xff] }
 0x190   : > { %13217 = vst [vmem:[#allocation62_spill] sm:$0xff] %v9549_v51  ;;  %13218 = vst [vmem:[#allocation63_spill] sm:$0xff] %v9551_v59  ;;  %v1170_v58 = vmul.bf16 1045249613, %v1138_v34  ;;  %v1169_v43 = vmul.bf16 1045249613, %v1137_v56  ;;  %v7574_v30 = vcombine.low %v9551_v59, %v9549_v51  ;;  %v7575_v5 = vcombine.high %v9551_v59, %v9549_v51 }
 0x191   : > { %1432 = vmax.xlane.bf16.xlu0 %v1431_v55  ;;  %1435 = vmax.xlane.bf16.xlu1 %v1434_v47  ;;  %13223 = vst [vmem:[#allocation68_spill] sm:$0xff] %v9569_v35  ;;  %13224 = vst [vmem:[#allocation69_spill] sm:$0xff] %v9571_v38 }
 0x192   : > { %v9553_v46 = vmax.bf16 %v1170_v58, %v1138_v34  ;;  %v9555_v31 = vmax.bf16 %v1169_v43, %v1137_v56  ;;  %v1437_v15 = vmax.bf16 %v7575_v5, %v7574_v30 }
 0x194   : > { %13219 = vst [vmem:[#allocation64_spill] sm:$0xff] %v9553_v46  ;;  %13220 = vst [vmem:[#allocation65_spill] sm:$0xff] %v9555_v31  ;;  %v7576_v1 = vcombine.low %v9555_v31, %v9553_v46  ;;  %v7577_v2 = vcombine.high %v9555_v31, %v9553_v46 }
 0x196   : > { %v1440_v14 = vmax.bf16 %v7577_v2, %v7576_v1  ;;  %v9609_v2 = vld [vmem:[#allocation4 + $0x20] sm:$0xff]  ;;  %v12878_v1 = vmov 0.0  }
 0x197   : > { %13231 = vst [vmem:[#allocation76_spill] sm:$0xff] %v9609_v2 }
 0x199   : > { %1438 = vmax.xlane.bf16.xlu0 %v1437_v15  ;;  %1441 = vmax.xlane.bf16.xlu1 %v1440_v14 }
 0x1ee   : > { %v1400_v37 = vpop.xlane.xlu1 %1399  ;;  %v1397_v33 = vpop.xlane.xlu0 %1396 }
 0x1ef   : > { %v1445_v34 = vunpack.c.l.bf16 %v1400_v37  ;;  %v1446_v56 = vunpack.c.h.bf16 %v1400_v37  ;;  %v1443_v55 = vunpack.c.l.bf16 %v1397_v33  ;;  %v1444_v47 = vunpack.c.h.bf16 %v1397_v33 }
 0x1f1   : > { %v9574_v58 = vmax.f32 %v9565_v39, %v1445_v34  ;;  %v9577_v30 = vmax.f32 %v9567_v42, %v1446_v56  ;;  %v9580_v43 = vmax.f32 %v9569_v35, %v1443_v55  ;;  %v9583_v5 = vmax.f32 %v9571_v38, %v1444_v47  ;;  %v9605_v55 = vld [vmem:[#allocation4 + $0x30] sm:$0xff]  ;;  %v9607_v47 = vld [vmem:[#allocation4 + $0x38] sm:$0xff] }
 0x1f2   : > { %13229 = vst [vmem:[#allocation74_spill] sm:$0xff] %v9605_v55  ;;  %13230 = vst [vmem:[#allocation75_spill] sm:$0xff] %v9607_v47 }
 0x1f3   : > { %13225 = vst [vmem:[#allocation70_spill] sm:$0xff] %v9574_v58  ;;  %13226 = vst [vmem:[#allocation71_spill] sm:$0xff] %v9577_v30  ;;  %vm2742_vm1 = vcmp.gt.f32.partialorder %v9574_v58, %v9565_v39  ;;  %vm2743_vm2 = vcmp.gt.f32.partialorder %v9577_v30, %v9567_v42  ;;  %vm2740_vm3 = vcmp.gt.f32.partialorder %v9580_v43, %v9569_v35  ;;  %v9730_v39 = vld [vmem:[#allocation4 + $0x60] sm:$0xff] }
 0x1f4   : > { %13227 = vst [vmem:[#allocation72_spill] sm:$0xff] %v9580_v43  ;;  %13228 = vst [vmem:[#allocation73_spill] sm:$0xff] %v9583_v5  ;;  %vm2741_vm4 = vcmp.gt.f32.partialorder %v9583_v5, %v9571_v38  ;;  %v1508_v34 = vpack.c.bf16 %v9577_v30, %v9574_v58  ;;  %v1507_v56 = vpack.c.bf16 %v9583_v5, %v9580_v43  ;;  %v2774_v15 = vsel %vm2742_vm1, 1.0, %v12878_v1  ;;  %v9728_v58 = vld [vmem:[#allocation4 + $0x78] sm:$0xff]  ;;  %v9732_v5 = vld [vmem:[#allocation4 + $0x68] sm:$0xff] }
 0x1f5   : > { %13246 = vst [vmem:[#allocation91_spill] sm:$0xff] %v9728_v58  ;;  %13247 = vst [vmem:[#allocation92_spill] sm:$0xff] %v9730_v39 }
 0x1f6   : > { %v1406_v37 = vpop.xlane.xlu1 %1405  ;;  %v1403_v33 = vpop.xlane.xlu0 %1402  ;;  %1529 = vperm.xlu1 %8029, %v1508_v34   ;;  %1525 = vperm.xlu0 %8028, %v1507_v56   ;;  %v2775_v34 = vsel %vm2743_vm2, 1.0, %v12878_v1  ;;  %13248 = vst [vmem:[#allocation93_spill] sm:$0xff] %v9732_v5 }
 0x1f7   : > { %v1449_v14 = vunpack.c.l.bf16 %v1406_v37  ;;  %v1450_v29 = vunpack.c.h.bf16 %v1406_v37  ;;  %v1447_v27 = vunpack.c.l.bf16 %v1403_v33  ;;  %v1448_v26 = vunpack.c.h.bf16 %v1403_v33 }
 0x1f8   : > { %v9628_v37 = vsel %vm2707_vm5, %v2774_v15, -inf }
 0x1f9   : > { %v9615_v25 = vmax.f32 %v9605_v55, %v1449_v14  ;;  %v9618_v24 = vmax.f32 %v9607_v47, %v1450_v29  ;;  %v9621_v23 = vmax.f32 %v9609_v2, %v1447_v27  ;;  %v9631_v56 = vmax.f32 %v9612_v28, %v1448_v26 }
 0x1fa   : > { %v9648_v14 = vsel %vm2707_vm5, %v2775_v34, -inf  ;;  %v2772_v29 = vsel %vm2740_vm3, 1.0, %v12878_v1  ;;  %v2773_v26 = vsel %vm2741_vm4, 1.0, %v12878_v1 }
 0x1fb   : > { %13233 = vst [vmem:[#allocation78_spill] sm:$0xff] %v9615_v25  ;;  %13234 = vst [vmem:[#allocation79_spill] sm:$0xff] %v9618_v24  ;;  %vm2746_vm6 = vcmp.gt.f32.partialorder %v9615_v25, %v9605_v55  ;;  %vm2747_vm7 = vcmp.gt.f32.partialorder %v9618_v24, %v9607_v47  ;;  %vm2744_vm8 = vcmp.gt.f32.partialorder %v9621_v23, %v9609_v2  ;;  %v9684_v55 = vsel %vm2707_vm5, %v2773_v26, -inf  ;;  %v9698_v26 = vld [vmem:[#allocation4 + $0x40] sm:$0xff]  ;;  %v9700_v2 = vld [vmem:[#allocation4 + $0x48] sm:$0xff] }
 0x1fc   : > { %13235 = vst [vmem:[#allocation80_spill] sm:$0xff] %v9621_v23  ;;  %13236 = vst [vmem:[#allocation81_spill] sm:$0xff] %v9631_v56  ;;  %v2778_v27 = vsel %vm2746_vm6, 1.0, %v12878_v1  ;;  %v2779_v15 = vsel %vm2747_vm7, 1.0, %v12878_v1  ;;  %vm2745_vm9 = vcmp.gt.f32.partialorder %v9631_v56, %v9612_v28  ;;  %v2776_v18 = vsel %vm2744_vm8, 1.0, %v12878_v1 }
 0x1fd   : > { %v9655_v22 = vsel %vm2707_vm5, %v2778_v27, -inf  ;;  %v9658_v21 = vsel %vm2707_vm5, %v2779_v15, -inf  ;;  %v1510_v27 = vpack.c.bf16 %v9618_v24, %v9615_v25  ;;  %v9675_v15 = vsel %vm2707_vm5, %v2772_v29, -inf  ;;  %v9692_v29 = vld [vmem:[#allocation4 + $0x58] sm:$0xff]  ;;  %13239 = vst [vmem:[#allocation84_spill] sm:$0xff] %v9698_v26  ;;  %13240 = vst [vmem:[#allocation85_spill] sm:$0xff] %v9700_v2 }
 0x1fe   : > { %v1412_v20 = vpop.xlane.xlu1 %1411  ;;  %v2777_v34 = vsel %vm2745_vm9, 1.0, %v12878_v1  ;;  %v1509_v33 = vpack.c.bf16 %v9631_v56, %v9621_v23  ;;  %v1409_v47 = vpop.xlane.xlu0 %1408  ;;  %v9687_v28 = vsel %vm2707_vm5, %v2776_v18, -inf  ;;  %13238 = vst [vmem:[#allocation83_spill] sm:$0xff] %v9692_v29 }
 0x1ff   : > { %v9690_v24 = vsel %vm2707_vm5, %v2777_v34, -inf  ;;  %1537 = vperm.xlu1 %8029, %v1510_v27   ;;  %v1453_v25 = vunpack.c.l.bf16 %v1412_v20  ;;  %v1454_v23 = vunpack.c.h.bf16 %v1412_v20  ;;  %v1451_v34 = vunpack.c.l.bf16 %v1409_v47 }
 0x200   : > { %1533 = vperm.xlu0 %8028, %v1509_v33   ;;  %v1452_v27 = vunpack.c.h.bf16 %v1409_v47 }
 0x201   : > { %v9703_v18 = vmax.f32 %v9681_v17, %v1453_v25  ;;  %v9706_v30 = vmax.f32 %v9692_v29, %v1454_v23  ;;  %v9711_v42 = vmax.f32 %v9698_v26, %v1451_v34 }
 0x202   : > { %v9714_v20 = vmax.f32 %v9700_v2, %v1452_v27  ;;  %v9726_v27 = vld [vmem:[#allocation4 + $0x70] sm:$0xff] }
 0x203   : > { %13241 = vst [vmem:[#allocation86_spill] sm:$0xff] %v9703_v18  ;;  %13242 = vst [vmem:[#allocation87_spill] sm:$0xff] %v9706_v30  ;;  %v1512_v25 = vpack.c.bf16 %v9706_v30, %v9703_v18  ;;  %vm2750_vm10 = vcmp.gt.f32.partialorder %v9703_v18, %v9681_v17  ;;  %vm2751_vm11 = vcmp.gt.f32.partialorder %v9706_v30, %v9692_v29  ;;  %v13258_v30 = vmov 0.0   ;;  %v9782_v17 = vld [vmem:[#allocation4 + $0x88] sm:$0xff] }
 0x204   : > { %13243 = vst [vmem:[#allocation88_spill] sm:$0xff] %v9711_v42  ;;  %13244 = vst [vmem:[#allocation89_spill] sm:$0xff] %v9714_v20  ;;  %v1511_v34 = vpack.c.bf16 %v9714_v20, %v9711_v42  ;;  %vm2748_vm12 = vcmp.gt.f32.partialorder %v9711_v42, %v9698_v26  ;;  %vm2749_vm13 = vcmp.gt.f32.partialorder %v9714_v20, %v9700_v2  ;;  %v2782_v29 = vsel %vm2750_vm10, 1.0, %v13258_v30 }
 0x205   : > { %1545 = vperm.xlu1 %8029, %v1512_v25   ;;  %13245 = vst [vmem:[#allocation90_spill] sm:$0xff] %v9726_v27  ;;  %13259 = vst [vmem:[#allocation103_spill] sm:$0xff] %v9782_v17  ;;  %v2780_v42 = vsel %vm2748_vm12, 1.0, %v13258_v30  ;;  %v2781_v2 = vsel %vm2749_vm13, 1.0, %v13258_v30 }
 0x206   : > { %v1418_v1 = vpop.xlane.xlu1 %1417  ;;  %v1415_v56 = vpop.xlane.xlu0 %1414  ;;  %1541 = vperm.xlu0 %8028, %v1511_v34   ;;  %v9748_v34 = vld [vmem:[#allocation4 + $0x90] sm:$0xff] }
 0x207   : > { %v1457_v33 = vunpack.c.l.bf16 %v1418_v1  ;;  %v1458_v47 = vunpack.c.h.bf16 %v1418_v1  ;;  %v1455_v43 = vunpack.c.l.bf16 %v1415_v56  ;;  %v1456_v23 = vunpack.c.h.bf16 %v1415_v56  ;;  %13253 = vst [vmem:[#allocation98_spill] sm:$0xff] %v9748_v34 }
 0x209   : > { %v9735_v25 = vmax.f32 %v9726_v27, %v1457_v33  ;;  %v9738_v35 = vmax.f32 %v9728_v58, %v1458_v47  ;;  %v9741_v51 = vmax.f32 %v9730_v39, %v1455_v43  ;;  %v9744_v59 = vmax.f32 %v9732_v5, %v1456_v23  ;;  %v9754_v47 = vld [vmem:[#allocation4 + $0x98] sm:$0xff]  ;;  %v9776_v43 = vld [vmem:[#allocation4 + $0x80] sm:$0xff] }
 0x20a   : > { %13254 = vst [vmem:[#allocation99_spill] sm:$0xff] %v9754_v47  ;;  %13257 = vst [vmem:[#allocation102_spill] sm:$0xff] %v9776_v43 }
 0x20b   : > { %13249 = vst [vmem:[#allocation94_spill] sm:$0xff] %v9735_v25  ;;  %13250 = vst [vmem:[#allocation95_spill] sm:$0xff] %v9738_v35  ;;  %v1514_v56 = vpack.c.bf16 %v9738_v35, %v9735_v25  ;;  %vm2754_vm14 = vcmp.gt.f32.partialorder %v9735_v25, %v9726_v27  ;;  %vm2755_vm15 = vcmp.gt.f32.partialorder %v9738_v35, %v9728_v58  ;;  %v2818_v25 = vsel %vm2707_vm5, %v2781_v2, -inf }
 0x20c   : > { %13251 = vst [vmem:[#allocation96_spill] sm:$0xff] %v9741_v51  ;;  %13252 = vst [vmem:[#allocation97_spill] sm:$0xff] %v9744_v59  ;;  %v13264_v2 = vmax.f32 %v9675_v15, %v9687_v28  ;;  %vm2752_vm0 = vcmp.gt.f32.partialorder %v9741_v51, %v9730_v39  ;;  %vm2753_vm1 = vcmp.gt.f32.partialorder %v9744_v59, %v9732_v5  ;;  %v9839_v15 = vld [vmem:[#allocation4 + $0xb8] sm:$0xff] }
 0x20d   : > { %1553 = vperm.xlu1 %8029, %v1514_v56   ;;  %v2820_v56 = vsel %vm2707_vm5, %v2782_v29, -inf  ;;  %v2787_v29 = vsel %vm2755_vm15, 1.0, %v13258_v30  ;;  %13267 = vst [vmem:[#allocation107_spill] sm:$0xff] %v9839_v15 }
 0x20e   : > { %v1424_v38 = vpop.xlane.xlu1 %1423  ;;  %v1421_v23 = vpop.xlane.xlu0 %1420 }
 0x20f   : > { %v1461_v46 = vunpack.c.l.bf16 %v1424_v38  ;;  %v1462_v1 = vunpack.c.h.bf16 %v1424_v38  ;;  %v1459_v31 = vunpack.c.l.bf16 %v1421_v23  ;;  %v1460_v33 = vunpack.c.h.bf16 %v1421_v23 }
 0x211   : > { %v9759_v10 = vmax.f32 %v9748_v34, %v1461_v46  ;;  %v9766_v38 = vmax.f32 %v9754_v47, %v1462_v1  ;;  %v1513_v46 = vpack.c.bf16 %v9744_v59, %v9741_v51  ;;  %v2783_v1 = vsel %vm2751_vm11, 1.0, %v13258_v30 }
 0x212   : > { %v9791_v23 = vmax.f32 %v9776_v43, %v1459_v31  ;;  %v2822_v18 = vsel %vm2707_vm5, %v2783_v1, -inf  ;;  %v9796_v26 = vmax.f32 %v9782_v17, %v1460_v33  ;;  %v2786_v31 = vsel %vm2754_vm14, 1.0, %v13258_v30 }
 0x213   : > { %13255 = vst [vmem:[#allocation100_spill] sm:$0xff] %v9759_v10  ;;  %13256 = vst [vmem:[#allocation101_spill] sm:$0xff] %v9766_v38  ;;  %1549 = vperm.xlu0 %8028, %v1513_v46   ;;  %v2816_v46 = vsel %vm2707_vm5, %v2780_v42, -inf  ;;  %v13262_v33 = vmax.f32 %v9628_v37, %v9655_v22  ;;  %v13263_v42 = vmax.f32 %v9648_v14, %v9658_v21  ;;  %v9829_v21 = vld [vmem:[#allocation4 + $0xb0] sm:$0xff]  ;;  %v2828_v28 = vsel %vm2707_vm5, %v2786_v31, -inf }
 0x214   : > { %13260 = vst [vmem:[#allocation104_spill] sm:$0xff] %v9791_v23  ;;  %13261 = vst [vmem:[#allocation105_spill] sm:$0xff] %v9796_v26  ;;  %v1516_v20 = vpack.c.bf16 %v9766_v38, %v9759_v10  ;;  %v9822_v58 = vmax.f32 %v13264_v2, %v2816_v46  ;;  %v1515_v22 = vpack.c.bf16 %v9796_v26, %v9791_v23  ;;  %v9841_v46 = vld [vmem:[#allocation4 + $0xa0] sm:$0xff]  ;;  %v2830_v31 = vsel %vm2707_vm5, %v2787_v29, -inf }
 0x215   : > { %v9810_v1 = vmax.f32 %v13262_v33, %v2820_v56  ;;  %v9815_v27 = vmax.f32 %v13263_v42, %v2822_v18  ;;  %13265 = vst [vmem:[#allocation106_spill] sm:$0xff] %v9829_v21  ;;  %v13266_v14 = vmax.f32 %v9684_v55, %v9690_v24  ;;  %13268 = vst [vmem:[#allocation108_spill] sm:$0xff] %v9841_v46  ;;  %v9843_v33 = vld [vmem:[#allocation4 + $0xa8] sm:$0xff] }
 0x216   : > { %v1430_v50 = vpop.xlane.xlu1 %1429  ;;  %v1427_v35 = vpop.xlane.xlu0 %1426  ;;  %1561 = vperm.xlu1 %8029, %v1516_v20   ;;  %13269 = vst [vmem:[#allocation109_spill] sm:$0xff] %v9843_v33  ;;  %vm2758_vm2 = vcmp.gt.f32.partialorder %v9759_v10, %v9748_v34  ;;  %v2784_v20 = vsel %vm2752_vm0, 1.0, %v13258_v30  ;;  %vm2759_vm3 = vcmp.gt.f32.partialorder %v9766_v38, %v9754_v47  ;;  %vm2756_vm4 = vcmp.gt.f32.partialorder %v9791_v23, %v9776_v43 }
 0x217   : > { %v9834_v18 = vmax.f32 %v13266_v14, %v2818_v25  ;;  %v1465_v56 = vunpack.c.l.bf16 %v1430_v50  ;;  %1557 = vperm.xlu0 %8028, %v1515_v22   ;;  %v1466_v24 = vunpack.c.h.bf16 %v1430_v50  ;;  %v1463_v55 = vunpack.c.l.bf16 %v1427_v35 }
 0x218   : > { %v1464_v25 = vunpack.c.h.bf16 %v1427_v35  ;;  %v9864_v35 = vld [vmem:[#allocation4 + $0xd0] sm:$0xff]  ;;  %v2785_v22 = vsel %vm2753_vm1, 1.0, %v13258_v30  ;;  %vm2757_vm6 = vcmp.gt.f32.partialorder %v9796_v26, %v9782_v17  ;;  %v2829_v47 = vmax.f32 %v9810_v1, %v2828_v28 }
 0x219   : > { %v9853_v42 = vmax.f32 %v9829_v21, %v1465_v56  ;;  %v9856_v14 = vmax.f32 %v9839_v15, %v1466_v24  ;;  %v9859_v32 = vmax.f32 %v9841_v46, %v1463_v55  ;;  %13274 = vst [vmem:[#allocation114_spill] sm:$0xff] %v9864_v35  ;;  %v2790_v56 = vsel %vm2758_vm2, 1.0, %v13258_v30  ;;  %v9878_v55 = vld [vmem:[#allocation4 + $0xd8] sm:$0xff] }
 0x21a   : > { %v9862_v50 = vmax.f32 %v9843_v33, %v1464_v25  ;;  %13275 = vst [vmem:[#allocation115_spill] sm:$0xff] %v9878_v55  ;;  %v2824_v10 = vsel %vm2707_vm5, %v2784_v20, -inf  ;;  %v2831_v23 = vmax.f32 %v9815_v27, %v2830_v31  ;;  %v2826_v26 = vsel %vm2707_vm5, %v2785_v22, -inf  ;;  %v9909_v31 = vld [vmem:[#allocation4 + $0xc0] sm:$0xff] }
 0x21b   : > { %13270 = vst [vmem:[#allocation110_spill] sm:$0xff] %v9853_v42  ;;  %13271 = vst [vmem:[#allocation111_spill] sm:$0xff] %v9856_v14  ;;  %v2836_v25 = vsel %vm2707_vm5, %v2790_v56, -inf  ;;  %v2788_v1 = vsel %vm2756_vm4, 1.0, %v13258_v30  ;;  %v2789_v28 = vsel %vm2757_vm6, 1.0, %v13258_v30  ;;  %v2825_v24 = vmax.f32 %v9822_v58, %v2824_v10  ;;  %v9917_v10 = vld [vmem:[#allocation4 + $0xc8] sm:$0xff] }
 0x21c   : > { %13272 = vst [vmem:[#allocation112_spill] sm:$0xff] %v9859_v32  ;;  %13273 = vst [vmem:[#allocation113_spill] sm:$0xff] %v9862_v50  ;;  %vm2762_vm7 = vcmp.gt.f32.partialorder %v9853_v42, %v9829_v21  ;;  %v1518_v27 = vpack.c.bf16 %v9856_v14, %v9853_v42  ;;  %v1517_v56 = vpack.c.bf16 %v9862_v50, %v9859_v32  ;;  %v2832_v5 = vsel %vm2707_vm5, %v2788_v1, -inf  ;;  %v590_v21 = vld [vmem:[%s8891_s19 + $0x38] sm:$0xff] }
 0x21d   : > { %13278 = vst [vmem:[#allocation118_spill] sm:$0xff] %v9909_v31  ;;  %13279 = vst [vmem:[#allocation119_spill] sm:$0xff] %v9917_v10  ;;  %v9919_v59 = vmax.f32 %v2829_v47, %v2836_v25  ;;  %v2834_v51 = vsel %vm2707_vm5, %v2789_v28, -inf  ;;  %vm2763_vm8 = vcmp.gt.f32.partialorder %v9856_v14, %v9839_v15  ;;  %vm2760_vm9 = vcmp.gt.f32.partialorder %v9859_v32, %v9841_v46  ;;  %v9943_v25 = vld [vmem:[#allocation4 + $0xf0] sm:$0xff] }
 0x21e   : > { %v1436_v37 = vpop.xlane.xlu1 %1435  ;;  %v1433_v38 = vpop.xlane.xlu0 %1432  ;;  %1569 = vperm.xlu1 %8029, %v1518_v27   ;;  %1565 = vperm.xlu0 %8028, %v1517_v56   ;;  %vm2761_vm10 = vcmp.gt.f32.partialorder %v9862_v50, %v9843_v33  ;;  %13282 = vst [vmem:[#allocation122_spill] sm:$0xff] %v9943_v25  ;;  %v2833_v27 = vmax.f32 %v2825_v24, %v2832_v5 }
 0x21f   : > { %v1469_v2 = vunpack.c.l.bf16 %v1436_v37  ;;  %v1470_v29 = vunpack.c.h.bf16 %v1436_v37  ;;  %v2791_v37 = vsel %vm2759_vm3, 1.0, %v13258_v30  ;;  %v1467_v20 = vunpack.c.l.bf16 %v1433_v38 }
 0x220   : > { %v2838_v22 = vsel %vm2707_vm5, %v2791_v37, -inf }
 0x221   : > { %v9893_v34 = vmax.f32 %v9864_v35, %v1469_v2  ;;  %v9899_v17 = vmax.f32 %v9878_v55, %v1470_v29  ;;  %v1468_v2 = vunpack.c.h.bf16 %v1433_v38  ;;  %v2827_v29 = vmax.f32 %v9834_v18, %v2826_v26 }
 0x222   : > { %v2794_v38 = vsel %vm2762_vm7, 1.0, %v13258_v30  ;;  %v9934_v47 = vmax.f32 %v9909_v31, %v1467_v20  ;;  %v9945_v28 = vmax.f32 %v2831_v23, %v2838_v22  ;;  %v9949_v20 = vld [vmem:[#allocation4 + $0xf8] sm:$0xff]  ;;  %v2792_v23 = vsel %vm2760_vm9, 1.0, %v13258_v30 }
 0x223   : > { %13276 = vst [vmem:[#allocation116_spill] sm:$0xff] %v9893_v34  ;;  %13277 = vst [vmem:[#allocation117_spill] sm:$0xff] %v9899_v17  ;;  %v9939_v18 = vmax.f32 %v9917_v10, %v1468_v2  ;;  %v1520_v37 = vpack.c.bf16 %v9899_v17, %v9893_v34  ;;  %v2835_v42 = vmax.f32 %v2827_v29, %v2834_v51  ;;  %v2795_v2 = vsel %vm2763_vm8, 1.0, %v13258_v30 }
 0x224   : > { %13280 = vst [vmem:[#allocation120_spill] sm:$0xff] %v9934_v47  ;;  %13283 = vst [vmem:[#allocation123_spill] sm:$0xff] %v9949_v20  ;;  %v2844_v24 = vsel %vm2707_vm5, %v2794_v38, -inf  ;;  %v2793_v51 = vsel %vm2761_vm10, 1.0, %v13258_v30  ;;  %vm2766_vm11 = vcmp.gt.f32.partialorder %v9893_v34, %v9864_v35  ;;  %v9978_v38 = vld [vmem:[#allocation4 + $0xe8] sm:$0xff]  ;;  %v2840_v14 = vsel %vm2707_vm5, %v2792_v23, -inf }
 0x225   : > { %13281 = vst [vmem:[#allocation121_spill] sm:$0xff] %v9939_v18  ;;  %1577 = vperm.xlu1 %8029, %v1520_v37   ;;  %v1519_v29 = vpack.c.bf16 %v9939_v18, %v9934_v47  ;;  %13287 = vst [vmem:[#allocation127_spill] sm:$0xff] %v9978_v38  ;;  %vm2764_vm12 = vcmp.gt.f32.partialorder %v9934_v47, %v9909_v31  ;;  %vm2765_vm13 = vcmp.gt.f32.partialorder %v9939_v18, %v9917_v10  ;;  %v584_v18 = vld [vmem:[%s8891_s19 + $0x8] sm:$0xff]  ;;  %v585_v10 = vld [vmem:[%s8891_s19 + $0x10] sm:$0xff] }
 0x226   : > { %v1442_v58 = vpop.xlane.xlu1 %1441  ;;  %v1439_v43 = vpop.xlane.xlu0 %1438  ;;  %v2842_v34 = vsel %vm2707_vm5, %v2793_v51, -inf  ;;  %vm2767_vm14 = vcmp.gt.f32.partialorder %v9899_v17, %v9878_v55  ;;  %v2798_v23 = vsel %vm2766_vm11, 1.0, %v13258_v30  ;;  %v2797_v35 = vsel %vm2765_vm13, 1.0, %v13258_v30  ;;  %v583_v55 = vld [vmem:[%s8891_s19] sm:$0xff] }
 0x227   : > { %v1473_v1 = vunpack.c.l.bf16 %v1442_v58  ;;  %v1474_v26 = vunpack.c.h.bf16 %v1442_v58  ;;  %v9971_v58 = vld [vmem:[#allocation4 + $0xe0] sm:$0xff]  ;;  %v1471_v5 = vunpack.c.l.bf16 %v1439_v43  ;;  %v1472_v56 = vunpack.c.h.bf16 %v1439_v43  ;;  %1573 = vperm.xlu0 %8028, %v1519_v29  }
 0x228   : > { %13285 = vst [vmem:[#allocation125_spill] sm:$0xff] %v9971_v58  ;;  %v2799_v43 = vsel %vm2767_vm14, 1.0, %v13258_v30  ;;  %vm599_vm3 = vnez %v583_v55  ;;  %vm600_vm4 = vnez %v584_v18  ;;  %vm601_vm6 = vnez %v585_v10 }
 0x229   : > { %v9969_v22 = vmax.f32 %v9943_v25, %v1473_v1  ;;  %v9976_v37 = vmax.f32 %v9949_v20, %v1474_v26  ;;  %v9993_v26 = vmax.f32 %v9971_v58, %v1471_v5  ;;  %v9999_v29 = vmax.f32 %v9978_v38, %v1472_v56 }
 0x22a   : > { %v2796_v1 = vsel %vm2764_vm12, 1.0, %v13258_v30 }
 0x22b   : > { %13284 = vst [vmem:[#allocation124_spill] sm:$0xff] %v9969_v22  ;;  %13286 = vst [vmem:[#allocation126_spill] sm:$0xff] %v9976_v37  ;;  %vm2770_vm15 = vcmp.gt.f32.partialorder %v9969_v22, %v9943_v25  ;;  %v1522_v51 = vpack.c.bf16 %v9976_v37, %v9969_v22  ;;  %vm2768_vm0 = vcmp.gt.f32.partialorder %v9993_v26, %v9971_v58  ;;  %v2846_v22 = vsel %vm2707_vm5, %v2795_v2, -inf }
 0x22c   : > { %13288 = vst [vmem:[#allocation128_spill] sm:$0xff] %v9993_v26  ;;  %13289 = vst [vmem:[#allocation129_spill] sm:$0xff] %v9999_v29  ;;  %vm2771_vm1 = vcmp.gt.f32.partialorder %v9976_v37, %v9949_v20  ;;  %vm2769_vm2 = vcmp.gt.f32.partialorder %v9999_v29, %v9978_v38  ;;  %v1521_v5 = vpack.c.bf16 %v9999_v29, %v9993_v26  ;;  %v2802_v37 = vsel %vm2770_vm15, 1.0, %v13258_v30 }
 0x22d   : > { %1585 = vperm.xlu1 %8029, %v1522_v51   ;;  %v2841_v20 = vmax.f32 %v2833_v27, %v2840_v14  ;;  %v2800_v56 = vsel %vm2768_vm0, 1.0, %v13258_v30  ;;  %v2801_v51 = vsel %vm2769_vm2, 1.0, %v13258_v30  ;;  %v2843_v25 = vmax.f32 %v2835_v42, %v2842_v34 }
 0x22e   : > { %1581 = vperm.xlu0 %8028, %v1521_v5   ;;  %v2845_v29 = vmax.f32 %v9919_v59, %v2844_v24  ;;  %v2803_v2 = vsel %vm2771_vm1, 1.0, %v13258_v30  ;;  %v2848_v38 = vsel %vm2707_vm5, %v2796_v1, -inf  ;;  %v2850_v26 = vsel %vm2707_vm5, %v2797_v35, -inf }
 0x22f   : > { %v2852_v58 = vsel %vm2707_vm5, %v2798_v23, -inf  ;;  %v2847_v17 = vmax.f32 %v9945_v28, %v2846_v22  ;;  %v2849_v14 = vmax.f32 %v2841_v20, %v2848_v38  ;;  %v2851_v27 = vmax.f32 %v2843_v25, %v2850_v26 }
 0x230   : > { %v2853_v5 = vmax.f32 %v2845_v29, %v2852_v58  ;;  %v2854_v34 = vsel %vm2707_vm5, %v2799_v43, -inf  ;;  %v2856_v59 = vsel %vm2707_vm5, %v2800_v56, -inf  ;;  %v2858_v30 = vsel %vm2707_vm5, %v2801_v51, -inf  ;;  %v586_v43 = vld [vmem:[%s8891_s19 + $0x18] sm:$0xff] }
 0x231   : > { %v2860_v42 = vsel %vm2707_vm5, %v2802_v37, -inf  ;;  %v2855_v35 = vmax.f32 %v2847_v17, %v2854_v34  ;;  %v2857_v24 = vmax.f32 %v2849_v14, %v2856_v59  ;;  %v2859_v1 = vmax.f32 %v2851_v27, %v2858_v30 }
 0x232   : > { %v2861_v23 = vmax.f32 %v2853_v5, %v2860_v42  ;;  %v2862_v28 = vsel %vm2707_vm5, %v2803_v2, -inf  ;;  %v13290_v22 = vmov 0   ;;  %vm602_vm7 = vnez %v586_v43 }
 0x233   : > { %v2863_v25 = vmax.f32 %v2855_v35, %v2862_v28  ;;  %v10039_v20 = vmax.f32 %v2857_v24, %v2859_v1  ;;  %v1987_v58 = vsel %vm599_vm3, 16843009, %v13290_v22  ;;  %v1988_v38 = vsel %vm600_vm4, 16843009, %v13290_v22 }
 0x234   : > { %v2005_v26 = vunpack.c.1.s8 %v1987_v58  ;;  %v2006_v29 = vunpack.c.1.s8 %v1988_v38  ;;  %v2003_v37 = vunpack.c.0.s8 %v1987_v58  ;;  %v2004_v17 = vunpack.c.0.s8 %v1988_v38 }
 0x235   : > { %v10044_v56 = vmax.f32 %v2861_v23, %v2863_v25  ;;  %v2007_v51 = vunpack.c.2.s8 %v1987_v58  ;;  %v2008_v10 = vunpack.c.2.s8 %v1988_v38  ;;  %v1989_v18 = vsel %vm601_vm6, 16843009, %v13290_v22 }
 0x236   : > { %v1990_v2 = vsel %vm602_vm7, 16843009, %v13290_v22  ;;  %v2069_v14 = vpack.c.b16 %v2006_v29, %v2005_v26  ;;  %v2067_v27 = vpack.c.b16 %v2004_v17, %v2003_v37  ;;  %v2009_v5 = vunpack.c.3.s8 %v1987_v58  ;;  %v587_v17 = vld [vmem:[%s8891_s19 + $0x20] sm:$0xff] }
 0x237   : > { %v2010_v34 = vunpack.c.3.s8 %v1988_v38  ;;  %v2011_v59 = vunpack.c.0.s8 %v1989_v18  ;;  %v2012_v30 = vunpack.c.0.s8 %v1990_v2  ;;  %v8695_v42 = vmov 1985246804  }
 0x238   : > { %v1611_v35 = vunpack.c.l.s4 %v8695_v42  ;;  %v2071_v24 = vpack.c.b16 %v2008_v10, %v2007_v51  ;;  %v2070_v1 = vpack.c.b8 %v2069_v14, %v2069_v14  ;;  %v2068_v23 = vpack.c.b8 %v2067_v27, %v2067_v27  ;;  %v588_v51 = vld [vmem:[%s8891_s19 + $0x28] sm:$0xff] }
 0x239   : > { %v2073_v28 = vpack.c.b16 %v2010_v34, %v2009_v5  ;;  %v2075_v25 = vpack.c.b16 %v2012_v30, %v2011_v59  ;;  %v2013_v43 = vunpack.c.1.s8 %v1989_v18  ;;  %v2014_v55 = vunpack.c.1.s8 %v1990_v2 }
 0x23a   : > { %v2015_v47 = vunpack.c.2.s8 %v1989_v18  ;;  %v1612_v31 = vunpack.c.0.s8 %v1611_v35  ;;  %v2072_v15 = vpack.c.b8 %v2071_v24, %v2071_v24  ;;  %v2016_v26 = vunpack.c.2.s8 %v1990_v2 }
 0x23b   : > { %vm2132_vm8 = vnez %v2070_v1  ;;  %vm2131_vm9 = vnez %v2068_v23  ;;  %v2074_v58 = vpack.c.b8 %v2073_v28, %v2073_v28  ;;  %v2076_v38 = vpack.c.b8 %v2075_v25, %v2075_v25 }
 0x23c   : > { %v2077_v29 = vpack.c.b16 %v2014_v55, %v2013_v43  ;;  %v2079_v37 = vpack.c.b16 %v2016_v26, %v2015_v47  ;;  %v10053_v10 = vsub.s32 %v1612_v31, %v9347_v53  ;;  %v2164_v14 = vsel %vm2132_vm8, 16843009, %v13290_v22 }
 0x23d   : > { %v2163_v27 = vsel %vm2131_vm9, 16843009, %v13290_v22  ;;  %vm2133_vm10 = vnez %v2072_v15  ;;  %vm2134_vm11 = vnez %v2074_v58  ;;  %v2017_v5 = vunpack.c.3.s8 %v1989_v18 }
 0x23e   : > { %13291 = vst [vmem:[#allocation130_spill] sm:$0xff] %v10053_v10  ;;  %v2018_v34 = vunpack.c.3.s8 %v1990_v2  ;;  %vm603_vm12 = vnez %v587_v17  ;;  %vm2135_vm13 = vnez %v2076_v38  ;;  %v2078_v59 = vpack.c.b8 %v2077_v29, %v2077_v29  ;;  %v589_v17 = vld [vmem:[%s8891_s19 + $0x30] sm:$0xff] }
 0x23f   : > { %v2080_v30 = vpack.c.b8 %v2079_v37, %v2079_v37  ;;  %vm604_vm14 = vnez %v588_v51  ;;  %v2198_v55 = vunpack.c.1.s8 %v2164_v14  ;;  %v2199_v47 = vunpack.c.0.s8 %v2164_v14 }
 0x240   : > { %v2081_v42 = vpack.c.b16 %v2018_v34, %v2017_v5  ;;  %v1991_v35 = vsel %vm603_vm12, 16843009, %v13290_v22  ;;  %v2195_v53 = vunpack.c.1.s8 %v2163_v27  ;;  %v2165_v31 = vsel %vm2133_vm10, 16843009, %v13290_v22 }
 0x241   : > { %v2166_v24 = vsel %vm2134_vm11, 16843009, %v13290_v22  ;;  %v1992_v15 = vsel %vm604_vm14, 16843009, %v13290_v22  ;;  %v2167_v18 = vsel %vm2135_vm13, 16843009, %v13290_v22  ;;  %v2019_v2 = vunpack.c.0.s8 %v1991_v35 }
 0x242   : > { %v2020_v1 = vunpack.c.0.s8 %v1992_v15  ;;  %v2021_v23 = vunpack.c.1.s8 %v1991_v35  ;;  %vm10062_vm15 = vnez %v2078_v59  ;;  %vm10066_vm0 = vnez %v2080_v30 }
 0x243   : > { %v2082_v43 = vpack.c.b8 %v2081_v42, %v2081_v42  ;;  %v2022_v26 = vunpack.c.1.s8 %v1992_v15  ;;  %v2196_v58 = vunpack.c.0.s8 %v2163_v27  ;;  %v2023_v29 = vunpack.c.2.s8 %v1991_v35 }
 0x244   : > { %v2083_v38 = vpack.c.b16 %v2020_v1, %v2019_v2  ;;  %v2024_v37 = vunpack.c.2.s8 %v1992_v15  ;;  %v2201_v51 = vunpack.c.1.s8 %v2165_v31  ;;  %v2202_v14 = vunpack.c.0.s8 %v2165_v31 }
 0x245   : > { %v2204_v5 = vunpack.c.1.s8 %v2166_v24  ;;  %v2205_v34 = vunpack.c.0.s8 %v2166_v24  ;;  %v13296_v59 = vmax.f32 %v10039_v20, %v10044_v56  ;;  %v2207_v30 = vunpack.c.1.s8 %v2167_v18 }
 0x246   : > { %v2168_v42 = vsel %vm10062_vm15, 16843009, %v13290_v22  ;;  %v2169_v27 = vsel %vm10066_vm0, 16843009, %v13290_v22  ;;  %v2085_v2 = vpack.c.b16 %v2022_v26, %v2021_v23  ;;  %vm2138_vm1 = vnez %v2082_v43 }
 0x247   : > { %v2025_v1 = vunpack.c.3.s8 %v1991_v35  ;;  %v2026_v31 = vunpack.c.3.s8 %v1992_v15  ;;  %vm605_vm2 = vnez %v589_v17  ;;  %v2208_v24 = vunpack.c.0.s8 %v2167_v18  ;;  %v591_v17 = vld [vmem:[%s8891_s19 + $0x40] sm:$0xff] }
 0x248   : > { %v2084_v50 = vpack.c.b8 %v2083_v38, %v2083_v38  ;;  %v2087_v33 = vpack.c.b16 %v2024_v37, %v2023_v29  ;;  %vm606_vm3 = vnez %v590_v21  ;;  %v2210_v20 = vunpack.c.1.s8 %v2168_v42 }
 0x249   : > { %v2211_v56 = vunpack.c.0.s8 %v2168_v42  ;;  %v2214_v32 = vunpack.c.0.s8 %v2169_v27  ;;  %v10081_v46 = vpack.c.b16 %v2198_v55, %v2199_v47  ;;  %v2170_v28 = vsel %vm2138_vm1, 16843009, %v13290_v22 }
 0x24a   : > { %v2086_v39 = vpack.c.b8 %v2085_v2, %v2085_v2  ;;  %v1993_v25 = vsel %vm605_vm2, 16843009, %v13290_v22  ;;  %v10085_v23 = vpack.c.b16 %v2195_v53, %v2196_v58  ;;  %v10087_v35 = vpack.c.b16 %v2201_v51, %v2202_v14 }
 0x24b   : > { %13297 = vst [vmem:[#allocation131_spill] sm:$0xff] %v10081_v46  ;;  %v2089_v15 = vpack.c.b16 %v2026_v31, %v2025_v1  ;;  %v1994_v18 = vsel %vm606_vm3, 16843009, %v13290_v22  ;;  %v10090_v21 = vpack.c.b16 %v2204_v5, %v2205_v34  ;;  %v10092_v43 = vpack.c.b16 %v2207_v30, %v2208_v24  ;;  %v592_v30 = vld [vmem:[%s8891_s19 + $0x48] sm:$0xff] }
 0x24c   : > { %13298 = vst [vmem:[#allocation132_spill] sm:$0xff] %v10085_v23  ;;  %13299 = vst [vmem:[#allocation133_spill] sm:$0xff] %v10087_v35  ;;  %vm2139_vm4 = vnez %v2084_v50  ;;  %v2088_v55 = vpack.c.b8 %v2087_v33, %v2087_v33  ;;  %v10094_v47 = vpack.c.b16 %v2210_v20, %v2211_v56  ;;  %v2216_v38 = vunpack.c.1.s8 %v2170_v28  ;;  %v10167_v20 = vld [vmem:[%s8889_s15 + $0x1c] sm:$0xf] }
 0x24d   : > { %2867 = vmax.xlane.f32.xlu0 %v13296_v59  ;;  %v2213_v59 = vunpack.c.1.s8 %v2169_v27  ;;  %13300 = vst [vmem:[#allocation134_spill] sm:$0xff] %v10090_v21  ;;  %13301 = vst [vmem:[#allocation135_spill] sm:$0xff] %v10092_v43  ;;  %v2027_v53 = vunpack.c.0.s8 %v1993_v25  ;;  %v2217_v58 = vunpack.c.0.s8 %v2170_v28  ;;  %vm2140_vm6 = vnez %v2086_v39 }
 0x24e   : > { %13302 = vst [vmem:[#allocation136_spill] sm:$0xff] %v10094_v47  ;;  %v2028_v29 = vunpack.c.0.s8 %v1994_v18  ;;  %v2029_v37 = vunpack.c.1.s8 %v1993_v25  ;;  %v2171_v51 = vsel %vm2139_vm4, 16843009, %v13290_v22  ;;  %v2090_v14 = vpack.c.b8 %v2089_v15, %v2089_v15  ;;  %13320 = vst [vmem:[#allocation146_spill] sm:$0xff] %v10167_v20 }
 0x24f   : > { %v10096_v26 = vpack.c.b16 %v2213_v59, %v2214_v32  ;;  %v2030_v5 = vunpack.c.1.s8 %v1994_v18  ;;  %v2031_v34 = vunpack.c.2.s8 %v1993_v25  ;;  %vm10101_vm7 = vnez %v2088_v55 }
 0x250   : > { %v2091_v33 = vpack.c.b16 %v2028_v29, %v2027_v53  ;;  %v2032_v32 = vunpack.c.2.s8 %v1994_v18  ;;  %v2033_v42 = vunpack.c.3.s8 %v1993_v25  ;;  %v10106_v27 = vsel %vm2140_vm6, 16843009, %v13290_v22  ;;  %v10123_v53 = vld [vmem:[%s8889_s15] sm:$0xf]  ;;  %v10126_v29 = vld [vmem:[%s8889_s15 + $0x4] sm:$0xf] }
 0x251   : > { %13303 = vst [vmem:[#allocation137_spill] sm:$0xff] %v10096_v26  ;;  %v2093_v39 = vpack.c.b16 %v2030_v5, %v2029_v37  ;;  %v2034_v2 = vunpack.c.3.s8 %v1994_v18  ;;  %vm607_vm8 = vnez %v591_v17  ;;  %vm608_vm9 = vnez %v592_v30  ;;  %13310 = vst [vmem:[#allocation138_spill] sm:$0xff] %v10123_v53  ;;  %v10129_v37 = vld [vmem:[%s8889_s15 + $0x8] sm:$0xf]  ;;  %v10146_v30 = vld [vmem:[%s8889_s15 + $0x10] sm:$0xf] }
 0x252   : > { %v2092_v1 = vpack.c.b8 %v2091_v33, %v2091_v33  ;;  %v2095_v31 = vpack.c.b16 %v2032_v32, %v2031_v34  ;;  %v10109_v24 = vsel %vm607_vm8, 16843009, %v13290_v22  ;;  %vm10111_vm10 = vnez %v2090_v14  ;;  %13311 = vst [vmem:[#allocation139_spill] sm:$0xff] %v10126_v29  ;;  %13312 = vst [vmem:[#allocation140_spill] sm:$0xff] %v10129_v37  ;;  %v10143_v34 = vld [vmem:[%s8889_s15 + $0xc] sm:$0xf] }
 0x253   : > { %v2094_v56 = vpack.c.b8 %v2093_v39, %v2093_v39  ;;  %v2097_v59 = vpack.c.b16 %v2034_v2, %v2033_v42  ;;  %v10116_v28 = vsel %vm608_vm9, 16843009, %v13290_v22  ;;  %v2219_v25 = vunpack.c.1.s8 %v2171_v51  ;;  %13315 = vst [vmem:[#allocation141_spill] sm:$0xff] %v10143_v34  ;;  %13316 = vst [vmem:[#allocation142_spill] sm:$0xff] %v10146_v30  ;;  %v10156_v39 = vld [vmem:[%s8889_s15 + $0x14] sm:$0xf] }
 0x254   : > { %v2220_v15 = vunpack.c.0.s8 %v2171_v51  ;;  %vm10118_vm11 = vnez %v2092_v1  ;;  %v2096_v55 = vpack.c.b8 %v2095_v31, %v2095_v31  ;;  %v10134_v17 = vsel %vm10101_vm7, 16843009, %v13290_v22  ;;  %13318 = vst [vmem:[#allocation144_spill] sm:$0xff] %v10156_v39  ;;  %v10159_v2 = vld [vmem:[%s8889_s15 + $0x18] sm:$0xf] }
 0x255   : > { %vm10136_vm12 = vnez %v2094_v56  ;;  %v2035_v14 = vunpack.c.0.s8 %v10109_v24  ;;  %v2036_v5 = vunpack.c.0.s8 %v10116_v28  ;;  %v10148_v33 = vpack.c.b16 %v2216_v38, %v2217_v58  ;;  %13319 = vst [vmem:[#allocation145_spill] sm:$0xff] %v10159_v2  ;;  %v10170_v56 = vld [vmem:[%s8889_s15 + $0x20] sm:$0xf]  ;;  %v10184_v37 = vld [vmem:[%s8889_s15 + $0x24] sm:$0xf] }
 0x256   : > { %v2174_v50 = vsel %vm10111_vm10, 16843009, %v13290_v22  ;;  %v2037_v32 = vunpack.c.1.s8 %v10109_v24  ;;  %v2038_v42 = vunpack.c.1.s8 %v10116_v28  ;;  %v2222_v1 = vunpack.c.1.s8 %v10106_v27  ;;  %13321 = vst [vmem:[#allocation147_spill] sm:$0xff] %v10170_v56  ;;  %13325 = vst [vmem:[#allocation149_spill] sm:$0xff] %v10184_v37  ;;  %v10187_v34 = vld [vmem:[%s8889_s15 + $0x28] sm:$0xf] }
 0x257   : > { %13317 = vst [vmem:[#allocation143_spill] sm:$0xff] %v10148_v33  ;;  %v2223_v38 = vunpack.c.0.s8 %v10106_v27  ;;  %v2175_v58 = vsel %vm10118_vm11, 16843009, %v13290_v22  ;;  %v2098_v31 = vpack.c.b8 %v2097_v59, %v2097_v59  ;;  %v10172_v53 = vpack.c.b16 %v2219_v25, %v2220_v15  ;;  %v593_v59 = vld [vmem:[%s8891_s19 + $0x50] sm:$0xff]  ;;  %13326 = vst [vmem:[#allocation150_spill] sm:$0xff] %v10187_v34  ;;  %v594_v34 = vld [vmem:[%s8891_s19 + $0x58] sm:$0xff] }
 0x258   : > { %v2225_v29 = vunpack.c.1.s8 %v10134_v17  ;;  %v2176_v27 = vsel %vm10136_vm12, 16843009, %v13290_v22  ;;  %vm10178_vm13 = vnez %v2096_v55  ;;  %v2226_v25 = vunpack.c.0.s8 %v10134_v17  ;;  %v10191_v51 = vld [vmem:[%s8889_s15 + $0x2c] sm:$0xf]  ;;  %v10194_v55 = vld [vmem:[%s8889_s15 + $0x30] sm:$0xf] }
 0x259   : > { %13322 = vst [vmem:[#allocation148_spill] sm:$0xff] %v10172_v53  ;;  %v2228_v15 = vunpack.c.1.s8 %v2174_v50  ;;  %v2229_v30 = vunpack.c.0.s8 %v2174_v50  ;;  %v2099_v39 = vpack.c.b16 %v2036_v5, %v2035_v14  ;;  %13327 = vst [vmem:[#allocation151_spill] sm:$0xff] %v10191_v51  ;;  %v10197_v2 = vld [vmem:[%s8889_s15 + $0x34] sm:$0xf]  ;;  %v2231_v20 = vunpack.c.1.s8 %v2175_v58  ;;  %v10202_v17 = vld [vmem:[%s8889_s15 + $0x38] sm:$0xf] }
 0x25a   : > { %13328 = vst [vmem:[#allocation152_spill] sm:$0xff] %v10194_v55  ;;  %13329 = vst [vmem:[#allocation153_spill] sm:$0xff] %v10197_v2  ;;  %v2232_v56 = vunpack.c.0.s8 %v2175_v58  ;;  %v2101_v41 = vpack.c.b16 %v2038_v42, %v2037_v32  ;;  %v2039_v37 = vunpack.c.2.s8 %v10109_v24  ;;  %v10205_v50 = vld [vmem:[%s8889_s15 + $0x3c] sm:$0xf]  ;;  %v2177_v14 = vsel %vm10178_vm13, 16843009, %v13290_v22 }
 0x25b   : > { %13330 = vst [vmem:[#allocation154_spill] sm:$0xff] %v10202_v17  ;;  %13331 = vst [vmem:[#allocation155_spill] sm:$0xff] %v10205_v50  ;;  %vm10210_vm14 = vnez %v2098_v31  ;;  %v2100_v58 = vpack.c.b8 %v2099_v39, %v2099_v39  ;;  %v2040_v32 = vunpack.c.2.s8 %v10116_v28  ;;  %v10216_v42 = vld [vmem:[%s8889_s15 + $0x40] sm:$0xf]  ;;  %v10219_v51 = vld [vmem:[%s8889_s15 + $0x44] sm:$0xf]  ;;  %v2234_v55 = vunpack.c.1.s8 %v2176_v27 }
 0x25c   : > { %13334 = vst [vmem:[#allocation156_spill] sm:$0xff] %v10216_v42  ;;  %13335 = vst [vmem:[#allocation157_spill] sm:$0xff] %v10219_v51  ;;  %v2102_v2 = vpack.c.b8 %v2101_v41, %v2101_v41  ;;  %v2041_v18 = vunpack.c.3.s8 %v10109_v24  ;;  %v2042_v17 = vunpack.c.3.s8 %v10116_v28  ;;  %v10224_v31 = vld [vmem:[%s8889_s15 + $0x48] sm:$0xf]  ;;  %v10227_v50 = vld [vmem:[%s8889_s15 + $0x4c] sm:$0xf]  ;;  %v2235_v12 = vunpack.c.0.s8 %v2176_v27 }
 0x25d   : > { %13336 = vst [vmem:[#allocation158_spill] sm:$0xff] %v10224_v31  ;;  %13337 = vst [vmem:[#allocation159_spill] sm:$0xff] %v10227_v50  ;;  %vm2147_vm15 = vnez %v2100_v58  ;;  %v2103_v39 = vpack.c.b16 %v2040_v32, %v2039_v37  ;;  %vm609_vm0 = vnez %v593_v59  ;;  %v10230_v42 = vld [vmem:[%s8889_s15 + $0x50] sm:$0xf]  ;;  %v10233_v51 = vld [vmem:[%s8889_s15 + $0x54] sm:$0xf]  ;;  %v2237_v41 = vunpack.c.1.s8 %v2177_v14 }
 0x25e   : > { %13338 = vst [vmem:[#allocation160_spill] sm:$0xff] %v10230_v42  ;;  %13339 = vst [vmem:[#allocation161_spill] sm:$0xff] %v10233_v51  ;;  %v2238_v16 = vunpack.c.0.s8 %v2177_v14  ;;  %v2178_v24 = vsel %vm10210_vm14, 16843009, %v13290_v22  ;;  %vm610_vm1 = vnez %v594_v34  ;;  %v10239_v28 = vld [vmem:[%s8889_s15 + $0x58] sm:$0xf]  ;;  %v10244_v58 = vpack.c.b16 %v2222_v1, %v2223_v38 }
 0x25f   : > { %13340 = vst [vmem:[#allocation162_spill] sm:$0xff] %v10239_v28  ;;  %v10242_v27 = vld [vmem:[%s8889_s15 + $0x5c] sm:$0xf]  ;;  %v10246_v37 = vpack.c.b16 %v2225_v29, %v2226_v25  ;;  %v10248_v32 = vpack.c.b16 %v2228_v15, %v2229_v30  ;;  %v2179_v14 = vsel %vm2147_vm15, 16843009, %v13290_v22  ;;  %vm10257_vm2 = vnez %v2102_v2 }
 0x260   : > { %13341 = vst [vmem:[#allocation163_spill] sm:$0xff] %v10242_v27  ;;  %13342 = vst [vmem:[#allocation164_spill] sm:$0xff] %v10244_v58  ;;  %v10252_v31 = vld [vmem:[%s8889_s15 + $0x60] sm:$0xf]  ;;  %v10255_v5 = vld [vmem:[%s8889_s15 + $0x64] sm:$0xf]  ;;  %v2104_v42 = vpack.c.b8 %v2103_v39, %v2103_v39  ;;  %v2105_v1 = vpack.c.b16 %v2042_v17, %v2041_v18  ;;  %v10271_v25 = vpack.c.b16 %v2231_v20, %v2232_v56  ;;  %v2240_v28 = vunpack.c.1.s8 %v2178_v24 }
 0x261   : > { %13343 = vst [vmem:[#allocation165_spill] sm:$0xff] %v10246_v37  ;;  %13344 = vst [vmem:[#allocation166_spill] sm:$0xff] %v10248_v32  ;;  %v10263_v29 = vsel %vm609_vm0, 16843009, %v13290_v22  ;;  %v10266_v30 = vld [vmem:[%s8889_s15 + $0x68] sm:$0xf]  ;;  %v10273_v15 = vpack.c.b16 %v2234_v55, %v2235_v12  ;;  %v10286_v51 = vpack.c.b16 %v2237_v41, %v2238_v16  ;;  %v2241_v27 = vunpack.c.0.s8 %v2178_v24 }
 0x262   : > { %13345 = vst [vmem:[#allocation167_spill] sm:$0xff] %v10252_v31  ;;  %13346 = vst [vmem:[#allocation168_spill] sm:$0xff] %v10255_v5  ;;  %v10269_v38 = vld [vmem:[%s8889_s15 + $0x6c] sm:$0xf]  ;;  %v10277_v2 = vsel %vm610_vm1, 16843009, %v13290_v22  ;;  %v2043_v39 = vunpack.c.0.s8 %v10263_v29  ;;  %v2243_v5 = vunpack.c.1.s8 %v2179_v14  ;;  %vm2149_vm3 = vnez %v2104_v42 }
 0x263   : > { %13349 = vst [vmem:[#allocation169_spill] sm:$0xff] %v10266_v30  ;;  %13350 = vst [vmem:[#allocation170_spill] sm:$0xff] %v10269_v38  ;;  %v10281_v17 = vld [vmem:[%s8889_s15 + $0x70] sm:$0xf]  ;;  %v10284_v59 = vld [vmem:[%s8889_s15 + $0x74] sm:$0xf]  ;;  %v2044_v20 = vunpack.c.0.s8 %v10277_v2  ;;  %v2106_v24 = vpack.c.b8 %v2105_v1, %v2105_v1 }
 0x264   : > { %13351 = vst [vmem:[#allocation171_spill] sm:$0xff] %v10271_v25  ;;  %13352 = vst [vmem:[#allocation172_spill] sm:$0xff] %v10273_v15  ;;  %v10290_v56 = vld [vmem:[%s8889_s15 + $0x78] sm:$0xf]  ;;  %v10293_v12 = vld [vmem:[%s8889_s15 + $0x7c] sm:$0xf]  ;;  %v10306_v25 = vpack.c.b16 %v2240_v28, %v2241_v27  ;;  %v2048_v28 = vunpack.c.2.s8 %v10277_v2 }
 0x265   : > { %13353 = vst [vmem:[#allocation173_spill] sm:$0xff] %v10281_v17  ;;  %13354 = vst [vmem:[#allocation174_spill] sm:$0xff] %v10284_v59  ;;  %v2180_v30 = vsel %vm10257_vm2, 16843009, %v13290_v22  ;;  %v2244_v59 = vunpack.c.0.s8 %v2179_v14  ;;  %vm2150_vm4 = vnez %v2106_v24  ;;  %vm2293_vm6 = vcmp.ne.s16.totalorder %v10087_v35, 0 }
 0x266   : > { %13355 = vst [vmem:[#allocation175_spill] sm:$0xff] %v10286_v51  ;;  %13356 = vst [vmem:[#allocation176_spill] sm:$0xff] %v10290_v56  ;;  %v2107_v56 = vpack.c.b16 %v2044_v20, %v2043_v39  ;;  %v2246_v36 = vunpack.c.1.s8 %v2180_v30  ;;  %v2247_v45 = vunpack.c.0.s8 %v2180_v30  ;;  %v2047_v30 = vunpack.c.2.s8 %v10263_v29 }
 0x267   : > { %13357 = vst [vmem:[#allocation177_spill] sm:$0xff] %v10293_v12  ;;  %13358 = vst [vmem:[#allocation178_spill] sm:$0xff] %v10306_v25  ;;  %v10318_v39 = vsel %vm2150_vm4, 16843009, %v13290_v22  ;;  %v2049_v20 = vunpack.c.3.s8 %v10263_v29  ;;  %vm2291_vm8 = vcmp.ne.s16.totalorder %v10085_v23, 0  ;;  %vm2294_vm9 = vcmp.ne.s16.totalorder %v10090_v21, 0 }
 0x268   : > { %v2108_v14 = vpack.c.b8 %v2107_v56, %v2107_v56  ;;  %v2050_v56 = vunpack.c.3.s8 %v10277_v2  ;;  %vm2292_vm10 = vcmp.ne.s16.totalorder %v10081_v46, 0  ;;  %vm12968_vm14 = vcmp.ne.s16.totalorder %v10096_v26, 0 }
 0x269   : > { %vm2295_vm0 = vcmp.ne.s16.totalorder %v10092_v43, 0  ;;  %vm2296_vm2 = vcmp.ne.s16.totalorder %v10094_v47, 0  ;;  %vm12955_vm4 = vcmp.ne.s16.totalorder %v10246_v37, 0 }
 0x26a   : > { %vm2151_vm7 = vnez %v2108_v14  ;;  %v2252_v14 = vunpack.c.1.s8 %v10318_v39 }
 0x271   : > { %v1530_v18 = vpop.permute.xlu1 %1529  ;;  %v1526_v31 = vpop.permute.xlu0 %1525 }
 0x272   : > { %v1623_v34 = vrot.slane %v1530_v18, %v9369_v4  ;;  %v1630_v55 = vrot.slane %v1530_v18, %v10053_v10  ;;  %v1609_v16 = vrot.slane %v1526_v31, %v9369_v4  ;;  %v1616_v41 = vrot.slane %v1526_v31, %v10053_v10 }
 0x273   : > { %v2181_v31 = vsel %vm2149_vm3, 16843009, %v13290_v22  ;;  %vm12967_vm3 = vcmp.ne.s16.totalorder %v10148_v33, 0 }
 0x274   : > { %v1861_v38 = vsub.bf16 %v9389_v3, %v1623_v34  ;;  %v1862_v17 = vsub.bf16 %v9383_v62, %v1630_v55  ;;  %v1859_v18 = vsub.bf16 %v9391_v6, %v1609_v16  ;;  %v1860_v12 = vsub.bf16 %v9385_v0, %v1616_v41 }
 0x275   : > { %v2045_v3 = vunpack.c.1.s8 %v10263_v29  ;;  %v10310_v62 = vpack.c.b16 %v2243_v5, %v2244_v59  ;;  %v2046_v6 = vunpack.c.1.s8 %v10277_v2  ;;  %v10313_v0 = vpack.c.b16 %v2246_v36, %v2247_v45 }
 0x276   : > { %v1898_v50 = vmul.bf16 1069105081, %v1861_v38  ;;  %v1901_v15 = vmul.bf16 1069105081, %v1862_v17  ;;  %v1892_v42 = vmul.bf16 1069105081, %v1859_v18  ;;  %v2249_v27 = vunpack.c.1.s8 %v2181_v31 }
 0x277   : > { %v1895_v1 = vmul.bf16 1069105081, %v1860_v12  ;;  %13359 = vst [vmem:[#allocation179_spill] sm:$0xff] %v10310_v62  ;;  %13360 = vst [vmem:[#allocation180_spill] sm:$0xff] %v10313_v0  ;;  %v2250_v38 = vunpack.c.0.s8 %v2181_v31  ;;  %v2109_v5 = vpack.c.b16 %v2046_v6, %v2045_v3  ;;  %v2111_v59 = vpack.c.b16 %v2048_v28, %v2047_v30 }
 0x278   : > { %8030 = vpow.bf16 %v1898_v50  ;;  %v2113_v18 = vpack.c.b16 %v2050_v56, %v2049_v20  ;;  %v10337_v31 = vsel %vm2151_vm7, 16843009, %v13290_v22  ;;  %vm12954_vm7 = vcmp.ne.s16.totalorder %v10248_v32, 0 }
 0x279   : > { %8032 = vpow.bf16 %v1901_v15  ;;  %v2110_v55 = vpack.c.b8 %v2109_v5, %v2109_v5  ;;  %v2112_v16 = vpack.c.b8 %v2111_v59, %v2111_v59  ;;  %v10331_v24 = vpack.c.b16 %v2249_v27, %v2250_v38 }
 0x27a   : > { %8034 = vpow.bf16 %v1892_v42  ;;  %v1538_v17 = vpop.permute.xlu1 %1537  ;;  %v2255_v30 = vunpack.c.1.s8 %v10337_v31  ;;  %v2256_v5 = vunpack.c.0.s8 %v10337_v31 }
 0x27b   : > { %8036 = vpow.bf16 %v1895_v1  ;;  %v1651_v15 = vrot.slane %v1538_v17, %v9369_v4  ;;  %v1658_v36 = vrot.slane %v1538_v17, %v10053_v10  ;;  %v1534_v45 = vpop.permute.xlu0 %1533  ;;  %13361 = vst [vmem:[#allocation181_spill] sm:$0xff] %v10331_v24  ;;  %vm2152_vm11 = vnez %v2110_v55  ;;  %v595_v17 = vld [vmem:[%s8891_s19 + $0x60] sm:$0xff] }
 0x27c   : > { %v1637_v12 = vrot.slane %v1534_v45, %v9369_v4  ;;  %v1644_v34 = vrot.slane %v1534_v45, %v10053_v10  ;;  %vm2153_vm12 = vnez %v2112_v16  ;;  %v10341_v6 = vsel %vm2152_vm11, 16843009, %v13290_v22  ;;  %v596_v45 = vld [vmem:[%s8891_s19 + $0x68] sm:$0xff] }
 0x27d   : > { %v1865_v41 = vsub.bf16 %v9413_v13, %v1651_v15  ;;  %v1866_v29 = vsub.bf16 %v9411_v63, %v1658_v36  ;;  %v2114_v63 = vpack.c.b8 %v2113_v18, %v2113_v18  ;;  %v2185_v38 = vsel %vm2153_vm12, 16843009, %v13290_v22 }
 0x27e   : > { %v1863_v50 = vsub.bf16 %v9407_v54, %v1637_v12  ;;  %v1864_v2 = vsub.bf16 %v9405_v52, %v1644_v34  ;;  %v2253_v54 = vunpack.c.0.s8 %v10318_v39  ;;  %v2258_v59 = vunpack.c.1.s8 %v10341_v6 }
 0x27f   : > { %v1910_v13 = vmul.bf16 1069105081, %v1865_v41  ;;  %v1913_v42 = vmul.bf16 1069105081, %v1866_v29  ;;  %vm2154_vm13 = vnez %v2114_v63  ;;  %v2259_v36 = vunpack.c.0.s8 %v10341_v6 }
 0x280   : > { %v1904_v1 = vmul.bf16 1069105081, %v1863_v50  ;;  %v1907_v3 = vmul.bf16 1069105081, %v1864_v2  ;;  %v1546_v52 = vpop.permute.xlu1 %1545  ;;  %v2186_v20 = vsel %vm2154_vm13, 16843009, %v13290_v22  ;;  %v2261_v12 = vunpack.c.1.s8 %v2185_v38 }
 0x281   : > { %8038 = vpow.bf16 %v1910_v13  ;;  %v1679_v28 = vrot.slane %v1546_v52, %v9369_v4  ;;  %v1686_v27 = vrot.slane %v1546_v52, %v10053_v10  ;;  %v2262_v34 = vunpack.c.0.s8 %v2185_v38  ;;  %v1542_v18 = vpop.permute.xlu0 %1541 }
 0x282   : > { %8040 = vpow.bf16 %v1913_v42  ;;  %v2264_v55 = vunpack.c.1.s8 %v2186_v20  ;;  %vm611_vm15 = vnez %v595_v17  ;;  %v1665_v2 = vrot.slane %v1542_v18, %v9369_v4 }
 0x283   : > { %8042 = vpow.bf16 %v1904_v1  ;;  %v1869_v39 = vsub.bf16 %v9437_v11, %v1679_v28  ;;  %v1870_v15 = vsub.bf16 %v9435_v48, %v1686_v27  ;;  %v2265_v11 = vunpack.c.0.s8 %v2186_v20 }
 0x284   : > { %8044 = vpow.bf16 %v1907_v3  ;;  %v1672_v31 = vrot.slane %v1542_v18, %v10053_v10  ;;  %vm612_vm1 = vnez %v596_v45  ;;  %v1867_v6 = vsub.bf16 %v9431_v60, %v1665_v2 }
 0x285   : > { %v1922_v41 = vmul.bf16 1069105081, %v1869_v39  ;;  %v1925_v29 = vmul.bf16 1069105081, %v1870_v15  ;;  %v10391_v18 = vpack.c.b16 %v2255_v30, %v2256_v5  ;;  %v10397_v2 = vsel %vm611_vm15, 16843009, %v13290_v22 }
 0x286   : > { %v8031_v56 = vpop.eup %8030  ;;  %v1868_v52 = vsub.bf16 %v9429_v57, %v1672_v31  ;;  %v1916_v15 = vmul.bf16 1069105081, %v1867_v6  ;;  %v10401_v31 = vsel %vm612_vm1, 16843009, %v13290_v22  ;;  %vm12956_vm11 = vcmp.ne.s16.totalorder %v10172_v53, 0 }
 0x287   : > { %v8033_v16 = vpop.eup %8032  ;;  %v10359_v50 = vsel %vm2293_vm6, %v8031_v56, 0  ;;  %8046 = vpow.bf16 %v1922_v41  ;;  %v10387_v56 = vpack.c.b16 %v2252_v14, %v2253_v54  ;;  %13363 = vst [vmem:[#allocation183_spill] sm:$0xff] %v10391_v18  ;;  %v10403_v54 = vpack.c.b16 %v2261_v12, %v2262_v34 }
 0x288   : > { %v8035_v48 = vpop.eup %8034  ;;  %v2519_v13 = vunpack.c.l.bf16 %v10359_v50  ;;  %v2520_v1 = vunpack.c.h.bf16 %v10359_v50  ;;  %v10372_v3 = vsel %vm2294_vm9, %v8033_v16, 0  ;;  %8048 = vpow.bf16 %v1925_v29  ;;  %v1554_v45 = vpop.permute.xlu1 %1553 }
 0x289   : > { %v8037_v42 = vpop.eup %8036  ;;  %v10367_v63 = vsel %vm2291_vm8, %v8035_v48, 0  ;;  %v1919_v60 = vmul.bf16 1069105081, %v1868_v52  ;;  %v2521_v57 = vunpack.c.l.bf16 %v10372_v3  ;;  %13362 = vst [vmem:[#allocation182_spill] sm:$0xff] %v10387_v56  ;;  %v2522_v29 = vunpack.c.h.bf16 %v10372_v3  ;;  %13365 = vst [vmem:[#allocation185_spill] sm:$0xff] %v10403_v54 }
 0x28a   : > { %v10378_v28 = vsel %vm2292_vm10, %v8037_v42, 0  ;;  %v2515_v20 = vunpack.c.l.bf16 %v10367_v63  ;;  %v2516_v39 = vunpack.c.h.bf16 %v10367_v63  ;;  %8050 = vpow.bf16 %v1916_v15 }
 0x28b   : > { %v2517_v27 = vunpack.c.l.bf16 %v10378_v28  ;;  %v2518_v38 = vunpack.c.h.bf16 %v10378_v28  ;;  %v10393_v48 = vpack.c.b16 %v2258_v59, %v2259_v36  ;;  %8052 = vpow.bf16 %v1919_v60 }
 0x28c   : > { %v2579_v41 = vadd.f32 %v2516_v39, %v2515_v20  ;;  %v2585_v14 = vadd.f32 %v2520_v1, %v2519_v13  ;;  %v10405_v42 = vpack.c.b16 %v2264_v55, %v2265_v11  ;;  %v2588_v5 = vadd.f32 %v2522_v29, %v2521_v57 }
 0x28d   : > { %v2582_v16 = vadd.f32 %v2518_v38, %v2517_v27  ;;  %13364 = vst [vmem:[#allocation184_spill] sm:$0xff] %v10393_v48  ;;  %v2051_v59 = vunpack.c.0.s8 %v10397_v2  ;;  %v2052_v17 = vunpack.c.0.s8 %v10401_v31  ;;  %v1707_v13 = vrot.slane %v1554_v45, %v9369_v4 }
 0x28e   : > { %2580 = vadd.xlane.f32.xlu1 %v2579_v41  ;;  %13366 = vst [vmem:[#allocation186_spill] sm:$0xff] %v10405_v42  ;;  %v1714_v1 = vrot.slane %v1554_v45, %v10053_v10  ;;  %v1550_v27 = vpop.permute.xlu0 %1549  ;;  %vm12958_vm12 = vcmp.ne.s16.totalorder %v10244_v58, 0  ;;  %vm12961_vm1 = vcmp.ne.s16.totalorder %v10286_v51, 0 }
 0x28f   : > { %2583 = vadd.xlane.f32.xlu0 %v2582_v16  ;;  %v8039_v30 = vpop.eup %8038  ;;  %v1693_v15 = vrot.slane %v1550_v27, %v9369_v4  ;;  %v1700_v60 = vrot.slane %v1550_v27, %v10053_v10  ;;  %v1873_v41 = vsub.bf16 %v9461_v19, %v1707_v13 }
 0x290   : > { %v8041_v6 = vpop.eup %8040  ;;  %v10412_v52 = vsel %vm12968_vm14, %v8039_v30, 0  ;;  %v1874_v29 = vsub.bf16 %v9459_v44, %v1714_v1  ;;  %vm12989_vm14 = vcmp.ne.s16.totalorder %v10393_v48, 0 }
 0x291   : > { %v8043_v11 = vpop.eup %8042  ;;  %v2527_v38 = vunpack.c.l.bf16 %v10412_v52  ;;  %v2528_v16 = vunpack.c.h.bf16 %v10412_v52  ;;  %v10443_v19 = vsel %vm12967_vm3, %v8041_v6, 0  ;;  %v1934_v44 = vmul.bf16 1069105081, %v1873_v41 }
 0x292   : > { %v8045_v39 = vpop.eup %8044  ;;  %2589 = vadd.xlane.f32.xlu1 %v2588_v5  ;;  %v10427_v57 = vsel %vm2295_vm0, %v8043_v11, 0  ;;  %v1872_v5 = vsub.bf16 %v9453_v61, %v1700_v60  ;;  %v1937_v13 = vmul.bf16 1069105081, %v1874_v29  ;;  %v2529_v6 = vunpack.c.l.bf16 %v10443_v19  ;;  %v10458_v29 = vld [vmem:[%s8891_s19 + $0x78] sm:$0xff] }
 0x293   : > { %2586 = vadd.xlane.f32.xlu0 %v2585_v14  ;;  %v2523_v30 = vunpack.c.l.bf16 %v10427_v57  ;;  %v2524_v45 = vunpack.c.h.bf16 %v10427_v57  ;;  %v1871_v14 = vsub.bf16 %v9455_v7, %v1693_v15  ;;  %v10439_v11 = vsel %vm2296_vm2, %v8045_v39, 0  ;;  %v10449_v15 = vld [vmem:[%s8891_s19 + $0x70] sm:$0xff] }
 0x294   : > { %v2525_v27 = vunpack.c.l.bf16 %v10439_v11  ;;  %v1931_v34 = vmul.bf16 1069105081, %v1872_v5  ;;  %v2526_v7 = vunpack.c.h.bf16 %v10439_v11  ;;  %8054 = vpow.bf16 %v1934_v44 }
 0x295   : > { %v2591_v1 = vadd.f32 %v2524_v45, %v2523_v30  ;;  %v8047_v20 = vpop.eup %8046  ;;  %v1928_v55 = vmul.bf16 1069105081, %v1871_v14  ;;  %v2530_v60 = vunpack.c.h.bf16 %v10443_v19  ;;  %8056 = vpow.bf16 %v1937_v13  ;;  %v1562_v30 = vpop.permute.xlu1 %1561 }
 0x296   : > { %v8049_v39 = vpop.eup %8048  ;;  %v10455_v41 = vsel %vm12955_vm4, %v8047_v20, 0  ;;  %v2594_v45 = vadd.f32 %v2526_v7, %v2525_v27  ;;  %v2597_v14 = vadd.f32 %v2528_v16, %v2527_v38  ;;  %v2115_v5 = vpack.c.b16 %v2052_v17, %v2051_v59 }
 0x297   : > { %2592 = vadd.xlane.f32.xlu0 %v2591_v1  ;;  %8058 = vpow.bf16 %v1928_v55  ;;  %v1735_v61 = vrot.slane %v1562_v30, %v9369_v4  ;;  %v1742_v44 = vrot.slane %v1562_v30, %v10053_v10  ;;  %v1558_v1 = vpop.permute.xlu0 %1557  ;;  %v2535_v12 = vunpack.c.l.bf16 %v10455_v41 }
 0x298   : > { %vm613_vm13 = vnez %v10449_v15  ;;  %8060 = vpow.bf16 %v1931_v34  ;;  %v1721_v20 = vrot.slane %v1558_v1, %v9369_v4  ;;  %v1728_v36 = vrot.slane %v1558_v1, %v10053_v10  ;;  %2595 = vadd.xlane.f32.xlu1 %v2594_v45  ;;  %v8051_v59 = vpop.eup %8050 }
 0x299   : > { %v2536_v13 = vunpack.c.h.bf16 %v10455_v41  ;;  %vm614_vm15 = vnez %v10458_v29  ;;  %v1877_v17 = vsub.bf16 %v9485_v49, %v1735_v61  ;;  %v1878_v55 = vsub.bf16 %v9483_v40, %v1742_v44  ;;  %v8053_v34 = vpop.eup %8052  ;;  %v13380_v29 = vld [vmem:[#allocation54_spill] sm:$0xff] }
 0x29a   : > { %v2600_v38 = vadd.f32 %v2530_v60, %v2529_v6  ;;  %v10472_v16 = vsel %vm12954_vm7, %v8049_v39, 0  ;;  %v1875_v27 = vsub.bf16 %v9479_v9, %v1721_v20  ;;  %v1876_v7 = vsub.bf16 %v9477_v8, %v1728_v36  ;;  %v13367_v9 = vld [vmem:[#allocation171_spill] sm:$0xff]  ;;  %v13368_v36 = vld [vmem:[#allocation172_spill] sm:$0xff] }
 0x29b   : > { %2598 = vadd.xlane.f32.xlu0 %v2597_v14  ;;  %v10479_v30 = vsel %vm12956_vm11, %v8051_v59, 0  ;;  %v2116_v49 = vpack.c.b8 %v2115_v5, %v2115_v5  ;;  %v1946_v61 = vmul.bf16 1069105081, %v1877_v17  ;;  %v1949_v40 = vmul.bf16 1069105081, %v1878_v55 }
 0x29c   : > { %v2531_v6 = vunpack.c.l.bf16 %v10479_v30  ;;  %v2532_v60 = vunpack.c.h.bf16 %v10479_v30  ;;  %v1940_v39 = vmul.bf16 1069105081, %v1875_v27  ;;  %v1943_v45 = vmul.bf16 1069105081, %v1876_v7  ;;  %2601 = vadd.xlane.f32.xlu1 %v2600_v38 }
 0x29d   : > { %v10485_v14 = vsel %vm12958_vm12, %v8053_v34, 0  ;;  %v2537_v8 = vunpack.c.l.bf16 %v10472_v16  ;;  %vm12965_vm7 = vcmp.ne.s16.totalorder %v13367_v9, 0  ;;  %vm12963_vm4 = vcmp.ne.s16.totalorder %v13368_v36, 0 }
 0x29e   : > { %v2603_v5 = vadd.f32 %v2532_v60, %v2531_v6  ;;  %v2533_v44 = vunpack.c.l.bf16 %v10485_v14  ;;  %v2534_v1 = vunpack.c.h.bf16 %v10485_v14  ;;  %v2538_v20 = vunpack.c.h.bf16 %v10472_v16 }
 0x29f   : > { %8062 = vpow.bf16 %v1946_v61  ;;  %v2609_v59 = vadd.f32 %v2536_v13, %v2535_v12  ;;  %vm2155_vm11 = vnez %v2116_v49  ;;  %v13369_v17 = vunpack.c.1.s8 %v10397_v2  ;;  %v1570_v49 = vpop.permute.xlu1 %1569 }
 0x2a0   : > { %v13370_v55 = vunpack.c.1.s8 %v10401_v31  ;;  %8064 = vpow.bf16 %v1940_v39  ;;  %2604 = vadd.xlane.f32.xlu0 %v2603_v5  ;;  %v2606_v34 = vadd.f32 %v2534_v1, %v2533_v44  ;;  %v2187_v27 = vsel %vm2155_vm11, 16843009, %v13290_v22 }
 0x2a1   : > { %v13371_v7 = vunpack.c.2.s8 %v10397_v2  ;;  %v13372_v6 = vunpack.c.2.s8 %v10401_v31  ;;  %8066 = vpow.bf16 %v1949_v40  ;;  %v2267_v61 = vunpack.c.1.s8 %v2187_v27 }
 0x2a2   : > { %v2117_v38 = vpack.c.b16 %v13370_v55, %v13369_v17  ;;  %v2268_v12 = vunpack.c.0.s8 %v2187_v27  ;;  %8068 = vpow.bf16 %v1943_v45  ;;  %2607 = vadd.xlane.f32.xlu1 %v2606_v34  ;;  %v2612_v32 = vadd.f32 %v2538_v20, %v2537_v8  ;;  %v1566_v55 = vpop.permute.xlu0 %1565  ;;  %v8055_v8 = vpop.eup %8054  ;;  %v13376_v27 = vld [vmem:[#allocation57_spill] sm:$0xff] }
 0x2a3   : > { %v10502_v60 = vpack.c.b16 %v13372_v6, %v13371_v7  ;;  %vm12966_vm12 = vcmp.ne.s16.totalorder %v10306_v25, 0  ;;  %v13373_v5 = vunpack.c.3.s8 %v10397_v2  ;;  %v13374_v44 = vunpack.c.3.s8 %v10401_v31  ;;  %v8057_v34 = vpop.eup %8056  ;;  %v13377_v6 = vld [vmem:[#allocation56_spill] sm:$0xff]  ;;  %v13392_v25 = vld [vmem:[#allocation62_spill] sm:$0xff] }
 0x2a4   : > { %v2118_v13 = vpack.c.b8 %v2117_v38, %v2117_v38  ;;  %v1763_v40 = vrot.slane %v1570_v49, %v9369_v4  ;;  %v1770_v17 = vrot.slane %v1570_v49, %v10053_v10  ;;  %v10518_v45 = vsel %vm613_vm13, 16843009, %v13290_v22  ;;  %2610 = vadd.xlane.f32.xlu0 %v2609_v59 }
 0x2a5   : > { %v10511_v1 = vpack.c.b16 %v13374_v44, %v13373_v5  ;;  %v1749_v20 = vrot.slane %v1566_v55, %v9369_v4  ;;  %v1756_v2 = vrot.slane %v1566_v55, %v10053_v10  ;;  %v10522_v31 = vpack.c.b16 %v2267_v61, %v2268_v12  ;;  %v8059_v61 = vpop.eup %8058  ;;  %v13379_v12 = vld [vmem:[#allocation55_spill] sm:$0xff]  ;;  %v1578_v44 = vpop.permute.xlu1 %1577 }
 0x2a6   : > { %vm2156_vm11 = vnez %v2118_v13  ;;  %v10527_v38 = vsel %vm614_vm15, 16843009, %v13290_v22  ;;  %v1881_v7 = vsub.bf16 %v13376_v27, %v1763_v40  ;;  %v1882_v15 = vsub.bf16 %v13377_v6, %v1770_v17  ;;  %2613 = vadd.xlane.f32.xlu1 %v2612_v32  ;;  %v8061_v55 = vpop.eup %8060 }
 0x2a7   : > { %13375 = vst [vmem:[#allocation187_spill] sm:$0xff] %v10522_v31  ;;  %v10533_v13 = vsel %vm12961_vm1, %v8055_v8, 0  ;;  %vm2307_vm13 = vcmp.ne.s16.totalorder %v10310_v62, 0  ;;  %v10537_v59 = vsel %vm2156_vm11, 16843009, %v13290_v22  ;;  %v1879_v49 = vsub.bf16 %v13379_v12, %v1749_v20 }
 0x2a8   : > { %13378 = vst [vmem:[#allocation57_spill] sm:$0xff] %v10533_v13  ;;  %v1880_v5 = vsub.bf16 %v13380_v29, %v1756_v2  ;;  %v2543_v40 = vunpack.c.l.bf16 %v10533_v13  ;;  %v2544_v17 = vunpack.c.h.bf16 %v10533_v13  ;;  %v1958_v27 = vmul.bf16 1069105081, %v1881_v7  ;;  %v13381_v2 = vld [vmem:[#allocation61_spill] sm:$0xff]  ;;  %v1574_v29 = vpop.permute.xlu0 %1573 }
 0x2a9   : > { %v1961_v8 = vmul.bf16 1069105081, %v1882_v15  ;;  %v1791_v6 = vrot.slane %v1578_v44, %v9369_v4  ;;  %v1798_v39 = vrot.slane %v1578_v44, %v10053_v10  ;;  %v1952_v51 = vmul.bf16 1069105081, %v1879_v49  ;;  %v13382_v15 = vld [vmem:[#allocation60_spill] sm:$0xff] }
 0x2aa   : > { %v1955_v37 = vmul.bf16 1069105081, %v1880_v5  ;;  %v10547_v20 = vsel %vm12965_vm7, %v8059_v61, 0  ;;  %v10551_v32 = vsel %vm12963_vm4, %v8061_v55, 0  ;;  %vm2308_vm15 = vcmp.ne.s16.totalorder %v10313_v0, 0 }
 0x2ab   : > { %vm12973_vm11 = vcmp.ne.s16.totalorder %v10331_v24, 0  ;;  %8070 = vpow.bf16 %v1958_v27  ;;  %v1885_v7 = vsub.bf16 %v13381_v2, %v1791_v6  ;;  %v1886_v12 = vsub.bf16 %v13382_v15, %v1798_v39  ;;  %v13383_v27 = vld [vmem:[#allocation59_spill] sm:$0xff]  ;;  %v13384_v6 = vld [vmem:[#allocation58_spill] sm:$0xff] }
 0x2ac   : > { %v2539_v49 = vunpack.c.l.bf16 %v10547_v20  ;;  %8072 = vpow.bf16 %v1961_v8  ;;  %v1777_v9 = vrot.slane %v1574_v29, %v9369_v4  ;;  %v1784_v61 = vrot.slane %v1574_v29, %v10053_v10 }
 0x2ad   : > { %v2540_v36 = vunpack.c.h.bf16 %v10547_v20  ;;  %8074 = vpow.bf16 %v1952_v51  ;;  %v1970_v5 = vmul.bf16 1069105081, %v1885_v7  ;;  %v1973_v44 = vmul.bf16 1069105081, %v1886_v12  ;;  %v8063_v8 = vpop.eup %8062  ;;  %v1586_v7 = vpop.permute.xlu1 %1585 }
 0x2ae   : > { %v2541_v55 = vunpack.c.l.bf16 %v10551_v32  ;;  %vm2310_vm1 = vcmp.ne.s16.totalorder %v10387_v56, 0  ;;  %8076 = vpow.bf16 %v1955_v37  ;;  %v1883_v39 = vsub.bf16 %v13383_v27, %v1777_v9  ;;  %v8065_v12 = vpop.eup %8064 }
 0x2af   : > { %v1884_v2 = vsub.bf16 %v13384_v6, %v1784_v61  ;;  %v2615_v15 = vadd.f32 %v2540_v36, %v2539_v49  ;;  %8078 = vpow.bf16 %v1970_v5  ;;  %v2542_v58 = vunpack.c.h.bf16 %v10551_v32  ;;  %v8067_v49 = vpop.eup %8066  ;;  %v1582_v36 = vpop.permute.xlu0 %1581 }
 0x2b0   : > { %v2621_v29 = vadd.f32 %v2544_v17, %v2543_v40  ;;  %v10568_v51 = vsel %vm12966_vm12, %v8057_v34, 0  ;;  %vm13108_vm4 = vcmp.ne.s16.totalorder %v10403_v54, 0  ;;  %8080 = vpow.bf16 %v1973_v44  ;;  %v8069_v27 = vpop.eup %8068 }
 0x2b1   : > { %v1964_v37 = vmul.bf16 1069105081, %v1883_v39  ;;  %v1967_v53 = vmul.bf16 1069105081, %v1884_v2  ;;  %2616 = vadd.xlane.f32.xlu0 %v2615_v15  ;;  %v2545_v9 = vunpack.c.l.bf16 %v10568_v51  ;;  %vm12974_vm7 = vcmp.ne.s16.totalorder %v10405_v42, 0  ;;  %v13390_v15 = vld [vmem:[#allocation64_spill] sm:$0xff] }
 0x2b2   : > { %v2618_v61 = vadd.f32 %v2542_v58, %v2541_v55  ;;  %v2546_v40 = vunpack.c.h.bf16 %v10568_v51  ;;  %v1819_v17 = vrot.slane %v1586_v7, %v9369_v4  ;;  %v1826_v34 = vrot.slane %v1586_v7, %v10053_v10 }
 0x2b3   : > { %vm13107_vm12 = vcmp.ne.s16.totalorder %v10391_v18, 0  ;;  %v13385_v5 = vpack.c.b8 %v10502_v60, %v10502_v60  ;;  %8082 = vpow.bf16 %v1964_v37  ;;  %v1805_v58 = vrot.slane %v1582_v36, %v9369_v4  ;;  %v13389_v60 = vld [vmem:[#allocation65_spill] sm:$0xff] }
 0x2b4   : > { %v1812_v55 = vrot.slane %v1582_v36, %v10053_v10  ;;  %v10588_v39 = vsel %vm2307_vm13, %v8065_v12, 0  ;;  %8084 = vpow.bf16 %v1967_v53  ;;  %2619 = vadd.xlane.f32.xlu1 %v2618_v61  ;;  %v2624_v6 = vadd.f32 %v2546_v40, %v2545_v9  ;;  %v2462_v10 = vld [vmem:[#allocation3 + $0x58] sm:$0xff] }
 0x2b5   : > { %vm10580_vm3 = vnez %v13385_v5  ;;  %13388 = vst [vmem:[#allocation56_spill] sm:$0xff] %v10588_v39  ;;  %v1889_v2 = vsub.bf16 %v13389_v60, %v1819_v17  ;;  %v1890_v7 = vsub.bf16 %v13390_v15, %v1826_v34  ;;  %2622 = vadd.xlane.f32.xlu0 %v2621_v29  ;;  %v13391_v5 = vld [vmem:[#allocation63_spill] sm:$0xff]  ;;  %v2547_v36 = vunpack.c.l.bf16 %v10588_v39 }
 0x2b6   : > { %v1887_v37 = vsub.bf16 %v13391_v5, %v1805_v58  ;;  %v1888_v33 = vsub.bf16 %v13392_v25, %v1812_v55  ;;  %v2548_v62 = vunpack.c.h.bf16 %v10588_v39  ;;  %v10599_v53 = vsel %vm2308_vm15, %v8069_v27, 0  ;;  %v2481_v39 = vld [vmem:[#allocation3 + $0xf0] sm:$0xff] }
 0x2b7   : > { %v1982_v12 = vmul.bf16 1069105081, %v1889_v2  ;;  %v1985_v26 = vmul.bf16 1069105081, %v1890_v7  ;;  %13393 = vst [vmem:[#allocation55_spill] sm:$0xff] %v10599_v53  ;;  %v10603_v9 = vsel %vm12973_vm11, %v8063_v8, 0  ;;  %v2549_v17 = vunpack.c.l.bf16 %v10599_v53 }
 0x2b8   : > { %13394 = vst [vmem:[#allocation54_spill] sm:$0xff] %v10603_v9  ;;  %v1976_v61 = vmul.bf16 1069105081, %v1887_v37  ;;  %v1979_v29 = vmul.bf16 1069105081, %v1888_v33  ;;  %v2627_v40 = vadd.f32 %v2548_v62, %v2547_v36  ;;  %2625 = vadd.xlane.f32.xlu1 %v2624_v6  ;;  %v2550_v25 = vunpack.c.h.bf16 %v10599_v53 }
 0x2b9   : > { %8086 = vpow.bf16 %v1982_v12  ;;  %v2551_v34 = vunpack.c.l.bf16 %v10603_v9  ;;  %v2552_v58 = vunpack.c.h.bf16 %v10603_v9  ;;  %v10611_v27 = vsel %vm2310_vm1, %v8067_v49, 0  ;;  %v8071_v62 = vpop.eup %8070 }
 0x2ba   : > { %8088 = vpow.bf16 %v1985_v26  ;;  %2628 = vadd.xlane.f32.xlu0 %v2627_v40  ;;  %13395 = vst [vmem:[#allocation61_spill] sm:$0xff] %v10611_v27  ;;  %v2270_v8 = vunpack.c.1.s8 %v10537_v59  ;;  %v2271_v33 = vunpack.c.0.s8 %v10537_v59  ;;  %v2630_v55 = vadd.f32 %v2550_v25, %v2549_v17  ;;  %v8073_v60 = vpop.eup %8072 }
 0x2bb   : > { %8090 = vpow.bf16 %v1976_v61  ;;  %v2553_v6 = vunpack.c.l.bf16 %v10611_v27  ;;  %vm12979_vm11 = vcmp.ne.s16.totalorder %v10522_v31, 0  ;;  %v2633_v2 = vadd.f32 %v2552_v58, %v2551_v34  ;;  %v8075_v7 = vpop.eup %8074 }
 0x2bc   : > { %v2554_v26 = vunpack.c.h.bf16 %v10611_v27  ;;  %v10620_v15 = vsel %vm13108_vm4, %v8071_v62, 0  ;;  %v10622_v49 = vpack.c.b16 %v2270_v8, %v2271_v33  ;;  %8092 = vpow.bf16 %v1979_v29  ;;  %2631 = vadd.xlane.f32.xlu1 %v2630_v55  ;;  %v8077_v36 = vpop.eup %8076 }
 0x2bd   : > { %13396 = vst [vmem:[#allocation60_spill] sm:$0xff] %v10620_v15  ;;  %v2559_v59 = vunpack.c.l.bf16 %v10620_v15  ;;  %v2560_v5 = vunpack.c.h.bf16 %v10620_v15  ;;  %v10628_v37 = vsel %vm12974_vm7, %v8073_v60, 0  ;;  %v10632_v61 = vsel %vm13107_vm12, %v8075_v7, 0  ;;  %v8079_v17 = vpop.eup %8078  ;;  %v2473_v15 = vld [vmem:[#allocation3 + $0xb0] sm:$0xff] }
 0x2be   : > { %13397 = vst [vmem:[#allocation59_spill] sm:$0xff] %v10622_v49  ;;  %13398 = vst [vmem:[#allocation58_spill] sm:$0xff] %v10628_v37  ;;  %2634 = vadd.xlane.f32.xlu0 %v2633_v2  ;;  %v2636_v12 = vadd.f32 %v2554_v26, %v2553_v6  ;;  %v2561_v40 = vunpack.c.l.bf16 %v10628_v37  ;;  %v2189_v29 = vsel %vm10580_vm3, 16843009, %v13290_v22  ;;  %v2555_v25 = vunpack.c.l.bf16 %v10632_v61  ;;  %v8081_v33 = vpop.eup %8080 }
 0x2bf   : > { %13399 = vst [vmem:[#allocation65_spill] sm:$0xff] %v10632_v61  ;;  %v2556_v34 = vunpack.c.h.bf16 %v10632_v61  ;;  %v10642_v58 = vsel %vm12989_vm14, %v8077_v36, 0  ;;  %v2562_v8 = vunpack.c.h.bf16 %v10628_v37  ;;  %v2645_v6 = vadd.f32 %v2560_v5, %v2559_v59 }
 0x2c0   : > { %13400 = vst [vmem:[#allocation64_spill] sm:$0xff] %v10642_v58  ;;  %v2557_v62 = vunpack.c.l.bf16 %v10642_v58  ;;  %v2558_v55 = vunpack.c.h.bf16 %v10642_v58  ;;  %vm12986_vm7 = vcmp.ne.s16.totalorder %v10622_v49, 0  ;;  %2637 = vadd.xlane.f32.xlu1 %v2636_v12  ;;  %v2273_v60 = vunpack.c.1.s8 %v2189_v29 }
 0x2c1   : > { %v2639_v44 = vadd.f32 %v2556_v34, %v2555_v25  ;;  %v2274_v2 = vunpack.c.0.s8 %v2189_v29  ;;  %v2122_v26 = vpack.c.b8 %v10511_v1, %v10511_v1  ;;  %v8083_v7 = vpop.eup %8082  ;;  %v2059_v42 = vunpack.c.0.s8 %v10518_v45 }
 0x2c2   : > { %v2642_v36 = vadd.f32 %v2558_v55, %v2557_v62  ;;  %v2060_v48 = vunpack.c.0.s8 %v10527_v38  ;;  %v2061_v18 = vunpack.c.1.s8 %v10518_v45  ;;  %v8085_v54 = vpop.eup %8084  ;;  %v10655_v59 = vsel %vm12979_vm11, %v8083_v7, 0 }
 0x2c3   : > { %2640 = vadd.xlane.f32.xlu0 %v2639_v44  ;;  %13401 = vst [vmem:[#allocation63_spill] sm:$0xff] %v10655_v59  ;;  %v10657_v5 = vpack.c.b16 %v2273_v60, %v2274_v2  ;;  %vm2158_vm3 = vnez %v2122_v26  ;;  %v2062_v12 = vunpack.c.1.s8 %v10527_v38  ;;  %v2563_v1 = vunpack.c.l.bf16 %v10655_v59 }
 0x2c4   : > { %v2564_v29 = vunpack.c.h.bf16 %v10655_v59  ;;  %v10664_v25 = vsel %vm12986_vm7, %v8085_v54, 0  ;;  %v2190_v34 = vsel %vm2158_vm3, 16843009, %v13290_v22  ;;  %2643 = vadd.xlane.f32.xlu1 %v2642_v36  ;;  %v2648_v60 = vadd.f32 %v2562_v8, %v2561_v40 }
 0x2c5   : > { %13402 = vst [vmem:[#allocation62_spill] sm:$0xff] %v10657_v5  ;;  %13403 = vst [vmem:[#allocation188_spill] sm:$0xff] %v10664_v25  ;;  %v2565_v62 = vunpack.c.l.bf16 %v10664_v25  ;;  %v2566_v55 = vunpack.c.h.bf16 %v10664_v25  ;;  %vm12987_vm11 = vcmp.ne.s16.totalorder %v10657_v5, 0  ;;  %v2276_v44 = vunpack.c.1.s8 %v2190_v34 }
 0x2c6   : > { %v10672_v2 = vsel %vm12987_vm11, %v8079_v17, 0  ;;  %v2277_v26 = vunpack.c.0.s8 %v2190_v34  ;;  %v2123_v7 = vpack.c.b16 %v2060_v48, %v2059_v42  ;;  %v2651_v54 = vadd.f32 %v2564_v29, %v2563_v1 }
 0x2c7   : > { %13404 = vst [vmem:[#allocation189_spill] sm:$0xff] %v10672_v2  ;;  %v10674_v49 = vpop.eup %8086  ;;  %2646 = vadd.xlane.f32.xlu0 %v2645_v6  ;;  %v2654_v31 = vadd.f32 %v2566_v55, %v2565_v62  ;;  %v2567_v36 = vunpack.c.l.bf16 %v10672_v2  ;;  %v2125_v56 = vpack.c.b16 %v2062_v12, %v2061_v18  ;;  %v2063_v40 = vunpack.c.2.s8 %v10518_v45 }
 0x2c8   : > { %v8089_v24 = vpop.eup %8088  ;;  %v10677_v0 = vpack.c.b16 %v2276_v44, %v2277_v26  ;;  %v2124_v47 = vpack.c.b8 %v2123_v7, %v2123_v7  ;;  %v2064_v8 = vunpack.c.2.s8 %v10527_v38  ;;  %2649 = vadd.xlane.f32.xlu1 %v2648_v60  ;;  %v2568_v48 = vunpack.c.h.bf16 %v10672_v2 }
 0x2c9   : > { %v8091_v17 = vpop.eup %8090  ;;  %v2126_v42 = vpack.c.b8 %v2125_v56, %v2125_v56  ;;  %v2065_v6 = vunpack.c.3.s8 %v10518_v45  ;;  %v2066_v1 = vunpack.c.3.s8 %v10527_v38 }
 0x2ca   : > { %13405 = vst [vmem:[#allocation190_spill] sm:$0xff] %v10677_v0  ;;  %vm12988_vm3 = vcmp.ne.s16.totalorder %v10677_v0, 0  ;;  %vm2159_vm7 = vnez %v2124_v47  ;;  %v2127_v18 = vpack.c.b16 %v2064_v8, %v2063_v40  ;;  %v8093_v12 = vpop.eup %8092  ;;  %v2657_v44 = vadd.f32 %v2568_v48, %v2567_v36 }
 0x2cb   : > { %2652 = vadd.xlane.f32.xlu0 %v2651_v54  ;;  %v10687_v29 = vsel %vm12988_vm3, %v8081_v33, 0  ;;  %v2191_v34 = vsel %vm2159_vm7, 16843009, %v13290_v22  ;;  %vm2160_vm11 = vnez %v2126_v42  ;;  %v2129_v62 = vpack.c.b16 %v2066_v1, %v2065_v6 }
 0x2cc   : > { %13406 = vst [vmem:[#allocation191_spill] sm:$0xff] %v10687_v29  ;;  %v2569_v56 = vunpack.c.l.bf16 %v10687_v29  ;;  %v2570_v45 = vunpack.c.h.bf16 %v10687_v29  ;;  %v2279_v55 = vunpack.c.1.s8 %v2191_v34  ;;  %v2280_v38 = vunpack.c.0.s8 %v2191_v34  ;;  %2655 = vadd.xlane.f32.xlu1 %v2654_v31 }
 0x2cd   : > { %v2192_v47 = vsel %vm2160_vm11, 16843009, %v13290_v22  ;;  %v2128_v60 = vpack.c.b8 %v2127_v18, %v2127_v18  ;;  %v2130_v26 = vpack.c.b8 %v2129_v62, %v2129_v62 }
 0x2ce   : > { %v10693_v7 = vpack.c.b16 %v2279_v55, %v2280_v38  ;;  %v2282_v33 = vunpack.c.1.s8 %v2192_v47  ;;  %v2283_v54 = vunpack.c.0.s8 %v2192_v47  ;;  %v2660_v40 = vadd.f32 %v2570_v45, %v2569_v56 }
 0x2cf   : > { %2658 = vadd.xlane.f32.xlu0 %v2657_v44  ;;  %vm2161_vm7 = vnez %v2128_v60  ;;  %vm2162_vm3 = vnez %v2130_v26 }
 0x2d0   : > { %13407 = vst [vmem:[#allocation192_spill] sm:$0xff] %v10693_v7  ;;  %vm13056_vm14 = vcmp.ne.s16.totalorder %v10693_v7, 0  ;;  %v10696_v8 = vpack.c.b16 %v2282_v33, %v2283_v54  ;;  %v2193_v42 = vsel %vm2161_vm7, 16843009, %v13290_v22  ;;  %v2194_v31 = vsel %vm2162_vm3, 16843009, %v13290_v22  ;;  %2661 = vadd.xlane.f32.xlu1 %v2660_v40 }
 0x2d1   : > { %v10702_v36 = vsel %vm13056_vm14, %v8091_v17, 0  ;;  %v2285_v48 = vunpack.c.1.s8 %v2193_v42  ;;  %v2286_v6 = vunpack.c.0.s8 %v2193_v42  ;;  %v2288_v1 = vunpack.c.1.s8 %v2194_v31 }
 0x2d2   : > { %13408 = vst [vmem:[#allocation193_spill] sm:$0xff] %v10696_v8  ;;  %13409 = vst [vmem:[#allocation194_spill] sm:$0xff] %v10702_v36  ;;  %v2571_v18 = vunpack.c.l.bf16 %v10702_v36  ;;  %v2572_v34 = vunpack.c.h.bf16 %v10702_v36  ;;  %vm13054_vm11 = vcmp.ne.s16.totalorder %v10696_v8, 0  ;;  %v2289_v62 = vunpack.c.0.s8 %v2194_v31 }
 0x2d3   : > { %v10709_v56 = vsel %vm13054_vm11, %v8093_v12, 0  ;;  %v10711_v22 = vpack.c.b16 %v2285_v48, %v2286_v6 }
 0x2d4   : > { %13410 = vst [vmem:[#allocation195_spill] sm:$0xff] %v10709_v56  ;;  %v2663_v45 = vadd.f32 %v2572_v34, %v2571_v18  ;;  %v2573_v17 = vunpack.c.l.bf16 %v10709_v56  ;;  %v2574_v55 = vunpack.c.h.bf16 %v10709_v56  ;;  %v10715_v38 = vpack.c.b16 %v2288_v1, %v2289_v62  ;;  %v13415_v62 = vld [vmem:[#allocation68_spill] sm:$0xff]  ;;  %v13491_v56 = vld [vmem:[#allocation121_spill] sm:$0xff] }
 0x2d5   : > { %13411 = vst [vmem:[#allocation196_spill] sm:$0xff] %v10711_v22  ;;  %vm13055_vm3 = vcmp.ne.s16.totalorder %v10711_v22, 0 }
 0x2d6   : > { %13412 = vst [vmem:[#allocation197_spill] sm:$0xff] %v10715_v38  ;;  %2664 = vadd.xlane.f32.xlu0 %v2663_v45  ;;  %v2666_v44 = vadd.f32 %v2574_v55, %v2573_v17  ;;  %v10721_v47 = vsel %vm13055_vm3, %v10674_v49, 0  ;;  %vm13053_vm7 = vcmp.ne.s16.totalorder %v10715_v38, 0  ;;  %v2868_v49 = vpop.xlane.xlu0 %2867  ;;  %v13418_v55 = vld [vmem:[#allocation69_spill] sm:$0xff] }
 0x2d7   : > { %13413 = vst [vmem:[#allocation198_spill] sm:$0xff] %v10721_v47  ;;  %v2575_v12 = vunpack.c.l.bf16 %v10721_v47  ;;  %v2576_v60 = vunpack.c.h.bf16 %v10721_v47  ;;  %v10728_v26 = vsel %vm13053_vm7, %v8089_v24, 0  ;;  %v2869_v31 = vrot.slane %v2868_v49, 4  ;;  %v13416_v24 = vld [vmem:[#allocation72_spill] sm:$0xff] }
 0x2d8   : > { %13414 = vst [vmem:[#allocation199_spill] sm:$0xff] %v10728_v26  ;;  %2667 = vadd.xlane.f32.xlu1 %v2666_v44  ;;  %v2577_v33 = vunpack.c.l.bf16 %v10728_v26  ;;  %v2578_v54 = vunpack.c.h.bf16 %v10728_v26  ;;  %v13417_v45 = vsub.f32 %v13415_v62, %v13416_v24  ;;  %v13419_v44 = vld [vmem:[#allocation73_spill] sm:$0xff] }
 0x2d9   : > { %v2669_v40 = vadd.f32 %v2576_v60, %v2575_v12  ;;  %v2870_v48 = vmax.f32 %v2868_v49, %v2869_v31  ;;  %v13420_v38 = vsub.f32 %v13418_v55, %v13419_v44  ;;  %v13421_v12 = vld [vmem:[#allocation66_spill] sm:$0xff]  ;;  %v13431_v62 = vld [vmem:[#allocation81_spill] sm:$0xff] }
 0x2da   : > { %v2672_v42 = vadd.f32 %v2578_v54, %v2577_v33  ;;  %v2387_v17 = vmul.f32 1.442695, %v13417_v45  ;;  %v13422_v60 = vld [vmem:[#allocation70_spill] sm:$0xff] }
 0x2db   : > { %2670 = vadd.xlane.f32.xlu0 %v2669_v40  ;;  %v2871_v6 = vrot.slane %v2870_v48, 2  ;;  %v2389_v8 = vmul.f32 1.442695, %v13420_v38  ;;  %v13423_v33 = vsub.f32 %v13421_v12, %v13422_v60  ;;  %v13424_v40 = vld [vmem:[#allocation67_spill] sm:$0xff]  ;;  %v13433_v45 = vld [vmem:[#allocation74_spill] sm:$0xff] }
 0x2dc   : > { %2673 = vadd.xlane.f32.xlu1 %v2672_v42  ;;  %8094 = vpow2.f32 %v2387_v17  ;;  %v13425_v42 = vld [vmem:[#allocation71_spill] sm:$0xff]  ;;  %v13434_v55 = vld [vmem:[#allocation78_spill] sm:$0xff] }
 0x2dd   : > { %v2872_v1 = vmax.f32 %v2870_v48, %v2871_v6  ;;  %v2391_v54 = vmul.f32 1.442695, %v13423_v33  ;;  %v13426_v49 = vsub.f32 %v13424_v40, %v13425_v42  ;;  %8096 = vpow2.f32 %v2389_v8  ;;  %v13427_v48 = vld [vmem:[#allocation76_spill] sm:$0xff]  ;;  %v13436_v60 = vld [vmem:[#allocation75_spill] sm:$0xff] }
 0x2de   : > { %v13428_v6 = vld [vmem:[#allocation80_spill] sm:$0xff]  ;;  %v13435_v44 = vsub.f32 %v13433_v45, %v13434_v55  ;;  %v13437_v33 = vld [vmem:[#allocation79_spill] sm:$0xff]  ;;  %v13442_v45 = vld [vmem:[#allocation85_spill] sm:$0xff] }
 0x2df   : > { %v2873_v18 = vrot.slane %v2872_v1, 1  ;;  %v2393_v31 = vmul.f32 1.442695, %v13426_v49  ;;  %8098 = vpow2.f32 %v2391_v54  ;;  %v13438_v8 = vsub.f32 %v13436_v60, %v13437_v33  ;;  %v2452_v42 = vld [vmem:[#allocation3 + $0x8] sm:$0xff]  ;;  %v2451_v49 = vld [vmem:[#allocation3] sm:$0xff]  ;;  %v2453_v33 = vld [vmem:[#allocation3 + $0x10] sm:$0xff] }
 0x2e0   : > { %v2399_v12 = vmul.f32 1.442695, %v13435_v44 }
 0x2e1   : > { %v2874_v34 = vmax.f32 %v2872_v1, %v2873_v18  ;;  %8100 = vpow2.f32 %v2393_v31  ;;  %v13429_v1 = vsub.f32 %v13427_v48, %v13428_v6  ;;  %v2401_v54 = vmul.f32 1.442695, %v13438_v8  ;;  %v13439_v31 = vld [vmem:[#allocation84_spill] sm:$0xff]  ;;  %v2454_v8 = vld [vmem:[#allocation3 + $0x18] sm:$0xff] }
 0x2e2   : > { %v13440_v48 = vld [vmem:[#allocation88_spill] sm:$0xff] }
 0x2e3   : > { %7923 = vpush %v2874_v34  ;;  %v2395_v18 = vmul.f32 1.442695, %v13429_v1  ;;  %v13430_v34 = vld [vmem:[#allocation77_spill] sm:$0xff]  ;;  %v13441_v6 = vsub.f32 %v13439_v31, %v13440_v48  ;;  %v13445_v48 = vld [vmem:[#allocation82_spill] sm:$0xff] }
 0x2e4   : > { %v13432_v24 = vsub.f32 %v13430_v34, %v13431_v62 }
 0x2e5   : > { %8102 = vpow2.f32 %v2395_v18  ;;  %v2403_v1 = vmul.f32 1.442695, %v13441_v6  ;;  %v13446_v6 = vld [vmem:[#allocation86_spill] sm:$0xff] }
 0x2e6   : > { %v2397_v38 = vmul.f32 1.442695, %v13432_v24  ;;  %v13447_v7 = vsub.f32 %v13445_v48, %v13446_v6  ;;  %v2457_v48 = vld [vmem:[#allocation3 + $0x30] sm:$0xff] }
 0x2e8   : > { %8104 = vpow2.f32 %v2397_v38  ;;  %v13443_v38 = vld [vmem:[#allocation89_spill] sm:$0xff] }
 0x2e9   : > { %v10753_v17 = vpop.eup %8094  ;;  %8106 = vpow2.f32 %v2399_v12  ;;  %v13444_v55 = vsub.f32 %v13442_v45, %v13443_v38  ;;  %v13448_v45 = vld [vmem:[#allocation83_spill] sm:$0xff] }
 0x2ea   : > { %v10758_v40 = vpop.eup %8096  ;;  %8108 = vpow2.f32 %v2401_v54  ;;  %v2483_v62 = vmul.f32 %v10753_v17, %v2451_v49  ;;  %v2407_v54 = vmul.f32 1.442695, %v13447_v7  ;;  %v13449_v38 = vld [vmem:[#allocation87_spill] sm:$0xff] }
 0x2eb   : > { %v2484_v18 = vmul.f32 %v10758_v40, %v2452_v42  ;;  %v2405_v44 = vmul.f32 1.442695, %v13444_v55  ;;  %8110 = vpow2.f32 %v2403_v1  ;;  %v13450_v55 = vsub.f32 %v13448_v45, %v13449_v38  ;;  %v13452_v45 = vld [vmem:[#allocation96_spill] sm:$0xff] }
 0x2ec   : > { %v10763_v34 = vpop.eup %8098 }
 0x2ed   : > { %v2485_v42 = vmul.f32 %v10763_v34, %v2453_v33  ;;  %v2409_v0 = vmul.f32 1.442695, %v13450_v55  ;;  %8112 = vpow2.f32 %v2405_v44  ;;  %v2456_v33 = vld [vmem:[#allocation3 + $0x28] sm:$0xff] }
 0x2ee   : > { %v10767_v24 = vpop.eup %8100  ;;  %8114 = vpow2.f32 %v2407_v54  ;;  %v13451_v54 = vld [vmem:[#allocation92_spill] sm:$0xff] }
 0x2ef   : > { %v2486_v49 = vmul.f32 %v10767_v24, %v2454_v8  ;;  %8116 = vpow2.f32 %v2409_v0  ;;  %v13453_v38 = vsub.f32 %v13451_v54, %v13452_v45  ;;  %v2459_v45 = vld [vmem:[#allocation3 + $0x40] sm:$0xff] }
 0x2f1   : > { %v2411_v55 = vmul.f32 1.442695, %v13453_v38  ;;  %v13457_v38 = vld [vmem:[#allocation90_spill] sm:$0xff] }
 0x2f2   : > { %v10784_v7 = vpop.eup %8102 }
 0x2f3   : > { %8118 = vpow2.f32 %v2411_v55  ;;  %v2461_v55 = vld [vmem:[#allocation3 + $0x50] sm:$0xff] }
 0x314   : > { %s10782_s23 = spop %7923 }
 0x315   : > { %p2876_p5 = scmp.gt.f32.partialorder %s10782_s23, 0.0 }
 0x317   : > { %v2581_v60 = vpop.xlane.xlu1 %2580 }
 0x318   : > { %v2584_v12 = vpop.xlane.xlu0 %2583  ;;  %v2675_v31 = vadd.f32 %v2581_v60, %v2483_v62  ;;  %v10789_v60 = vpop.eup %8104 }
 0x319   : > { %v2676_v22 = vadd.f32 %v2584_v12, %v2484_v18  ;;  %v2455_v12 = vld [vmem:[#allocation3 + $0x20] sm:$0xff]  ;;  %v10792_v8 = vpop.eup %8106 }
 0x31a   : > { %2708 = vst.msk [vmem:[#allocation3] sm:$0xff] %vm2707_vm5, %v2675_v31  ;;  %v2487_v44 = vmul.f32 %v10784_v7, %v2455_v12  ;;  %v2489_v0 = vmul.f32 %v10792_v8, %v2457_v48 }
 0x31b   : > { %2709 = vst.msk [vmem:[#allocation3 + $0x8] sm:$0xff] %vm2707_vm5, %v2676_v22  ;;  %v2590_v62 = vpop.xlane.xlu1 %2589 }
 0x31c   : > { %v2587_v18 = vpop.xlane.xlu0 %2586  ;;  %v2678_v1 = vadd.f32 %v2590_v62, %v2486_v49  ;;  %v10795_v49 = vpop.eup %8108  ;;  %v2458_v62 = vld [vmem:[#allocation3 + $0x38] sm:$0xff] }
 0x31d   : > { %v2677_v22 = vadd.f32 %v2587_v18, %v2485_v42  ;;  %v2488_v42 = vmul.f32 %v10789_v60, %v2456_v33  ;;  %v10802_v5 = vpop.eup %8110  ;;  %v2490_v54 = vmul.f32 %v10795_v49, %v2458_v62 }
 0x31e   : > { %2711 = vst.msk [vmem:[#allocation3 + $0x18] sm:$0xff] %vm2707_vm5, %v2678_v1 }
 0x31f   : > { %2710 = vst.msk [vmem:[#allocation3 + $0x10] sm:$0xff] %vm2707_vm5, %v2677_v22 }
 0x320   : > { %v2593_v31 = vpop.xlane.xlu0 %2592 }
 0x321   : > { %v2679_v6 = vadd.f32 %v2593_v31, %v2487_v44  ;;  %v2596_v18 = vpop.xlane.xlu1 %2595  ;;  %v13454_v44 = vld [vmem:[#allocation93_spill] sm:$0xff] }
 0x322   : > { %v2680_v22 = vadd.f32 %v2596_v18, %v2488_v42  ;;  %v13455_v31 = vld [vmem:[#allocation97_spill] sm:$0xff]  ;;  %v10813_v42 = vpop.eup %8112 }
 0x323   : > { %2712 = vst.msk [vmem:[#allocation3 + $0x20] sm:$0xff] %vm2707_vm5, %v2679_v6  ;;  %v13456_v33 = vsub.f32 %v13454_v44, %v13455_v31  ;;  %v13458_v6 = vld [vmem:[#allocation94_spill] sm:$0xff]  ;;  %v10816_v44 = vpop.eup %8114  ;;  %v13461_v31 = vld [vmem:[#allocation95_spill] sm:$0xff] }
 0x324   : > { %v2599_v1 = vpop.xlane.xlu0 %2598  ;;  %2713 = vst.msk [vmem:[#allocation3 + $0x28] sm:$0xff] %vm2707_vm5, %v2680_v22  ;;  %v13459_v21 = vsub.f32 %v13457_v38, %v13458_v6  ;;  %v13460_v22 = vld [vmem:[#allocation91_spill] sm:$0xff]  ;;  %v13464_v38 = vld [vmem:[#allocation104_spill] sm:$0xff] }
 0x325   : > { %v2681_v12 = vadd.f32 %v2599_v1, %v2489_v0  ;;  %v2413_v43 = vmul.f32 1.442695, %v13456_v33  ;;  %v2602_v48 = vpop.xlane.xlu1 %2601  ;;  %v2460_v0 = vld [vmem:[#allocation3 + $0x48] sm:$0xff]  ;;  %v2491_v1 = vmul.f32 %v10802_v5, %v2459_v45  ;;  %v13462_v62 = vsub.f32 %v13460_v22, %v13461_v31  ;;  %v10826_v45 = vpop.eup %8116  ;;  %v13467_v31 = vld [vmem:[#allocation105_spill] sm:$0xff] }
 0x326   : > { %v2415_v46 = vmul.f32 1.442695, %v13459_v21  ;;  %v2682_v18 = vadd.f32 %v2602_v48, %v2490_v54  ;;  %v2492_v48 = vmul.f32 %v10813_v42, %v2460_v0 }
 0x327   : > { %2714 = vst.msk [vmem:[#allocation3 + $0x30] sm:$0xff] %vm2707_vm5, %v2681_v12  ;;  %v2417_v33 = vmul.f32 1.442695, %v13462_v62  ;;  %8120 = vpow2.f32 %v2413_v43  ;;  %v13463_v12 = vld [vmem:[#allocation102_spill] sm:$0xff]  ;;  %v2493_v43 = vmul.f32 %v10816_v44, %v2461_v55  ;;  %v13473_v55 = vld [vmem:[#allocation101_spill] sm:$0xff] }
 0x328   : > { %2715 = vst.msk [vmem:[#allocation3 + $0x38] sm:$0xff] %vm2707_vm5, %v2682_v18  ;;  %8122 = vpow2.f32 %v2415_v46  ;;  %v13465_v6 = vsub.f32 %v13463_v12, %v13464_v38  ;;  %v13466_v18 = vld [vmem:[#allocation103_spill] sm:$0xff]  ;;  %v13469_v12 = vld [vmem:[#allocation98_spill] sm:$0xff]  ;;  %v13470_v38 = vld [vmem:[#allocation100_spill] sm:$0xff] }
 0x329   : > { %v2605_v21 = vpop.xlane.xlu0 %2604  ;;  %8124 = vpow2.f32 %v2417_v33  ;;  %v13468_v46 = vsub.f32 %v13466_v18, %v13467_v31  ;;  %v13472_v33 = vld [vmem:[#allocation99_spill] sm:$0xff]  ;;  %v10843_v31 = vpop.eup %8118 }
 0x32a   : > { %v2419_v23 = vmul.f32 1.442695, %v13465_v6  ;;  %v2683_v54 = vadd.f32 %v2605_v21, %v2491_v1  ;;  %v13471_v1 = vsub.f32 %v13469_v12, %v13470_v38  ;;  %v2494_v6 = vmul.f32 %v10826_v45, %v2462_v10  ;;  %v13478_v10 = vld [vmem:[#allocation109_spill] sm:$0xff] }
 0x32b   : > { %v2608_v35 = vpop.xlane.xlu1 %2607  ;;  %v2421_v62 = vmul.f32 1.442695, %v13468_v46  ;;  %v13476_v46 = vld [vmem:[#allocation112_spill] sm:$0xff]  ;;  %v13479_v12 = vld [vmem:[#allocation113_spill] sm:$0xff] }
 0x32c   : > { %2716 = vst.msk [vmem:[#allocation3 + $0x40] sm:$0xff] %vm2707_vm5, %v2683_v54  ;;  %v2684_v22 = vadd.f32 %v2608_v35, %v2492_v48  ;;  %v2423_v21 = vmul.f32 1.442695, %v13471_v1  ;;  %8126 = vpow2.f32 %v2419_v23  ;;  %v13474_v48 = vsub.f32 %v13472_v33, %v13473_v55  ;;  %v13475_v23 = vld [vmem:[#allocation108_spill] sm:$0xff] }
 0x32d   : > { %v2611_v47 = vpop.xlane.xlu0 %2610  ;;  %8128 = vpow2.f32 %v2421_v62  ;;  %v13480_v38 = vsub.f32 %v13478_v10, %v13479_v12  ;;  %v2464_v62 = vld [vmem:[#allocation3 + $0x68] sm:$0xff] }
 0x32e   : > { %2717 = vst.msk [vmem:[#allocation3 + $0x48] sm:$0xff] %vm2707_vm5, %v2684_v22  ;;  %v2685_v0 = vadd.f32 %v2611_v47, %v2493_v43  ;;  %v2425_v18 = vmul.f32 1.442695, %v13474_v48  ;;  %8130 = vpow2.f32 %v2423_v21  ;;  %v13477_v22 = vsub.f32 %v13475_v23, %v13476_v46  ;;  %v2463_v43 = vld [vmem:[#allocation3 + $0x60] sm:$0xff]  ;;  %v2465_v23 = vld [vmem:[#allocation3 + $0x70] sm:$0xff] }
 0x32f   : > { %v2614_v54 = vpop.xlane.xlu1 %2613  ;;  %v2429_v1 = vmul.f32 1.442695, %v13480_v38 }
 0x330   : > { %2718 = vst.msk [vmem:[#allocation3 + $0x50] sm:$0xff] %vm2707_vm5, %v2685_v0  ;;  %v2686_v35 = vadd.f32 %v2614_v54, %v2494_v6  ;;  %v2427_v47 = vmul.f32 1.442695, %v13477_v22  ;;  %8132 = vpow2.f32 %v2425_v18  ;;  %v2495_v6 = vmul.f32 %v10843_v31, %v2463_v43  ;;  %v13481_v54 = vld [vmem:[#allocation106_spill] sm:$0xff]  ;;  %v13484_v18 = vld [vmem:[#allocation107_spill] sm:$0xff] }
 0x331   : > { %v13485_v22 = vld [vmem:[#allocation111_spill] sm:$0xff] }
 0x332   : > { %2719 = vst.msk [vmem:[#allocation3 + $0x58] sm:$0xff] %vm2707_vm5, %v2686_v35  ;;  %v13482_v35 = vld [vmem:[#allocation110_spill] sm:$0xff]  ;;  %8134 = vpow2.f32 %v2427_v47  ;;  %v13486_v26 = vsub.f32 %v13484_v18, %v13485_v22 }
 0x333   : > { %v13483_v33 = vsub.f32 %v13481_v54, %v13482_v35  ;;  %8136 = vpow2.f32 %v2429_v1  ;;  %v2466_v54 = vld [vmem:[#allocation3 + $0x78] sm:$0xff]  ;;  %v2467_v1 = vld [vmem:[#allocation3 + $0x80] sm:$0xff] }
 0x334   : > { %v10851_v0 = vpop.eup %8120  ;;  %v2433_v10 = vmul.f32 1.442695, %v13486_v26  ;;  %v13487_v47 = vld [vmem:[#allocation118_spill] sm:$0xff] }
 0x335   : > { %v10854_v21 = vpop.eup %8122  ;;  %v2431_v55 = vmul.f32 1.442695, %v13483_v33  ;;  %v2496_v12 = vmul.f32 %v10851_v0, %v2464_v62  ;;  %v13490_v62 = vld [vmem:[#allocation119_spill] sm:$0xff] }
 0x336   : > { %v10863_v38 = vpop.eup %8124  ;;  %v2497_v36 = vmul.f32 %v10854_v21, %v2465_v23  ;;  %v13492_v2 = vsub.f32 %v13490_v62, %v13491_v56  ;;  %v13497_v62 = vld [vmem:[#allocation117_spill] sm:$0xff] }
 0x337   : > { %8138 = vpow2.f32 %v2431_v55  ;;  %v2498_v23 = vmul.f32 %v10863_v38, %v2466_v54  ;;  %v13496_v54 = vld [vmem:[#allocation115_spill] sm:$0xff] }
 0x338   : > { %8140 = vpow2.f32 %v2433_v10  ;;  %v13494_v10 = vld [vmem:[#allocation116_spill] sm:$0xff]  ;;  %v13498_v59 = vsub.f32 %v13496_v54, %v13497_v62 }
 0x339   : > { %v10867_v35 = vpop.eup %8126 }
 0x33a   : > { %v2617_v48 = vpop.xlane.xlu0 %2616  ;;  %v10877_v29 = vpop.eup %8128  ;;  %v2441_v25 = vmul.f32 1.442695, %v13498_v59  ;;  %v2471_v59 = vld [vmem:[#allocation3 + $0xa0] sm:$0xff] }
 0x33b   : > { %v2687_v46 = vadd.f32 %v2617_v48, %v2495_v6  ;;  %v13488_v6 = vld [vmem:[#allocation120_spill] sm:$0xff] }
 0x33c   : > { %v13489_v33 = vsub.f32 %v13487_v47, %v13488_v6  ;;  %v2499_v47 = vmul.f32 %v10867_v35, %v2467_v1 }
 0x33d   : > { %2720 = vst.msk [vmem:[#allocation3 + $0x60] sm:$0xff] %vm2707_vm5, %v2687_v46  ;;  %v2620_v43 = vpop.xlane.xlu1 %2619  ;;  %v2437_v46 = vmul.f32 1.442695, %v13492_v2 }
 0x33e   : > { %v2435_v48 = vmul.f32 1.442695, %v13489_v33  ;;  %v2688_v18 = vadd.f32 %v2620_v43, %v2496_v12  ;;  %v2623_v26 = vpop.xlane.xlu0 %2622  ;;  %v2468_v12 = vld [vmem:[#allocation3 + $0x88] sm:$0xff]  ;;  %v10881_v43 = vpop.eup %8130 }
 0x33f   : > { %v2689_v22 = vadd.f32 %v2623_v26, %v2497_v36  ;;  %v13493_v36 = vld [vmem:[#allocation114_spill] sm:$0xff]  ;;  %v2500_v1 = vmul.f32 %v10877_v29, %v2468_v12 }
 0x340   : > { %2721 = vst.msk [vmem:[#allocation3 + $0x68] sm:$0xff] %vm2707_vm5, %v2688_v18  ;;  %v13495_v6 = vsub.f32 %v13493_v36, %v13494_v10  ;;  %8142 = vpow2.f32 %v2435_v48  ;;  %v2469_v18 = vld [vmem:[#allocation3 + $0x90] sm:$0xff] }
 0x341   : > { %2722 = vst.msk [vmem:[#allocation3 + $0x70] sm:$0xff] %vm2707_vm5, %v2689_v22  ;;  %v2626_v55 = vpop.xlane.xlu1 %2625  ;;  %8144 = vpow2.f32 %v2437_v46  ;;  %v10891_v22 = vpop.eup %8132  ;;  %v2501_v48 = vmul.f32 %v10881_v43, %v2469_v18  ;;  %v2472_v18 = vld [vmem:[#allocation3 + $0xa8] sm:$0xff] }
 0x342   : > { %v2439_v33 = vmul.f32 1.442695, %v13495_v6  ;;  %v2690_v2 = vadd.f32 %v2626_v55, %v2498_v23  ;;  %v2470_v23 = vld [vmem:[#allocation3 + $0x98] sm:$0xff]  ;;  %v10895_v10 = vpop.eup %8134 }
 0x343   : > { %v2629_v56 = vpop.xlane.xlu0 %2628  ;;  %v2502_v46 = vmul.f32 %v10891_v22, %v2470_v23  ;;  %v10899_v12 = vpop.eup %8136 }
 0x344   : > { %v2691_v26 = vadd.f32 %v2629_v56, %v2499_v47  ;;  %2723 = vst.msk [vmem:[#allocation3 + $0x78] sm:$0xff] %vm2707_vm5, %v2690_v2  ;;  %8146 = vpow2.f32 %v2439_v33  ;;  %v13499_v2 = vld [vmem:[#allocation125_spill] sm:$0xff]  ;;  %v13500_v56 = vld [vmem:[#allocation128_spill] sm:$0xff] }
 0x345   : > { %v2632_v36 = vpop.xlane.xlu1 %2631  ;;  %8148 = vpow2.f32 %v2441_v25  ;;  %v13502_v25 = vld [vmem:[#allocation127_spill] sm:$0xff] }
 0x346   : > { %2724 = vst.msk [vmem:[#allocation3 + $0x80] sm:$0xff] %vm2707_vm5, %v2691_v26  ;;  %v2692_v55 = vadd.f32 %v2632_v36, %v2500_v1  ;;  %v13501_v26 = vsub.f32 %v13499_v2, %v13500_v56  ;;  %v2503_v1 = vmul.f32 %v10895_v10, %v2471_v59  ;;  %v10906_v36 = vpop.eup %8138  ;;  %v2504_v2 = vmul.f32 %v10899_v12, %v2472_v18  ;;  %v13506_v59 = vld [vmem:[#allocation124_spill] sm:$0xff] }
 0x347   : > { %v2635_v47 = vpop.xlane.xlu0 %2634  ;;  %v10913_v56 = vpop.eup %8140 }
 0x348   : > { %v2693_v6 = vadd.f32 %v2635_v47, %v2501_v48  ;;  %2725 = vst.msk [vmem:[#allocation3 + $0x88] sm:$0xff] %vm2707_vm5, %v2692_v55  ;;  %v2443_v54 = vmul.f32 1.442695, %v13501_v26  ;;  %v13503_v48 = vld [vmem:[#allocation129_spill] sm:$0xff]  ;;  %v13505_v26 = vld [vmem:[#allocation122_spill] sm:$0xff] }
 0x349   : > { %v2638_v33 = vpop.xlane.xlu1 %2637  ;;  %v13504_v55 = vsub.f32 %v13502_v25, %v13503_v48  ;;  %v2505_v48 = vmul.f32 %v10906_v36, %v2473_v15 }
 0x34a   : > { %2726 = vst.msk [vmem:[#allocation3 + $0x90] sm:$0xff] %vm2707_vm5, %v2693_v6  ;;  %v2694_v62 = vadd.f32 %v2638_v33, %v2502_v46  ;;  %8150 = vpow2.f32 %v2443_v54  ;;  %v2474_v46 = vld [vmem:[#allocation3 + $0xb8] sm:$0xff]  ;;  %v13507_v33 = vsub.f32 %v13505_v26, %v13506_v59  ;;  %v2475_v54 = vld [vmem:[#allocation3 + $0xc0] sm:$0xff] }
 0x34b   : > { %v2445_v47 = vmul.f32 1.442695, %v13504_v55  ;;  %v2506_v26 = vmul.f32 %v10913_v56, %v2474_v46 }
 0x34c   : > { %v2641_v23 = vpop.xlane.xlu0 %2640  ;;  %2727 = vst.msk [vmem:[#allocation3 + $0x98] sm:$0xff] %vm2707_vm5, %v2694_v62  ;;  %v2447_v61 = vmul.f32 1.442695, %v13507_v33  ;;  %v13508_v62 = vld [vmem:[#allocation123_spill] sm:$0xff] }
 0x34d   : > { %v2695_v37 = vadd.f32 %v2641_v23, %v2503_v1  ;;  %v2644_v6 = vpop.xlane.xlu1 %2643  ;;  %v10920_v55 = vpop.eup %8142  ;;  %v13509_v1 = vld [vmem:[#allocation126_spill] sm:$0xff]  ;;  %8152 = vpow2.f32 %v2445_v47 }
 0x34e   : > { %v2696_v25 = vadd.f32 %v2644_v6, %v2504_v2  ;;  %v13510_v23 = vsub.f32 %v13508_v62, %v13509_v1  ;;  %v10927_v59 = vpop.eup %8144  ;;  %v2476_v2 = vld [vmem:[#allocation3 + $0xc8] sm:$0xff]  ;;  %8154 = vpow2.f32 %v2447_v61  ;;  %v2507_v6 = vmul.f32 %v10920_v55, %v2475_v54  ;;  %v2477_v62 = vld [vmem:[#allocation3 + $0xd0] sm:$0xff]  ;;  %v2478_v1 = vld [vmem:[#allocation3 + $0xd8] sm:$0xff] }
 0x34f   : > { %2728 = vst.msk [vmem:[#allocation3 + $0xa0] sm:$0xff] %vm2707_vm5, %v2695_v37  ;;  %v2508_v46 = vmul.f32 %v10927_v59, %v2476_v2 }
 0x350   : > { %v2449_v18 = vmul.f32 1.442695, %v13510_v23  ;;  %v2647_v58 = vpop.xlane.xlu0 %2646  ;;  %2729 = vst.msk [vmem:[#allocation3 + $0xa8] sm:$0xff] %vm2707_vm5, %v2696_v25 }
 0x351   : > { %v2697_v9 = vadd.f32 %v2647_v58, %v2505_v48  ;;  %v2650_v37 = vpop.xlane.xlu1 %2649  ;;  %v10931_v33 = vpop.eup %8146 }
 0x352   : > { %v2698_v15 = vadd.f32 %v2650_v37, %v2506_v26  ;;  %8156 = vpow2.f32 %v2449_v18  ;;  %v10935_v25 = vpop.eup %8148  ;;  %v2509_v61 = vmul.f32 %v10931_v33, %v2477_v62 }
 0x353   : > { %2730 = vst.msk [vmem:[#allocation3 + $0xb0] sm:$0xff] %vm2707_vm5, %v2697_v9  ;;  %v2510_v54 = vmul.f32 %v10935_v25, %v2478_v1 }
 0x354   : > { %v2653_v47 = vpop.xlane.xlu0 %2652  ;;  %2731 = vst.msk [vmem:[#allocation3 + $0xb8] sm:$0xff] %vm2707_vm5, %v2698_v15  ;;  %v2479_v15 = vld [vmem:[#allocation3 + $0xe0] sm:$0xff] }
 0x355   : > { %v2699_v58 = vadd.f32 %v2653_v47, %v2507_v6  ;;  %v2656_v48 = vpop.xlane.xlu1 %2655  ;;  %v2480_v47 = vld [vmem:[#allocation3 + $0xe8] sm:$0xff] }
 0x356   : > { %v2700_v9 = vadd.f32 %v2656_v48, %v2508_v46 }
 0x357   : > { %2732 = vst.msk [vmem:[#allocation3 + $0xc0] sm:$0xff] %vm2707_vm5, %v2699_v58  ;;  %v8151_v37 = vpop.eup %8150 }
 0x358   : > { %v2659_v23 = vpop.xlane.xlu0 %2658  ;;  %2733 = vst.msk [vmem:[#allocation3 + $0xc8] sm:$0xff] %vm2707_vm5, %v2700_v9  ;;  %v2511_v58 = vmul.f32 %v8151_v37, %v2479_v15  ;;  %v8696_v15 = vmov (%p2876_p5), 0  }
 0x359   : > { %v2701_v18 = vadd.f32 %v2659_v23, %v2509_v61  ;;  %v2662_v26 = vpop.xlane.xlu1 %2661  ;;  %v2482_v23 = vld [vmem:[#allocation3 + $0xf8] sm:$0xff]  ;;  %8159 = vset.pattern.permute.xlu1 (%p2876_p5), %v8696_v15  ;;  %8158 = vset.pattern.permute.xlu0 (%p2876_p5), %v8696_v15 }
 0x35a   : > { %v2702_v2 = vadd.f32 %v2662_v26, %v2510_v54  ;;  %v8153_v6 = vpop.eup %8152  ;;  %2924 = vperm.xlu1 (%p2876_p5), %8159, %v10763_v34   ;;  %2914 = vperm.xlu0 (%p2876_p5), %8158, %v10753_v17   ;;  %v2883_v17 = vld [vmem:[#allocation2 + $0x18] sm:$0xff] (%p2876_p5) }
 0x35b   : > { %2734 = vst.msk [vmem:[#allocation3 + $0xd0] sm:$0xff] %vm2707_vm5, %v2701_v18  ;;  %v8155_v48 = vpop.eup %8154  ;;  %v2512_v27 = vmul.f32 %v8153_v6, %v2480_v47 }
 0x35c   : > { %2735 = vst.msk [vmem:[#allocation3 + $0xd8] sm:$0xff] %vm2707_vm5, %v2702_v2  ;;  %v2513_v53 = vmul.f32 %v8155_v48, %v2481_v39  ;;  %v2880_v39 = vld [vmem:[#allocation2 + $0xb0] sm:$0xff] (%p2876_p5) }
 0x35e   : > { %2929 = vperm.xlu1 (%p2876_p5), %8159, %v10767_v24   ;;  %2919 = vperm.xlu0 (%p2876_p5), %8158, %v10758_v40   ;;  %v2881_v40 = vld [vmem:[#allocation2 + $0x1b0] sm:$0xff] (%p2876_p5) }
 0x35f   : > { %v2665_v46 = vpop.xlane.xlu0 %2664  ;;  %v8157_v9 = vpop.eup %8156 }
 0x360   : > { %v2703_v62 = vadd.f32 %v2665_v46, %v2511_v58  ;;  %v2514_v54 = vmul.f32 %v8157_v9, %v2482_v23  ;;  %v2893_v46 = vld [vmem:[#allocation2 + $0x150] sm:$0xff] (%p2876_p5) }
 0x361   : > { %v2668_v61 = vpop.xlane.xlu1 %2667 }
 0x362   : > { %2736 = vst.msk [vmem:[#allocation3 + $0xe0] sm:$0xff] %vm2707_vm5, %v2703_v62  ;;  %v2704_v1 = vadd.f32 %v2668_v61, %v2512_v27  ;;  %2939 = vperm.xlu1 (%p2876_p5), %8159, %v10789_v60   ;;  %2934 = vperm.xlu0 (%p2876_p5), %8158, %v10784_v7  }
 0x364   : > { %2737 = vst.msk [vmem:[#allocation3 + $0xe8] sm:$0xff] %vm2707_vm5, %v2704_v1  ;;  %v2671_v18 = vpop.xlane.xlu0 %2670  ;;  %2879 = sbr.rel (!%p2876_p5) target bundleno = 1045 (0x415), region = 71  ;;  %v2895_v1 = vld [vmem:[#allocation2 + $0x60] sm:$0xff] (%p2876_p5) }
 0x365   : > { %v2705_v26 = vadd.f32 %v2671_v18, %v2513_v53  ;;  %v2674_v2 = vpop.xlane.xlu1 %2673  ;;  %v2894_v18 = vld [vmem:[#allocation2 + $0x108] sm:$0xff] (%p2876_p5) }
 0x366   : > { %v2706_v13 = vadd.f32 %v2674_v2, %v2514_v54  ;;  %2949 = vperm.xlu1 (%p2876_p5), %8159, %v10795_v49   ;;  %2944 = vperm.xlu0 (%p2876_p5), %8158, %v10792_v8   ;;  %v2885_v8 = vld [vmem:[#allocation2 + $0x168] sm:$0xff] (%p2876_p5)  ;;  %v2884_v49 = vld [vmem:[#allocation2 + $0x50] sm:$0xff] (%p2876_p5) }
 0x367   : > { %2738 = vst.msk [vmem:[#allocation3 + $0xf0] sm:$0xff] %vm2707_vm5, %v2705_v26 }
 0x368   : > { %2739 = vst.msk [vmem:[#allocation3 + $0xf8] sm:$0xff] %vm2707_vm5, %v2706_v13  ;;  %v2882_v13 = vld [vmem:[#allocation2 + $0xd8] sm:$0xff] (%p2876_p5) }
 0x36a   : > { %2959 = vperm.xlu1 %8159, %v10813_v42   ;;  %2954 = vperm.xlu0 %8158, %v10802_v5  }
 0x36e   : > { %2969 = vperm.xlu1 %8159, %v10826_v45   ;;  %2964 = vperm.xlu0 %8158, %v10816_v44  }
 0x372   : > { %2979 = vperm.xlu1 %8159, %v10851_v0   ;;  %2974 = vperm.xlu0 %8158, %v10843_v31   ;;  %v2887_v0 = vld [vmem:[#allocation2 + $0x48] sm:$0xff] }
 0x376   : > { %2989 = vperm.xlu1 %8159, %v10863_v38   ;;  %2984 = vperm.xlu0 %8158, %v10854_v21   ;;  %v2886_v21 = vld [vmem:[#allocation2 + $0x130] sm:$0xff] }
 0x37a   : > { %2999 = vperm.xlu1 %8159, %v10877_v29   ;;  %2994 = vperm.xlu0 %8158, %v10867_v35  }
 0x37e   : > { %3009 = vperm.xlu1 %8159, %v10891_v22   ;;  %3004 = vperm.xlu0 %8158, %v10881_v43  }
 0x382   : > { %3019 = vperm.xlu1 %8159, %v10899_v12   ;;  %3014 = vperm.xlu0 %8158, %v10895_v10   ;;  %v2889_v10 = vld [vmem:[#allocation2 + $0x110] sm:$0xff]  ;;  %v2888_v12 = vld [vmem:[#allocation2 + $0x180] sm:$0xff] }
 0x386   : > { %3029 = vperm.xlu1 %8159, %v10913_v56   ;;  %3024 = vperm.xlu0 %8158, %v10906_v36  }
 0x38a   : > { %3039 = vperm.xlu1 %8159, %v10927_v59   ;;  %3034 = vperm.xlu0 %8158, %v10920_v55  }
 0x38e   : > { %3049 = vperm.xlu1 %8159, %v10935_v25   ;;  %3044 = vperm.xlu0 %8158, %v10931_v33   ;;  %v2891_v33 = vld [vmem:[#allocation2 + $0x98] sm:$0xff] }
 0x38f   : > { %v2890_v25 = vld [vmem:[#allocation2 + $0x118] sm:$0xff] }
 0x392   : > { %3059 = vperm.xlu1 %8159, %v8153_v6   ;;  %3054 = vperm.xlu0 %8158, %v8151_v37  }
 0x396   : > { %3069 = vperm.xlu1 %8159, %v8157_v9   ;;  %3064 = vperm.xlu0 %8158, %v8155_v48   ;;  %v2892_v48 = vld [vmem:[#allocation2 + $0x120] sm:$0xff] }
 0x3d5   : > { %v2925_v53 = vpop.permute.xlu1 %2924  ;;  %v2915_v27 = vpop.permute.xlu0 %2914 }
 0x3d6   : > { %v3074_v5 = vmul.f32 %v2925_v53, %v2882_v13  ;;  %v3072_v29 = vmul.f32 %v2915_v27, %v2880_v39  ;;  %v2897_v13 = vld [vmem:[#allocation2 + $0x188] sm:$0xff]  ;;  %v2896_v39 = vld [vmem:[#allocation2 + $0xe0] sm:$0xff] }
 0x3d8   : > { %3106 = vst [vmem:[#allocation2 + $0xd8] sm:$0xff] %v3074_v5  ;;  %3104 = vst [vmem:[#allocation2 + $0xb0] sm:$0xff] %v3072_v29 }
 0x3d9   : > { %v2930_v34 = vpop.permute.xlu1 %2929  ;;  %v2920_v24 = vpop.permute.xlu0 %2919 }
 0x3da   : > { %v3075_v7 = vmul.f32 %v2930_v34, %v2883_v17  ;;  %v3073_v60 = vmul.f32 %v2920_v24, %v2881_v40  ;;  %v2899_v17 = vld [vmem:[#allocation2 + $0x140] sm:$0xff]  ;;  %v2898_v40 = vld [vmem:[#allocation2 + $0x138] sm:$0xff] }
 0x3dc   : > { %3107 = vst [vmem:[#allocation2 + $0x18] sm:$0xff] %v3075_v7  ;;  %3105 = vst [vmem:[#allocation2 + $0x1b0] sm:$0xff] %v3073_v60 }
 0x3dd   : > { %v2940_v42 = vpop.permute.xlu1 %2939  ;;  %v2935_v44 = vpop.permute.xlu0 %2934 }
 0x3de   : > { %v3077_v45 = vmul.f32 %v2940_v42, %v2885_v8  ;;  %v3076_v31 = vmul.f32 %v2935_v44, %v2884_v49  ;;  %v2901_v8 = vld [vmem:[#allocation2 + $0x1a8] sm:$0xff]  ;;  %v2900_v49 = vld [vmem:[#allocation2 + $0x80] sm:$0xff] }
 0x3e0   : > { %3109 = vst [vmem:[#allocation2 + $0x168] sm:$0xff] %v3077_v45  ;;  %3108 = vst [vmem:[#allocation2 + $0x50] sm:$0xff] %v3076_v31 }
 0x3e1   : > { %v2950_v38 = vpop.permute.xlu1 %2949  ;;  %v2945_v35 = vpop.permute.xlu0 %2944 }
 0x3e2   : > { %v3079_v43 = vmul.f32 %v2950_v38, %v2887_v0  ;;  %v3078_v22 = vmul.f32 %v2945_v35, %v2886_v21  ;;  %v2903_v0 = vld [vmem:[#allocation2 + $0x28] sm:$0xff]  ;;  %v2902_v21 = vld [vmem:[#allocation2 + $0x1b8] sm:$0xff] }
 0x3e4   : > { %3111 = vst [vmem:[#allocation2 + $0x48] sm:$0xff] %v3079_v43  ;;  %3110 = vst [vmem:[#allocation2 + $0x130] sm:$0xff] %v3078_v22 }
 0x3e5   : > { %v2960_v36 = vpop.permute.xlu1 %2959  ;;  %v2955_v56 = vpop.permute.xlu0 %2954 }
 0x3e6   : > { %v3081_v55 = vmul.f32 %v2960_v36, %v2889_v10  ;;  %v3080_v59 = vmul.f32 %v2955_v56, %v2888_v12  ;;  %v2905_v10 = vld [vmem:[#allocation2 + $0xf8] sm:$0xff]  ;;  %v2904_v12 = vld [vmem:[#allocation2 + $0x1e8] sm:$0xff] }
 0x3e8   : > { %3113 = vst [vmem:[#allocation2 + $0x110] sm:$0xff] %v3081_v55  ;;  %3112 = vst [vmem:[#allocation2 + $0x180] sm:$0xff] %v3080_v59 }
 0x3e9   : > { %v2970_v37 = vpop.permute.xlu1 %2969  ;;  %v2965_v6 = vpop.permute.xlu0 %2964 }
 0x3ea   : > { %v3083_v47 = vmul.f32 %v2970_v37, %v2891_v33  ;;  %v3082_v58 = vmul.f32 %v2965_v6, %v2890_v25  ;;  %v2907_v33 = vld [vmem:[#allocation2 + $0x30] sm:$0xff]  ;;  %v2906_v25 = vld [vmem:[#allocation2 + $0x160] sm:$0xff] }
 0x3ec   : > { %3115 = vst [vmem:[#allocation2 + $0x98] sm:$0xff] %v3083_v47  ;;  %3114 = vst [vmem:[#allocation2 + $0x118] sm:$0xff] %v3082_v58 }
 0x3ed   : > { %v2980_v62 = vpop.permute.xlu1 %2979  ;;  %v2975_v9 = vpop.permute.xlu0 %2974 }
 0x3ee   : > { %v3085_v61 = vmul.f32 %v2980_v62, %v2893_v46  ;;  %v3084_v23 = vmul.f32 %v2975_v9, %v2892_v48  ;;  %v2909_v46 = vld [vmem:[#allocation2] sm:$0xff] }
 0x3ef   : > { %v2908_v48 = vld [vmem:[#allocation2 + $0x1e0] sm:$0xff] }
 0x3f0   : > { %3117 = vst [vmem:[#allocation2 + $0x150] sm:$0xff] %v3085_v61  ;;  %3116 = vst [vmem:[#allocation2 + $0x120] sm:$0xff] %v3084_v23 }
 0x3f1   : > { %v2990_v54 = vpop.permute.xlu1 %2989  ;;  %v2985_v26 = vpop.permute.xlu0 %2984 }
 0x3f2   : > { %v3087_v2 = vmul.f32 %v2990_v54, %v2895_v1  ;;  %v3086_v15 = vmul.f32 %v2985_v26, %v2894_v18  ;;  %v2911_v1 = vld [vmem:[#allocation2 + $0x8] sm:$0xff]  ;;  %v2910_v18 = vld [vmem:[#allocation2 + $0xf0] sm:$0xff] }
 0x3f4   : > { %3119 = vst [vmem:[#allocation2 + $0x60] sm:$0xff] %v3087_v2  ;;  %3118 = vst [vmem:[#allocation2 + $0x108] sm:$0xff] %v3086_v15 }
 0x3f5   : > { %v3000_v53 = vpop.permute.xlu1 %2999  ;;  %v2995_v27 = vpop.permute.xlu0 %2994 }
 0x3f6   : > { %v3089_v5 = vmul.f32 %v3000_v53, %v2897_v13  ;;  %v3088_v29 = vmul.f32 %v2995_v27, %v2896_v39 }
 0x3f8   : > { %3121 = vst [vmem:[#allocation2 + $0x188] sm:$0xff] %v3089_v5  ;;  %3120 = vst [vmem:[#allocation2 + $0xe0] sm:$0xff] %v3088_v29 }
 0x3f9   : > { %v3010_v34 = vpop.permute.xlu1 %3009  ;;  %v3005_v24 = vpop.permute.xlu0 %3004 }
 0x3fa   : > { %v3091_v7 = vmul.f32 %v3010_v34, %v2899_v17  ;;  %v3090_v60 = vmul.f32 %v3005_v24, %v2898_v40 }
 0x3fc   : > { %3123 = vst [vmem:[#allocation2 + $0x140] sm:$0xff] %v3091_v7  ;;  %3122 = vst [vmem:[#allocation2 + $0x138] sm:$0xff] %v3090_v60 }
 0x3fd   : > { %v3020_v42 = vpop.permute.xlu1 %3019  ;;  %v3015_v44 = vpop.permute.xlu0 %3014 }
 0x3fe   : > { %v3093_v45 = vmul.f32 %v3020_v42, %v2901_v8  ;;  %v3092_v31 = vmul.f32 %v3015_v44, %v2900_v49 }
 0x400   : > { %3125 = vst [vmem:[#allocation2 + $0x1a8] sm:$0xff] %v3093_v45  ;;  %3124 = vst [vmem:[#allocation2 + $0x80] sm:$0xff] %v3092_v31 }
 0x401   : > { %v3030_v38 = vpop.permute.xlu1 %3029  ;;  %v3025_v35 = vpop.permute.xlu0 %3024 }
 0x402   : > { %v3095_v43 = vmul.f32 %v3030_v38, %v2903_v0  ;;  %v3094_v22 = vmul.f32 %v3025_v35, %v2902_v21 }
 0x404   : > { %3127 = vst [vmem:[#allocation2 + $0x28] sm:$0xff] %v3095_v43  ;;  %3126 = vst [vmem:[#allocation2 + $0x1b8] sm:$0xff] %v3094_v22 }
 0x405   : > { %v3040_v36 = vpop.permute.xlu1 %3039  ;;  %v3035_v56 = vpop.permute.xlu0 %3034 }
 0x406   : > { %v3097_v55 = vmul.f32 %v3040_v36, %v2905_v10  ;;  %v3096_v59 = vmul.f32 %v3035_v56, %v2904_v12 }
 0x408   : > { %3129 = vst [vmem:[#allocation2 + $0xf8] sm:$0xff] %v3097_v55  ;;  %3128 = vst [vmem:[#allocation2 + $0x1e8] sm:$0xff] %v3096_v59 }
 0x409   : > { %v3050_v37 = vpop.permute.xlu1 %3049  ;;  %v3045_v6 = vpop.permute.xlu0 %3044 }
 0x40a   : > { %v3099_v47 = vmul.f32 %v3050_v37, %v2907_v33  ;;  %v3098_v58 = vmul.f32 %v3045_v6, %v2906_v25 }
 0x40c   : > { %3131 = vst [vmem:[#allocation2 + $0x30] sm:$0xff] %v3099_v47  ;;  %3130 = vst [vmem:[#allocation2 + $0x160] sm:$0xff] %v3098_v58 }
 0x40d   : > { %v3060_v62 = vpop.permute.xlu1 %3059  ;;  %v3055_v9 = vpop.permute.xlu0 %3054 }
 0x40e   : > { %v3101_v61 = vmul.f32 %v3060_v62, %v2909_v46  ;;  %v3100_v23 = vmul.f32 %v3055_v9, %v2908_v48 }
 0x410   : > { %3133 = vst [vmem:[#allocation2] sm:$0xff] %v3101_v61  ;;  %3132 = vst [vmem:[#allocation2 + $0x1e0] sm:$0xff] %v3100_v23 }
 0x411   : > { %v3070_v54 = vpop.permute.xlu1 %3069  ;;  %v3065_v26 = vpop.permute.xlu0 %3064 }
 0x412   : > { %v3103_v2 = vmul.f32 %v3070_v54, %v2911_v1  ;;  %v3102_v15 = vmul.f32 %v3065_v26, %v2910_v18 }
 0x414   : > { %3135 = vst [vmem:[#allocation2 + $0x8] sm:$0xff] %v3103_v2  ;;  %3134 = vst [vmem:[#allocation2 + $0xf0] sm:$0xff] %v3102_v15 }
 0x415 PF: > { %v13511_v13 = vld [vmem:[#allocation72_spill] sm:$0xff]  ;;  %v13512_v39 = vld [vmem:[#allocation73_spill] sm:$0xff]  ;;  %v13513_v53 = vld [vmem:[#allocation70_spill] sm:$0xff]  ;;  %v8697_v37 = vmov 1  }
 0x416   : > { %3649 = vst.msk [vmem:[#allocation4] sm:$0xff] %vm2707_vm5, %v13511_v13  ;;  %3650 = vst.msk [vmem:[#allocation4 + $0x8] sm:$0xff] %vm2707_vm5, %v13512_v39  ;;  %v13514_v27 = vld [vmem:[#allocation71_spill] sm:$0xff]  ;;  %v13515_v5 = vld [vmem:[#allocation80_spill] sm:$0xff]  ;;  %8161 = vset.pattern.permute.xlu1 %v8697_v37  ;;  %8160 = vset.pattern.permute.xlu0 %v8697_v37 }
 0x417   : > { %3651 = vst.msk [vmem:[#allocation4 + $0x10] sm:$0xff] %vm2707_vm5, %v13513_v53  ;;  %3652 = vst.msk [vmem:[#allocation4 + $0x18] sm:$0xff] %vm2707_vm5, %v13514_v27  ;;  %v13516_v29 = vld [vmem:[#allocation81_spill] sm:$0xff]  ;;  %v13517_v17 = vld [vmem:[#allocation78_spill] sm:$0xff] }
 0x418   : > { %3653 = vst.msk [vmem:[#allocation4 + $0x20] sm:$0xff] %vm2707_vm5, %v13515_v5  ;;  %3654 = vst.msk [vmem:[#allocation4 + $0x28] sm:$0xff] %vm2707_vm5, %v13516_v29  ;;  %v13518_v40 = vld [vmem:[#allocation79_spill] sm:$0xff]  ;;  %v13519_v34 = vld [vmem:[#allocation88_spill] sm:$0xff] }
 0x419   : > { %3655 = vst.msk [vmem:[#allocation4 + $0x30] sm:$0xff] %vm2707_vm5, %v13517_v17  ;;  %3656 = vst.msk [vmem:[#allocation4 + $0x38] sm:$0xff] %vm2707_vm5, %v13518_v40  ;;  %v13520_v24 = vld [vmem:[#allocation89_spill] sm:$0xff]  ;;  %v13521_v7 = vld [vmem:[#allocation86_spill] sm:$0xff] }
 0x41a   : > { %3657 = vst.msk [vmem:[#allocation4 + $0x40] sm:$0xff] %vm2707_vm5, %v13519_v34  ;;  %3658 = vst.msk [vmem:[#allocation4 + $0x48] sm:$0xff] %vm2707_vm5, %v13520_v24  ;;  %v13522_v60 = vld [vmem:[#allocation87_spill] sm:$0xff]  ;;  %v13523_v8 = vld [vmem:[#allocation96_spill] sm:$0xff] }
 0x41b   : > { %3659 = vst.msk [vmem:[#allocation4 + $0x50] sm:$0xff] %vm2707_vm5, %v13521_v7  ;;  %3660 = vst.msk [vmem:[#allocation4 + $0x58] sm:$0xff] %vm2707_vm5, %v13522_v60  ;;  %v13524_v49 = vld [vmem:[#allocation97_spill] sm:$0xff]  ;;  %v13525_v42 = vld [vmem:[#allocation94_spill] sm:$0xff] }
 0x41c   : > { %3661 = vst.msk [vmem:[#allocation4 + $0x60] sm:$0xff] %vm2707_vm5, %v13523_v8  ;;  %3662 = vst.msk [vmem:[#allocation4 + $0x68] sm:$0xff] %vm2707_vm5, %v13524_v49  ;;  %v13526_v44 = vld [vmem:[#allocation95_spill] sm:$0xff]  ;;  %v13527_v45 = vld [vmem:[#allocation104_spill] sm:$0xff] }
 0x41d   : > { %3663 = vst.msk [vmem:[#allocation4 + $0x70] sm:$0xff] %vm2707_vm5, %v13525_v42  ;;  %3664 = vst.msk [vmem:[#allocation4 + $0x78] sm:$0xff] %vm2707_vm5, %v13526_v44  ;;  %v13528_v31 = vld [vmem:[#allocation105_spill] sm:$0xff]  ;;  %v13529_v0 = vld [vmem:[#allocation100_spill] sm:$0xff] }
 0x41e   : > { %3665 = vst.msk [vmem:[#allocation4 + $0x80] sm:$0xff] %vm2707_vm5, %v13527_v45  ;;  %3666 = vst.msk [vmem:[#allocation4 + $0x88] sm:$0xff] %vm2707_vm5, %v13528_v31  ;;  %v13530_v21 = vld [vmem:[#allocation101_spill] sm:$0xff]  ;;  %v13531_v38 = vld [vmem:[#allocation112_spill] sm:$0xff]  ;;  %v13575_v31 = vmov 0  }
 0x41f   : > { %3667 = vst.msk [vmem:[#allocation4 + $0x90] sm:$0xff] %vm2707_vm5, %v13529_v0  ;;  %3668 = vst.msk [vmem:[#allocation4 + $0x98] sm:$0xff] %vm2707_vm5, %v13530_v21  ;;  %v13532_v35 = vld [vmem:[#allocation113_spill] sm:$0xff]  ;;  %v13533_v43 = vld [vmem:[#allocation110_spill] sm:$0xff] }
 0x420   : > { %3669 = vst.msk [vmem:[#allocation4 + $0xa0] sm:$0xff] %vm2707_vm5, %v13531_v38  ;;  %3670 = vst.msk [vmem:[#allocation4 + $0xa8] sm:$0xff] %vm2707_vm5, %v13532_v35  ;;  %v13534_v22 = vld [vmem:[#allocation111_spill] sm:$0xff]  ;;  %v13535_v10 = vld [vmem:[#allocation120_spill] sm:$0xff] }
 0x421   : > { %3671 = vst.msk [vmem:[#allocation4 + $0xb0] sm:$0xff] %vm2707_vm5, %v13533_v43  ;;  %3672 = vst.msk [vmem:[#allocation4 + $0xb8] sm:$0xff] %vm2707_vm5, %v13534_v22  ;;  %v13536_v12 = vld [vmem:[#allocation121_spill] sm:$0xff]  ;;  %v13537_v36 = vld [vmem:[#allocation116_spill] sm:$0xff] }
 0x422   : > { %3673 = vst.msk [vmem:[#allocation4 + $0xc0] sm:$0xff] %vm2707_vm5, %v13535_v10  ;;  %3674 = vst.msk [vmem:[#allocation4 + $0xc8] sm:$0xff] %vm2707_vm5, %v13536_v12  ;;  %v13538_v56 = vld [vmem:[#allocation117_spill] sm:$0xff]  ;;  %v13539_v55 = vld [vmem:[#allocation128_spill] sm:$0xff] }
 0x423   : > { %3675 = vst.msk [vmem:[#allocation4 + $0xd0] sm:$0xff] %vm2707_vm5, %v13537_v36  ;;  %3676 = vst.msk [vmem:[#allocation4 + $0xd8] sm:$0xff] %vm2707_vm5, %v13538_v56  ;;  %v13540_v59 = vld [vmem:[#allocation129_spill] sm:$0xff]  ;;  %v13541_v33 = vld [vmem:[#allocation124_spill] sm:$0xff] }
 0x424   : > { %3677 = vst.msk [vmem:[#allocation4 + $0xe0] sm:$0xff] %vm2707_vm5, %v13539_v55  ;;  %3678 = vst.msk [vmem:[#allocation4 + $0xe8] sm:$0xff] %vm2707_vm5, %v13540_v59  ;;  %v13542_v25 = vld [vmem:[#allocation126_spill] sm:$0xff]  ;;  %v13543_v6 = vld [vmem:[#allocation19_spill] sm:$0xff] }
 0x425   : > { %3679 = vst.msk [vmem:[#allocation4 + $0xf0] sm:$0xff] %vm2707_vm5, %v13541_v33  ;;  %3680 = vst.msk [vmem:[#allocation4 + $0xf8] sm:$0xff] %vm2707_vm5, %v13542_v25  ;;  %3704 = vperm.xlu1 %8161, %v13543_v6   ;;  %v13544_v47 = vld [vmem:[#allocation20_spill] sm:$0xff]  ;;  %v13545_v58 = vld [vmem:[#allocation21_spill] sm:$0xff] }
 0x426   : > { %3682 = vperm.xlu0 %8160, %v13544_v47   ;;  %v13546_v46 = vld [vmem:[#allocation22_spill] sm:$0xff]  ;;  %v13547_v48 = vld [vmem:[#allocation23_spill] sm:$0xff]  ;;  %v13548_v62 = vld [vmem:[#allocation24_spill] sm:$0xff] }
 0x427   : > { %v13549_v9 = vld [vmem:[#allocation25_spill] sm:$0xff]  ;;  %v13550_v61 = vld [vmem:[#allocation26_spill] sm:$0xff]  ;;  %v13551_v23 = vld [vmem:[#allocation27_spill] sm:$0xff] }
 0x428   : > { %v13552_v1 = vld [vmem:[#allocation28_spill] sm:$0xff]  ;;  %v13553_v18 = vld [vmem:[#allocation29_spill] sm:$0xff]  ;;  %v13554_v54 = vld [vmem:[#allocation30_spill] sm:$0xff] }
 0x429   : > { %3715 = vperm.xlu1 %8161, %v13545_v58   ;;  %v13555_v26 = vld [vmem:[#allocation31_spill] sm:$0xff]  ;;  %v13556_v2 = vld [vmem:[#allocation32_spill] sm:$0xff]  ;;  %v13557_v15 = vld [vmem:[#allocation33_spill] sm:$0xff] }
 0x42a   : > { %3693 = vperm.xlu0 %8160, %v13546_v46   ;;  %v13558_v13 = vld [vmem:[#allocation34_spill] sm:$0xff]  ;;  %v13559_v39 = vld [vmem:[#allocation35_spill] sm:$0xff]  ;;  %v13560_v53 = vld [vmem:[#allocation36_spill] sm:$0xff] }
 0x42b   : > { %v13561_v27 = vld [vmem:[#allocation37_spill] sm:$0xff]  ;;  %v13562_v5 = vld [vmem:[#allocation38_spill] sm:$0xff]  ;;  %v13563_v29 = vld [vmem:[#allocation39_spill] sm:$0xff] }
 0x42c   : > { %v13564_v17 = vld [vmem:[#allocation40_spill] sm:$0xff]  ;;  %v13565_v40 = vld [vmem:[#allocation41_spill] sm:$0xff]  ;;  %v13566_v34 = vld [vmem:[#allocation42_spill] sm:$0xff] }
 0x42d   : > { %3737 = vperm.xlu1 %8161, %v13547_v48   ;;  %v13567_v24 = vld [vmem:[#allocation43_spill] sm:$0xff]  ;;  %v13568_v7 = vld [vmem:[#allocation44_spill] sm:$0xff]  ;;  %v13569_v60 = vld [vmem:[#allocation45_spill] sm:$0xff] }
 0x42e   : > { %3726 = vperm.xlu0 %8160, %v13548_v62   ;;  %v13570_v8 = vld [vmem:[#allocation46_spill] sm:$0xff]  ;;  %v13571_v49 = vld [vmem:[#allocation47_spill] sm:$0xff]  ;;  %v13572_v42 = vld [vmem:[#allocation48_spill] sm:$0xff] }
 0x42f   : > { %v13573_v44 = vld [vmem:[#allocation49_spill] sm:$0xff]  ;;  %v13574_v45 = vld [vmem:[#allocation50_spill] sm:$0xff]  ;;  %v13576_v0 = vld [vmem:[#allocation51_spill] sm:$0xff] }
 0x430   : > { %v4033_v21 = vshrl.u32 %v13576_v0, 16  ;;  %v13577_v38 = vld [vmem:[#allocation52_spill] sm:$0xff]  ;;  %v13578_v10 = vld [vmem:[#allocation53_spill] sm:$0xff] }
 0x431   : > { %3759 = vperm.xlu1 %8161, %v13549_v9   ;;  %v4040_v35 = vshrl.u32 %v13577_v38, 16 }
 0x432   : > { %3748 = vperm.xlu0 %8160, %v13550_v61   ;;  %v4034_v43 = vpack.i.b16 %v4033_v21, %v4033_v21 }
 0x433   : > { %v4041_v22 = vpack.i.b16 %v4040_v35, %v4040_v35 }
 0x434   : > { %v4039_v12 = vrot.slane %v4034_v43, %v13578_v10 }
 0x435   : > { %3781 = vperm.xlu1 %8161, %v13551_v23   ;;  %v4046_v36 = vrot.slane %v4041_v22, %v13578_v10 }
 0x436   : > { %3770 = vperm.xlu0 %8160, %v13552_v1  }
 0x437   : > { %v11079_v56 = vcombine.low %v4039_v12, %v4046_v36 }
 0x439   : > { %3803 = vperm.xlu1 %8161, %v13553_v18  }
 0x43a   : > { %3792 = vperm.xlu0 %8160, %v13554_v54  }
 0x43d   : > { %3825 = vperm.xlu1 %8161, %v13555_v26  }
 0x43e   : > { %3814 = vperm.xlu0 %8160, %v13556_v2  }
 0x441   : > { %3847 = vperm.xlu1 %8161, %v13557_v15  }
 0x442   : > { %3836 = vperm.xlu0 %8160, %v13558_v13  }
 0x445   : > { %3869 = vperm.xlu1 %8161, %v13559_v39  }
 0x446   : > { %3858 = vperm.xlu0 %8160, %v13560_v53  }
 0x449   : > { %3891 = vperm.xlu1 %8161, %v13561_v27  }
 0x44a   : > { %3880 = vperm.xlu0 %8160, %v13562_v5  }
 0x44d   : > { %3913 = vperm.xlu1 %8161, %v13563_v29  }
 0x44e   : > { %3902 = vperm.xlu0 %8160, %v13564_v17  }
 0x451   : > { %3935 = vperm.xlu1 %8161, %v13565_v40  }
 0x452   : > { %3924 = vperm.xlu0 %8160, %v13566_v34  }
 0x455   : > { %3957 = vperm.xlu1 %8161, %v13567_v24  }
 0x456   : > { %3946 = vperm.xlu0 %8160, %v13568_v7  }
 0x459   : > { %3979 = vperm.xlu1 %8161, %v13569_v60  }
 0x45a   : > { %3968 = vperm.xlu0 %8160, %v13570_v8  }
 0x45d   : > { %4001 = vperm.xlu1 %8161, %v13571_v49  }
 0x45e   : > { %3990 = vperm.xlu0 %8160, %v13572_v42  }
 0x461   : > { %4023 = vperm.xlu1 %8161, %v13573_v44  }
 0x462   : > { %4012 = vperm.xlu0 %8160, %v13574_v45  }
 0x465   : > { %8163 = vset.pattern.permute.xlu1 %v13575_v31 }
 0x466   : > { %8162 = vset.pattern.permute.xlu0 %v13575_v31 }
 0x4a0   : > { %v3705_v55 = vpop.permute.xlu1 %3704 }
 0x4a1   : > { %v3683_v59 = vpop.permute.xlu0 %3682  ;;  %v3713_v33 = vrot.slane %v3705_v55, %v9369_v4 }
 0x4a2   : > { %v3691_v25 = vrot.slane %v3683_v59, %v9369_v4 }
 0x4a3   : > { %v4055_v37 = vadd.bf16 %v11079_v56, %v3713_v33 }
 0x4a4   : > { %v4053_v6 = vadd.bf16 %v11079_v56, %v3691_v25  ;;  %v3716_v47 = vpop.permute.xlu1 %3715 }
 0x4a5   : > { %v3694_v58 = vpop.permute.xlu0 %3693  ;;  %v3724_v46 = vrot.slane %v3716_v47, %v9369_v4  ;;  %v4087_v62 = vmul.bf16 1045249613, %v4055_v37 }
 0x4a6   : > { %v3702_v48 = vrot.slane %v3694_v58, %v9369_v4  ;;  %v4085_v23 = vmul.bf16 1045249613, %v4053_v6 }
 0x4a7   : > { %v4056_v9 = vadd.bf16 %v11079_v56, %v3724_v46  ;;  %v11091_v13 = vmax.bf16 %v4087_v62, %v4055_v37 }
 0x4a8   : > { %v4054_v61 = vadd.bf16 %v11079_v56, %v3702_v48  ;;  %v3738_v1 = vpop.permute.xlu1 %3737  ;;  %v11099_v29 = vmax.bf16 %v4085_v23, %v4053_v6 }
 0x4a9   : > { %v3727_v18 = vpop.permute.xlu0 %3726  ;;  %v4088_v54 = vmul.bf16 1045249613, %v4056_v9  ;;  %v3746_v2 = vrot.slane %v3738_v1, %v9369_v4 }
 0x4aa   : > { %v4086_v26 = vmul.bf16 1045249613, %v4054_v61  ;;  %v3735_v15 = vrot.slane %v3727_v18, %v9369_v4 }
 0x4ab   : > { %v11093_v39 = vmax.bf16 %v4088_v54, %v4056_v9  ;;  %v4058_v27 = vadd.bf16 %v11079_v56, %v3746_v2 }
 0x4ac   : > { %v11095_v53 = vmax.bf16 %v4086_v26, %v4054_v61  ;;  %v4057_v5 = vadd.bf16 %v11079_v56, %v3735_v15  ;;  %v3760_v17 = vpop.permute.xlu1 %3759 }
 0x4ad   : > { %v3749_v40 = vpop.permute.xlu0 %3748  ;;  %v4090_v34 = vmul.bf16 1045249613, %v4058_v27  ;;  %v3768_v7 = vrot.slane %v3760_v17, %v9369_v4  ;;  %v7629_v8 = vcombine.low %v11091_v13, %v11093_v39  ;;  %v7630_v49 = vcombine.high %v11091_v13, %v11093_v39 }
 0x4ae   : > { %v4089_v24 = vmul.bf16 1045249613, %v4057_v5  ;;  %v3757_v60 = vrot.slane %v3749_v40, %v9369_v4  ;;  %v7627_v42 = vcombine.low %v11099_v29, %v11095_v53  ;;  %v7628_v44 = vcombine.high %v11099_v29, %v11095_v53 }
 0x4af   : > { %v4060_v45 = vadd.bf16 %v11079_v56, %v3768_v7  ;;  %v11113_v0 = vmax.bf16 %v4090_v34, %v4058_v27  ;;  %v4345_v43 = vmax.bf16 %v7630_v49, %v7629_v8 }
 0x4b0   : > { %v4059_v31 = vadd.bf16 %v11079_v56, %v3757_v60  ;;  %v11115_v21 = vmax.bf16 %v4089_v24, %v4057_v5  ;;  %v3782_v38 = vpop.permute.xlu1 %3781  ;;  %v4342_v22 = vmax.bf16 %v7628_v44, %v7627_v42 }
 0x4b1   : > { %v3771_v35 = vpop.permute.xlu0 %3770  ;;  %v4092_v10 = vmul.bf16 1045249613, %v4060_v45  ;;  %v3790_v36 = vrot.slane %v3782_v38, %v9369_v4  ;;  %4346 = vmax.xlane.bf16.xlu1 %v4345_v43 }
 0x4b2   : > { %v4091_v12 = vmul.bf16 1045249613, %v4059_v31  ;;  %v3779_v55 = vrot.slane %v3771_v35, %v9369_v4  ;;  %4343 = vmax.xlane.bf16.xlu0 %v4342_v22  ;;  %v7631_v58 = vcombine.low %v11115_v21, %v11113_v0  ;;  %v7632_v46 = vcombine.high %v11115_v21, %v11113_v0 }
 0x4b3   : > { %v11119_v59 = vmax.bf16 %v4092_v10, %v4060_v45  ;;  %v4062_v25 = vadd.bf16 %v11079_v56, %v3790_v36 }
 0x4b4   : > { %v11121_v33 = vmax.bf16 %v4091_v12, %v4059_v31  ;;  %v4061_v37 = vadd.bf16 %v11079_v56, %v3779_v55  ;;  %v3804_v6 = vpop.permute.xlu1 %3803  ;;  %v4348_v5 = vmax.bf16 %v7632_v46, %v7631_v58 }
 0x4b5   : > { %v3793_v47 = vpop.permute.xlu0 %3792  ;;  %v4094_v48 = vmul.bf16 1045249613, %v4062_v25  ;;  %v3812_v9 = vrot.slane %v3804_v6, %v9369_v4 }
 0x4b6   : > { %v4093_v62 = vmul.bf16 1045249613, %v4061_v37  ;;  %v3801_v61 = vrot.slane %v3793_v47, %v9369_v4  ;;  %v7633_v23 = vcombine.low %v11121_v33, %v11119_v59  ;;  %v7634_v1 = vcombine.high %v11121_v33, %v11119_v59 }
 0x4b7   : > { %v11135_v18 = vmax.bf16 %v4094_v48, %v4062_v25  ;;  %v4064_v26 = vadd.bf16 %v11079_v56, %v3812_v9  ;;  %v13580_v9 = vld [vmem:[#allocation176_spill] sm:$0xff] }
 0x4b8   : > { %v11137_v54 = vmax.bf16 %v4093_v62, %v4061_v37  ;;  %v4063_v2 = vadd.bf16 %v11079_v56, %v3801_v61  ;;  %v3826_v15 = vpop.permute.xlu1 %3825  ;;  %v4351_v17 = vmax.bf16 %v7634_v1, %v7633_v23  ;;  %v13579_v62 = vld [vmem:[#allocation177_spill] sm:$0xff] }
 0x4b9   : > { %v3815_v27 = vpop.permute.xlu0 %3814  ;;  %v4096_v40 = vmul.bf16 1045249613, %v4064_v26  ;;  %v3834_v24 = vrot.slane %v3826_v15, %v9369_v4  ;;  %v11167_v61 = vcombine.low %v13580_v9, %v13579_v62  ;;  %v13582_v15 = vld [vmem:[#allocation155_spill] sm:$0xff] }
 0x4ba   : > { %v4095_v34 = vmul.bf16 1045249613, %v4063_v2  ;;  %v3823_v7 = vrot.slane %v3815_v27, %v9369_v4  ;;  %4349 = vmax.xlane.bf16.xlu0 %v4348_v5  ;;  %4352 = vmax.xlane.bf16.xlu1 %v4351_v17  ;;  %v7635_v60 = vcombine.low %v11137_v54, %v11135_v18  ;;  %v7636_v8 = vcombine.high %v11137_v54, %v11135_v18  ;;  %v13583_v27 = vld [vmem:[#allocation154_spill] sm:$0xff] }
 0x4bb   : > { %v11147_v49 = vmax.bf16 %v4096_v40, %v4064_v26  ;;  %v4066_v44 = vadd.bf16 %v11079_v56, %v3834_v24  ;;  %13581 = vst [vmem:[#allocation68_spill] sm:$0xff] %v11167_v61  ;;  %v11173_v5 = vcombine.low %v13583_v27, %v13582_v15  ;;  %7699 = vmatprep.subr.bf16.mxu0 %v11167_v61 }
 0x4bc   : > { %v11149_v42 = vmax.bf16 %v4095_v34, %v4063_v2  ;;  %v4065_v45 = vadd.bf16 %v11079_v56, %v3823_v7  ;;  %v3848_v31 = vpop.permute.xlu1 %3847  ;;  %v4354_v37 = vmax.bf16 %v7636_v8, %v7635_v60 }
 0x4bd   : > { %v3837_v38 = vpop.permute.xlu0 %3836  ;;  %v4098_v35 = vmul.bf16 1045249613, %v4066_v44  ;;  %v3856_v22 = vrot.slane %v3848_v31, %v9369_v4  ;;  %13584 = vst [vmem:[#allocation69_spill] sm:$0xff] %v11173_v5  ;;  %7700 = vmatpush3.bf16.msra.mxu0 %v11173_v5  ;;  %v13586_v31 = vld [vmem:[#allocation173_spill] sm:$0xff] }
 0x4be   : > { %v4097_v43 = vmul.bf16 1045249613, %v4065_v45  ;;  %v3845_v10 = vrot.slane %v3837_v38, %v9369_v4  ;;  %v7637_v12 = vcombine.low %v11149_v42, %v11147_v49  ;;  %v7638_v36 = vcombine.high %v11149_v42, %v11147_v49 }
 0x4bf   : > { %v4068_v55 = vadd.bf16 %v11079_v56, %v3856_v22  ;;  %v11161_v6 = vmax.bf16 %v4098_v35, %v4066_v44 }
 0x4c0   : > { %v4067_v25 = vadd.bf16 %v11079_v56, %v3845_v10  ;;  %v11163_v47 = vmax.bf16 %v4097_v43, %v4065_v45  ;;  %v3870_v58 = vpop.permute.xlu1 %3869  ;;  %v4357_v48 = vmax.bf16 %v7638_v36, %v7637_v12  ;;  %v13585_v45 = vld [vmem:[#allocation174_spill] sm:$0xff] }
 0x4c1   : > { %v3859_v46 = vpop.permute.xlu0 %3858  ;;  %v4100_v23 = vmul.bf16 1045249613, %v4068_v55  ;;  %v3878_v26 = vrot.slane %v3870_v58, %v9369_v4  ;;  %v11189_v38 = vcombine.low %v13586_v31, %v13585_v45 }
 0x4c2   : > { %v4099_v1 = vmul.bf16 1045249613, %v4067_v25  ;;  %v3867_v2 = vrot.slane %v3859_v46, %v9369_v4  ;;  %4355 = vmax.xlane.bf16.xlu0 %v4354_v37  ;;  %4358 = vmax.xlane.bf16.xlu1 %v4357_v48  ;;  %v7639_v8 = vcombine.low %v11163_v47, %v11161_v6  ;;  %v7640_v44 = vcombine.high %v11163_v47, %v11161_v6 }
 0x4c3   : > { %v11175_v17 = vmax.bf16 %v4100_v23, %v4068_v55  ;;  %v4070_v34 = vadd.bf16 %v11079_v56, %v3878_v26  ;;  %13587 = vst [vmem:[#allocation66_spill] sm:$0xff] %v11189_v38  ;;  %7701 = vmatprep.subr.bf16.mxu0 %v11189_v38  ;;  %v13588_v55 = vld [vmem:[#allocation153_spill] sm:$0xff] }
 0x4c4   : > { %v11177_v40 = vmax.bf16 %v4099_v1, %v4067_v25  ;;  %v4069_v24 = vadd.bf16 %v11079_v56, %v3867_v2  ;;  %v3892_v7 = vpop.permute.xlu1 %3891  ;;  %v13589_v25 = vld [vmem:[#allocation152_spill] sm:$0xff]  ;;  %v4360_v1 = vmax.bf16 %v7640_v44, %v7639_v8 }
 0x4c5   : > { %v3881_v60 = vpop.permute.xlu0 %3880  ;;  %v4102_v35 = vmul.bf16 1045249613, %v4070_v34  ;;  %v3900_v22 = vrot.slane %v3892_v7, %v9369_v4  ;;  %v11200_v37 = vcombine.low %v13589_v25, %v13588_v55 }
 0x4c6   : > { %v4101_v43 = vmul.bf16 1045249613, %v4069_v24  ;;  %v3889_v10 = vrot.slane %v3881_v60, %v9369_v4  ;;  %v7641_v12 = vcombine.low %v11177_v40, %v11175_v17  ;;  %v7642_v36 = vcombine.high %v11177_v40, %v11175_v17 }
 0x4c7   : > { %13590 = vst [vmem:[#allocation67_spill] sm:$0xff] %v11200_v37  ;;  %v11202_v58 = vmax.bf16 %v4102_v35, %v4070_v34  ;;  %v4072_v48 = vadd.bf16 %v11079_v56, %v3900_v22  ;;  %7702 = vmatpush3.bf16.msra.mxu0 %v11200_v37  ;;  %v13592_v22 = vld [vmem:[#allocation169_spill] sm:$0xff] }
 0x4c8   : > { %v11204_v46 = vmax.bf16 %v4101_v43, %v4069_v24  ;;  %v4071_v62 = vadd.bf16 %v11079_v56, %v3889_v10  ;;  %v3914_v9 = vpop.permute.xlu1 %3913  ;;  %v4363_v26 = vmax.bf16 %v7642_v36, %v7641_v12  ;;  %v13591_v43 = vld [vmem:[#allocation170_spill] sm:$0xff]  ;;  %v13594_v12 = vld [vmem:[#allocation151_spill] sm:$0xff]  ;;  %v13602_v37 = vld [vmem:[#allocation149_spill] sm:$0xff] }
 0x4c9   : > { %v3903_v23 = vpop.permute.xlu0 %3902  ;;  %v4104_v2 = vmul.bf16 1045249613, %v4072_v48  ;;  %v3922_v27 = vrot.slane %v3914_v9, %v9369_v4  ;;  %v11223_v10 = vcombine.low %v13592_v22, %v13591_v43  ;;  %v13595_v36 = vld [vmem:[#allocation150_spill] sm:$0xff]  ;;  %v13599_v22 = vld [vmem:[#allocation168_spill] sm:$0xff] }
 0x4ca   : > { %v4103_v15 = vmul.bf16 1045249613, %v4071_v62  ;;  %v3911_v7 = vrot.slane %v3903_v23, %v9369_v4  ;;  %4361 = vmax.xlane.bf16.xlu0 %v4360_v1  ;;  %4364 = vmax.xlane.bf16.xlu1 %v4363_v26  ;;  %v7643_v34 = vcombine.low %v11204_v46, %v11202_v58  ;;  %v7644_v24 = vcombine.high %v11204_v46, %v11202_v58 }
 0x4cb   : > { %v11215_v60 = vmax.bf16 %v4104_v2, %v4072_v48  ;;  %v4074_v44 = vadd.bf16 %v11079_v56, %v3922_v27  ;;  %13593 = vst [vmem:[#allocation76_spill] sm:$0xff] %v11223_v10  ;;  %v11227_v55 = vcombine.low %v13595_v36, %v13594_v12  ;;  %7703 = vmatprep.subr.bf16.mxu0 %v11223_v10  ;;  %v13600_v12 = vld [vmem:[#allocation167_spill] sm:$0xff] }
 0x4cc   : > { %v11217_v8 = vmax.bf16 %v4103_v15, %v4071_v62  ;;  %v4073_v45 = vadd.bf16 %v11079_v56, %v3911_v7  ;;  %v3936_v31 = vpop.permute.xlu1 %3935  ;;  %v4366_v27 = vmax.bf16 %v7644_v24, %v7643_v34  ;;  %v11245_v36 = vcombine.low %v13600_v12, %v13599_v22  ;;  %v13603_v10 = vld [vmem:[#allocation147_spill] sm:$0xff] }
 0x4cd   : > { %v3925_v35 = vpop.permute.xlu0 %3924  ;;  %13596 = vst [vmem:[#allocation77_spill] sm:$0xff] %v11227_v55  ;;  %v4106_v25 = vmul.bf16 1045249613, %v4074_v44  ;;  %v3944_v48 = vrot.slane %v3936_v31, %v9369_v4  ;;  %7704 = vmatpush3.bf16.msra.mxu0 %v11227_v55  ;;  %v13605_v12 = vld [vmem:[#allocation163_spill] sm:$0xff] }
 0x4ce   : > { %v4105_v9 = vmul.bf16 1045249613, %v4073_v45  ;;  %v3933_v62 = vrot.slane %v3925_v35, %v9369_v4  ;;  %v7645_v23 = vcombine.low %v11217_v8, %v11215_v60  ;;  %v7646_v1 = vcombine.high %v11217_v8, %v11215_v60  ;;  %13601 = vst [vmem:[#allocation84_spill] sm:$0xff] %v11245_v36  ;;  %7705 = vmatprep.subr.bf16.mxu0 %v11245_v36 }
 0x4cf   : > { %v11236_v26 = vmax.bf16 %v4106_v25, %v4074_v44  ;;  %v4076_v2 = vadd.bf16 %v11079_v56, %v3944_v48  ;;  %v11249_v44 = vcombine.low %v13603_v10, %v13602_v37 }
 0x4d0   : > { %v4075_v15 = vadd.bf16 %v11079_v56, %v3933_v62  ;;  %v11241_v7 = vmax.bf16 %v4105_v9, %v4073_v45  ;;  %v3958_v31 = vpop.permute.xlu1 %3957  ;;  %v4369_v43 = vmax.bf16 %v7646_v1, %v7645_v23 }
 0x4d1   : > { %13597 = vst [vmem:[#allocation74_spill] sm:$0xff] %v11236_v26  ;;  %v3947_v35 = vpop.permute.xlu0 %3946  ;;  %13604 = vst [vmem:[#allocation85_spill] sm:$0xff] %v11249_v44  ;;  %v4108_v25 = vmul.bf16 1045249613, %v4076_v2  ;;  %v3966_v62 = vrot.slane %v3958_v31, %v9369_v4  ;;  %7706 = vmatpush3.bf16.msra.mxu0 %v11249_v44 }
 0x4d2   : > { %13598 = vst [vmem:[#allocation75_spill] sm:$0xff] %v11241_v7  ;;  %v4107_v48 = vmul.bf16 1045249613, %v4075_v15  ;;  %v3955_v34 = vrot.slane %v3947_v35, %v9369_v4  ;;  %4367 = vmax.xlane.bf16.xlu0 %v4366_v27  ;;  %4370 = vmax.xlane.bf16.xlu1 %v4369_v43  ;;  %v7647_v1 = vcombine.low %v11241_v7, %v11236_v26 }
 0x4d3   : > { %v11253_v24 = vmax.bf16 %v4108_v25, %v4076_v2  ;;  %v4078_v9 = vadd.bf16 %v11079_v56, %v3966_v62  ;;  %v7648_v31 = vcombine.high %v11241_v7, %v11236_v26  ;;  %v13606_v25 = vld [vmem:[#allocation162_spill] sm:$0xff] }
 0x4d4   : > { %v11255_v45 = vmax.bf16 %v4107_v48, %v4075_v15  ;;  %v4077_v23 = vadd.bf16 %v11079_v56, %v3955_v34  ;;  %v3980_v37 = vpop.permute.xlu1 %3979  ;;  %v11273_v48 = vcombine.low %v13606_v25, %v13605_v12  ;;  %v13608_v62 = vld [vmem:[#allocation146_spill] sm:$0xff]  ;;  %v13609_v34 = vld [vmem:[#allocation145_spill] sm:$0xff] }
 0x4d5   : > { %v3969_v10 = vpop.permute.xlu0 %3968  ;;  %v4110_v2 = vmul.bf16 1045249613, %v4078_v9  ;;  %v3988_v15 = vrot.slane %v3980_v37, %v9369_v4  ;;  %v11277_v36 = vcombine.low %v13609_v34, %v13608_v62  ;;  %v4372_v61 = vmax.bf16 %v7648_v31, %v7647_v1 }
 0x4d6   : > { %v4109_v27 = vmul.bf16 1045249613, %v4077_v23  ;;  %v3977_v35 = vrot.slane %v3969_v10, %v9369_v4  ;;  %v7649_v43 = vcombine.low %v11255_v45, %v11253_v24  ;;  %v7650_v22 = vcombine.high %v11255_v45, %v11253_v24  ;;  %13607 = vst [vmem:[#allocation82_spill] sm:$0xff] %v11273_v48  ;;  %7707 = vmatprep.subr.bf16.mxu0 %v11273_v48 }
 0x4d7   : > { %13610 = vst [vmem:[#allocation83_spill] sm:$0xff] %v11277_v36  ;;  %v11279_v44 = vmax.bf16 %v4110_v2, %v4078_v9  ;;  %v4080_v37 = vadd.bf16 %v11079_v56, %v3988_v15  ;;  %7708 = vmatpush3.bf16.msra.mxu0 %v11277_v36  ;;  %v13614_v15 = vld [vmem:[#allocation161_spill] sm:$0xff] }
 0x4d8   : > { %v11281_v55 = vmax.bf16 %v4109_v27, %v4077_v23  ;;  %v4079_v10 = vadd.bf16 %v11079_v56, %v3977_v35  ;;  %v4002_v38 = vpop.permute.xlu1 %4001  ;;  %v4375_v26 = vmax.bf16 %v7650_v22, %v7649_v43  ;;  %v13615_v35 = vld [vmem:[#allocation160_spill] sm:$0xff]  ;;  %v13618_v43 = vld [vmem:[#allocation142_spill] sm:$0xff] }
 0x4d9   : > { %13611 = vst [vmem:[#allocation92_spill] sm:$0xff] %v11279_v44  ;;  %v3991_v5 = vpop.permute.xlu0 %3990  ;;  %v4112_v12 = vmul.bf16 1045249613, %v4080_v37  ;;  %v4010_v7 = vrot.slane %v4002_v38, %v9369_v4 }
 0x4da   : > { %13612 = vst [vmem:[#allocation93_spill] sm:$0xff] %v11281_v55  ;;  %v4111_v25 = vmul.bf16 1045249613, %v4079_v10  ;;  %v3999_v62 = vrot.slane %v3991_v5, %v9369_v4  ;;  %4373 = vmax.xlane.bf16.xlu0 %v4372_v61  ;;  %4376 = vmax.xlane.bf16.xlu1 %v4375_v26  ;;  %v7651_v9 = vcombine.low %v11281_v55, %v11279_v44  ;;  %v13617_v26 = vld [vmem:[#allocation144_spill] sm:$0xff] }
 0x4db   : > { %v7652_v23 = vcombine.high %v11281_v55, %v11279_v44  ;;  %v11293_v1 = vmax.bf16 %v4112_v12, %v4080_v37  ;;  %v4082_v2 = vadd.bf16 %v11079_v56, %v4010_v7  ;;  %v11301_v61 = vcombine.low %v13615_v35, %v13614_v15 }
 0x4dc   : > { %v11295_v31 = vmax.bf16 %v4111_v25, %v4079_v10  ;;  %v4081_v38 = vadd.bf16 %v11079_v56, %v3999_v62  ;;  %v4024_v27 = vpop.permute.xlu1 %4023  ;;  %v11305_v22 = vcombine.low %v13618_v43, %v13617_v26  ;;  %v13621_v26 = vld [vmem:[#allocation159_spill] sm:$0xff]  ;;  %v13622_v43 = vld [vmem:[#allocation158_spill] sm:$0xff] }
 0x4dd   : > { %13613 = vst [vmem:[#allocation90_spill] sm:$0xff] %v11293_v1  ;;  %v4013_v5 = vpop.permute.xlu0 %4012  ;;  %13616 = vst [vmem:[#allocation91_spill] sm:$0xff] %v11301_v61  ;;  %v4114_v34 = vmul.bf16 1045249613, %v4082_v2  ;;  %v4032_v37 = vrot.slane %v4024_v27, %v9369_v4  ;;  %7709 = vmatprep.subr.bf16.mxu0 %v11301_v61  ;;  %v4378_v15 = vmax.bf16 %v7652_v23, %v7651_v9  ;;  %v13624_v61 = vld [vmem:[#allocation141_spill] sm:$0xff] }
 0x4de   : > { %13619 = vst [vmem:[#allocation102_spill] sm:$0xff] %v11305_v22  ;;  %v4113_v36 = vmul.bf16 1045249613, %v4081_v38  ;;  %v4021_v10 = vrot.slane %v4013_v5, %v9369_v4  ;;  %v7653_v7 = vcombine.low %v11295_v31, %v11293_v1  ;;  %v7654_v12 = vcombine.high %v11295_v31, %v11293_v1  ;;  %7710 = vmatpush3.bf16.msra.mxu0 %v11305_v22  ;;  %v13668_v22 = vld [vmem:[#allocation191_spill] sm:$0xff] }
 0x4df   : > { %v4084_v25 = vadd.bf16 %v11079_v56, %v4032_v37  ;;  %v11317_v35 = vmax.bf16 %v4114_v34, %v4082_v2  ;;  %v11323_v48 = vcombine.low %v13622_v43, %v13621_v26  ;;  %v13625_v37 = vld [vmem:[#allocation140_spill] sm:$0xff]  ;;  %v13631_v34 = vld [vmem:[#allocation139_spill] sm:$0xff]  ;;  %v7580_v26 = vcombine.low %v10359_v50, %v10372_v3 }
 0x4e0   : > { %v4083_v62 = vadd.bf16 %v11079_v56, %v4021_v10  ;;  %v11319_v27 = vmax.bf16 %v4113_v36, %v4081_v38  ;;  %v4381_v5 = vmax.bf16 %v7654_v12, %v7653_v7  ;;  %v11327_v1 = vcombine.low %v13625_v37, %v13624_v61  ;;  %v13629_v61 = vld [vmem:[#allocation156_spill] sm:$0xff]  ;;  %v13632_v10 = vld [vmem:[#allocation138_spill] sm:$0xff] }
 0x4e1   : > { %13620 = vst [vmem:[#allocation103_spill] sm:$0xff] %v11317_v35  ;;  %13623 = vst [vmem:[#allocation98_spill] sm:$0xff] %v11323_v48  ;;  %v4116_v44 = vmul.bf16 1045249613, %v4084_v25  ;;  %7711 = vmatprep.subr.bf16.mxu0 %v11323_v48  ;;  %v11349_v7 = vcombine.low %v13632_v10, %v13631_v34  ;;  %v7583_v43 = vcombine.high %v10427_v57, %v10439_v11  ;;  %v13640_v34 = vld [vmem:[#allocation65_spill] sm:$0xff] }
 0x4e2   : > { %v4115_v55 = vmul.bf16 1045249613, %v4083_v62  ;;  %4379 = vmax.xlane.bf16.xlu0 %v4378_v15  ;;  %4382 = vmax.xlane.bf16.xlu1 %v4381_v5  ;;  %13626 = vst [vmem:[#allocation99_spill] sm:$0xff] %v11327_v1  ;;  %v7655_v36 = vcombine.low %v11319_v27, %v11317_v35  ;;  %v7656_v23 = vcombine.high %v11319_v27, %v11317_v35 }
 0x4e3   : > { %v11329_v56 = vmax.bf16 %v4116_v44, %v4084_v25  ;;  %7712 = vmatpush3.bf16.msra.mxu0 %v11327_v1  ;;  %v13628_v44 = vld [vmem:[#allocation157_spill] sm:$0xff]  ;;  %13633 = vst [vmem:[#allocation106_spill] sm:$0xff] %v11349_v7  ;;  %v7578_v15 = vcombine.low %v10367_v63, %v10378_v28  ;;  %v7581_v5 = vcombine.high %v10359_v50, %v10372_v3 }
 0x4e4   : > { %v11331_v9 = vmax.bf16 %v4115_v55, %v4083_v62  ;;  %v11345_v55 = vcombine.low %v13629_v61, %v13628_v44  ;;  %v4384_v25 = vmax.bf16 %v7656_v23, %v7655_v36  ;;  %v7579_v62 = vcombine.high %v10367_v63, %v10378_v28  ;;  %v13635_v23 = vld [vmem:[#allocation55_spill] sm:$0xff]  ;;  %v13638_v44 = vld [vmem:[#allocation54_spill] sm:$0xff] }
 0x4e5   : > { %13627 = vst [vmem:[#allocation108_spill] sm:$0xff] %v11329_v56  ;;  %v7582_v37 = vcombine.low %v10427_v57, %v10439_v11  ;;  %v7585_v63 = vcombine.high %v10412_v52, %v10443_v19  ;;  %v7584_v28 = vcombine.low %v10412_v52, %v10443_v19  ;;  %v7587_v50 = vcombine.high %v10479_v30, %v10485_v14  ;;  %v13634_v19 = vld [vmem:[#allocation57_spill] sm:$0xff] }
 0x4e6   : > { %v7657_v2 = vcombine.low %v11331_v9, %v11329_v56  ;;  %v7658_v38 = vcombine.high %v11331_v9, %v11329_v56  ;;  %13630 = vst [vmem:[#allocation109_spill] sm:$0xff] %v11345_v55  ;;  %7713 = vmatprep.subr.bf16.mxu0 %v11345_v55  ;;  %3456 = vmatprep.mubr.bf16.mxu0 %v7579_v62  ;;  %v13643_v62 = vld [vmem:[#allocation60_spill] sm:$0xff] }
 0x4e7   : > { %7714 = vmatpush3.bf16.msra.mxu0 %v11349_v7  ;;  %v7586_v3 = vcombine.low %v10479_v30, %v10485_v14  ;;  %v7589_v36 = vcombine.high %v10455_v41, %v10472_v16  ;;  %v7588_v57 = vcombine.low %v10455_v41, %v10472_v16  ;;  %v7591_v11 = vcombine.high %v10547_v20, %v10551_v32  ;;  %v13637_v16 = vld [vmem:[#allocation61_spill] sm:$0xff] }
 0x4e8   : > { %v4387_v12 = vmax.bf16 %v7658_v38, %v7657_v2  ;;  %v7590_v52 = vcombine.low %v10547_v20, %v10551_v32  ;;  %v7593_v30 = vcombine.high %v13634_v19, %v10568_v51  ;;  %v7592_v14 = vcombine.low %v13634_v19, %v10568_v51  ;;  %v13636_v2 = vld [vmem:[#allocation56_spill] sm:$0xff] }
 0x4e9   : > { %v7595_v38 = vcombine.high %v13636_v2, %v13635_v23  ;;  %v7594_v41 = vcombine.low %v13636_v2, %v13635_v23  ;;  %v7597_v61 = vcombine.high %v13638_v44, %v13637_v16  ;;  %v7596_v20 = vcombine.low %v13638_v44, %v13637_v16  ;;  %v13639_v32 = vld [vmem:[#allocation64_spill] sm:$0xff]  ;;  %v13652_v16 = vld [vmem:[#allocation63_spill] sm:$0xff] }
 0x4ea   : > { %4385 = vmax.xlane.bf16.xlu0 %v4384_v25  ;;  %4388 = vmax.xlane.bf16.xlu1 %v4387_v12  ;;  %v7599_v10 = vcombine.high %v13640_v34, %v13639_v32  ;;  %v7598_v51 = vcombine.low %v13640_v34, %v13639_v32  ;;  %v11397_v12 = vld [vmem:[#allocation4 + $0x110] sm:$0xff]  ;;  %v13642_v25 = vld [vmem:[#allocation58_spill] sm:$0xff] }
 0x4eb   : > { %3457 = vmatmul.mubr.bf16.vlgmr.msra.gmra.mxu0 %v7578_v15  ;;  %13641 = vst [vmem:[#allocation107_spill] sm:$0xff] %v11397_v12  ;;  %v7601_v15 = vcombine.high %v13643_v62, %v13642_v25 }
 0x4ec   : > { %3464 = vmatprep.mubr.bf16.mxu0 %v7581_v5  ;;  %v11401_v5 = vld [vmem:[#allocation4 + $0x118] sm:$0xff] }
 0x4ed   : > { %13644 = vst [vmem:[#allocation118_spill] sm:$0xff] %v11401_v5 }
 0x4f3   : > { %3465 = vmatmul.mubr.bf16.gmra.mxu0 %v7580_v26 }
 0x4f4   : > { %3472 = vmatprep.mubr.bf16.mxu0 %v7583_v43  ;;  %v11403_v43 = vld [vmem:[#allocation4 + $0x100] sm:$0xff] }
 0x4f5   : > { %13645 = vst [vmem:[#allocation119_spill] sm:$0xff] %v11403_v43 }
 0x4fb   : > { %3473 = vmatmul.mubr.bf16.gmra.mxu0 %v7582_v37  ;;  %v11405_v37 = vld [vmem:[#allocation4 + $0x108] sm:$0xff] }
 0x4fc   : > { %3480 = vmatprep.mubr.bf16.mxu0 %v7585_v63  ;;  %13646 = vst [vmem:[#allocation114_spill] sm:$0xff] %v11405_v37 }
 0x503   : > { %3481 = vmatmul.mubr.bf16.gmra.mxu0 %v7584_v28 }
 0x504   : > { %3488 = vmatprep.mubr.bf16.mxu0 %v7587_v50 }
 0x50b   : > { %3489 = vmatmul.mubr.bf16.gmra.mxu0 %v7586_v3 }
 0x50c   : > { %3496 = vmatprep.mubr.bf16.mxu0 %v7589_v36 }
 0x513   : > { %3497 = vmatmul.mubr.bf16.gmra.mxu0 %v7588_v57 }
 0x514   : > { %3504 = vmatprep.mubr.bf16.mxu0 %v7591_v11 }
 0x51b   : > { %3505 = vmatmul.mubr.bf16.gmra.mxu0 %v7590_v52 }
 0x51c   : > { %3512 = vmatprep.mubr.bf16.mxu0 %v7593_v30 }
 0x523   : > { %3513 = vmatmul.mubr.bf16.gmra.mxu0 %v7592_v14 }
 0x524   : > { %3520 = vmatprep.mubr.bf16.mxu0 %v7595_v38  ;;  %v7600_v38 = vcombine.low %v13643_v62, %v13642_v25  ;;  %v11447_v25 = vld [vmem:[#allocation4 + $0x120] sm:$0xff]  ;;  %v13656_v62 = vmov 0.0  }
 0x525   : > { %13655 = vst [vmem:[#allocation73_spill] sm:$0xff] %v11447_v25 }
 0x52b   : > { %3521 = vmatmul.mubr.bf16.gmra.mxu0 %v7594_v41  ;;  %v13651_v41 = vld [vmem:[#allocation188_spill] sm:$0xff] }
 0x52c   : > { %3528 = vmatprep.mubr.bf16.mxu0 %v7597_v61  ;;  %v7603_v44 = vcombine.high %v13652_v16, %v13651_v41 }
 0x533   : > { %3529 = vmatmul.mubr.bf16.gmra.mxu0 %v7596_v20 }
 0x534   : > { %3536 = vmatprep.mubr.bf16.mxu0 %v7599_v10  ;;  %v11443_v10 = vld [vmem:[#allocation4 + $0x130] sm:$0xff] }
 0x535   : > { %13653 = vst [vmem:[#allocation123_spill] sm:$0xff] %v11443_v10 }
 0x53b   : > { %3537 = vmatmul.mubr.bf16.gmra.mxu0 %v7598_v51  ;;  %v11445_v51 = vld [vmem:[#allocation4 + $0x138] sm:$0xff] }
 0x53c   : > { %3544 = vmatprep.mubr.bf16.mxu0 %v7601_v15  ;;  %13654 = vst [vmem:[#allocation72_spill] sm:$0xff] %v11445_v51 }
 0x53e   : > { %v4347_v26 = vpop.xlane.xlu1 %4346 }
 0x53f   : > { %v4344_v63 = vpop.xlane.xlu0 %4343  ;;  %v4392_v28 = vunpack.c.l.bf16 %v4347_v26  ;;  %v4393_v50 = vunpack.c.h.bf16 %v4347_v26 }
 0x540   : > { %v4390_v3 = vunpack.c.l.bf16 %v4344_v63  ;;  %v4391_v36 = vunpack.c.h.bf16 %v4344_v63 }
 0x541   : > { %v11408_v57 = vmax.f32 %v11397_v12, %v4392_v28  ;;  %v11411_v11 = vmax.f32 %v11401_v5, %v4393_v50  ;;  %v11453_v28 = vld [vmem:[#allocation4 + $0x128] sm:$0xff] }
 0x542   : > { %v11414_v52 = vmax.f32 %v11403_v43, %v4390_v3  ;;  %v11417_v19 = vmax.f32 %v11405_v37, %v4391_v36  ;;  %13657 = vst [vmem:[#allocation70_spill] sm:$0xff] %v11453_v28 }
 0x543   : > { %13647 = vst [vmem:[#allocation115_spill] sm:$0xff] %v11408_v57  ;;  %13648 = vst [vmem:[#allocation125_spill] sm:$0xff] %v11411_v11  ;;  %vm5353_vm7 = vcmp.gt.f32.partialorder %v11408_v57, %v11397_v12  ;;  %vm5354_vm11 = vcmp.gt.f32.partialorder %v11411_v11, %v11401_v5  ;;  %v4455_v32 = vpack.c.bf16 %v11411_v11, %v11408_v57  ;;  %3545 = vmatmul.mubr.bf16.gmra.mxu0 %v7600_v38  ;;  %v11577_v11 = vld [vmem:[#allocation4 + $0x168] sm:$0xff]  ;;  %v11595_v57 = vld [vmem:[#allocation4 + $0x190] sm:$0xff] }
 0x544   : > { %13649 = vst [vmem:[#allocation127_spill] sm:$0xff] %v11414_v52  ;;  %13650 = vst [vmem:[#allocation122_spill] sm:$0xff] %v11417_v19  ;;  %vm5351_vm3 = vcmp.gt.f32.partialorder %v11414_v52, %v11403_v43  ;;  %vm5352_vm14 = vcmp.gt.f32.partialorder %v11417_v19, %v11405_v37  ;;  %v4454_v34 = vpack.c.bf16 %v11417_v19, %v11414_v52  ;;  %v5385_v15 = vsel %vm5353_vm7, 1.0, %v13656_v62  ;;  %v11603_v12 = vld [vmem:[#allocation4 + $0x198] sm:$0xff] }
 0x545   : > { %4476 = vperm.xlu1 %8163, %v4455_v32   ;;  %3552 = vmatprep.mubr.bf16.mxu0 %v7603_v44  ;;  %v11469_v32 = vsel %vm2707_vm5, %v5385_v15, -inf  ;;  %13674 = vst [vmem:[#allocation105_spill] sm:$0xff] %v11577_v11  ;;  %13679 = vst [vmem:[#allocation110_spill] sm:$0xff] %v11595_v57 }
 0x546   : > { %4472 = vperm.xlu0 %8162, %v4454_v34   ;;  %13680 = vst [vmem:[#allocation111_spill] sm:$0xff] %v11603_v12 }
 0x547   : > { %v4353_v61 = vpop.xlane.xlu1 %4352  ;;  %v4350_v20 = vpop.xlane.xlu0 %4349 }
 0x548   : > { %v4396_v26 = vunpack.c.l.bf16 %v4353_v61  ;;  %v4397_v63 = vunpack.c.h.bf16 %v4353_v61  ;;  %v4394_v50 = vunpack.c.l.bf16 %v4350_v20  ;;  %v4395_v3 = vunpack.c.h.bf16 %v4350_v20 }
 0x549   : > { %v5386_v61 = vsel %vm5354_vm11, 1.0, %v13656_v62  ;;  %v7602_v20 = vcombine.low %v13652_v16, %v13651_v41  ;;  %v5384_v41 = vsel %vm5352_vm14, 1.0, %v13656_v62 }
 0x54a   : > { %v11456_v36 = vmax.f32 %v11443_v10, %v4396_v26  ;;  %v11459_v14 = vmax.f32 %v11445_v51, %v4397_v63  ;;  %v11462_v38 = vmax.f32 %v11447_v25, %v4394_v50  ;;  %v11472_v44 = vmax.f32 %v11453_v28, %v4395_v3  ;;  %v11524_v50 = vld [vmem:[#allocation4 + $0x158] sm:$0xff] }
 0x54b   : > { %v11491_v16 = vsel %vm2707_vm5, %v5386_v61, -inf  ;;  %v5383_v3 = vsel %vm5351_vm3, 1.0, %v13656_v62  ;;  %3553 = vmatmul.mubr.bf16.gmra.mxu0 %v7602_v20  ;;  %13663 = vst [vmem:[#allocation88_spill] sm:$0xff] %v11524_v50  ;;  %v11527_v55 = vsel %vm2707_vm5, %v5384_v41, -inf }
 0x54c   : > { %13658 = vst [vmem:[#allocation71_spill] sm:$0xff] %v11456_v36  ;;  %13659 = vst [vmem:[#allocation80_spill] sm:$0xff] %v11459_v14  ;;  %vm5357_vm7 = vcmp.gt.f32.partialorder %v11456_v36, %v11443_v10  ;;  %vm5358_vm11 = vcmp.gt.f32.partialorder %v11459_v14, %v11445_v51  ;;  %vm5355_vm3 = vcmp.gt.f32.partialorder %v11462_v38, %v11447_v25  ;;  %v11520_v23 = vsel %vm2707_vm5, %v5383_v3, -inf  ;;  %v13669_v51 = vld [vmem:[#allocation189_spill] sm:$0xff] }
 0x54d   : > { %13660 = vst [vmem:[#allocation81_spill] sm:$0xff] %v11462_v38  ;;  %13661 = vst [vmem:[#allocation78_spill] sm:$0xff] %v11472_v44  ;;  %v5389_v15 = vsel %vm5357_vm7, 1.0, %v13656_v62  ;;  %v5390_v63 = vsel %vm5358_vm11, 1.0, %v13656_v62  ;;  %vm5356_vm7 = vcmp.gt.f32.partialorder %v11472_v44, %v11453_v28  ;;  %v5387_v30 = vsel %vm5355_vm3, 1.0, %v13656_v62  ;;  %v11542_v28 = vld [vmem:[#allocation4 + $0x140] sm:$0xff] }
 0x54e   : > { %v11498_v26 = vsel %vm2707_vm5, %v5389_v15, -inf  ;;  %v11501_v34 = vsel %vm2707_vm5, %v5390_v63, -inf  ;;  %v4456_v15 = vpack.c.bf16 %v11472_v44, %v11462_v38  ;;  %v11517_v63 = vld [vmem:[#allocation4 + $0x150] sm:$0xff]  ;;  %v5388_v61 = vsel %vm5356_vm7, 1.0, %v13656_v62  ;;  %13665 = vst [vmem:[#allocation86_spill] sm:$0xff] %v11542_v28 }
 0x54f   : > { %v4359_v2 = vpop.xlane.xlu1 %4358  ;;  %13662 = vst [vmem:[#allocation79_spill] sm:$0xff] %v11517_v63  ;;  %v4356_v7 = vpop.xlane.xlu0 %4355  ;;  %v11530_v1 = vsel %vm2707_vm5, %v5387_v30, -inf  ;;  %v11533_v48 = vsel %vm2707_vm5, %v5388_v61, -inf  ;;  %v11547_v30 = vld [vmem:[#allocation4 + $0x148] sm:$0xff]  ;;  %v7605_v38 = vcombine.high %v13669_v51, %v13668_v22  ;;  %v13686_v35 = vmax.f32 %v11491_v16, %v11501_v34  ;;  %v11681_v34 = vld [vmem:[#allocation4 + $0x1b8] sm:$0xff] }
 0x550   : > { %v4400_v20 = vunpack.c.l.bf16 %v4359_v2  ;;  %4480 = vperm.xlu1 %8163, %v4456_v15   ;;  %v4401_v3 = vunpack.c.h.bf16 %v4359_v2  ;;  %13667 = vst [vmem:[#allocation96_spill] sm:$0xff] %v11547_v30  ;;  %v4398_v61 = vunpack.c.l.bf16 %v4356_v7  ;;  %v4399_v10 = vunpack.c.h.bf16 %v4356_v7  ;;  %13689 = vst [vmem:[#allocation129_spill] sm:$0xff] %v11681_v34 }
 0x551   : > { %v4457_v2 = vpack.c.bf16 %v11459_v14, %v11456_v36  ;;  %3560 = vmatprep.mubr.bf16.mxu0 %v7605_v38 }
 0x552   : > { %v11540_v44 = vmax.f32 %v11517_v63, %v4400_v20  ;;  %v11545_v41 = vmax.f32 %v11524_v50, %v4401_v3  ;;  %v7604_v20 = vcombine.low %v13669_v51, %v13668_v22  ;;  %v11560_v25 = vmax.f32 %v11542_v28, %v4398_v61  ;;  %v11571_v3 = vld [vmem:[#allocation4 + $0x170] sm:$0xff]  ;;  %v11573_v61 = vld [vmem:[#allocation4 + $0x178] sm:$0xff] }
 0x553   : > { %v11563_v7 = vmax.f32 %v11547_v30, %v4399_v10  ;;  %13672 = vst [vmem:[#allocation95_spill] sm:$0xff] %v11571_v3  ;;  %13673 = vst [vmem:[#allocation104_spill] sm:$0xff] %v11573_v61  ;;  %v11575_v10 = vld [vmem:[#allocation4 + $0x160] sm:$0xff] }
 0x554   : > { %13664 = vst [vmem:[#allocation89_spill] sm:$0xff] %v11540_v44  ;;  %13666 = vst [vmem:[#allocation87_spill] sm:$0xff] %v11545_v41  ;;  %4484 = vperm.xlu1 %8163, %v4457_v2   ;;  %3561 = vmatmul.mubr.bf16.gmra.mxu0 %v7604_v20  ;;  %v4459_v52 = vpack.c.bf16 %v11545_v41, %v11540_v44  ;;  %vm5361_vm14 = vcmp.gt.f32.partialorder %v11540_v44, %v11517_v63  ;;  %v11629_v44 = vld [vmem:[#allocation4 + $0x188] sm:$0xff] }
 0x555   : > { %13670 = vst [vmem:[#allocation97_spill] sm:$0xff] %v11560_v25  ;;  %13671 = vst [vmem:[#allocation94_spill] sm:$0xff] %v11563_v7  ;;  %v4458_v51 = vpack.c.bf16 %v11563_v7, %v11560_v25  ;;  %vm5362_vm11 = vcmp.gt.f32.partialorder %v11545_v41, %v11524_v50  ;;  %vm5359_vm3 = vcmp.gt.f32.partialorder %v11560_v25, %v11542_v28 }
 0x556   : > { %v5394_v41 = vsel %vm5362_vm11, 1.0, %v13656_v62  ;;  %vm5360_vm7 = vcmp.gt.f32.partialorder %v11563_v7, %v11547_v30 }
 0x557   : > { %v4365_v36 = vpop.xlane.xlu1 %4364  ;;  %v4362_v22 = vpop.xlane.xlu0 %4361  ;;  %v5433_v25 = vsel %vm2707_vm5, %v5394_v41, -inf  ;;  %v5392_v7 = vsel %vm5360_vm7, 1.0, %v13656_v62  ;;  %v13685_v41 = vmax.f32 %v11469_v32, %v11498_v26  ;;  %v11669_v26 = vld [vmem:[#allocation4 + $0x1b0] sm:$0xff] }
 0x558   : > { %v4404_v2 = vunpack.c.l.bf16 %v4365_v36  ;;  %4488 = vperm.xlu1 %8163, %v4458_v51   ;;  %v4405_v38 = vunpack.c.h.bf16 %v4365_v36  ;;  %v4402_v20 = vunpack.c.l.bf16 %v4362_v22  ;;  %v4403_v5 = vunpack.c.h.bf16 %v4362_v22  ;;  %13687 = vst [vmem:[#allocation128_spill] sm:$0xff] %v11669_v26 }
 0x55a   : > { %v11580_v14 = vmax.f32 %v11571_v3, %v4404_v2  ;;  %v11583_v19 = vmax.f32 %v11573_v61, %v4405_v38  ;;  %v11586_v37 = vmax.f32 %v11575_v10, %v4402_v20  ;;  %v11593_v51 = vmax.f32 %v11577_v11, %v4403_v5  ;;  %v11622_v2 = vld [vmem:[#allocation4 + $0x180] sm:$0xff] }
 0x55b   : > { %13683 = vst [vmem:[#allocation116_spill] sm:$0xff] %v11622_v2 }
 0x55c   : > { %13675 = vst [vmem:[#allocation100_spill] sm:$0xff] %v11580_v14  ;;  %13676 = vst [vmem:[#allocation101_spill] sm:$0xff] %v11583_v19  ;;  %4492 = vperm.xlu1 %8163, %v4459_v52   ;;  %v4460_v22 = vpack.c.bf16 %v11593_v51, %v11586_v37  ;;  %vm5366_vm11 = vcmp.gt.f32.partialorder %v11583_v19, %v11573_v61  ;;  %vm5364_vm7 = vcmp.gt.f32.partialorder %v11593_v51, %v11577_v11 }
 0x55d   : > { %13677 = vst [vmem:[#allocation112_spill] sm:$0xff] %v11586_v37  ;;  %13678 = vst [vmem:[#allocation113_spill] sm:$0xff] %v11593_v51  ;;  %v11716_v51 = vld [vmem:[#allocation4 + $0x1d0] sm:$0xff] }
 0x55f   : > { %v4371_v15 = vpop.xlane.xlu1 %4370  ;;  %v4368_v5 = vpop.xlane.xlu0 %4367 }
 0x560   : > { %v4408_v43 = vunpack.c.l.bf16 %v4371_v15  ;;  %v4409_v20 = vunpack.c.h.bf16 %v4371_v15  ;;  %v4406_v15 = vunpack.c.l.bf16 %v4368_v5  ;;  %4496 = vperm.xlu1 %8163, %v4460_v22   ;;  %v4407_v63 = vunpack.c.h.bf16 %v4368_v5 }
 0x561   : > { %v11661_v5 = vmax.f32 %v13686_v35, %v5433_v25  ;;  %v5429_v35 = vsel %vm2707_vm5, %v5392_v7, -inf  ;;  %v5398_v25 = vsel %vm5366_vm11, 1.0, %v13656_v62 }
 0x562   : > { %v11606_v36 = vmax.f32 %v11595_v57, %v4408_v43  ;;  %v11617_v52 = vmax.f32 %v11603_v12, %v4409_v20  ;;  %v5393_v43 = vsel %vm5361_vm14, 1.0, %v13656_v62  ;;  %v5391_v20 = vsel %vm5359_vm3, 1.0, %v13656_v62 }
 0x563   : > { %v5431_v22 = vsel %vm2707_vm5, %v5393_v43, -inf  ;;  %vm5365_vm14 = vcmp.gt.f32.partialorder %v11580_v14, %v11571_v3  ;;  %v11636_v38 = vmax.f32 %v11622_v2, %v4406_v15  ;;  %v11641_v30 = vmax.f32 %v11629_v44, %v4407_v63 }
 0x564   : > { %13681 = vst [vmem:[#allocation120_spill] sm:$0xff] %v11606_v36  ;;  %13682 = vst [vmem:[#allocation121_spill] sm:$0xff] %v11617_v52  ;;  %v5427_v28 = vsel %vm2707_vm5, %v5391_v20, -inf  ;;  %v4461_v15 = vpack.c.bf16 %v11583_v19, %v11580_v14  ;;  %v5432_v43 = vmax.f32 %v13685_v41, %v5431_v22  ;;  %v5397_v3 = vsel %vm5365_vm14, 1.0, %v13656_v62 }
 0x565   : > { %13684 = vst [vmem:[#allocation117_spill] sm:$0xff] %v11636_v38  ;;  %v4463_v20 = vpack.c.bf16 %v11617_v52, %v11606_v36  ;;  %vm5363_vm3 = vcmp.gt.f32.partialorder %v11586_v37, %v11575_v10  ;;  %v4462_v32 = vpack.c.bf16 %v11641_v30, %v11636_v38  ;;  %v13688_v22 = vmax.f32 %v11520_v23, %v11530_v1  ;;  %v11688_v23 = vld [vmem:[#allocation4 + $0x1a8] sm:$0xff] }
 0x566   : > { %4500 = vperm.xlu1 %8163, %v4461_v15   ;;  %v11683_v15 = vld [vmem:[#allocation4 + $0x1a0] sm:$0xff]  ;;  %v5439_v14 = vsel %vm2707_vm5, %v5397_v3, -inf  ;;  %vm5369_vm14 = vcmp.gt.f32.partialorder %v11606_v36, %v11595_v57  ;;  %13690 = vst [vmem:[#allocation124_spill] sm:$0xff] %v11688_v23  ;;  %v5395_v7 = vsel %vm5363_vm3, 1.0, %v13656_v62  ;;  %vm5370_vm11 = vcmp.gt.f32.partialorder %v11617_v52, %v11603_v12 }
 0x567   : > { %v4377_v50 = vpop.xlane.xlu1 %4376  ;;  %v4374_v56 = vpop.xlane.xlu0 %4373  ;;  %v11674_v41 = vmax.f32 %v13688_v22, %v5427_v28  ;;  %4508 = vperm.xlu0 %8162, %v4463_v20   ;;  %v5396_v20 = vsel %vm5364_vm7, 1.0, %v13656_v62  ;;  %v5441_v19 = vsel %vm2707_vm5, %v5398_v25, -inf  ;;  %v5401_v61 = vsel %vm5369_vm14, 1.0, %v13656_v62  ;;  %v11738_v25 = vld [vmem:[#allocation4 + $0x1d8] sm:$0xff] }
 0x568   : > { %v4412_v16 = vunpack.c.l.bf16 %v4377_v50  ;;  %v4413_v1 = vunpack.c.h.bf16 %v4377_v50  ;;  %v4410_v28 = vunpack.c.l.bf16 %v4374_v56  ;;  %v4411_v3 = vunpack.c.h.bf16 %v4374_v56  ;;  %13695 = vst [vmem:[#allocation21_spill] sm:$0xff] %v11738_v25 }
 0x569   : > { %vm5367_vm3 = vcmp.gt.f32.partialorder %v11636_v38, %v11622_v2  ;;  %v5437_v11 = vsel %vm2707_vm5, %v5396_v20, -inf  ;;  %v13694_v38 = vmax.f32 %v11527_v55, %v11533_v48  ;;  %vm5368_vm7 = vcmp.gt.f32.partialorder %v11641_v30, %v11629_v44 }
 0x56a   : > { %v11699_v22 = vmax.f32 %v11669_v26, %v4412_v16  ;;  %4504 = vperm.xlu1 %8163, %v4462_v32   ;;  %v11704_v50 = vmax.f32 %v11681_v34, %v4413_v1  ;;  %v11707_v36 = vmax.f32 %v11683_v15, %v4410_v28  ;;  %v11714_v56 = vmax.f32 %v11688_v23, %v4411_v3 }
 0x56b   : > { %v5435_v32 = vsel %vm2707_vm5, %v5395_v7, -inf  ;;  %v5402_v3 = vsel %vm5370_vm11, 1.0, %v13656_v62  ;;  %v5430_v2 = vmax.f32 %v13694_v38, %v5429_v35  ;;  %v5447_v1 = vsel %vm2707_vm5, %v5401_v61, -inf  ;;  %v11749_v38 = vld [vmem:[#allocation4 + $0x1c0] sm:$0xff] }
 0x56c   : > { %13691 = vst [vmem:[#allocation126_spill] sm:$0xff] %v11699_v22  ;;  %13692 = vst [vmem:[#allocation19_spill] sm:$0xff] %v11704_v50  ;;  %v5440_v52 = vmax.f32 %v5432_v43, %v5439_v14  ;;  %v5442_v12 = vmax.f32 %v11661_v5, %v5441_v19  ;;  %v5399_v7 = vsel %vm5367_vm3, 1.0, %v13656_v62  ;;  %v5436_v37 = vmax.f32 %v11674_v41, %v5435_v32  ;;  %v11759_v5 = vld [vmem:[#allocation4 + $0x1c8] sm:$0xff] }
 0x56d   : > { %13693 = vst [vmem:[#allocation20_spill] sm:$0xff] %v11714_v56  ;;  %v5438_v48 = vmax.f32 %v5430_v2, %v5437_v11  ;;  %v5449_v55 = vsel %vm2707_vm5, %v5402_v3, -inf  ;;  %v4465_v61 = vpack.c.bf16 %v11704_v50, %v11699_v22  ;;  %v4464_v19 = vpack.c.bf16 %v11714_v56, %v11707_v36 }
 0x56e   : > { %v11751_v35 = vmax.f32 %v5440_v52, %v5447_v1  ;;  %v5443_v11 = vsel %vm2707_vm5, %v5399_v7, -inf  ;;  %vm5373_vm14 = vcmp.gt.f32.partialorder %v11699_v22, %v11669_v26  ;;  %vm5371_vm11 = vcmp.gt.f32.partialorder %v11707_v36, %v11683_v15 }
 0x56f   : > { %v4383_v63 = vpop.xlane.xlu1 %4382  ;;  %v4380_v28 = vpop.xlane.xlu0 %4379  ;;  %4516 = vperm.xlu0 %8162, %v4465_v61   ;;  %vm5372_vm3 = vcmp.gt.f32.partialorder %v11714_v56, %v11688_v23  ;;  %4512 = vperm.xlu1 %8163, %v4464_v19   ;;  %v11783_v3 = vmax.f32 %v5442_v12, %v5449_v55  ;;  %v5444_v7 = vmax.f32 %v5436_v37, %v5443_v11  ;;  %v11787_v19 = vld [vmem:[#allocation4 + $0x1f0] sm:$0xff]  ;;  %v11808_v61 = vld [vmem:[#allocation4 + $0x1f8] sm:$0xff] }
 0x570   : > { %v4416_v57 = vunpack.c.l.bf16 %v4383_v63  ;;  %v4417_v16 = vunpack.c.h.bf16 %v4383_v63  ;;  %v4414_v63 = vunpack.c.l.bf16 %v4380_v28  ;;  %v4415_v52 = vunpack.c.h.bf16 %v4380_v28  ;;  %13697 = vst [vmem:[#allocation23_spill] sm:$0xff] %v11787_v19  ;;  %13698 = vst [vmem:[#allocation24_spill] sm:$0xff] %v11808_v61 }
 0x571   : > { %v5404_v12 = vsel %vm5372_vm3, 1.0, %v13656_v62 }
 0x572   : > { %v11741_v20 = vmax.f32 %v11716_v51, %v4416_v57  ;;  %v5400_v57 = vsel %vm5368_vm7, 1.0, %v13656_v62  ;;  %v11757_v14 = vmax.f32 %v11738_v25, %v4417_v16  ;;  %v11773_v16 = vmax.f32 %v11749_v38, %v4414_v63 }
 0x573   : > { %v5445_v32 = vsel %vm2707_vm5, %v5400_v57, -inf  ;;  %vm5374_vm7 = vcmp.gt.f32.partialorder %v11704_v50, %v11681_v34  ;;  %v11779_v1 = vmax.f32 %v11759_v5, %v4415_v52  ;;  %v5405_v57 = vsel %vm5373_vm14, 1.0, %v13656_v62  ;;  %v11810_v50 = vld [vmem:[#allocation4 + $0x1e0] sm:$0xff] }
 0x574   : > { %13696 = vst [vmem:[#allocation22_spill] sm:$0xff] %v11757_v14  ;;  %v4467_v28 = vpack.c.bf16 %v11757_v14, %v11741_v20  ;;  %v5403_v52 = vsel %vm5371_vm11, 1.0, %v13656_v62  ;;  %v5446_v55 = vmax.f32 %v5438_v48, %v5445_v32  ;;  %v5406_v11 = vsel %vm5374_vm7, 1.0, %v13656_v62  ;;  %13699 = vst [vmem:[#allocation25_spill] sm:$0xff] %v11810_v50  ;;  %v11817_v48 = vld [vmem:[#allocation4 + $0x1e8] sm:$0xff] }
 0x575   : > { %vm5375_vm14 = vcmp.gt.f32.partialorder %v11773_v16, %v11749_v38  ;;  %v4466_v2 = vpack.c.bf16 %v11779_v1, %v11773_v16  ;;  %vm5376_vm11 = vcmp.gt.f32.partialorder %v11779_v1, %v11759_v5  ;;  %13701 = vst [vmem:[#allocation27_spill] sm:$0xff] %v11817_v48  ;;  %v5451_v56 = vsel %vm2707_vm5, %v5403_v52, -inf }
 0x576   : > { %4524 = vperm.xlu0 %8162, %v4467_v28   ;;  %v5455_v28 = vsel %vm2707_vm5, %v5405_v57, -inf  ;;  %v5453_v23 = vsel %vm2707_vm5, %v5404_v12, -inf  ;;  %vm5377_vm3 = vcmp.gt.f32.partialorder %v11741_v20, %v11716_v51  ;;  %vm5378_vm7 = vcmp.gt.f32.partialorder %v11757_v14, %v11738_v25 }
 0x577   : > { %v4389_v43 = vpop.xlane.xlu1 %4388  ;;  %v4386_v41 = vpop.xlane.xlu0 %4385  ;;  %4520 = vperm.xlu1 %8163, %v4466_v2   ;;  %v5407_v2 = vsel %vm5375_vm14, 1.0, %v13656_v62  ;;  %v5409_v57 = vsel %vm5377_vm3, 1.0, %v13656_v62  ;;  %v5410_v52 = vsel %vm5378_vm7, 1.0, %v13656_v62 }
 0x578   : > { %v4420_v63 = vunpack.c.l.bf16 %v4389_v43  ;;  %v4421_v34 = vunpack.c.h.bf16 %v4389_v43  ;;  %v4418_v32 = vunpack.c.l.bf16 %v4386_v41  ;;  %v4419_v22 = vunpack.c.h.bf16 %v4386_v41 }
 0x579   : > { %v5459_v14 = vsel %vm2707_vm5, %v5407_v2, -inf }
 0x57a   : > { %v11815_v37 = vmax.f32 %v11787_v19, %v4420_v63  ;;  %v11825_v26 = vmax.f32 %v11808_v61, %v4421_v34  ;;  %v11830_v63 = vmax.f32 %v11810_v50, %v4418_v32  ;;  %v5408_v34 = vsel %vm5376_vm11, 1.0, %v13656_v62 }
 0x57b   : > { %v11843_v41 = vmax.f32 %v11817_v48, %v4419_v22  ;;  %v5457_v22 = vsel %vm2707_vm5, %v5406_v11, -inf }
 0x57c   : > { %13700 = vst [vmem:[#allocation26_spill] sm:$0xff] %v11815_v37  ;;  %13702 = vst [vmem:[#allocation28_spill] sm:$0xff] %v11825_v26  ;;  %v4469_v12 = vpack.c.bf16 %v11825_v26, %v11815_v37  ;;  %vm5381_vm14 = vcmp.gt.f32.partialorder %v11815_v37, %v11787_v19  ;;  %vm5379_vm11 = vcmp.gt.f32.partialorder %v11830_v63, %v11810_v50 }
 0x57d   : > { %13703 = vst [vmem:[#allocation29_spill] sm:$0xff] %v11830_v63  ;;  %13704 = vst [vmem:[#allocation30_spill] sm:$0xff] %v11843_v41  ;;  %v4468_v43 = vpack.c.bf16 %v11843_v41, %v11830_v63  ;;  %vm5380_vm12 = vcmp.gt.f32.partialorder %v11843_v41, %v11817_v48  ;;  %vm5382_vm4 = vcmp.gt.f32.partialorder %v11825_v26, %v11808_v61  ;;  %v5411_v32 = vsel %vm5379_vm11, 1.0, %v13656_v62 }
 0x57e   : > { %4532 = vperm.xlu0 %8162, %v4469_v12   ;;  %v5452_v63 = vmax.f32 %v5444_v7, %v5451_v56  ;;  %v5454_v50 = vmax.f32 %v5446_v55, %v5453_v23  ;;  %v5456_v41 = vmax.f32 %v11751_v35, %v5455_v28  ;;  %v5412_v11 = vsel %vm5380_vm12, 1.0, %v13656_v62 }
 0x57f   : > { %4528 = vperm.xlu1 %8163, %v4468_v43   ;;  %v5413_v48 = vsel %vm5381_vm14, 1.0, %v13656_v62  ;;  %v5461_v12 = vsel %vm2707_vm5, %v5408_v34, -inf  ;;  %v5414_v26 = vsel %vm5382_vm4, 1.0, %v13656_v62  ;;  %v5458_v43 = vmax.f32 %v11783_v3, %v5457_v22  ;;  %v13705_v3 = vld [vmem:[#allocation195_spill] sm:$0xff] }
 0x580   : > { %v5460_v61 = vmax.f32 %v5452_v63, %v5459_v14  ;;  %v5463_v23 = vsel %vm2707_vm5, %v5409_v57, -inf  ;;  %v5462_v56 = vmax.f32 %v5454_v50, %v5461_v12  ;;  %v5465_v7 = vsel %vm2707_vm5, %v5410_v52, -inf  ;;  %v13706_v14 = vld [vmem:[#allocation194_spill] sm:$0xff] }
 0x581   : > { %v5464_v35 = vmax.f32 %v5456_v41, %v5463_v23  ;;  %v5467_v55 = vsel %vm2707_vm5, %v5411_v32, -inf  ;;  %v5466_v28 = vmax.f32 %v5458_v43, %v5465_v7  ;;  %v5469_v19 = vsel %vm2707_vm5, %v5412_v11, -inf  ;;  %v13707_v41 = vld [vmem:[#allocation199_spill] sm:$0xff]  ;;  %v13708_v52 = vld [vmem:[#allocation198_spill] sm:$0xff]  ;;  %v3136_v11 = vld [vmem:[#allocation2 + $0xb0] sm:$0xff] }
 0x582   : > { %v5468_v37 = vmax.f32 %v5460_v61, %v5467_v55  ;;  %v5471_v2 = vsel %vm2707_vm5, %v5413_v48, -inf  ;;  %v5470_v34 = vmax.f32 %v5462_v56, %v5469_v19  ;;  %v5473_v62 = vsel %vm2707_vm5, %v5414_v26, -inf }
 0x583   : > { %v5472_v25 = vmax.f32 %v5464_v35, %v5471_v2  ;;  %v7607_v63 = vcombine.high %v13706_v14, %v13705_v3  ;;  %v5474_v57 = vmax.f32 %v5466_v28, %v5473_v62  ;;  %v7606_v50 = vcombine.low %v13706_v14, %v13705_v3  ;;  %v3137_v35 = vld [vmem:[#allocation2 + $0x1b0] sm:$0xff]  ;;  %v3138_v28 = vld [vmem:[#allocation2 + $0xd8] sm:$0xff] }
 0x584   : > { %v7609_v32 = vcombine.high %v13708_v52, %v13707_v41  ;;  %v5475_v22 = vmax.f32 %v5468_v37, %v5470_v34  ;;  %v7608_v19 = vcombine.low %v13708_v52, %v13707_v41  ;;  %v3139_v14 = vld [vmem:[#allocation2 + $0x18] sm:$0xff]  ;;  %v3140_v52 = vld [vmem:[#allocation2 + $0x50] sm:$0xff] }
 0x585   : > { %3568 = vmatprep.mubr.bf16.mxu0 %v7607_v63  ;;  %v5476_v61 = vmax.f32 %v5472_v25, %v5474_v57 }
 0x586   : > { %3569 = vmatmul.mubr.bf16.gmra.mxu0 %v7606_v50 }
 0x587   : > { %3576 = vmatprep.mubr.bf16.mxu0 %v7609_v32  ;;  %v5477_v48 = vmax.f32 %v5475_v22, %v5476_v61 }
 0x58e   : > { %3577 = vmatmul.mubr.bf16.gmra.mxu0 %v7608_v19 }
 0x5a3   : > { %5478 = vmax.xlane.f32.xlu1 %v5477_v48 }
 0x5ab   : > { %v7715_v26 = vpop.f32.mrf.mxu0 }
 0x5ad   : > { %v7716_v12 = vpop.f32.mrf.mxu0 }
 0x5ae   : > { %v7717_v43 = vadd.f32 %v7716_v12, %v7715_v26  ;;  %v13709_v26 = vld [vmem:[#allocation130_spill] sm:$0xff] }
 0x5af   : > { %v7718_v23 = vpop.f32.mrf.mxu0 }
 0x5b0   : > { %v3585_v56 = vadd.f32 %v7717_v43, %v3136_v11 }
 0x5b1   : > { %v7719_v7 = vpop.f32.mrf.mxu0 }
 0x5b2   : > { %3617 = vst [vmem:[#allocation2 + $0xb0] sm:$0xff] %v3585_v56  ;;  %v7720_v37 = vadd.f32 %v7719_v7, %v7718_v23 }
 0x5b3   : > { %v7721_v25 = vpop.f32.mrf.mxu0 }
 0x5b4   : > { %v3586_v55 = vadd.f32 %v7720_v37, %v3137_v35  ;;  %v3141_v35 = vld [vmem:[#allocation2 + $0x168] sm:$0xff] }
 0x5b5   : > { %v7722_v2 = vpop.f32.mrf.mxu0 }
 0x5b6   : > { %3618 = vst [vmem:[#allocation2 + $0x1b0] sm:$0xff] %v3586_v55  ;;  %v7723_v34 = vadd.f32 %v7722_v2, %v7721_v25 }
 0x5b7   : > { %v7724_v62 = vpop.f32.mrf.mxu0 }
 0x5b8   : > { %v3587_v3 = vadd.f32 %v7723_v34, %v3138_v28 }
 0x5b9   : > { %v7725_v63 = vpop.f32.mrf.mxu0 }
 0x5ba   : > { %3619 = vst [vmem:[#allocation2 + $0xd8] sm:$0xff] %v3587_v3  ;;  %v7726_v57 = vadd.f32 %v7725_v63, %v7724_v62 }
 0x5bb   : > { %v7727_v50 = vpop.f32.mrf.mxu0 }
 0x5bc   : > { %v3588_v41 = vadd.f32 %v7726_v57, %v3139_v14 }
 0x5bd   : > { %v7728_v32 = vpop.f32.mrf.mxu0 }
 0x5be   : > { %3620 = vst [vmem:[#allocation2 + $0x18] sm:$0xff] %v3588_v41  ;;  %v7729_v22 = vadd.f32 %v7728_v32, %v7727_v50  ;;  %v3142_v50 = vld [vmem:[#allocation2 + $0x130] sm:$0xff] }
 0x5bf   : > { %v7730_v48 = vpop.f32.mrf.mxu0 }
 0x5c0   : > { %v4477_v61 = vpop.permute.xlu1 %4476  ;;  %v3589_v43 = vadd.f32 %v7729_v22, %v3140_v52 }
 0x5c1   : > { %v4570_v19 = vrot.slane %v4477_v61, %v9369_v4  ;;  %v4577_v11 = vrot.slane %v4477_v61, %v13709_v26  ;;  %v4473_v12 = vpop.permute.xlu0 %4472  ;;  %v7731_v7 = vpop.f32.mrf.mxu0 }
 0x5c2   : > { %v4556_v23 = vrot.slane %v4473_v12, %v9369_v4  ;;  %v4563_v56 = vrot.slane %v4473_v12, %v13709_v26  ;;  %3621 = vst [vmem:[#allocation2 + $0x50] sm:$0xff] %v3589_v43  ;;  %v7732_v25 = vadd.f32 %v7731_v7, %v7730_v48 }
 0x5c3   : > { %v4808_v37 = vsub.bf16 %v11091_v13, %v4570_v19  ;;  %v4809_v55 = vsub.bf16 %v11093_v39, %v4577_v11  ;;  %v7733_v34 = vpop.f32.mrf.mxu0 }
 0x5c4   : > { %v4806_v28 = vsub.bf16 %v11099_v29, %v4556_v23  ;;  %v4807_v2 = vsub.bf16 %v11095_v53, %v4563_v56  ;;  %v3590_v14 = vadd.f32 %v7732_v25, %v3141_v35  ;;  %v3143_v29 = vld [vmem:[#allocation2 + $0x48] sm:$0xff]  ;;  %v3144_v25 = vld [vmem:[#allocation2 + $0x180] sm:$0xff] }
 0x5c5   : > { %v4845_v62 = vmul.bf16 1069105081, %v4808_v37  ;;  %v4848_v3 = vmul.bf16 1069105081, %v4809_v55  ;;  %v7734_v41 = vpop.f32.mrf.mxu0 }
 0x5c6   : > { %v4839_v63 = vmul.bf16 1069105081, %v4806_v28  ;;  %v4842_v57 = vmul.bf16 1069105081, %v4807_v2  ;;  %3622 = vst [vmem:[#allocation2 + $0x168] sm:$0xff] %v3590_v14  ;;  %v7735_v52 = vadd.f32 %v7734_v41, %v7733_v34 }
 0x5c7   : > { %8164 = vpow.bf16 %v4845_v62  ;;  %v7736_v13 = vpop.f32.mrf.mxu0  ;;  %v3145_v62 = vld [vmem:[#allocation2 + $0x110] sm:$0xff] }
 0x5c8   : > { %8166 = vpow.bf16 %v4848_v3  ;;  %v3591_v39 = vadd.f32 %v7735_v52, %v3142_v50 }
 0x5c9   : > { %8168 = vpow.bf16 %v4839_v63  ;;  %v7737_v22 = vpop.f32.mrf.mxu0 }
 0x5ca   : > { %8170 = vpow.bf16 %v4842_v57  ;;  %3623 = vst [vmem:[#allocation2 + $0x130] sm:$0xff] %v3591_v39  ;;  %v7738_v48 = vadd.f32 %v7737_v22, %v7736_v13 }
 0x5cb   : > { %v4481_v32 = vpop.permute.xlu1 %4480  ;;  %v7739_v19 = vpop.f32.mrf.mxu0 }
 0x5cc   : > { %v4584_v53 = vrot.slane %v4481_v32, %v9369_v4  ;;  %v4591_v61 = vrot.slane %v4481_v32, %v13709_v26  ;;  %v3592_v43 = vadd.f32 %v7738_v48, %v3143_v29 }
 0x5cd   : > { %v7740_v56 = vpop.f32.mrf.mxu0 }
 0x5ce   : > { %v4810_v11 = vsub.bf16 %v11115_v21, %v4584_v53  ;;  %v4811_v12 = vsub.bf16 %v11113_v0, %v4591_v61  ;;  %3624 = vst [vmem:[#allocation2 + $0x48] sm:$0xff] %v3592_v43  ;;  %v7741_v28 = vadd.f32 %v7740_v56, %v7739_v19 }
 0x5cf   : > { %v4485_v23 = vpop.permute.xlu1 %4484  ;;  %v7742_v2 = vpop.f32.mrf.mxu0 }
 0x5d0   : > { %v4851_v35 = vmul.bf16 1069105081, %v4810_v11  ;;  %v4854_v7 = vmul.bf16 1069105081, %v4811_v12  ;;  %v4598_v37 = vrot.slane %v4485_v23, %v9369_v4  ;;  %v4605_v55 = vrot.slane %v4485_v23, %v13709_v26 }
 0x5d1   : > { %v3593_v0 = vadd.f32 %v7741_v28, %v3144_v25  ;;  %v7743_v3 = vpop.f32.mrf.mxu0 }
 0x5d2   : > { %8172 = vpow.bf16 %v4851_v35  ;;  %v4812_v34 = vsub.bf16 %v11121_v33, %v4598_v37  ;;  %v4813_v21 = vsub.bf16 %v11119_v59, %v4605_v55  ;;  %v7744_v57 = vadd.f32 %v7743_v3, %v7742_v2 }
 0x5d3   : > { %8174 = vpow.bf16 %v4854_v7  ;;  %3625 = vst [vmem:[#allocation2 + $0x180] sm:$0xff] %v3593_v0  ;;  %v7745_v50 = vpop.f32.mrf.mxu0  ;;  %v4489_v52 = vpop.permute.xlu1 %4488 }
 0x5d4   : > { %v4857_v14 = vmul.bf16 1069105081, %v4812_v34  ;;  %v4860_v63 = vmul.bf16 1069105081, %v4813_v21  ;;  %v3594_v13 = vadd.f32 %v7744_v57, %v3145_v62  ;;  %v4612_v32 = vrot.slane %v4489_v52, %v9369_v4  ;;  %v3146_v34 = vld [vmem:[#allocation2 + $0x118] sm:$0xff] }
 0x5d5   : > { %v8165_v41 = vpop.eup %8164  ;;  %v4619_v33 = vrot.slane %v4489_v52, %v13709_v26  ;;  %v7746_v22 = vpop.f32.mrf.mxu0 }
 0x5d6   : > { %8176 = vpow.bf16 %v4857_v14  ;;  %v8167_v39 = vpop.eup %8166  ;;  %v11914_v29 = vsel %vm2293_vm6, %v8165_v41, 0  ;;  %3626 = vst [vmem:[#allocation2 + $0x110] sm:$0xff] %v3594_v13  ;;  %v4814_v11 = vsub.bf16 %v11137_v54, %v4612_v32  ;;  %v7747_v56 = vadd.f32 %v7746_v22, %v7745_v50  ;;  %v3147_v32 = vld [vmem:[#allocation2 + $0x98] sm:$0xff] }
 0x5d7   : > { %8178 = vpow.bf16 %v4860_v63  ;;  %v8169_v53 = vpop.eup %8168  ;;  %v5131_v61 = vunpack.c.l.bf16 %v11914_v29  ;;  %v5132_v48 = vunpack.c.h.bf16 %v11914_v29  ;;  %v4815_v12 = vsub.bf16 %v11135_v18, %v4619_v33  ;;  %v7748_v35 = vpop.f32.mrf.mxu0 }
 0x5d8   : > { %v8171_v19 = vpop.eup %8170  ;;  %v11922_v23 = vsel %vm2291_vm8, %v8169_v53, 0  ;;  %v4493_v7 = vpop.permute.xlu1 %4492  ;;  %v4863_v54 = vmul.bf16 1069105081, %v4814_v11  ;;  %v11936_v50 = vsel %vm2294_vm9, %v8167_v39, 0  ;;  %v3595_v13 = vadd.f32 %v7747_v56, %v3146_v34 }
 0x5d9   : > { %v5197_v37 = vadd.f32 %v5132_v48, %v5131_v61  ;;  %v5127_v55 = vunpack.c.l.bf16 %v11922_v23  ;;  %v5128_v25 = vunpack.c.h.bf16 %v11922_v23  ;;  %v11928_v2 = vsel %vm2292_vm10, %v8171_v19, 0  ;;  %v7749_v62 = vpop.f32.mrf.mxu0 }
 0x5da   : > { %v4866_v21 = vmul.bf16 1069105081, %v4815_v12  ;;  %v4626_v18 = vrot.slane %v4493_v7, %v9369_v4  ;;  %v4633_v0 = vrot.slane %v4493_v7, %v13709_v26  ;;  %v5129_v14 = vunpack.c.l.bf16 %v11928_v2  ;;  %3627 = vst [vmem:[#allocation2 + $0x118] sm:$0xff] %v3595_v13 }
 0x5db   : > { %5198 = vadd.xlane.f32.xlu1 %v5197_v37  ;;  %v5191_v3 = vadd.f32 %v5128_v25, %v5127_v55  ;;  %v5130_v63 = vunpack.c.h.bf16 %v11928_v2  ;;  %8180 = vpow.bf16 %v4863_v54  ;;  %v7751_v33 = vpop.f32.mrf.mxu0  ;;  %v7750_v59 = vadd.f32 %v7749_v62, %v7748_v35  ;;  %v3148_v55 = vld [vmem:[#allocation2 + $0x120] sm:$0xff] }
 0x5dc   : > { %v4816_v41 = vsub.bf16 %v11149_v42, %v4626_v18  ;;  %v4817_v52 = vsub.bf16 %v11147_v49, %v4633_v0  ;;  %8182 = vpow.bf16 %v4866_v21  ;;  %v5133_v61 = vunpack.c.l.bf16 %v11936_v50  ;;  %v4497_v39 = vpop.permute.xlu1 %4496 }
 0x5dd   : > { %5192 = vadd.xlane.f32.xlu0 %v5191_v3  ;;  %v7752_v48 = vpop.f32.mrf.mxu0  ;;  %v5194_v11 = vadd.f32 %v5130_v63, %v5129_v14  ;;  %v5134_v12 = vunpack.c.h.bf16 %v11936_v50  ;;  %v3596_v42 = vadd.f32 %v7750_v59, %v3147_v32  ;;  %v4640_v56 = vrot.slane %v4497_v39, %v9369_v4  ;;  %v3149_v14 = vld [vmem:[#allocation2 + $0x150] sm:$0xff] }
 0x5de   : > { %v4869_v22 = vmul.bf16 1069105081, %v4816_v41  ;;  %v4872_v53 = vmul.bf16 1069105081, %v4817_v52  ;;  %v7753_v43 = vadd.f32 %v7752_v48, %v7751_v33  ;;  %v4647_v7 = vrot.slane %v4497_v39, %v13709_v26  ;;  %v13718_v39 = vld [vmem:[#allocation143_spill] sm:$0xff] }
 0x5df   : > { %v7754_v25 = vpop.f32.mrf.mxu0  ;;  %3628 = vst [vmem:[#allocation2 + $0x98] sm:$0xff] %v3596_v42  ;;  %v4818_v18 = vsub.bf16 %v11163_v47, %v4640_v56  ;;  %v5200_v52 = vadd.f32 %v5134_v12, %v5133_v61  ;;  %vm13719_vm8 = vcmp.ne.s16.totalorder %v13718_v39, 0  ;;  %v13722_v39 = vld [vmem:[#allocation164_spill] sm:$0xff] }
 0x5e0   : > { %v8173_v19 = vpop.eup %8172  ;;  %8184 = vpow.bf16 %v4869_v22  ;;  %v4819_v0 = vsub.bf16 %v11161_v6, %v4647_v7  ;;  %v3597_v13 = vadd.f32 %v7753_v43, %v3148_v55  ;;  %vm13723_vm10 = vcmp.ne.s16.totalorder %v13722_v39, 0 }
 0x5e1   : > { %v8175_v49 = vpop.eup %8174  ;;  %v11946_v37 = vsel %vm2295_vm0, %v8173_v19, 0  ;;  %8186 = vpow.bf16 %v4872_v53  ;;  %5195 = vadd.xlane.f32.xlu0 %v5194_v11  ;;  %v7755_v63 = vpop.f32.mrf.mxu0  ;;  %v4875_v59 = vmul.bf16 1069105081, %v4818_v18  ;;  %v13716_v53 = vld [vmem:[#allocation137_spill] sm:$0xff] }
 0x5e2   : > { %v5135_v28 = vunpack.c.l.bf16 %v11946_v37  ;;  %v5136_v34 = vunpack.c.h.bf16 %v11946_v37  ;;  %v11952_v21 = vsel %vm2296_vm2, %v8175_v49, 0  ;;  %v7756_v32 = vadd.f32 %v7755_v63, %v7754_v25  ;;  %3629 = vst [vmem:[#allocation2 + $0x120] sm:$0xff] %v3597_v13  ;;  %v4501_v12 = vpop.permute.xlu1 %4500  ;;  %v4509_v55 = vpop.permute.xlu0 %4508 }
 0x5e3   : > { %v5137_v62 = vunpack.c.l.bf16 %v11952_v21  ;;  %v5138_v3 = vunpack.c.h.bf16 %v11952_v21  ;;  %v4878_v22 = vmul.bf16 1069105081, %v4819_v0  ;;  %vm13717_vm6 = vcmp.ne.s16.totalorder %v13716_v53, 0  ;;  %v7757_v47 = vpop.f32.mrf.mxu0 }
 0x5e4   : > { %v8177_v57 = vpop.eup %8176  ;;  %v5203_v41 = vadd.f32 %v5136_v34, %v5135_v28  ;;  %v3598_v61 = vadd.f32 %v7756_v32, %v3149_v14  ;;  %8188 = vpow.bf16 %v4875_v59  ;;  %v4654_v7 = vrot.slane %v4501_v12, %v9369_v4  ;;  %v3150_v28 = vld [vmem:[#allocation2 + $0x108] sm:$0xff] }
 0x5e5   : > { %v8179_v33 = vpop.eup %8178  ;;  %v11960_v48 = vsel %vm13717_vm6, %v8177_v57, 0  ;;  %5201 = vadd.xlane.f32.xlu0 %v5200_v52  ;;  %v5206_v42 = vadd.f32 %v5138_v3, %v5137_v62  ;;  %v7758_v56 = vpop.f32.mrf.mxu0  ;;  %8190 = vpow.bf16 %v4878_v22  ;;  %v4661_v35 = vrot.slane %v4501_v12, %v13709_v26 }
 0x5e6   : > { %5204 = vadd.xlane.f32.xlu1 %v5203_v41  ;;  %v5139_v6 = vunpack.c.l.bf16 %v11960_v48  ;;  %v5140_v19 = vunpack.c.h.bf16 %v11960_v48  ;;  %v11966_v11 = vsel %vm13719_vm8, %v8179_v33, 0  ;;  %3630 = vst [vmem:[#allocation2 + $0x150] sm:$0xff] %v3598_v61  ;;  %v4682_v34 = vrot.slane %v4509_v55, %v9369_v4  ;;  %v4505_v63 = vpop.permute.xlu1 %4504 }
 0x5e7   : > { %v5141_v43 = vunpack.c.l.bf16 %v11966_v11  ;;  %v5142_v49 = vunpack.c.h.bf16 %v11966_v11  ;;  %v4689_v54 = vrot.slane %v4509_v55, %v13709_v26  ;;  %v7759_v18 = vadd.f32 %v7758_v56, %v7757_v47  ;;  %v7760_v0 = vpop.f32.mrf.mxu0 }
 0x5e8   : > { %v5209_v25 = vadd.f32 %v5140_v19, %v5139_v6  ;;  %v4820_v62 = vsub.bf16 %v11177_v40, %v4654_v7  ;;  %v4821_v3 = vsub.bf16 %v11175_v17, %v4661_v35  ;;  %v4824_v57 = vsub.bf16 %v11217_v8, %v4682_v34  ;;  %v13720_v6 = vld [vmem:[#allocation148_spill] sm:$0xff]  ;;  %v13724_v34 = vld [vmem:[#allocation165_spill] sm:$0xff] }
 0x5e9   : > { %5207 = vadd.xlane.f32.xlu0 %v5206_v42  ;;  %v8181_v14 = vpop.eup %8180  ;;  %v4825_v41 = vsub.bf16 %v11215_v60, %v4689_v54  ;;  %v5212_v52 = vadd.f32 %v5142_v49, %v5141_v43  ;;  %v3599_v13 = vadd.f32 %v7759_v18, %v3150_v28  ;;  %v7761_v32 = vpop.f32.mrf.mxu0  ;;  %v4668_v53 = vrot.slane %v4505_v63, %v9369_v4 }
 0x5ea   : > { %5210 = vadd.xlane.f32.xlu1 %v5209_v25  ;;  %v8183_v33 = vpop.eup %8182  ;;  %v4881_v59 = vmul.bf16 1069105081, %v4820_v62  ;;  %v4884_v22 = vmul.bf16 1069105081, %v4821_v3  ;;  %v4675_v40 = vrot.slane %v4505_v63, %v13709_v26  ;;  %v4893_v47 = vmul.bf16 1069105081, %v4824_v57 }
 0x5eb   : > { %v4896_v17 = vmul.bf16 1069105081, %v4825_v41  ;;  %vm13721_vm9 = vcmp.ne.s16.totalorder %v13720_v6, 0  ;;  %v11986_v8 = vsel %vm13723_vm10, %v8183_v33, 0  ;;  %3631 = vst [vmem:[#allocation2 + $0x108] sm:$0xff] %v3599_v13  ;;  %v7763_v60 = vpop.f32.mrf.mxu0  ;;  %v4822_v61 = vsub.bf16 %v11204_v46, %v4668_v53  ;;  %v3151_v62 = vld [vmem:[#allocation2 + $0x60] sm:$0xff] }
 0x5ec   : > { %v11982_v19 = vsel %vm13721_vm9, %v8181_v14, 0  ;;  %8192 = vpow.bf16 %v4881_v59  ;;  %v4823_v12 = vsub.bf16 %v11202_v58, %v4675_v40  ;;  %v5145_v56 = vunpack.c.l.bf16 %v11986_v8  ;;  %v13727_v63 = vld [vmem:[#allocation166_spill] sm:$0xff]  ;;  %v4513_v40 = vpop.permute.xlu1 %4512 }
 0x5ed   : > { %v5143_v42 = vunpack.c.l.bf16 %v11982_v19  ;;  %5213 = vadd.xlane.f32.xlu0 %v5212_v52  ;;  %8194 = vpow.bf16 %v4884_v22  ;;  %v5144_v49 = vunpack.c.h.bf16 %v11982_v19  ;;  %v5146_v7 = vunpack.c.h.bf16 %v11986_v8  ;;  %v7764_v35 = vpop.f32.mrf.mxu0  ;;  %v4517_v52 = vpop.permute.xlu0 %4516  ;;  %v3152_v22 = vld [vmem:[#allocation2 + $0xe0] sm:$0xff] }
 0x5ee   : > { %v8185_v43 = vpop.eup %8184  ;;  %v4887_v25 = vmul.bf16 1069105081, %v4822_v61  ;;  %v4890_v28 = vmul.bf16 1069105081, %v4823_v12  ;;  %8196 = vpow.bf16 %v4893_v47  ;;  %vm13725_vm0 = vcmp.ne.s16.totalorder %v13724_v34, 0  ;;  %v13734_v34 = vld [vmem:[#allocation74_spill] sm:$0xff] }
 0x5ef   : > { %v8187_v55 = vpop.eup %8186  ;;  %v11996_v46 = vsel %vm13725_vm0, %v8185_v43, 0  ;;  %8198 = vpow.bf16 %v4896_v17  ;;  %v5215_v58 = vadd.f32 %v5144_v49, %v5143_v42  ;;  %v7766_v3 = vpop.f32.mrf.mxu0  ;;  %v5218_v14 = vadd.f32 %v5146_v7, %v5145_v56 }
 0x5f0   : > { %13726 = vst [vmem:[#allocation31_spill] sm:$0xff] %v11996_v46  ;;  %v5147_v54 = vunpack.c.l.bf16 %v11996_v46  ;;  %v5148_v18 = vunpack.c.h.bf16 %v11996_v46  ;;  %8200 = vpow.bf16 %v4887_v25  ;;  %vm13728_vm2 = vcmp.ne.s16.totalorder %v13727_v63, 0 }
 0x5f1   : > { %v12002_v57 = vsel %vm13728_vm2, %v8187_v55, 0  ;;  %v7762_v41 = vadd.f32 %v7761_v32, %v7760_v0  ;;  %8202 = vpow.bf16 %v4890_v28  ;;  %5216 = vadd.xlane.f32.xlu1 %v5215_v58  ;;  %v7767_v53 = vpop.f32.mrf.mxu0  ;;  %v4710_v47 = vrot.slane %v4517_v52, %v9369_v4  ;;  %5219 = vadd.xlane.f32.xlu0 %v5218_v14  ;;  %v13730_v55 = vld [vmem:[#allocation171_spill] sm:$0xff] }
 0x5f2   : > { %13729 = vst [vmem:[#allocation32_spill] sm:$0xff] %v12002_v57  ;;  %v5221_v13 = vadd.f32 %v5148_v18, %v5147_v54  ;;  %v5149_v33 = vunpack.c.l.bf16 %v12002_v57  ;;  %v5150_v59 = vunpack.c.h.bf16 %v12002_v57  ;;  %v4717_v17 = vrot.slane %v4517_v52, %v13709_v26  ;;  %v8189_v61 = vpop.eup %8188  ;;  %v4525_v54 = vpop.permute.xlu0 %4524 }
 0x5f3   : > { %v3600_v6 = vadd.f32 %v7762_v41, %v3151_v62  ;;  %v7765_v39 = vadd.f32 %v7764_v35, %v7763_v60  ;;  %v4696_v0 = vrot.slane %v4513_v40, %v9369_v4  ;;  %v4703_v32 = vrot.slane %v4513_v40, %v13709_v26  ;;  %v12010_v43 = vpop.f32.mrf.mxu0  ;;  %v8191_v49 = vpop.eup %8190  ;;  %v13733_v35 = vld [vmem:[#allocation75_spill] sm:$0xff] }
 0x5f4   : > { %v5224_v12 = vadd.f32 %v5150_v59, %v5149_v33  ;;  %v7768_v42 = vadd.f32 %v7767_v53, %v7766_v3  ;;  %v4828_v56 = vsub.bf16 %v11255_v45, %v4710_v47  ;;  %v4829_v7 = vsub.bf16 %v11253_v24, %v4717_v17  ;;  %v13735_v59 = vld [vmem:[#allocation172_spill] sm:$0xff]  ;;  %v4521_v40 = vpop.permute.xlu1 %4520  ;;  %v13738_v17 = vld [vmem:[#allocation90_spill] sm:$0xff] }
 0x5f5   : > { %vm13731_vm4 = vcmp.ne.s16.totalorder %v13730_v55, 0  ;;  %3632 = vst [vmem:[#allocation2 + $0x60] sm:$0xff] %v3600_v6  ;;  %v3601_v60 = vadd.f32 %v7765_v39, %v3152_v22  ;;  %v4826_v28 = vsub.bf16 %v13733_v35, %v4696_v0  ;;  %v4827_v58 = vsub.bf16 %v13734_v34, %v4703_v32  ;;  %5222 = vadd.xlane.f32.xlu1 %v5221_v13  ;;  %v12022_v3 = vpop.f32.mrf.mxu0  ;;  %v3153_v22 = vld [vmem:[#allocation2 + $0x188] sm:$0xff] }
 0x5f6   : > { %v12016_v25 = vsel %vm13731_vm4, %v8189_v61, 0  ;;  %v4905_v45 = vmul.bf16 1069105081, %v4828_v56  ;;  %v4908_v24 = vmul.bf16 1069105081, %v4829_v7  ;;  %v4738_v14 = vrot.slane %v4525_v54, %v9369_v4  ;;  %5225 = vadd.xlane.f32.xlu0 %v5224_v12 }
 0x5f7   : > { %13732 = vst [vmem:[#allocation33_spill] sm:$0xff] %v12016_v25  ;;  %v5151_v18 = vunpack.c.l.bf16 %v12016_v25  ;;  %v5152_v62 = vunpack.c.h.bf16 %v12016_v25  ;;  %v4745_v63 = vrot.slane %v4525_v54, %v13709_v26  ;;  %3633 = vst [vmem:[#allocation2 + $0xe0] sm:$0xff] %v3601_v60  ;;  %v4899_v41 = vmul.bf16 1069105081, %v4826_v28  ;;  %v12030_v53 = vpop.f32.mrf.mxu0  ;;  %v13739_v60 = vld [vmem:[#allocation93_spill] sm:$0xff]  ;;  %v13740_v28 = vld [vmem:[#allocation92_spill] sm:$0xff] }
 0x5f8   : > { %v4902_v52 = vmul.bf16 1069105081, %v4827_v58  ;;  %vm13736_vm12 = vcmp.ne.s16.totalorder %v13735_v59, 0  ;;  %8204 = vpow.bf16 %v4905_v45  ;;  %v4832_v47 = vsub.bf16 %v11295_v31, %v4738_v14  ;;  %v13741_v58 = vld [vmem:[#allocation175_spill] sm:$0xff] }
 0x5f9   : > { %v5227_v33 = vadd.f32 %v5152_v62, %v5151_v18  ;;  %v12028_v13 = vsel %vm13736_vm12, %v8191_v49, 0  ;;  %v4833_v6 = vsub.bf16 %v13738_v17, %v4745_v63  ;;  %8206 = vpow.bf16 %v4899_v41  ;;  %v12038_v12 = vpop.f32.mrf.mxu0 }
 0x5fa   : > { %13737 = vst [vmem:[#allocation34_spill] sm:$0xff] %v12028_v13  ;;  %v5153_v39 = vunpack.c.l.bf16 %v12028_v13  ;;  %v4724_v61 = vrot.slane %v4521_v40, %v9369_v4  ;;  %v4731_v0 = vrot.slane %v4521_v40, %v13709_v26  ;;  %v5154_v32 = vunpack.c.h.bf16 %v12028_v13  ;;  %v8193_v49 = vpop.eup %8192  ;;  %v4529_v17 = vpop.permute.xlu1 %4528 }
 0x5fb   : > { %5228 = vadd.xlane.f32.xlu1 %v5227_v33  ;;  %8208 = vpow.bf16 %v4902_v52  ;;  %v4917_v56 = vmul.bf16 1069105081, %v4832_v47  ;;  %v4920_v7 = vmul.bf16 1069105081, %v4833_v6  ;;  %v3602_v55 = vadd.f32 %v7768_v42, %v3153_v22  ;;  %v8195_v31 = vpop.eup %8194  ;;  %v12046_v18 = vpop.f32.mrf.mxu0  ;;  %v13744_v33 = vld [vmem:[#allocation178_spill] sm:$0xff] }
 0x5fc   : > { %8210 = vpow.bf16 %v4908_v24  ;;  %v4830_v35 = vsub.bf16 %v13739_v60, %v4724_v61  ;;  %v4831_v34 = vsub.bf16 %v13740_v28, %v4731_v0  ;;  %vm13742_vm3 = vcmp.ne.s16.totalorder %v13741_v58, 0  ;;  %v8197_v62 = vpop.eup %8196  ;;  %v4533_v52 = vpop.permute.xlu0 %4532  ;;  %v13749_v28 = vld [vmem:[#allocation103_spill] sm:$0xff] }
 0x5fd   : > { %v12044_v54 = vsel %vm13742_vm3, %v8193_v49, 0  ;;  %8212 = vpow.bf16 %v4917_v56  ;;  %v5230_v63 = vadd.f32 %v5154_v32, %v5153_v39  ;;  %3634 = vst [vmem:[#allocation2 + $0x188] sm:$0xff] %v3602_v55  ;;  %v8199_v42 = vpop.eup %8198  ;;  %vm13745_vm7 = vcmp.ne.s16.totalorder %v13744_v33, 0  ;;  %v12054_v22 = vpop.f32.mrf.mxu0 }
 0x5fe   : > { %13743 = vst [vmem:[#allocation35_spill] sm:$0xff] %v12044_v54  ;;  %v5155_v45 = vunpack.c.l.bf16 %v12044_v54  ;;  %v5156_v14 = vunpack.c.h.bf16 %v12044_v54  ;;  %v4911_v24 = vmul.bf16 1069105081, %v4830_v35  ;;  %v4914_v41 = vmul.bf16 1069105081, %v4831_v34  ;;  %v8201_v40 = vpop.eup %8200 }
 0x5ff   : > { %8214 = vpow.bf16 %v4920_v7  ;;  %v12052_v59 = vsel %vm13745_vm7, %v8195_v31, 0  ;;  %5231 = vadd.xlane.f32.xlu0 %v5230_v63  ;;  %v4766_v6 = vrot.slane %v4533_v52, %v9369_v4  ;;  %v4773_v39 = vrot.slane %v4533_v52, %v13709_v26  ;;  %v8203_v0 = vpop.eup %8202  ;;  %v12065_v55 = vpop.f32.mrf.mxu0 }
 0x600   : > { %13746 = vst [vmem:[#allocation36_spill] sm:$0xff] %v12052_v59  ;;  %v5233_v47 = vadd.f32 %v5156_v14, %v5155_v45  ;;  %v5157_v61 = vunpack.c.l.bf16 %v12052_v59  ;;  %8216 = vpow.bf16 %v4911_v24  ;;  %v4752_v32 = vrot.slane %v4529_v17, %v9369_v4  ;;  %v13750_v45 = vld [vmem:[#allocation108_spill] sm:$0xff] }
 0x601   : > { %v4759_v49 = vrot.slane %v4529_v17, %v13709_v26  ;;  %v12063_v7 = vsel %vm2307_vm13, %v8201_v40, 0  ;;  %8218 = vpow.bf16 %v4914_v41  ;;  %v4836_v31 = vsub.bf16 %v11331_v9, %v4766_v6  ;;  %v12073_v58 = vpop.f32.mrf.mxu0  ;;  %v13753_v9 = vld [vmem:[#allocation181_spill] sm:$0xff] }
 0x602   : > { %13748 = vst [vmem:[#allocation37_spill] sm:$0xff] %v12063_v7  ;;  %5234 = vadd.xlane.f32.xlu1 %v5233_v47  ;;  %v5159_v60 = vunpack.c.l.bf16 %v12063_v7  ;;  %v4834_v35 = vsub.bf16 %v11319_v27, %v4752_v32  ;;  %v5160_v4 = vunpack.c.h.bf16 %v12063_v7  ;;  %v5158_v26 = vunpack.c.h.bf16 %v12052_v59 }
 0x603   : > { %v4835_v34 = vsub.bf16 %v13749_v28, %v4759_v49  ;;  %v4837_v14 = vsub.bf16 %v13750_v45, %v4773_v39  ;;  %v4929_v63 = vmul.bf16 1069105081, %v4836_v31  ;;  %v12078_v41 = vsel %vm2308_vm15, %v8203_v0, 0  ;;  %v12084_v17 = vpop.f32.mrf.mxu0  ;;  %v3154_v49 = vld [vmem:[#allocation2 + $0x138] sm:$0xff] }
 0x604   : > { %13752 = vst [vmem:[#allocation38_spill] sm:$0xff] %v12078_v41  ;;  %vm13754_vm13 = vcmp.ne.s16.totalorder %v13753_v9, 0  ;;  %v4923_v27 = vmul.bf16 1069105081, %v4834_v35  ;;  %v5239_v40 = vadd.f32 %v5160_v4, %v5159_v60  ;;  %v5236_v47 = vadd.f32 %v5158_v26, %v5157_v61 }
 0x605   : > { %v12082_v52 = vsel %vm13754_vm13, %v8197_v62, 0  ;;  %v4926_v33 = vmul.bf16 1069105081, %v4835_v34  ;;  %8220 = vpow.bf16 %v4929_v63  ;;  %v5161_v6 = vunpack.c.l.bf16 %v12078_v41  ;;  %v12096_v31 = vpop.f32.mrf.mxu0  ;;  %v13758_v63 = vld [vmem:[#allocation185_spill] sm:$0xff] }
 0x606   : > { %13755 = vst [vmem:[#allocation39_spill] sm:$0xff] %v12082_v52  ;;  %v5162_v39 = vunpack.c.h.bf16 %v12078_v41  ;;  %v5163_v32 = vunpack.c.l.bf16 %v12082_v52  ;;  %8222 = vpow.bf16 %v4923_v27  ;;  %5240 = vadd.xlane.f32.xlu1 %v5239_v40  ;;  %5237 = vadd.xlane.f32.xlu0 %v5236_v47  ;;  %v5164_v62 = vunpack.c.h.bf16 %v12082_v52  ;;  %v8205_v60 = vpop.eup %8204  ;;  %v13764_v47 = vld [vmem:[#allocation184_spill] sm:$0xff]  ;;  %v13776_v52 = vld [vmem:[#allocation59_spill] sm:$0xff] }
 0x607   : > { %v12092_v56 = vsel %vm2310_vm1, %v8199_v42, 0  ;;  %v7771_v61 = vadd.f32 %v12022_v3, %v12010_v43  ;;  %8224 = vpow.bf16 %v4926_v33  ;;  %v4932_v35 = vmul.bf16 1069105081, %v4837_v14  ;;  %v8207_v4 = vpop.eup %8206  ;;  %v7784_v9 = vpop.f32.mrf.mxu0  ;;  %v13761_v43 = vld [vmem:[#allocation183_spill] sm:$0xff] }
 0x608   : > { %13757 = vst [vmem:[#allocation40_spill] sm:$0xff] %v12092_v56  ;;  %v5165_v28 = vunpack.c.l.bf16 %v12092_v56  ;;  %v5166_v34 = vunpack.c.h.bf16 %v12092_v56  ;;  %v5242_v26 = vadd.f32 %v5162_v39, %v5161_v6  ;;  %v5245_v45 = vadd.f32 %v5164_v62, %v5163_v32 }
 0x609   : > { %vm13759_vm15 = vcmp.ne.s16.totalorder %v13758_v63, 0  ;;  %v3603_v42 = vadd.f32 %v7771_v61, %v3154_v49  ;;  %v8209_v27 = vpop.eup %8208  ;;  %vm13762_vm1 = vcmp.ne.s16.totalorder %v13761_v43, 0  ;;  %vm13765_vm14 = vcmp.ne.s16.totalorder %v13764_v47, 0  ;;  %v7785_v32 = vpop.f32.mrf.mxu0  ;;  %v13767_v61 = vld [vmem:[#allocation186_spill] sm:$0xff]  ;;  %v3157_v47 = vld [vmem:[#allocation2 + $0x1a8] sm:$0xff] }
 0x60a   : > { %v12102_v24 = vsel %vm13759_vm15, %v8205_v60, 0  ;;  %v12106_v3 = vsel %vm13762_vm1, %v8207_v4, 0  ;;  %v8211_v33 = vpop.eup %8210  ;;  %5243 = vadd.xlane.f32.xlu0 %v5242_v26  ;;  %5246 = vadd.xlane.f32.xlu1 %v5245_v45  ;;  %v12112_v6 = vsel %vm13765_vm14, %v8209_v27, 0  ;;  %v7774_v39 = vadd.f32 %v12038_v12, %v12030_v53  ;;  %v3155_v4 = vld [vmem:[#allocation2 + $0x140] sm:$0xff] }
 0x60b   : > { %13760 = vst [vmem:[#allocation41_spill] sm:$0xff] %v12102_v24  ;;  %13763 = vst [vmem:[#allocation42_spill] sm:$0xff] %v12106_v3  ;;  %v5167_v14 = vunpack.c.l.bf16 %v12106_v3  ;;  %v5168_v40 = vunpack.c.h.bf16 %v12106_v3  ;;  %v8213_v49 = vpop.eup %8212  ;;  %8226 = vpow.bf16 %v4932_v35  ;;  %v5248_v62 = vadd.f32 %v5166_v34, %v5165_v28  ;;  %v7787_v53 = vpop.f32.mrf.mxu0  ;;  %v13770_v28 = vld [vmem:[#allocation62_spill] sm:$0xff]  ;;  %v13773_v3 = vld [vmem:[#allocation187_spill] sm:$0xff] }
 0x60c   : > { %13766 = vst [vmem:[#allocation43_spill] sm:$0xff] %v12112_v6  ;;  %3635 = vst [vmem:[#allocation2 + $0x138] sm:$0xff] %v3603_v42  ;;  %v5171_v0 = vunpack.c.l.bf16 %v12102_v24  ;;  %vm13768_vm11 = vcmp.ne.s16.totalorder %v13767_v61, 0  ;;  %v5169_v63 = vunpack.c.l.bf16 %v12112_v6  ;;  %v5170_v42 = vunpack.c.h.bf16 %v12112_v6 }
 0x60d   : > { %v12119_v60 = vsel %vm13768_vm11, %v8211_v33, 0  ;;  %v8215_v26 = vpop.eup %8214  ;;  %v5251_v45 = vadd.f32 %v5168_v40, %v5167_v14  ;;  %v5172_v27 = vunpack.c.h.bf16 %v12102_v24  ;;  %vm13771_vm6 = vcmp.ne.s16.totalorder %v13770_v28, 0  ;;  %v3156_v33 = vld [vmem:[#allocation2 + $0x80] sm:$0xff]  ;;  %v7788_v14 = vpop.f32.mrf.mxu0 }
 0x60e   : > { %13769 = vst [vmem:[#allocation44_spill] sm:$0xff] %v12119_v60  ;;  %v8217_v12 = vpop.eup %8216  ;;  %5249 = vadd.xlane.f32.xlu0 %v5248_v62  ;;  %v5173_v35 = vunpack.c.l.bf16 %v12119_v60  ;;  %v12127_v34 = vsel %vm13771_vm6, %v8213_v49, 0  ;;  %v3604_v43 = vadd.f32 %v7774_v39, %v3155_v4  ;;  %v5174_v61 = vunpack.c.h.bf16 %v12119_v60 }
 0x60f   : > { %5252 = vadd.xlane.f32.xlu1 %v5251_v45  ;;  %13772 = vst [vmem:[#allocation45_spill] sm:$0xff] %v12127_v34  ;;  %v8219_v40 = vpop.eup %8218  ;;  %vm13774_vm8 = vcmp.ne.s16.totalorder %v13773_v3, 0  ;;  %v7777_v62 = vadd.f32 %v12054_v22, %v12046_v18  ;;  %v7780_v45 = vadd.f32 %v12073_v58, %v12065_v55  ;;  %v5254_v28 = vadd.f32 %v5170_v42, %v5169_v63  ;;  %v7790_v6 = vpop.f32.mrf.mxu0  ;;  %v3158_v18 = vld [vmem:[#allocation2 + $0x1b8] sm:$0xff]  ;;  %v3159_v22 = vld [vmem:[#allocation2 + $0x28] sm:$0xff] }
 0x610   : > { %v12132_v24 = vsel %vm13774_vm8, %v8217_v12, 0  ;;  %v5257_v49 = vadd.f32 %v5172_v27, %v5171_v0  ;;  %3636 = vst [vmem:[#allocation2 + $0x140] sm:$0xff] %v3604_v43  ;;  %vm13777_vm9 = vcmp.ne.s16.totalorder %v13776_v52, 0  ;;  %v5179_v3 = vunpack.c.l.bf16 %v12127_v34  ;;  %v3160_v42 = vld [vmem:[#allocation2 + $0x1e8] sm:$0xff] }
 0x611   : > { %13775 = vst [vmem:[#allocation46_spill] sm:$0xff] %v12132_v24  ;;  %v5175_v39 = vunpack.c.l.bf16 %v12132_v24  ;;  %v5176_v4 = vunpack.c.h.bf16 %v12132_v24  ;;  %v12142_v60 = vsel %vm13777_vm9, %v8219_v40, 0  ;;  %v3605_v12 = vadd.f32 %v7777_v62, %v3156_v33  ;;  %v7791_v27 = vpop.f32.mrf.mxu0  ;;  %v13779_v40 = vld [vmem:[#allocation190_spill] sm:$0xff] }
 0x612   : > { %13778 = vst [vmem:[#allocation47_spill] sm:$0xff] %v12142_v60  ;;  %v3606_v56 = vadd.f32 %v7780_v45, %v3157_v47  ;;  %5255 = vadd.xlane.f32.xlu0 %v5254_v28  ;;  %v5180_v58 = vunpack.c.h.bf16 %v12127_v34  ;;  %v7783_v0 = vadd.f32 %v12096_v31, %v12084_v17  ;;  %v7786_v63 = vadd.f32 %v7785_v32, %v7784_v9  ;;  %v3161_v47 = vld [vmem:[#allocation2 + $0xf8] sm:$0xff]  ;;  %v13782_v32 = vld [vmem:[#allocation192_spill] sm:$0xff] }
 0x613   : > { %5258 = vadd.xlane.f32.xlu1 %v5257_v49  ;;  %v5263_v55 = vadd.f32 %v5176_v4, %v5175_v39  ;;  %v8221_v52 = vpop.eup %8220  ;;  %v5260_v43 = vadd.f32 %v5174_v61, %v5173_v35  ;;  %vm13780_vm10 = vcmp.ne.s16.totalorder %v13779_v40, 0  ;;  %3637 = vst [vmem:[#allocation2 + $0x80] sm:$0xff] %v3605_v12  ;;  %v7789_v33 = vadd.f32 %v7788_v14, %v7787_v53  ;;  %v3162_v4 = vld [vmem:[#allocation2 + $0x160] sm:$0xff] }
 0x614   : > { %v12150_v24 = vsel %vm13780_vm10, %v8215_v26, 0  ;;  %3638 = vst [vmem:[#allocation2 + $0x1a8] sm:$0xff] %v3606_v56  ;;  %v7792_v62 = vadd.f32 %v7791_v27, %v7790_v6  ;;  %v8223_v45 = vpop.eup %8222  ;;  %v5177_v28 = vunpack.c.l.bf16 %v12142_v60  ;;  %v5178_v49 = vunpack.c.h.bf16 %v12142_v60  ;;  %v7793_v26 = vpop.f32.mrf.mxu0  ;;  %v13788_v27 = vld [vmem:[#allocation193_spill] sm:$0xff] }
 0x615   : > { %13781 = vst [vmem:[#allocation48_spill] sm:$0xff] %v12150_v24  ;;  %v3607_v17 = vadd.f32 %v7783_v0, %v3158_v18  ;;  %v3608_v31 = vadd.f32 %v7786_v63, %v3159_v22  ;;  %v8225_v9 = vpop.eup %8224  ;;  %vm13783_vm0 = vcmp.ne.s16.totalorder %v13782_v32, 0  ;;  %v3609_v61 = vadd.f32 %v7789_v33, %v3160_v42  ;;  %v13785_v0 = vld [vmem:[#allocation196_spill] sm:$0xff] }
 0x616   : > { %v12156_v35 = vsel %vm13783_vm0, %v8223_v45, 0  ;;  %5261 = vadd.xlane.f32.xlu0 %v5260_v43  ;;  %v3610_v53 = vadd.f32 %v7792_v62, %v3161_v47  ;;  %v5181_v14 = vunpack.c.l.bf16 %v12150_v24  ;;  %v5182_v39 = vunpack.c.h.bf16 %v12150_v24  ;;  %v7794_v12 = vpop.f32.mrf.mxu0 }
 0x617   : > { %13784 = vst [vmem:[#allocation49_spill] sm:$0xff] %v12156_v35  ;;  %5264 = vadd.xlane.f32.xlu1 %v5263_v55  ;;  %v5183_v56 = vunpack.c.l.bf16 %v12156_v35  ;;  %v5184_v6 = vunpack.c.h.bf16 %v12156_v35  ;;  %3639 = vst [vmem:[#allocation2 + $0x1b8] sm:$0xff] %v3607_v17  ;;  %v5266_v18 = vadd.f32 %v5178_v49, %v5177_v28  ;;  %v5269_v22 = vadd.f32 %v5180_v58, %v5179_v3  ;;  %v3163_v3 = vld [vmem:[#allocation2 + $0x30] sm:$0xff] }
 0x618   : > { %3640 = vst [vmem:[#allocation2 + $0x28] sm:$0xff] %v3608_v31  ;;  %3641 = vst [vmem:[#allocation2 + $0x1e8] sm:$0xff] %v3609_v61  ;;  %vm13786_vm2 = vcmp.ne.s16.totalorder %v13785_v0, 0  ;;  %v7795_v55 = vadd.f32 %v7794_v12, %v7793_v26  ;;  %vm13789_vm4 = vcmp.ne.s16.totalorder %v13788_v27, 0  ;;  %v7796_v40 = vpop.f32.mrf.mxu0  ;;  %v5272_v62 = vadd.f32 %v5182_v39, %v5181_v14  ;;  %v13791_v31 = vld [vmem:[#allocation197_spill] sm:$0xff] }
 0x619   : > { %v12164_v63 = vsel %vm13786_vm2, %v8221_v52, 0  ;;  %3642 = vst [vmem:[#allocation2 + $0xf8] sm:$0xff] %v3610_v53  ;;  %v8227_v42 = vpop.eup %8226  ;;  %v12168_v43 = vsel %vm13789_vm4, %v8225_v9, 0  ;;  %v5275_v33 = vadd.f32 %v5184_v6, %v5183_v56  ;;  %vm13792_vm12 = vcmp.ne.s16.totalorder %v13791_v31, 0  ;;  %v3165_v31 = vld [vmem:[#allocation2] sm:$0xff] }
 0x61a   : > { %13787 = vst [vmem:[#allocation50_spill] sm:$0xff] %v12164_v63  ;;  %13790 = vst [vmem:[#allocation51_spill] sm:$0xff] %v12168_v43  ;;  %5267 = vadd.xlane.f32.xlu0 %v5266_v18  ;;  %v3611_v47 = vadd.f32 %v7795_v55, %v3162_v4  ;;  %v5187_v45 = vunpack.c.l.bf16 %v12164_v63  ;;  %v7797_v58 = vpop.f32.mrf.mxu0  ;;  %v5185_v52 = vunpack.c.l.bf16 %v12168_v43  ;;  %v5186_v28 = vunpack.c.h.bf16 %v12168_v43 }
 0x61b   : > { %5270 = vadd.xlane.f32.xlu1 %v5269_v22  ;;  %v5188_v49 = vunpack.c.h.bf16 %v12164_v63  ;;  %v7798_v17 = vadd.f32 %v7797_v58, %v7796_v40  ;;  %v12176_v9 = vsel %vm13792_vm12, %v8227_v42, 0  ;;  %v3164_v42 = vld [vmem:[#allocation2 + $0x1e0] sm:$0xff] }
 0x61c   : > { %3643 = vst [vmem:[#allocation2 + $0x160] sm:$0xff] %v3611_v47  ;;  %13793 = vst [vmem:[#allocation52_spill] sm:$0xff] %v12176_v9  ;;  %v5278_v61 = vadd.f32 %v5186_v28, %v5185_v52  ;;  %v5189_v56 = vunpack.c.l.bf16 %v12176_v9  ;;  %v5190_v6 = vunpack.c.h.bf16 %v12176_v9  ;;  %v13794_v40 = vld [vmem:[#allocation107_spill] sm:$0xff] }
 0x61d   : > { %v3612_v32 = vadd.f32 %v7798_v17, %v3163_v3  ;;  %v5281_v26 = vadd.f32 %v5188_v49, %v5187_v45  ;;  %v13797_v58 = vld [vmem:[#allocation119_spill] sm:$0xff] }
 0x61e   : > { %5273 = vadd.xlane.f32.xlu0 %v5272_v62  ;;  %v5284_v53 = vadd.f32 %v5190_v6, %v5189_v56  ;;  %v13798_v52 = vld [vmem:[#allocation127_spill] sm:$0xff]  ;;  %v13800_v56 = vld [vmem:[#allocation114_spill] sm:$0xff] }
 0x61f   : > { %5276 = vadd.xlane.f32.xlu1 %v5275_v33  ;;  %3644 = vst [vmem:[#allocation2 + $0x30] sm:$0xff] %v3612_v32  ;;  %v13795_v33 = vld [vmem:[#allocation115_spill] sm:$0xff]  ;;  %v13799_v28 = vsub.f32 %v13797_v58, %v13798_v52  ;;  %v13801_v6 = vld [vmem:[#allocation122_spill] sm:$0xff] }
 0x620   : > { %v13796_v47 = vsub.f32 %v13794_v40, %v13795_v33  ;;  %v13806_v40 = vld [vmem:[#allocation73_spill] sm:$0xff] }
 0x621   : > { %v4998_v49 = vmul.f32 1.442695, %v13799_v28  ;;  %v13807_v33 = vld [vmem:[#allocation81_spill] sm:$0xff]  ;;  %v13809_v28 = vld [vmem:[#allocation123_spill] sm:$0xff] }
 0x622   : > { %5279 = vadd.xlane.f32.xlu0 %v5278_v61  ;;  %v5002_v62 = vmul.f32 1.442695, %v13796_v47  ;;  %v13808_v47 = vsub.f32 %v13806_v40, %v13807_v33 }
 0x623   : > { %5282 = vadd.xlane.f32.xlu1 %v5281_v26 }
 0x624   : > { %8228 = vpow2.f32 %v5002_v62  ;;  %v5006_v62 = vmul.f32 1.442695, %v13808_v47  ;;  %v13818_v47 = vld [vmem:[#allocation86_spill] sm:$0xff] }
 0x625   : > { %8230 = vpow2.f32 %v4998_v49  ;;  %v13810_v49 = vld [vmem:[#allocation71_spill] sm:$0xff] }
 0x626   : > { %5285 = vadd.xlane.f32.xlu0 %v5284_v53  ;;  %v13802_v53 = vsub.f32 %v13800_v56, %v13801_v6 }
 0x62c   : > { %v5479_v14 = vpop.xlane.xlu1 %5478 }
 0x62d   : > { %v5480_v39 = vrot.slane %v5479_v14, 4 }
 0x62f   : > { %v5481_v4 = vmax.f32 %v5479_v14, %v5480_v39  ;;  %v5000_v14 = vmul.f32 1.442695, %v13802_v53 }
 0x631   : > { %v5482_v12 = vrot.slane %v5481_v4, 2  ;;  %8232 = vpow2.f32 %v5000_v14  ;;  %v12201_v53 = vpop.eup %8228  ;;  %v5065_v14 = vld [vmem:[#allocation3 + $0x110] sm:$0xff] }
 0x633   : > { %v5483_v18 = vmax.f32 %v5481_v4, %v5482_v12  ;;  %v3166_v4 = vld [vmem:[#allocation2 + $0xf0] sm:$0xff] }
 0x635   : > { %v5484_v22 = vrot.slane %v5483_v18, 1 }
 0x637   : > { %v5485_v0 = vmax.f32 %v5483_v18, %v5484_v22  ;;  %v13803_v22 = vld [vmem:[#allocation118_spill] sm:$0xff] }
 0x639   : > { %7925 = vpush %v5485_v0  ;;  %v13804_v0 = vld [vmem:[#allocation125_spill] sm:$0xff] }
 0x646   : > { %v7799_v55 = vpop.f32.mrf.mxu0 }
 0x648   : > { %v7800_v27 = vpop.f32.mrf.mxu0 }
 0x649   : > { %v7801_v45 = vadd.f32 %v7800_v27, %v7799_v55  ;;  %v13805_v55 = vsub.f32 %v13803_v22, %v13804_v0  ;;  %v12206_v22 = vpop.eup %8230  ;;  %v5063_v0 = vld [vmem:[#allocation3 + $0x100] sm:$0xff] }
 0x64a   : > { %v7802_v3 = vpop.f32.mrf.mxu0  ;;  %v5095_v40 = vmul.f32 %v12206_v22, %v5063_v0  ;;  %v12210_v33 = vpop.eup %8232  ;;  %v5066_v0 = vld [vmem:[#allocation3 + $0x118] sm:$0xff] }
 0x64b   : > { %v3613_v17 = vadd.f32 %v7801_v45, %v3164_v42  ;;  %v5004_v42 = vmul.f32 1.442695, %v13805_v55  ;;  %v5097_v55 = vmul.f32 %v12201_v53, %v5065_v14  ;;  %v13825_v14 = vld [vmem:[#allocation89_spill] sm:$0xff] }
 0x64c   : > { %v7803_v32 = vpop.f32.mrf.mxu0 }
 0x64d   : > { %3645 = vst [vmem:[#allocation2 + $0x1e0] sm:$0xff] %v3613_v17  ;;  %v7804_v61 = vadd.f32 %v7803_v32, %v7802_v3  ;;  %v3167_v3 = vld [vmem:[#allocation2 + $0x8] sm:$0xff]  ;;  %8234 = vpow2.f32 %v5004_v42  ;;  %v13811_v17 = vsub.f32 %v13809_v28, %v13810_v49  ;;  %v13812_v32 = vld [vmem:[#allocation70_spill] sm:$0xff] }
 0x64e   : > { %v7805_v26 = vpop.f32.mrf.mxu0  ;;  %8236 = vpow2.f32 %v5006_v62  ;;  %v13819_v62 = vld [vmem:[#allocation97_spill] sm:$0xff]  ;;  %v13821_v28 = vld [vmem:[#allocation96_spill] sm:$0xff]  ;;  %v13822_v49 = vld [vmem:[#allocation94_spill] sm:$0xff] }
 0x64f   : > { %v3614_v39 = vadd.f32 %v7804_v61, %v3165_v31  ;;  %v5010_v31 = vmul.f32 1.442695, %v13811_v17  ;;  %v13813_v61 = vld [vmem:[#allocation78_spill] sm:$0xff]  ;;  %v13823_v17 = vsub.f32 %v13821_v28, %v13822_v49 }
 0x650   : > { %v7806_v12 = vpop.f32.mrf.mxu0 }
 0x651   : > { %3646 = vst [vmem:[#allocation2] sm:$0xff] %v3614_v39  ;;  %v7807_v18 = vadd.f32 %v7806_v12, %v7805_v26  ;;  %v13814_v26 = vsub.f32 %v13812_v32, %v13813_v61  ;;  %8238 = vpow2.f32 %v5010_v31  ;;  %v13815_v39 = vld [vmem:[#allocation72_spill] sm:$0xff]  ;;  %v5016_v31 = vmul.f32 1.442695, %v13823_v17 }
 0x652   : > { %v7808_v27 = vpop.f32.mrf.mxu0 }
 0x653   : > { %v3615_v45 = vadd.f32 %v7807_v18, %v3166_v4  ;;  %v5008_v56 = vmul.f32 1.442695, %v13814_v26  ;;  %v13816_v4 = vld [vmem:[#allocation80_spill] sm:$0xff] }
 0x654   : > { %v7809_v58 = vpop.f32.mrf.mxu0  ;;  %v13817_v12 = vsub.f32 %v13815_v39, %v13816_v4 }
 0x655   : > { %3647 = vst [vmem:[#allocation2 + $0xf0] sm:$0xff] %v3615_v45  ;;  %v7810_v52 = vadd.f32 %v7809_v58, %v7808_v27  ;;  %8240 = vpow2.f32 %v5008_v56  ;;  %v13820_v45 = vsub.f32 %v13818_v47, %v13819_v62 }
 0x656   : > { %v5012_v18 = vmul.f32 1.442695, %v13817_v12 }
 0x657   : > { %v3616_v6 = vadd.f32 %v7810_v52, %v3167_v3  ;;  %v5014_v3 = vmul.f32 1.442695, %v13820_v45  ;;  %v5064_v52 = vld [vmem:[#allocation3 + $0x108] sm:$0xff] }
 0x658   : > { %8242 = vpow2.f32 %v5012_v18  ;;  %v5096_v26 = vmul.f32 %v12210_v33, %v5064_v52  ;;  %v5067_v18 = vld [vmem:[#allocation3 + $0x120] sm:$0xff] }
 0x659   : > { %3648 = vst [vmem:[#allocation2 + $0x8] sm:$0xff] %v3616_v6  ;;  %v13824_v6 = vld [vmem:[#allocation79_spill] sm:$0xff]  ;;  %8244 = vpow2.f32 %v5014_v3  ;;  %v13830_v3 = vld [vmem:[#allocation112_spill] sm:$0xff] }
 0x65a   : > { %v12219_v61 = vpop.eup %8234  ;;  %v13826_v39 = vsub.f32 %v13824_v6, %v13825_v14  ;;  %8246 = vpow2.f32 %v5016_v31  ;;  %v13831_v28 = vsub.f32 %v11575_v10, %v13830_v3  ;;  %v5069_v6 = vld [vmem:[#allocation3 + $0x130] sm:$0xff]  ;;  %v5068_v31 = vld [vmem:[#allocation3 + $0x128] sm:$0xff] }
 0x65b   : > { %v12223_v56 = vpop.eup %8236  ;;  %v13836_v3 = vld [vmem:[#allocation100_spill] sm:$0xff] }
 0x65c   : > { %v5018_v4 = vmul.f32 1.442695, %v13826_v39  ;;  %v5099_v45 = vmul.f32 %v12223_v56, %v5067_v18  ;;  %v5022_v49 = vmul.f32 1.442695, %v13831_v28 }
 0x65e   : > { %v12231_v62 = vpop.eup %8238  ;;  %8248 = vpow2.f32 %v5018_v4 }
 0x65f   : > { %v5101_v39 = vmul.f32 %v12231_v62, %v5069_v6 }
 0x662   : > { %v12236_v52 = vpop.eup %8240 }
 0x663   : > { %v5100_v10 = vmul.f32 %v12236_v52, %v5068_v31  ;;  %v5071_v31 = vld [vmem:[#allocation3 + $0x140] sm:$0xff] }
 0x664   : > { %v5199_v42 = vpop.xlane.xlu1 %5198 }
 0x665   : > { %v5289_v27 = vadd.f32 %v5199_v42, %v5097_v55  ;;  %v13827_v55 = vld [vmem:[#allocation88_spill] sm:$0xff]  ;;  %v13828_v42 = vld [vmem:[#allocation87_spill] sm:$0xff]  ;;  %v12248_v4 = vpop.eup %8242 }
 0x666   : > { %v5193_v58 = vpop.xlane.xlu0 %5192  ;;  %v12259_v6 = vpop.eup %8244 }
 0x667   : > { %5321 = vst.msk [vmem:[#allocation3 + $0x110] sm:$0xff] %vm2707_vm5, %v5289_v27  ;;  %v5287_v32 = vadd.f32 %v5193_v58, %v5095_v40  ;;  %v13829_v27 = vsub.f32 %v13827_v55, %v13828_v42  ;;  %v5098_v58 = vmul.f32 %v12219_v61, %v5066_v0  ;;  %v5070_v0 = vld [vmem:[#allocation3 + $0x138] sm:$0xff]  ;;  %v13832_v55 = vld [vmem:[#allocation105_spill] sm:$0xff] }
 0x668   : > { %v13833_v42 = vld [vmem:[#allocation113_spill] sm:$0xff] }
 0x669   : > { %5319 = vst.msk [vmem:[#allocation3 + $0x100] sm:$0xff] %vm2707_vm5, %v5287_v32  ;;  %v5020_v40 = vmul.f32 1.442695, %v13829_v27  ;;  %v13834_v27 = vsub.f32 %v13832_v55, %v13833_v42  ;;  %v13841_v42 = vld [vmem:[#allocation116_spill] sm:$0xff] }
 0x66a   : > { %v5196_v12 = vpop.xlane.xlu0 %5195  ;;  %s12241_s29 = spop %7925 }
 0x66b   : > { %v5288_v47 = vadd.f32 %v5196_v12, %v5096_v26  ;;  %8250 = vpow2.f32 %v5020_v40  ;;  %p5487_p6 = scmp.gt.f32.partialorder %s12241_s29, 0.0  ;;  %v5024_v40 = vmul.f32 1.442695, %v13834_v27  ;;  %v13842_v27 = vld [vmem:[#allocation117_spill] sm:$0xff] }
 0x66c   : > { %8252 = vpow2.f32 %v5022_v49 }
 0x66d   : > { %5320 = vst.msk [vmem:[#allocation3 + $0x108] sm:$0xff] %vm2707_vm5, %v5288_v47  ;;  %8254 = vpow2.f32 %v5024_v40 }
 0x66e   : > { %v5202_v32 = vpop.xlane.xlu0 %5201 }
 0x66f   : > { %v5205_v17 = vpop.xlane.xlu1 %5204  ;;  %v5290_v14 = vadd.f32 %v5202_v32, %v5098_v58  ;;  %v13835_v58 = vld [vmem:[#allocation95_spill] sm:$0xff]  ;;  %v5102_v32 = vmul.f32 %v12248_v4, %v5070_v0 }
 0x670   : > { %v5291_v26 = vadd.f32 %v5205_v17, %v5099_v45  ;;  %v13837_v28 = vsub.f32 %v13835_v58, %v13836_v3  ;;  %v5073_v3 = vld [vmem:[#allocation3 + $0x150] sm:$0xff] }
 0x671   : > { %5322 = vst.msk [vmem:[#allocation3 + $0x118] sm:$0xff] %vm2707_vm5, %v5290_v14  ;;  %v12261_v14 = vpop.eup %8246 }
 0x672   : > { %5323 = vst.msk [vmem:[#allocation3 + $0x120] sm:$0xff] %vm2707_vm5, %v5291_v26  ;;  %v5208_v18 = vpop.xlane.xlu0 %5207  ;;  %v5026_v17 = vmul.f32 1.442695, %v13837_v28  ;;  %v12271_v58 = vpop.eup %8248 }
 0x673   : > { %v5211_v12 = vpop.xlane.xlu1 %5210  ;;  %v5292_v45 = vadd.f32 %v5208_v18, %v5100_v10  ;;  %v13838_v10 = vld [vmem:[#allocation104_spill] sm:$0xff] }
 0x674   : > { %v5293_v47 = vadd.f32 %v5211_v12, %v5101_v39  ;;  %v5072_v39 = vld [vmem:[#allocation3 + $0x148] sm:$0xff]  ;;  %8256 = vpow2.f32 %v5026_v17  ;;  %v13839_v12 = vld [vmem:[#allocation101_spill] sm:$0xff] }
 0x675   : > { %5324 = vst.msk [vmem:[#allocation3 + $0x128] sm:$0xff] %vm2707_vm5, %v5292_v45  ;;  %v13840_v18 = vsub.f32 %v13838_v10, %v13839_v12  ;;  %v5103_v45 = vmul.f32 %v12259_v6, %v5071_v31  ;;  %v5104_v28 = vmul.f32 %v12261_v14, %v5072_v39  ;;  %v5074_v10 = vld [vmem:[#allocation3 + $0x158] sm:$0xff]  ;;  %v13847_v31 = vsub.f32 %v11629_v44, %v11641_v30 }
 0x676   : > { %5325 = vst.msk [vmem:[#allocation3 + $0x130] sm:$0xff] %vm2707_vm5, %v5293_v47  ;;  %v5214_v49 = vpop.xlane.xlu0 %5213  ;;  %v13843_v47 = vsub.f32 %v13841_v42, %v13842_v27  ;;  %v13844_v12 = vld [vmem:[#allocation110_spill] sm:$0xff]  ;;  %v5105_v39 = vmul.f32 %v12271_v58, %v5073_v3  ;;  %v13851_v3 = vsub.f32 %v11683_v15, %v11707_v36  ;;  %v13855_v15 = vld [vmem:[#allocation124_spill] sm:$0xff] }
 0x677   : > { %v5294_v26 = vadd.f32 %v5214_v49, %v5102_v32  ;;  %v5028_v55 = vmul.f32 1.442695, %v13840_v18  ;;  %v5032_v27 = vmul.f32 1.442695, %v13847_v31 }
 0x678   : > { %v5030_v0 = vmul.f32 1.442695, %v13843_v47  ;;  %v12274_v32 = vpop.eup %8250 }
 0x679   : > { %5326 = vst.msk [vmem:[#allocation3 + $0x138] sm:$0xff] %vm2707_vm5, %v5294_v26  ;;  %8258 = vpow2.f32 %v5028_v55  ;;  %v13845_v26 = vld [vmem:[#allocation120_spill] sm:$0xff]  ;;  %v12284_v47 = vpop.eup %8252  ;;  %v5075_v55 = vld [vmem:[#allocation3 + $0x160] sm:$0xff] }
 0x67a   : > { %v5217_v40 = vpop.xlane.xlu1 %5216  ;;  %v5220_v49 = vpop.xlane.xlu0 %5219  ;;  %v13846_v18 = vsub.f32 %v13844_v12, %v13845_v26  ;;  %8260 = vpow2.f32 %v5030_v0  ;;  %v13848_v0 = vld [vmem:[#allocation111_spill] sm:$0xff] }
 0x67b   : > { %v5295_v17 = vadd.f32 %v5217_v40, %v5103_v45  ;;  %v5296_v42 = vadd.f32 %v5220_v49, %v5104_v28  ;;  %v5106_v40 = vmul.f32 %v12274_v32, %v5074_v10  ;;  %v13849_v28 = vld [vmem:[#allocation121_spill] sm:$0xff]  ;;  %v12297_v10 = vpop.eup %8254 }
 0x67c   : > { %v5034_v63 = vmul.f32 1.442695, %v13846_v18  ;;  %v13850_v49 = vsub.f32 %v13848_v0, %v13849_v28  ;;  %v13853_v0 = vld [vmem:[#allocation126_spill] sm:$0xff]  ;;  %v13856_v28 = vld [vmem:[#allocation20_spill] sm:$0xff] }
 0x67d   : > { %5327 = vst.msk [vmem:[#allocation3 + $0x140] sm:$0xff] %vm2707_vm5, %v5295_v17  ;;  %5328 = vst.msk [vmem:[#allocation3 + $0x148] sm:$0xff] %vm2707_vm5, %v5296_v42  ;;  %v5038_v17 = vmul.f32 1.442695, %v13851_v3  ;;  %v5107_v42 = vmul.f32 %v12284_v47, %v5075_v55  ;;  %v5077_v55 = vld [vmem:[#allocation3 + $0x170] sm:$0xff] }
 0x67e   : > { %v5223_v45 = vpop.xlane.xlu1 %5222  ;;  %8262 = vpow2.f32 %v5034_v63  ;;  %v5036_v44 = vmul.f32 1.442695, %v13850_v49 }
 0x67f   : > { %v5297_v12 = vadd.f32 %v5223_v45, %v5105_v39  ;;  %v5226_v26 = vpop.xlane.xlu0 %5225  ;;  %8264 = vpow2.f32 %v5032_v27  ;;  %v5076_v39 = vld [vmem:[#allocation3 + $0x168] sm:$0xff] }
 0x680   : > { %v5298_v18 = vadd.f32 %v5226_v26, %v5106_v40  ;;  %8266 = vpow2.f32 %v5036_v44  ;;  %v13852_v45 = vld [vmem:[#allocation128_spill] sm:$0xff]  ;;  %v13859_v44 = vld [vmem:[#allocation19_spill] sm:$0xff] }
 0x681   : > { %5329 = vst.msk [vmem:[#allocation3 + $0x150] sm:$0xff] %vm2707_vm5, %v5297_v12  ;;  %v13854_v40 = vsub.f32 %v13852_v45, %v13853_v0  ;;  %v12302_v26 = vpop.eup %8256  ;;  %8268 = vpow2.f32 %v5038_v17  ;;  %v13857_v12 = vsub.f32 %v13855_v15, %v13856_v28  ;;  %v13861_v17 = vsub.f32 %v11749_v38, %v11773_v16 }
 0x682   : > { %5330 = vst.msk [vmem:[#allocation3 + $0x158] sm:$0xff] %vm2707_vm5, %v5298_v18  ;;  %v5108_v18 = vmul.f32 %v12297_v10, %v5076_v39  ;;  %v5109_v45 = vmul.f32 %v12302_v26, %v5077_v55  ;;  %v13862_v55 = vsub.f32 %v11716_v51, %v11741_v20  ;;  %v13863_v38 = vsub.f32 %v11759_v5, %v11779_v1  ;;  %v5080_v51 = vld [vmem:[#allocation3 + $0x188] sm:$0xff]  ;;  %v13867_v5 = vld [vmem:[#allocation25_spill] sm:$0xff] }
 0x683   : > { %v5042_v27 = vmul.f32 1.442695, %v13854_v40  ;;  %v5040_v49 = vmul.f32 1.442695, %v13857_v12  ;;  %v5046_v15 = vmul.f32 1.442695, %v13861_v17 }
 0x684   : > { %v5229_v31 = vpop.xlane.xlu1 %5228  ;;  %v5078_v12 = vld [vmem:[#allocation3 + $0x178] sm:$0xff] }
 0x685   : > { %v5299_v63 = vadd.f32 %v5229_v31, %v5107_v42  ;;  %8270 = vpow2.f32 %v5042_v27  ;;  %v13858_v42 = vld [vmem:[#allocation129_spill] sm:$0xff]  ;;  %v5079_v27 = vld [vmem:[#allocation3 + $0x180] sm:$0xff] }
 0x686   : > { %v13860_v31 = vsub.f32 %v13858_v42, %v13859_v44  ;;  %v12313_v40 = vpop.eup %8258  ;;  %8272 = vpow2.f32 %v5040_v49 }
 0x687   : > { %5331 = vst.msk [vmem:[#allocation3 + $0x160] sm:$0xff] %vm2707_vm5, %v5299_v63  ;;  %v12318_v28 = vpop.eup %8260  ;;  %v5110_v44 = vmul.f32 %v12313_v40, %v5078_v12 }
 0x688   : > { %v5232_v3 = vpop.xlane.xlu0 %5231  ;;  %v5044_v9 = vmul.f32 1.442695, %v13860_v31  ;;  %v5111_v42 = vmul.f32 %v12318_v28, %v5079_v27  ;;  %v13868_v27 = vld [vmem:[#allocation29_spill] sm:$0xff] }
 0x689   : > { %v5300_v0 = vadd.f32 %v5232_v3, %v5108_v18  ;;  %v5050_v18 = vmul.f32 1.442695, %v13862_v55  ;;  %v5048_v3 = vmul.f32 1.442695, %v13863_v38  ;;  %v13865_v55 = vld [vmem:[#allocation22_spill] sm:$0xff]  ;;  %v13869_v38 = vsub.f32 %v13867_v5, %v13868_v27 }
 0x68a   : > { %8274 = vpow2.f32 %v5044_v9  ;;  %v13871_v5 = vld [vmem:[#allocation26_spill] sm:$0xff] }
 0x68b   : > { %v5235_v63 = vpop.xlane.xlu1 %5234  ;;  %5332 = vst.msk [vmem:[#allocation3 + $0x168] sm:$0xff] %vm2707_vm5, %v5300_v0  ;;  %v12325_v49 = vpop.eup %8262  ;;  %8276 = vpow2.f32 %v5046_v15  ;;  %v5081_v0 = vld [vmem:[#allocation3 + $0x190] sm:$0xff]  ;;  %v5054_v12 = vmul.f32 1.442695, %v13869_v38 }
 0x68c   : > { %v5301_v39 = vadd.f32 %v5235_v63, %v5109_v45  ;;  %v12332_v31 = vpop.eup %8264  ;;  %8278 = vpow2.f32 %v5050_v18  ;;  %v5113_v34 = vmul.f32 %v12325_v49, %v5081_v0  ;;  %v13874_v0 = vld [vmem:[#allocation30_spill] sm:$0xff] }
 0x68d   : > { %v12337_v43 = vpop.eup %8266  ;;  %8280 = vpow2.f32 %v5048_v3 }
 0x68e   : > { %5333 = vst.msk [vmem:[#allocation3 + $0x170] sm:$0xff] %vm2707_vm5, %v5301_v39  ;;  %v13864_v39 = vld [vmem:[#allocation21_spill] sm:$0xff]  ;;  %v12346_v18 = vpop.eup %8268 }
 0x68f   : > { %v5241_v9 = vpop.xlane.xlu1 %5240  ;;  %v5238_v45 = vpop.xlane.xlu0 %5237  ;;  %v13866_v15 = vsub.f32 %v13864_v39, %v13865_v55  ;;  %v5082_v39 = vld [vmem:[#allocation3 + $0x198] sm:$0xff] }
 0x690   : > { %v5303_v17 = vadd.f32 %v5241_v9, %v5111_v42  ;;  %v5302_v63 = vadd.f32 %v5238_v45, %v5110_v44  ;;  %v5112_v42 = vmul.f32 %v12332_v31, %v5080_v51  ;;  %v5083_v45 = vld [vmem:[#allocation3 + $0x1a0] sm:$0xff] }
 0x691   : > { %v5052_v35 = vmul.f32 1.442695, %v13866_v15  ;;  %v13870_v15 = vld [vmem:[#allocation23_spill] sm:$0xff]  ;;  %v5115_v60 = vmul.f32 %v12346_v18, %v5083_v45 }
 0x692   : > { %5335 = vst.msk [vmem:[#allocation3 + $0x180] sm:$0xff] %vm2707_vm5, %v5303_v17  ;;  %5334 = vst.msk [vmem:[#allocation3 + $0x178] sm:$0xff] %vm2707_vm5, %v5302_v63  ;;  %v13872_v27 = vsub.f32 %v13870_v15, %v13871_v5  ;;  %v12351_v17 = vpop.eup %8270  ;;  %v13873_v63 = vld [vmem:[#allocation27_spill] sm:$0xff]  ;;  %v5084_v15 = vld [vmem:[#allocation3 + $0x1a8] sm:$0xff] }
 0x693   : > { %v5247_v44 = vpop.xlane.xlu1 %5246  ;;  %v5244_v9 = vpop.xlane.xlu0 %5243  ;;  %8282 = vpow2.f32 %v5052_v35  ;;  %v13875_v24 = vsub.f32 %v13873_v63, %v13874_v0  ;;  %v13877_v63 = vld [vmem:[#allocation28_spill] sm:$0xff] }
 0x694   : > { %v5305_v55 = vadd.f32 %v5247_v44, %v5113_v34  ;;  %v5304_v3 = vadd.f32 %v5244_v9, %v5112_v42  ;;  %v5058_v38 = vmul.f32 1.442695, %v13872_v27  ;;  %8284 = vpow2.f32 %v5054_v12  ;;  %v12360_v35 = vpop.eup %8272  ;;  %v5085_v9 = vld [vmem:[#allocation3 + $0x1b0] sm:$0xff] }
 0x695   : > { %v5056_v51 = vmul.f32 1.442695, %v13875_v24  ;;  %v5114_v34 = vmul.f32 %v12337_v43, %v5082_v39  ;;  %v13876_v24 = vld [vmem:[#allocation24_spill] sm:$0xff]  ;;  %v5117_v45 = vmul.f32 %v12351_v17, %v5085_v9  ;;  %v5116_v39 = vmul.f32 %v12360_v35, %v5084_v15 }
 0x696   : > { %5337 = vst.msk [vmem:[#allocation3 + $0x190] sm:$0xff] %vm2707_vm5, %v5305_v55  ;;  %5336 = vst.msk [vmem:[#allocation3 + $0x188] sm:$0xff] %vm2707_vm5, %v5304_v3  ;;  %8286 = vpow2.f32 %v5058_v38  ;;  %v13878_v55 = vsub.f32 %v13876_v24, %v13877_v63  ;;  %v5087_v38 = vld [vmem:[#allocation3 + $0x1c0] sm:$0xff]  ;;  %v5089_v24 = vld [vmem:[#allocation3 + $0x1d0] sm:$0xff] }
 0x697   : > { %v5250_v44 = vpop.xlane.xlu0 %5249  ;;  %v12362_v27 = vpop.eup %8274  ;;  %8288 = vpow2.f32 %v5056_v51  ;;  %v5088_v63 = vld [vmem:[#allocation3 + $0x1c8] sm:$0xff] }
 0x698   : > { %v5253_v42 = vpop.xlane.xlu1 %5252  ;;  %v5306_v12 = vadd.f32 %v5250_v44, %v5114_v34  ;;  %v5060_v0 = vmul.f32 1.442695, %v13878_v55  ;;  %v12371_v3 = vpop.eup %8276 }
 0x699   : > { %v5307_v5 = vadd.f32 %v5253_v42, %v5115_v60  ;;  %v5086_v42 = vld [vmem:[#allocation3 + $0x1b8] sm:$0xff]  ;;  %v12373_v41 = vpop.eup %8278  ;;  %v5119_v51 = vmul.f32 %v12371_v3, %v5087_v38 }
 0x69a   : > { %5338 = vst.msk [vmem:[#allocation3 + $0x198] sm:$0xff] %vm2707_vm5, %v5306_v12  ;;  %8290 = vpow2.f32 %v5060_v0  ;;  %v5118_v9 = vmul.f32 %v12362_v27, %v5086_v42  ;;  %v12379_v15 = vpop.eup %8280  ;;  %v5091_v42 = vld [vmem:[#allocation3 + $0x1e0] sm:$0xff] }
 0x69b   : > { %5339 = vst.msk [vmem:[#allocation3 + $0x1a0] sm:$0xff] %vm2707_vm5, %v5307_v5  ;;  %v5256_v34 = vpop.xlane.xlu0 %5255  ;;  %v5120_v0 = vmul.f32 %v12379_v15, %v5088_v63 }
 0x69c   : > { %v5259_v60 = vpop.xlane.xlu1 %5258  ;;  %v5308_v7 = vadd.f32 %v5256_v34, %v5116_v39 }
 0x69d   : > { %v5309_v44 = vadd.f32 %v5259_v60, %v5117_v45 }
 0x69e   : > { %5340 = vst.msk [vmem:[#allocation3 + $0x1a8] sm:$0xff] %vm2707_vm5, %v5308_v7  ;;  %v5121_v7 = vmul.f32 %v12373_v41, %v5089_v24 }
 0x69f   : > { %5341 = vst.msk [vmem:[#allocation3 + $0x1b0] sm:$0xff] %vm2707_vm5, %v5309_v44  ;;  %v5262_v12 = vpop.xlane.xlu0 %5261  ;;  %v5090_v44 = vld [vmem:[#allocation3 + $0x1d8] sm:$0xff] }
 0x6a0   : > { %v5265_v5 = vpop.xlane.xlu1 %5264  ;;  %v5310_v45 = vadd.f32 %v5262_v12, %v5118_v9  ;;  %v12381_v39 = vpop.eup %8282 }
 0x6a1   : > { %v5311_v55 = vadd.f32 %v5265_v5, %v5119_v51  ;;  %v12387_v60 = vpop.eup %8284  ;;  %v5122_v5 = vmul.f32 %v12381_v39, %v5090_v44 }
 0x6a2   : > { %5342 = vst.msk [vmem:[#allocation3 + $0x1b8] sm:$0xff] %vm2707_vm5, %v5310_v45  ;;  %v5123_v9 = vmul.f32 %v12387_v60, %v5091_v42  ;;  %v5092_v45 = vld [vmem:[#allocation3 + $0x1e8] sm:$0xff] }
 0x6a3   : > { %5343 = vst.msk [vmem:[#allocation3 + $0x1c0] sm:$0xff] %vm2707_vm5, %v5311_v55  ;;  %v5268_v38 = vpop.xlane.xlu0 %5267  ;;  %v8287_v51 = vpop.eup %8286  ;;  %v5093_v55 = vld [vmem:[#allocation3 + $0x1f0] sm:$0xff] }
 0x6a4   : > { %v5271_v34 = vpop.xlane.xlu1 %5270  ;;  %v5312_v59 = vadd.f32 %v5268_v38, %v5120_v0  ;;  %v8289_v12 = vpop.eup %8288  ;;  %v5094_v38 = vld [vmem:[#allocation3 + $0x1f8] sm:$0xff] }
 0x6a5   : > { %v5313_v54 = vadd.f32 %v5271_v34, %v5121_v7  ;;  %v5125_v7 = vmul.f32 %v8287_v51, %v5093_v55  ;;  %v5124_v0 = vmul.f32 %v8289_v12, %v5092_v45  ;;  %v5504_v55 = vld [vmem:[#allocation2 + $0x70] sm:$0xff] (%p5487_p6) }
 0x6a6   : > { %5344 = vst.msk [vmem:[#allocation3 + $0x1c8] sm:$0xff] %vm2707_vm5, %v5312_v59 }
 0x6a7   : > { %5345 = vst.msk [vmem:[#allocation3 + $0x1d0] sm:$0xff] %vm2707_vm5, %v5313_v54  ;;  %v5274_v63 = vpop.xlane.xlu0 %5273  ;;  %v8291_v54 = vpop.eup %8290 }
 0x6a8   : > { %v5277_v24 = vpop.xlane.xlu1 %5276  ;;  %v5314_v13 = vadd.f32 %v5274_v63, %v5122_v5  ;;  %v5126_v44 = vmul.f32 %v8291_v54, %v5094_v38  ;;  %v5505_v63 = vld [vmem:[#allocation2 + $0x90] sm:$0xff] (%p5487_p6) }
 0x6a9   : > { %v5315_v25 = vadd.f32 %v5277_v24, %v5123_v9 }
 0x6aa   : > { %5346 = vst.msk [vmem:[#allocation3 + $0x1d8] sm:$0xff] %vm2707_vm5, %v5314_v13 }
 0x6ab   : > { %5347 = vst.msk [vmem:[#allocation3 + $0x1e0] sm:$0xff] %vm2707_vm5, %v5315_v25  ;;  %v5280_v59 = vpop.xlane.xlu0 %5279  ;;  %v8698_v25 = vmov (%p5487_p6), 0  }
 0x6ac   : > { %v5283_v34 = vpop.xlane.xlu1 %5282  ;;  %v5316_v46 = vadd.f32 %v5280_v59, %v5124_v0  ;;  %8293 = vset.pattern.permute.xlu1 (%p5487_p6), %v8698_v25  ;;  %8292 = vset.pattern.permute.xlu0 (%p5487_p6), %v8698_v25  ;;  %v5506_v59 = vld [vmem:[#allocation2 + $0x1d8] sm:$0xff] (%p5487_p6)  ;;  %v5509_v25 = vld [vmem:[#allocation2 + $0x88] sm:$0xff] (%p5487_p6) }
 0x6ad   : > { %v5317_v42 = vadd.f32 %v5283_v34, %v5125_v7  ;;  %5536 = vperm.xlu1 (%p5487_p6), %8293, %v12201_v53   ;;  %5526 = vperm.xlu0 (%p5487_p6), %8292, %v12206_v22   ;;  %v5507_v34 = vld [vmem:[#allocation2 + $0xd0] sm:$0xff] (%p5487_p6) }
 0x6ae   : > { %5348 = vst.msk [vmem:[#allocation3 + $0x1e8] sm:$0xff] %vm2707_vm5, %v5316_v46  ;;  %5490 = sbr.rel (!%p5487_p6) target bundleno = 1896 (0x768), region = 75  ;;  %v5494_v46 = vld [vmem:[#allocation2 + $0x100] sm:$0xff] (%p5487_p6) }
 0x6af   : > { %5349 = vst.msk [vmem:[#allocation3 + $0x1f0] sm:$0xff] %vm2707_vm5, %v5317_v42  ;;  %v5286_v57 = vpop.xlane.xlu0 %5285 }
 0x6b0   : > { %v5318_v9 = vadd.f32 %v5286_v57, %v5126_v44  ;;  %v5492_v57 = vld [vmem:[#allocation2 + $0x148] sm:$0xff] (%p5487_p6) }
 0x6b1   : > { %5541 = vperm.xlu1 (%p5487_p6), %8293, %v12219_v61   ;;  %5531 = vperm.xlu0 (%p5487_p6), %8292, %v12210_v33   ;;  %v5495_v33 = vld [vmem:[#allocation2 + $0xc8] sm:$0xff] (%p5487_p6)  ;;  %v5493_v61 = vld [vmem:[#allocation2 + $0x1d0] sm:$0xff] (%p5487_p6) }
 0x6b2   : > { %5350 = vst.msk [vmem:[#allocation3 + $0x1f8] sm:$0xff] %vm2707_vm5, %v5318_v9 }
 0x6b5   : > { %5551 = vperm.xlu1 %8293, %v12236_v52   ;;  %5546 = vperm.xlu0 %8292, %v12223_v56  }
 0x6b9   : > { %5561 = vperm.xlu1 %8293, %v12248_v4   ;;  %5556 = vperm.xlu0 %8292, %v12231_v62  }
 0x6bd   : > { %5571 = vperm.xlu1 %8293, %v12261_v14   ;;  %5566 = vperm.xlu0 %8292, %v12259_v6   ;;  %v5496_v6 = vld [vmem:[#allocation2 + $0x40] sm:$0xff] }
 0x6c1   : > { %5581 = vperm.xlu1 %8293, %v12274_v32   ;;  %5576 = vperm.xlu0 %8292, %v12271_v58  }
 0x6c5   : > { %5591 = vperm.xlu1 %8293, %v12297_v10   ;;  %5586 = vperm.xlu0 %8292, %v12284_v47   ;;  %v5499_v10 = vld [vmem:[#allocation2 + $0x128] sm:$0xff] }
 0x6c9   : > { %5601 = vperm.xlu1 %8293, %v12313_v40   ;;  %5596 = vperm.xlu0 %8292, %v12302_v26   ;;  %v5498_v26 = vld [vmem:[#allocation2 + $0x20] sm:$0xff] }
 0x6cd   : > { %5611 = vperm.xlu1 %8293, %v12332_v31   ;;  %5606 = vperm.xlu0 %8292, %v12318_v28  }
 0x6d1   : > { %5621 = vperm.xlu1 %8293, %v12337_v43   ;;  %5616 = vperm.xlu0 %8292, %v12325_v49  }
 0x6d5   : > { %5631 = vperm.xlu1 %8293, %v12360_v35   ;;  %5626 = vperm.xlu0 %8292, %v12346_v18   ;;  %v5501_v18 = vld [vmem:[#allocation2 + $0x1f0] sm:$0xff] }
 0x6d9   : > { %5641 = vperm.xlu1 %8293, %v12362_v27   ;;  %5636 = vperm.xlu0 %8292, %v12351_v17   ;;  %v5500_v17 = vld [vmem:[#allocation2 + $0x1a0] sm:$0xff] }
 0x6dd   : > { %5651 = vperm.xlu1 %8293, %v12379_v15   ;;  %5646 = vperm.xlu0 %8292, %v12371_v3  }
 0x6e1   : > { %5661 = vperm.xlu1 %8293, %v12381_v39   ;;  %5656 = vperm.xlu0 %8292, %v12373_v41   ;;  %v5497_v41 = vld [vmem:[#allocation2 + $0x1f8] sm:$0xff] }
 0x6e2   : > { %v5503_v39 = vld [vmem:[#allocation2 + $0x78] sm:$0xff] }
 0x6e5   : > { %5671 = vperm.xlu1 %8293, %v8289_v12   ;;  %5666 = vperm.xlu0 %8292, %v12387_v60   ;;  %v5502_v60 = vld [vmem:[#allocation2 + $0xe8] sm:$0xff] }
 0x6e9   : > { %5681 = vperm.xlu1 %8293, %v8291_v54   ;;  %5676 = vperm.xlu0 %8292, %v8287_v51  }
 0x728   : > { %v5537_v13 = vpop.permute.xlu1 %5536  ;;  %v5527_v43 = vpop.permute.xlu0 %5526 }
 0x729   : > { %v5686_v53 = vmul.f32 %v5537_v13, %v5494_v46  ;;  %v5684_v22 = vmul.f32 %v5527_v43, %v5492_v57  ;;  %v5508_v46 = vld [vmem:[#allocation2 + $0xb8] sm:$0xff] }
 0x72b   : > { %5718 = vst [vmem:[#allocation2 + $0x100] sm:$0xff] %v5686_v53  ;;  %5716 = vst [vmem:[#allocation2 + $0x148] sm:$0xff] %v5684_v22  ;;  %v5511_v22 = vld [vmem:[#allocation2 + $0x1c8] sm:$0xff] }
 0x72c   : > { %v5542_v56 = vpop.permute.xlu1 %5541  ;;  %v5532_v62 = vpop.permute.xlu0 %5531 }
 0x72d   : > { %v5687_v52 = vmul.f32 %v5542_v56, %v5495_v33  ;;  %v5685_v4 = vmul.f32 %v5532_v62, %v5493_v61  ;;  %v5510_v33 = vld [vmem:[#allocation2 + $0xa8] sm:$0xff] }
 0x72f   : > { %5719 = vst [vmem:[#allocation2 + $0xc8] sm:$0xff] %v5687_v52  ;;  %5717 = vst [vmem:[#allocation2 + $0x1d0] sm:$0xff] %v5685_v4  ;;  %v5513_v4 = vld [vmem:[#allocation2 + $0x178] sm:$0xff] }
 0x730   : > { %v5552_v14 = vpop.permute.xlu1 %5551  ;;  %v5547_v58 = vpop.permute.xlu0 %5546 }
 0x731   : > { %v5689_v32 = vmul.f32 %v5552_v14, %v5497_v41  ;;  %v5688_v47 = vmul.f32 %v5547_v58, %v5496_v6  ;;  %v5512_v41 = vld [vmem:[#allocation2 + $0x170] sm:$0xff] }
 0x733   : > { %5721 = vst [vmem:[#allocation2 + $0x1f8] sm:$0xff] %v5689_v32  ;;  %5720 = vst [vmem:[#allocation2 + $0x40] sm:$0xff] %v5688_v47  ;;  %v5515_v47 = vld [vmem:[#allocation2 + $0x190] sm:$0xff] }
 0x734   : > { %v5562_v40 = vpop.permute.xlu1 %5561  ;;  %v5557_v28 = vpop.permute.xlu0 %5556 }
 0x735   : > { %v5691_v49 = vmul.f32 %v5562_v40, %v5499_v10  ;;  %v5690_v31 = vmul.f32 %v5557_v28, %v5498_v26  ;;  %v5514_v10 = vld [vmem:[#allocation2 + $0x68] sm:$0xff] }
 0x737   : > { %5723 = vst [vmem:[#allocation2 + $0x128] sm:$0xff] %v5691_v49  ;;  %5722 = vst [vmem:[#allocation2 + $0x20] sm:$0xff] %v5690_v31  ;;  %v5517_v31 = vld [vmem:[#allocation2 + $0x38] sm:$0xff] }
 0x738   : > { %v5572_v35 = vpop.permute.xlu1 %5571  ;;  %v5567_v27 = vpop.permute.xlu0 %5566 }
 0x739   : > { %v5693_v3 = vmul.f32 %v5572_v35, %v5501_v18  ;;  %v5692_v15 = vmul.f32 %v5567_v27, %v5500_v17  ;;  %v5516_v18 = vld [vmem:[#allocation2 + $0x198] sm:$0xff] }
 0x73b   : > { %5725 = vst [vmem:[#allocation2 + $0x1f0] sm:$0xff] %v5693_v3  ;;  %5724 = vst [vmem:[#allocation2 + $0x1a0] sm:$0xff] %v5692_v15  ;;  %v5519_v15 = vld [vmem:[#allocation2 + $0x1c0] sm:$0xff] }
 0x73c   : > { %v5582_v51 = vpop.permute.xlu1 %5581  ;;  %v5577_v5 = vpop.permute.xlu0 %5576 }
 0x73d   : > { %v5695_v12 = vmul.f32 %v5582_v51, %v5503_v39  ;;  %v5694_v24 = vmul.f32 %v5577_v5, %v5502_v60  ;;  %v5518_v39 = vld [vmem:[#allocation2 + $0xc0] sm:$0xff] }
 0x73f   : > { %5727 = vst [vmem:[#allocation2 + $0x78] sm:$0xff] %v5695_v12  ;;  %5726 = vst [vmem:[#allocation2 + $0xe8] sm:$0xff] %v5694_v24  ;;  %v5521_v24 = vld [vmem:[#allocation2 + $0x10] sm:$0xff] }
 0x740   : > { %v5592_v45 = vpop.permute.xlu1 %5591  ;;  %v5587_v7 = vpop.permute.xlu0 %5586 }
 0x741   : > { %v5697_v0 = vmul.f32 %v5592_v45, %v5505_v63  ;;  %v5696_v54 = vmul.f32 %v5587_v7, %v5504_v55  ;;  %v5520_v63 = vld [vmem:[#allocation2 + $0x158] sm:$0xff] }
 0x743   : > { %5729 = vst [vmem:[#allocation2 + $0x90] sm:$0xff] %v5697_v0  ;;  %5728 = vst [vmem:[#allocation2 + $0x70] sm:$0xff] %v5696_v54  ;;  %v5523_v54 = vld [vmem:[#allocation2 + $0xa0] sm:$0xff] }
 0x744   : > { %v5602_v38 = vpop.permute.xlu1 %5601  ;;  %v5597_v42 = vpop.permute.xlu0 %5596 }
 0x745   : > { %v5699_v44 = vmul.f32 %v5602_v38, %v5507_v34  ;;  %v5698_v9 = vmul.f32 %v5597_v42, %v5506_v59  ;;  %v5522_v34 = vld [vmem:[#allocation2 + $0x58] sm:$0xff] }
 0x747   : > { %5731 = vst [vmem:[#allocation2 + $0xd0] sm:$0xff] %v5699_v44  ;;  %5730 = vst [vmem:[#allocation2 + $0x1d8] sm:$0xff] %v5698_v9 }
 0x748   : > { %v5612_v57 = vpop.permute.xlu1 %5611  ;;  %v5607_v13 = vpop.permute.xlu0 %5606 }
 0x749   : > { %v5701_v43 = vmul.f32 %v5612_v57, %v5509_v25  ;;  %v5700_v53 = vmul.f32 %v5607_v13, %v5508_v46 }
 0x74b   : > { %5733 = vst [vmem:[#allocation2 + $0x88] sm:$0xff] %v5701_v43  ;;  %5732 = vst [vmem:[#allocation2 + $0xb8] sm:$0xff] %v5700_v53 }
 0x74c   : > { %v5622_v61 = vpop.permute.xlu1 %5621  ;;  %v5617_v56 = vpop.permute.xlu0 %5616 }
 0x74d   : > { %v5703_v62 = vmul.f32 %v5622_v61, %v5511_v22  ;;  %v5702_v52 = vmul.f32 %v5617_v56, %v5510_v33 }
 0x74f   : > { %5735 = vst [vmem:[#allocation2 + $0x1c8] sm:$0xff] %v5703_v62  ;;  %5734 = vst [vmem:[#allocation2 + $0xa8] sm:$0xff] %v5702_v52 }
 0x750   : > { %v5632_v6 = vpop.permute.xlu1 %5631  ;;  %v5627_v14 = vpop.permute.xlu0 %5626 }
 0x751   : > { %v5705_v58 = vmul.f32 %v5632_v6, %v5513_v4  ;;  %v5704_v32 = vmul.f32 %v5627_v14, %v5512_v41 }
 0x753   : > { %5737 = vst [vmem:[#allocation2 + $0x178] sm:$0xff] %v5705_v58  ;;  %5736 = vst [vmem:[#allocation2 + $0x170] sm:$0xff] %v5704_v32 }
 0x754   : > { %v5642_v26 = vpop.permute.xlu1 %5641  ;;  %v5637_v40 = vpop.permute.xlu0 %5636 }
 0x755   : > { %v5707_v28 = vmul.f32 %v5642_v26, %v5515_v47  ;;  %v5706_v49 = vmul.f32 %v5637_v40, %v5514_v10 }
 0x757   : > { %5739 = vst [vmem:[#allocation2 + $0x190] sm:$0xff] %v5707_v28  ;;  %5738 = vst [vmem:[#allocation2 + $0x68] sm:$0xff] %v5706_v49 }
 0x758   : > { %v5652_v17 = vpop.permute.xlu1 %5651  ;;  %v5647_v35 = vpop.permute.xlu0 %5646 }
 0x759   : > { %v5709_v27 = vmul.f32 %v5652_v17, %v5517_v31  ;;  %v5708_v3 = vmul.f32 %v5647_v35, %v5516_v18 }
 0x75b   : > { %5741 = vst [vmem:[#allocation2 + $0x38] sm:$0xff] %v5709_v27  ;;  %5740 = vst [vmem:[#allocation2 + $0x198] sm:$0xff] %v5708_v3 }
 0x75c   : > { %v5662_v60 = vpop.permute.xlu1 %5661  ;;  %v5657_v51 = vpop.permute.xlu0 %5656 }
 0x75d   : > { %v5711_v5 = vmul.f32 %v5662_v60, %v5519_v15  ;;  %v5710_v12 = vmul.f32 %v5657_v51, %v5518_v39 }
 0x75f   : > { %5743 = vst [vmem:[#allocation2 + $0x1c0] sm:$0xff] %v5711_v5  ;;  %5742 = vst [vmem:[#allocation2 + $0xc0] sm:$0xff] %v5710_v12 }
 0x760   : > { %v5672_v55 = vpop.permute.xlu1 %5671  ;;  %v5667_v45 = vpop.permute.xlu0 %5666 }
 0x761   : > { %v5713_v7 = vmul.f32 %v5672_v55, %v5521_v24  ;;  %v5712_v0 = vmul.f32 %v5667_v45, %v5520_v63 }
 0x763   : > { %5745 = vst [vmem:[#allocation2 + $0x10] sm:$0xff] %v5713_v7  ;;  %5744 = vst [vmem:[#allocation2 + $0x158] sm:$0xff] %v5712_v0 }
 0x764   : > { %v5682_v59 = vpop.permute.xlu1 %5681  ;;  %v5677_v38 = vpop.permute.xlu0 %5676 }
 0x765   : > { %v5715_v42 = vmul.f32 %v5682_v59, %v5523_v54  ;;  %v5714_v44 = vmul.f32 %v5677_v38, %v5522_v34 }
 0x767   : > { %5747 = vst [vmem:[#allocation2 + $0xa0] sm:$0xff] %v5715_v42  ;;  %5746 = vst [vmem:[#allocation2 + $0x58] sm:$0xff] %v5714_v44 }
 0x768 PF: > { %v13879_v9 = vld [vmem:[#allocation68_spill] sm:$0xff]  ;;  %v7660_v25 = vcombine.high %v11922_v23, %v11928_v2  ;;  %v13880_v46 = vld [vmem:[#allocation127_spill] sm:$0xff]  ;;  %v13881_v57 = vld [vmem:[#allocation122_spill] sm:$0xff]  ;;  %6183 = vst.msk [vmem:[#allocation4 + $0x188] sm:$0xff] %vm2707_vm5, %v11641_v30  ;;  %v7659_v63 = vcombine.low %v11922_v23, %v11928_v2  ;;  %v7662_v45 = vcombine.high %v11914_v29, %v11936_v50  ;;  %v7661_v7 = vcombine.low %v11914_v29, %v11936_v50 }
 0x769   : > { %7811 = vmatprep.subr.bf16.mxu1 %v13879_v9  ;;  %6166 = vst.msk [vmem:[#allocation4 + $0x100] sm:$0xff] %vm2707_vm5, %v13880_v46  ;;  %6167 = vst.msk [vmem:[#allocation4 + $0x108] sm:$0xff] %vm2707_vm5, %v13881_v57  ;;  %v13882_v13 = vld [vmem:[#allocation115_spill] sm:$0xff]  ;;  %v13883_v43 = vld [vmem:[#allocation125_spill] sm:$0xff]  ;;  %v7664_v0 = vcombine.high %v11946_v37, %v11952_v21  ;;  %v7663_v54 = vcombine.low %v11946_v37, %v11952_v21  ;;  %v7666_v23 = vcombine.high %v11960_v48, %v11966_v11 }
 0x76a   : > { %6168 = vst.msk [vmem:[#allocation4 + $0x110] sm:$0xff] %vm2707_vm5, %v13882_v13  ;;  %6169 = vst.msk [vmem:[#allocation4 + $0x118] sm:$0xff] %vm2707_vm5, %v13883_v43  ;;  %v13884_v53 = vld [vmem:[#allocation81_spill] sm:$0xff]  ;;  %v13885_v22 = vld [vmem:[#allocation78_spill] sm:$0xff]  ;;  %5973 = vmatprep.mubr.bf16.mxu1 %v7660_v25  ;;  %v7665_v2 = vcombine.low %v11960_v48, %v11966_v11  ;;  %v7668_v34 = vcombine.high %v11982_v19, %v11986_v8  ;;  %v7667_v29 = vcombine.low %v11982_v19, %v11986_v8 }
 0x76b   : > { %6170 = vst.msk [vmem:[#allocation4 + $0x120] sm:$0xff] %vm2707_vm5, %v13884_v53  ;;  %6171 = vst.msk [vmem:[#allocation4 + $0x128] sm:$0xff] %vm2707_vm5, %v13885_v22  ;;  %v13886_v33 = vld [vmem:[#allocation71_spill] sm:$0xff]  ;;  %v13887_v61 = vld [vmem:[#allocation80_spill] sm:$0xff] }
 0x76c   : > { %6172 = vst.msk [vmem:[#allocation4 + $0x130] sm:$0xff] %vm2707_vm5, %v13886_v33  ;;  %6173 = vst.msk [vmem:[#allocation4 + $0x138] sm:$0xff] %vm2707_vm5, %v13887_v61  ;;  %v13888_v56 = vld [vmem:[#allocation97_spill] sm:$0xff]  ;;  %v13889_v62 = vld [vmem:[#allocation94_spill] sm:$0xff] }
 0x76d   : > { %6174 = vst.msk [vmem:[#allocation4 + $0x140] sm:$0xff] %vm2707_vm5, %v13888_v56  ;;  %6175 = vst.msk [vmem:[#allocation4 + $0x148] sm:$0xff] %vm2707_vm5, %v13889_v62  ;;  %v13890_v52 = vld [vmem:[#allocation89_spill] sm:$0xff]  ;;  %v13891_v4 = vld [vmem:[#allocation87_spill] sm:$0xff] }
 0x76e   : > { %6176 = vst.msk [vmem:[#allocation4 + $0x150] sm:$0xff] %vm2707_vm5, %v13890_v52  ;;  %6177 = vst.msk [vmem:[#allocation4 + $0x158] sm:$0xff] %vm2707_vm5, %v13891_v4  ;;  %v13892_v41 = vld [vmem:[#allocation112_spill] sm:$0xff]  ;;  %v13893_v6 = vld [vmem:[#allocation113_spill] sm:$0xff] }
 0x76f   : > { %6178 = vst.msk [vmem:[#allocation4 + $0x160] sm:$0xff] %vm2707_vm5, %v13892_v41  ;;  %6179 = vst.msk [vmem:[#allocation4 + $0x168] sm:$0xff] %vm2707_vm5, %v13893_v6  ;;  %v13894_v14 = vld [vmem:[#allocation100_spill] sm:$0xff]  ;;  %v13895_v58 = vld [vmem:[#allocation101_spill] sm:$0xff] }
 0x770   : > { %6180 = vst.msk [vmem:[#allocation4 + $0x170] sm:$0xff] %vm2707_vm5, %v13894_v14  ;;  %6181 = vst.msk [vmem:[#allocation4 + $0x178] sm:$0xff] %vm2707_vm5, %v13895_v58  ;;  %v13896_v32 = vld [vmem:[#allocation117_spill] sm:$0xff]  ;;  %v13897_v47 = vld [vmem:[#allocation120_spill] sm:$0xff] }
 0x771   : > { %6182 = vst.msk [vmem:[#allocation4 + $0x180] sm:$0xff] %vm2707_vm5, %v13896_v32  ;;  %6184 = vst.msk [vmem:[#allocation4 + $0x190] sm:$0xff] %vm2707_vm5, %v13897_v47  ;;  %v13898_v10 = vld [vmem:[#allocation121_spill] sm:$0xff]  ;;  %v13899_v26 = vld [vmem:[#allocation20_spill] sm:$0xff] }
 0x772   : > { %6185 = vst.msk [vmem:[#allocation4 + $0x198] sm:$0xff] %vm2707_vm5, %v13898_v10  ;;  %6186 = vst.msk [vmem:[#allocation4 + $0x1a0] sm:$0xff] %vm2707_vm5, %v11707_v36  ;;  %v13900_v40 = vld [vmem:[#allocation126_spill] sm:$0xff]  ;;  %v13901_v28 = vld [vmem:[#allocation19_spill] sm:$0xff] }
 0x773   : > { %6187 = vst.msk [vmem:[#allocation4 + $0x1a8] sm:$0xff] %vm2707_vm5, %v13899_v26  ;;  %6188 = vst.msk [vmem:[#allocation4 + $0x1b0] sm:$0xff] %vm2707_vm5, %v13900_v40  ;;  %v13902_v30 = vld [vmem:[#allocation22_spill] sm:$0xff]  ;;  %v13903_v36 = vld [vmem:[#allocation29_spill] sm:$0xff] }
 0x774   : > { %6189 = vst.msk [vmem:[#allocation4 + $0x1b8] sm:$0xff] %vm2707_vm5, %v13901_v28  ;;  %6190 = vst.msk [vmem:[#allocation4 + $0x1c0] sm:$0xff] %vm2707_vm5, %v11773_v16  ;;  %v13904_v49 = vld [vmem:[#allocation30_spill] sm:$0xff]  ;;  %v13906_v18 = vld [vmem:[#allocation28_spill] sm:$0xff] }
 0x775   : > { %6191 = vst.msk [vmem:[#allocation4 + $0x1c8] sm:$0xff] %vm2707_vm5, %v11779_v1  ;;  %6192 = vst.msk [vmem:[#allocation4 + $0x1d0] sm:$0xff] %vm2707_vm5, %v11741_v20  ;;  %v13905_v31 = vld [vmem:[#allocation26_spill] sm:$0xff]  ;;  %v13907_v16 = vld [vmem:[#allocation69_spill] sm:$0xff] }
 0x776   : > { %6193 = vst.msk [vmem:[#allocation4 + $0x1d8] sm:$0xff] %vm2707_vm5, %v13902_v30  ;;  %6194 = vst.msk [vmem:[#allocation4 + $0x1e0] sm:$0xff] %vm2707_vm5, %v13903_v36  ;;  %7812 = vmatpush3.bf16.msra.mxu1 %v13907_v16  ;;  %v13908_v1 = vld [vmem:[#allocation66_spill] sm:$0xff]  ;;  %v13909_v20 = vld [vmem:[#allocation67_spill] sm:$0xff] }
 0x777   : > { %6195 = vst.msk [vmem:[#allocation4 + $0x1e8] sm:$0xff] %vm2707_vm5, %v13904_v49  ;;  %6196 = vst.msk [vmem:[#allocation4 + $0x1f0] sm:$0xff] %vm2707_vm5, %v13905_v31  ;;  %7813 = vmatprep.subr.bf16.mxu1 %v13908_v1  ;;  %v13910_v17 = vld [vmem:[#allocation76_spill] sm:$0xff]  ;;  %v13911_v35 = vld [vmem:[#allocation77_spill] sm:$0xff] }
 0x778   : > { %6197 = vst.msk [vmem:[#allocation4 + $0x1f8] sm:$0xff] %vm2707_vm5, %v13906_v18  ;;  %v13912_v27 = vld [vmem:[#allocation84_spill] sm:$0xff]  ;;  %v13913_v3 = vld [vmem:[#allocation85_spill] sm:$0xff]  ;;  %v13914_v15 = vld [vmem:[#allocation82_spill] sm:$0xff] }
 0x779   : > { %v13915_v39 = vld [vmem:[#allocation83_spill] sm:$0xff]  ;;  %v13917_v51 = vld [vmem:[#allocation102_spill] sm:$0xff]  ;;  %v13920_v24 = vld [vmem:[#allocation109_spill] sm:$0xff] }
 0x77a   : > { %7814 = vmatpush3.bf16.msra.mxu1 %v13909_v20  ;;  %v13916_v60 = vld [vmem:[#allocation91_spill] sm:$0xff]  ;;  %v13918_v5 = vld [vmem:[#allocation98_spill] sm:$0xff]  ;;  %v13922_v50 = vld [vmem:[#allocation32_spill] sm:$0xff] }
 0x77b   : > { %7815 = vmatprep.subr.bf16.mxu1 %v13910_v17  ;;  %v13919_v12 = vld [vmem:[#allocation99_spill] sm:$0xff]  ;;  %v13921_v55 = vld [vmem:[#allocation106_spill] sm:$0xff]  ;;  %v13925_v42 = vld [vmem:[#allocation33_spill] sm:$0xff] }
 0x77c   : > { %v13923_v59 = vld [vmem:[#allocation31_spill] sm:$0xff]  ;;  %v13924_v21 = vld [vmem:[#allocation34_spill] sm:$0xff]  ;;  %v13926_v11 = vld [vmem:[#allocation36_spill] sm:$0xff] }
 0x77d   : > { %v7670_v38 = vcombine.high %v13923_v59, %v13922_v50  ;;  %v7669_v37 = vcombine.low %v13923_v59, %v13922_v50  ;;  %v7672_v44 = vcombine.high %v13925_v42, %v13924_v21  ;;  %v7671_v48 = vcombine.low %v13925_v42, %v13924_v21  ;;  %v13927_v9 = vld [vmem:[#allocation35_spill] sm:$0xff]  ;;  %v13928_v8 = vld [vmem:[#allocation38_spill] sm:$0xff]  ;;  %v13929_v46 = vld [vmem:[#allocation37_spill] sm:$0xff] }
 0x77e   : > { %7816 = vmatpush3.bf16.msra.mxu1 %v13911_v35  ;;  %v7674_v25 = vcombine.high %v13927_v9, %v13926_v11  ;;  %v7673_v19 = vcombine.low %v13927_v9, %v13926_v11  ;;  %v7676_v57 = vcombine.high %v13929_v46, %v13928_v8  ;;  %v7675_v13 = vcombine.low %v13929_v46, %v13928_v8  ;;  %v13930_v43 = vld [vmem:[#allocation40_spill] sm:$0xff]  ;;  %v13931_v53 = vld [vmem:[#allocation39_spill] sm:$0xff]  ;;  %v13933_v56 = vld [vmem:[#allocation42_spill] sm:$0xff] }
 0x77f   : > { %7817 = vmatprep.subr.bf16.mxu1 %v13912_v27  ;;  %v7678_v22 = vcombine.high %v13931_v53, %v13930_v43  ;;  %v7677_v33 = vcombine.low %v13931_v53, %v13930_v43  ;;  %v13932_v61 = vld [vmem:[#allocation43_spill] sm:$0xff]  ;;  %v13934_v4 = vld [vmem:[#allocation44_spill] sm:$0xff]  ;;  %v13935_v41 = vld [vmem:[#allocation41_spill] sm:$0xff] }
 0x780   : > { %v7680_v62 = vcombine.high %v13933_v56, %v13932_v61  ;;  %v7679_v52 = vcombine.low %v13933_v56, %v13932_v61  ;;  %v7682_v6 = vcombine.high %v13935_v41, %v13934_v4  ;;  %v7681_v14 = vcombine.low %v13935_v41, %v13934_v4  ;;  %v13936_v58 = vld [vmem:[#allocation47_spill] sm:$0xff]  ;;  %v13937_v32 = vld [vmem:[#allocation46_spill] sm:$0xff]  ;;  %v13938_v26 = vld [vmem:[#allocation48_spill] sm:$0xff] }
 0x781   : > { %v7684_v47 = vcombine.high %v13937_v32, %v13936_v58  ;;  %v7683_v10 = vcombine.low %v13937_v32, %v13936_v58  ;;  %v13939_v40 = vld [vmem:[#allocation45_spill] sm:$0xff]  ;;  %v13940_v36 = vld [vmem:[#allocation51_spill] sm:$0xff]  ;;  %v13942_v16 = vld [vmem:[#allocation52_spill] sm:$0xff] }
 0x782   : > { %7818 = vmatpush3.bf16.msra.mxu1 %v13913_v3  ;;  %v7686_v28 = vcombine.high %v13939_v40, %v13938_v26  ;;  %v7685_v30 = vcombine.low %v13939_v40, %v13938_v26  ;;  %v13941_v49 = vld [vmem:[#allocation49_spill] sm:$0xff]  ;;  %v13943_v1 = vld [vmem:[#allocation50_spill] sm:$0xff]  ;;  %v5749_v27 = vld [vmem:[#allocation2 + $0x148] sm:$0xff] }
 0x783   : > { %7819 = vmatprep.subr.bf16.mxu1 %v13914_v15  ;;  %v7688_v31 = vcombine.high %v13941_v49, %v13940_v36  ;;  %v7687_v18 = vcombine.low %v13941_v49, %v13940_v36  ;;  %v7690_v20 = vcombine.high %v13943_v1, %v13942_v16  ;;  %v7689_v17 = vcombine.low %v13943_v1, %v13942_v16  ;;  %v5753_v59 = vld [vmem:[#allocation2 + $0x40] sm:$0xff]  ;;  %v5756_v43 = vld [vmem:[#allocation2 + $0x128] sm:$0xff]  ;;  %v5760_v36 = vld [vmem:[#allocation2 + $0x78] sm:$0xff] }
 0x784   : > { %v5757_v56 = vld [vmem:[#allocation2 + $0x1a0] sm:$0xff]  ;;  %v5761_v1 = vld [vmem:[#allocation2 + $0x70] sm:$0xff] }
 0x786   : > { %7820 = vmatpush3.bf16.msra.mxu1 %v13915_v39 }
 0x787   : > { %7821 = vmatprep.subr.bf16.mxu1 %v13916_v60 }
 0x78a   : > { %7822 = vmatpush3.bf16.msra.mxu1 %v13917_v51  ;;  %v5750_v51 = vld [vmem:[#allocation2 + $0x1d0] sm:$0xff] }
 0x78b   : > { %7823 = vmatprep.subr.bf16.mxu1 %v13918_v5 }
 0x78e   : > { %7824 = vmatpush3.bf16.msra.mxu1 %v13919_v12 }
 0x78f   : > { %7825 = vmatprep.subr.bf16.mxu1 %v13920_v24 }
 0x792   : > { %7826 = vmatpush3.bf16.msra.mxu1 %v13921_v55  ;;  %v5751_v55 = vld [vmem:[#allocation2 + $0x100] sm:$0xff] }
 0x795   : > { %5974 = vmatmul.mubr.bf16.vlgmr.msra.gmra.mxu1 %v7659_v63 }
 0x796   : > { %5981 = vmatprep.mubr.bf16.mxu1 %v7662_v45 }
 0x79d   : > { %5982 = vmatmul.mubr.bf16.gmra.mxu1 %v7661_v7 }
 0x79e   : > { %5989 = vmatprep.mubr.bf16.mxu1 %v7664_v0 }
 0x7a5   : > { %5990 = vmatmul.mubr.bf16.gmra.mxu1 %v7663_v54 }
 0x7a6   : > { %5997 = vmatprep.mubr.bf16.mxu1 %v7666_v23  ;;  %v5752_v23 = vld [vmem:[#allocation2 + $0xc8] sm:$0xff] }
 0x7ad   : > { %5998 = vmatmul.mubr.bf16.gmra.mxu1 %v7665_v2 }
 0x7ae   : > { %6005 = vmatprep.mubr.bf16.mxu1 %v7668_v34 }
 0x7b5   : > { %6006 = vmatmul.mubr.bf16.gmra.mxu1 %v7667_v29 }
 0x7b6   : > { %6013 = vmatprep.mubr.bf16.mxu1 %v7670_v38 }
 0x7bd   : > { %6014 = vmatmul.mubr.bf16.gmra.mxu1 %v7669_v37 }
 0x7be   : > { %6021 = vmatprep.mubr.bf16.mxu1 %v7672_v44  ;;  %v5754_v44 = vld [vmem:[#allocation2 + $0x1f8] sm:$0xff] }
 0x7c5   : > { %6022 = vmatmul.mubr.bf16.gmra.mxu1 %v7671_v48 }
 0x7c6   : > { %6029 = vmatprep.mubr.bf16.mxu1 %v7674_v25 }
 0x7cd   : > { %6030 = vmatmul.mubr.bf16.gmra.mxu1 %v7673_v19  ;;  %v5755_v19 = vld [vmem:[#allocation2 + $0x20] sm:$0xff] }
 0x7ce   : > { %6037 = vmatprep.mubr.bf16.mxu1 %v7676_v57 }
 0x7d5   : > { %6038 = vmatmul.mubr.bf16.gmra.mxu1 %v7675_v13 }
 0x7d6   : > { %6045 = vmatprep.mubr.bf16.mxu1 %v7678_v22 }
 0x7dd   : > { %6046 = vmatmul.mubr.bf16.gmra.mxu1 %v7677_v33 }
 0x7de   : > { %6053 = vmatprep.mubr.bf16.mxu1 %v7680_v62 }
 0x7e5   : > { %6054 = vmatmul.mubr.bf16.gmra.mxu1 %v7679_v52 }
 0x7e6   : > { %6061 = vmatprep.mubr.bf16.mxu1 %v7682_v6  ;;  %v5758_v6 = vld [vmem:[#allocation2 + $0x1f0] sm:$0xff] }
 0x7ed   : > { %6062 = vmatmul.mubr.bf16.gmra.mxu1 %v7681_v14 }
 0x7ee   : > { %6069 = vmatprep.mubr.bf16.mxu1 %v7684_v47 }
 0x7f5   : > { %6070 = vmatmul.mubr.bf16.gmra.mxu1 %v7683_v10  ;;  %v5759_v10 = vld [vmem:[#allocation2 + $0xe8] sm:$0xff] }
 0x7f6   : > { %6077 = vmatprep.mubr.bf16.mxu1 %v7686_v28 }
 0x7fd   : > { %6078 = vmatmul.mubr.bf16.gmra.mxu1 %v7685_v30 }
 0x7fe   : > { %6085 = vmatprep.mubr.bf16.mxu1 %v7688_v31 }
 0x805   : > { %6086 = vmatmul.mubr.bf16.gmra.mxu1 %v7687_v18 }
 0x806   : > { %6093 = vmatprep.mubr.bf16.mxu1 %v7690_v20 }
 0x80d   : > { %6094 = vmatmul.mubr.bf16.gmra.mxu1 %v7689_v17 }
 0x855   : > { %v7827_v35 = vpop.f32.mrf.mxu1 }
 0x857   : > { %v7828_v3 = vpop.f32.mrf.mxu1 }
 0x858   : > { %v7829_v15 = vadd.f32 %v7828_v3, %v7827_v35  ;;  %v5762_v3 = vld [vmem:[#allocation2 + $0x90] sm:$0xff] }
 0x859   : > { %v7830_v39 = vpop.f32.mrf.mxu1 }
 0x85a   : > { %v6102_v60 = vadd.f32 %v7829_v15, %v5749_v27 }
 0x85b   : > { %v7831_v5 = vpop.f32.mrf.mxu1 }
 0x85c   : > { %6134 = vst [vmem:[#allocation2 + $0x148] sm:$0xff] %v6102_v60  ;;  %v7832_v12 = vadd.f32 %v7831_v5, %v7830_v39  ;;  %v5763_v5 = vld [vmem:[#allocation2 + $0x1d8] sm:$0xff] }
 0x85d   : > { %v7833_v24 = vpop.f32.mrf.mxu1 }
 0x85e   : > { %v6103_v63 = vadd.f32 %v7832_v12, %v5750_v51 }
 0x85f   : > { %v7834_v45 = vpop.f32.mrf.mxu1 }
 0x860   : > { %6135 = vst [vmem:[#allocation2 + $0x1d0] sm:$0xff] %v6103_v63  ;;  %v7835_v7 = vadd.f32 %v7834_v45, %v7833_v24  ;;  %v5764_v45 = vld [vmem:[#allocation2 + $0xd0] sm:$0xff] }
 0x861   : > { %v7836_v0 = vpop.f32.mrf.mxu1 }
 0x862   : > { %v6104_v54 = vadd.f32 %v7835_v7, %v5751_v55 }
 0x863   : > { %v7837_v2 = vpop.f32.mrf.mxu1 }
 0x864   : > { %6136 = vst [vmem:[#allocation2 + $0x100] sm:$0xff] %v6104_v54  ;;  %v7838_v34 = vadd.f32 %v7837_v2, %v7836_v0  ;;  %v5765_v2 = vld [vmem:[#allocation2 + $0xb8] sm:$0xff] }
 0x865   : > { %v7839_v29 = vpop.f32.mrf.mxu1 }
 0x866   : > { %v6105_v50 = vadd.f32 %v7838_v34, %v5752_v23 }
 0x867   : > { %v7840_v38 = vpop.f32.mrf.mxu1 }
 0x868   : > { %6137 = vst [vmem:[#allocation2 + $0xc8] sm:$0xff] %v6105_v50  ;;  %v7841_v37 = vadd.f32 %v7840_v38, %v7839_v29  ;;  %v5766_v38 = vld [vmem:[#allocation2 + $0x88] sm:$0xff] }
 0x869   : > { %v7842_v21 = vpop.f32.mrf.mxu1 }
 0x86a   : > { %v6106_v42 = vadd.f32 %v7841_v37, %v5753_v59 }
 0x86b   : > { %v7843_v48 = vpop.f32.mrf.mxu1 }
 0x86c   : > { %6138 = vst [vmem:[#allocation2 + $0x40] sm:$0xff] %v6106_v42  ;;  %v7844_v11 = vadd.f32 %v7843_v48, %v7842_v21  ;;  %v5767_v48 = vld [vmem:[#allocation2 + $0xa8] sm:$0xff] }
 0x86d   : > { %v7845_v9 = vpop.f32.mrf.mxu1 }
 0x86e   : > { %v6107_v25 = vadd.f32 %v7844_v11, %v5754_v44 }
 0x86f   : > { %v7846_v8 = vpop.f32.mrf.mxu1 }
 0x870   : > { %6139 = vst [vmem:[#allocation2 + $0x1f8] sm:$0xff] %v6107_v25  ;;  %v7847_v46 = vadd.f32 %v7846_v8, %v7845_v9  ;;  %v5768_v8 = vld [vmem:[#allocation2 + $0x1c8] sm:$0xff] }
 0x871   : > { %v7848_v57 = vpop.f32.mrf.mxu1 }
 0x872   : > { %v6108_v13 = vadd.f32 %v7847_v46, %v5755_v19 }
 0x873   : > { %v7849_v53 = vpop.f32.mrf.mxu1 }
 0x874   : > { %6140 = vst [vmem:[#allocation2 + $0x20] sm:$0xff] %v6108_v13  ;;  %v7850_v22 = vadd.f32 %v7849_v53, %v7848_v57  ;;  %v5769_v53 = vld [vmem:[#allocation2 + $0x170] sm:$0xff] }
 0x875   : > { %v7851_v33 = vpop.f32.mrf.mxu1 }
 0x876   : > { %v6109_v61 = vadd.f32 %v7850_v22, %v5756_v43 }
 0x877   : > { %v7852_v62 = vpop.f32.mrf.mxu1 }
 0x878   : > { %6141 = vst [vmem:[#allocation2 + $0x128] sm:$0xff] %v6109_v61  ;;  %v7853_v52 = vadd.f32 %v7852_v62, %v7851_v33  ;;  %v5770_v62 = vld [vmem:[#allocation2 + $0x178] sm:$0xff] }
 0x879   : > { %v7854_v4 = vpop.f32.mrf.mxu1 }
 0x87a   : > { %v6110_v41 = vadd.f32 %v7853_v52, %v5757_v56 }
 0x87b   : > { %v7855_v14 = vpop.f32.mrf.mxu1 }
 0x87c   : > { %6142 = vst [vmem:[#allocation2 + $0x1a0] sm:$0xff] %v6110_v41  ;;  %v7856_v58 = vadd.f32 %v7855_v14, %v7854_v4  ;;  %v5771_v14 = vld [vmem:[#allocation2 + $0x68] sm:$0xff] }
 0x87d   : > { %v7857_v32 = vpop.f32.mrf.mxu1 }
 0x87e   : > { %v6111_v47 = vadd.f32 %v7856_v58, %v5758_v6 }
 0x87f   : > { %v7858_v26 = vpop.f32.mrf.mxu1 }
 0x880   : > { %6143 = vst [vmem:[#allocation2 + $0x1f0] sm:$0xff] %v6111_v47  ;;  %v7859_v40 = vadd.f32 %v7858_v26, %v7857_v32  ;;  %v5772_v26 = vld [vmem:[#allocation2 + $0x190] sm:$0xff] }
 0x881   : > { %v7860_v28 = vpop.f32.mrf.mxu1 }
 0x882   : > { %v6112_v30 = vadd.f32 %v7859_v40, %v5759_v10 }
 0x883   : > { %v7861_v49 = vpop.f32.mrf.mxu1 }
 0x884   : > { %6144 = vst [vmem:[#allocation2 + $0xe8] sm:$0xff] %v6112_v30  ;;  %v7862_v31 = vadd.f32 %v7861_v49, %v7860_v28  ;;  %v5773_v49 = vld [vmem:[#allocation2 + $0x198] sm:$0xff] }
 0x885   : > { %v7863_v18 = vpop.f32.mrf.mxu1 }
 0x886   : > { %v6113_v16 = vadd.f32 %v7862_v31, %v5760_v36 }
 0x887   : > { %v7864_v20 = vpop.f32.mrf.mxu1 }
 0x888   : > { %6145 = vst [vmem:[#allocation2 + $0x78] sm:$0xff] %v6113_v16  ;;  %v7865_v17 = vadd.f32 %v7864_v20, %v7863_v18  ;;  %v5774_v20 = vld [vmem:[#allocation2 + $0x38] sm:$0xff] }
 0x889   : > { %v7866_v35 = vpop.f32.mrf.mxu1 }
 0x88a   : > { %v6114_v27 = vadd.f32 %v7865_v17, %v5761_v1 }
 0x88b   : > { %v7867_v15 = vpop.f32.mrf.mxu1 }
 0x88c   : > { %6146 = vst [vmem:[#allocation2 + $0x70] sm:$0xff] %v6114_v27  ;;  %v7868_v39 = vadd.f32 %v7867_v15, %v7866_v35  ;;  %v5775_v15 = vld [vmem:[#allocation2 + $0xc0] sm:$0xff] }
 0x88d   : > { %v7869_v60 = vpop.f32.mrf.mxu1 }
 0x88e   : > { %v6115_v51 = vadd.f32 %v7868_v39, %v5762_v3 }
 0x88f   : > { %v7870_v12 = vpop.f32.mrf.mxu1 }
 0x890   : > { %6147 = vst [vmem:[#allocation2 + $0x90] sm:$0xff] %v6115_v51  ;;  %v7871_v24 = vadd.f32 %v7870_v12, %v7869_v60  ;;  %v5776_v12 = vld [vmem:[#allocation2 + $0x1c0] sm:$0xff] }
 0x891   : > { %v7872_v63 = vpop.f32.mrf.mxu1 }
 0x892   : > { %v6116_v55 = vadd.f32 %v7871_v24, %v5763_v5 }
 0x893   : > { %v7873_v7 = vpop.f32.mrf.mxu1 }
 0x894   : > { %6148 = vst [vmem:[#allocation2 + $0x1d8] sm:$0xff] %v6116_v55  ;;  %v7874_v0 = vadd.f32 %v7873_v7, %v7872_v63  ;;  %v5777_v7 = vld [vmem:[#allocation2 + $0x158] sm:$0xff] }
 0x895   : > { %v7875_v54 = vpop.f32.mrf.mxu1 }
 0x896   : > { %v6117_v23 = vadd.f32 %v7874_v0, %v5764_v45 }
 0x897   : > { %v7876_v34 = vpop.f32.mrf.mxu1 }
 0x898   : > { %6149 = vst [vmem:[#allocation2 + $0xd0] sm:$0xff] %v6117_v23  ;;  %v7877_v29 = vadd.f32 %v7876_v34, %v7875_v54  ;;  %v5778_v34 = vld [vmem:[#allocation2 + $0x10] sm:$0xff] }
 0x899   : > { %v7878_v50 = vpop.f32.mrf.mxu1 }
 0x89a   : > { %v6118_v59 = vadd.f32 %v7877_v29, %v5765_v2 }
 0x89b   : > { %v7879_v37 = vpop.f32.mrf.mxu1 }
 0x89c   : > { %6150 = vst [vmem:[#allocation2 + $0xb8] sm:$0xff] %v6118_v59  ;;  %v7880_v21 = vadd.f32 %v7879_v37, %v7878_v50  ;;  %v5779_v37 = vld [vmem:[#allocation2 + $0x58] sm:$0xff] }
 0x89d   : > { %v7881_v42 = vpop.f32.mrf.mxu1 }
 0x89e   : > { %v6119_v44 = vadd.f32 %v7880_v21, %v5766_v38 }
 0x89f   : > { %v7882_v11 = vpop.f32.mrf.mxu1 }
 0x8a0   : > { %6151 = vst [vmem:[#allocation2 + $0x88] sm:$0xff] %v6119_v44  ;;  %v7883_v9 = vadd.f32 %v7882_v11, %v7881_v42  ;;  %v5780_v11 = vld [vmem:[#allocation2 + $0xa0] sm:$0xff] }
 0x8a1   : > { %v7884_v25 = vpop.f32.mrf.mxu1 }
 0x8a2   : > { %v6120_v19 = vadd.f32 %v7883_v9, %v5767_v48 }
 0x8a3   : > { %v7885_v46 = vpop.f32.mrf.mxu1 }
 0x8a4   : > { %6152 = vst [vmem:[#allocation2 + $0xa8] sm:$0xff] %v6120_v19  ;;  %v7886_v57 = vadd.f32 %v7885_v46, %v7884_v25 }
 0x8a5   : > { %v7887_v13 = vpop.f32.mrf.mxu1 }
 0x8a6   : > { %v6121_v43 = vadd.f32 %v7886_v57, %v5768_v8 }
 0x8a7   : > { %v7888_v22 = vpop.f32.mrf.mxu1 }
 0x8a8   : > { %6153 = vst [vmem:[#allocation2 + $0x1c8] sm:$0xff] %v6121_v43  ;;  %v7889_v33 = vadd.f32 %v7888_v22, %v7887_v13 }
 0x8a9   : > { %v7890_v61 = vpop.f32.mrf.mxu1 }
 0x8aa   : > { %v6122_v56 = vadd.f32 %v7889_v33, %v5769_v53 }
 0x8ab   : > { %v7891_v52 = vpop.f32.mrf.mxu1 }
 0x8ac   : > { %6154 = vst [vmem:[#allocation2 + $0x170] sm:$0xff] %v6122_v56  ;;  %v7892_v4 = vadd.f32 %v7891_v52, %v7890_v61 }
 0x8ad   : > { %v7893_v41 = vpop.f32.mrf.mxu1 }
 0x8ae   : > { %v6123_v6 = vadd.f32 %v7892_v4, %v5770_v62 }
 0x8af   : > { %v7894_v58 = vpop.f32.mrf.mxu1 }
 0x8b0   : > { %6155 = vst [vmem:[#allocation2 + $0x178] sm:$0xff] %v6123_v6  ;;  %v7895_v32 = vadd.f32 %v7894_v58, %v7893_v41 }
 0x8b1   : > { %v7896_v47 = vpop.f32.mrf.mxu1 }
 0x8b2   : > { %v6124_v10 = vadd.f32 %v7895_v32, %v5771_v14 }
 0x8b3   : > { %v7897_v40 = vpop.f32.mrf.mxu1 }
 0x8b4   : > { %6156 = vst [vmem:[#allocation2 + $0x68] sm:$0xff] %v6124_v10  ;;  %v7898_v28 = vadd.f32 %v7897_v40, %v7896_v47 }
 0x8b5   : > { %v7899_v30 = vpop.f32.mrf.mxu1 }
 0x8b6   : > { %v6125_v36 = vadd.f32 %v7898_v28, %v5772_v26 }
 0x8b7   : > { %v7900_v31 = vpop.f32.mrf.mxu1 }
 0x8b8   : > { %6157 = vst [vmem:[#allocation2 + $0x190] sm:$0xff] %v6125_v36  ;;  %v7901_v18 = vadd.f32 %v7900_v31, %v7899_v30 }
 0x8b9   : > { %v7902_v16 = vpop.f32.mrf.mxu1 }
 0x8ba   : > { %v6126_v1 = vadd.f32 %v7901_v18, %v5773_v49 }
 0x8bb   : > { %v7903_v17 = vpop.f32.mrf.mxu1 }
 0x8bc   : > { %6158 = vst [vmem:[#allocation2 + $0x198] sm:$0xff] %v6126_v1  ;;  %v7904_v35 = vadd.f32 %v7903_v17, %v7902_v16 }
 0x8bd   : > { %v7905_v27 = vpop.f32.mrf.mxu1 }
 0x8be   : > { %v6127_v3 = vadd.f32 %v7904_v35, %v5774_v20 }
 0x8bf   : > { %v7906_v39 = vpop.f32.mrf.mxu1 }
 0x8c0   : > { %6159 = vst [vmem:[#allocation2 + $0x38] sm:$0xff] %v6127_v3  ;;  %v7907_v60 = vadd.f32 %v7906_v39, %v7905_v27 }
 0x8c1   : > { %v7908_v51 = vpop.f32.mrf.mxu1 }
 0x8c2   : > { %v6128_v5 = vadd.f32 %v7907_v60, %v5775_v15 }
 0x8c3   : > { %v7909_v24 = vpop.f32.mrf.mxu1 }
 0x8c4   : > { %6160 = vst [vmem:[#allocation2 + $0xc0] sm:$0xff] %v6128_v5  ;;  %v7910_v63 = vadd.f32 %v7909_v24, %v7908_v51 }
 0x8c5   : > { %v7911_v55 = vpop.f32.mrf.mxu1 }
 0x8c6   : > { %v6129_v45 = vadd.f32 %v7910_v63, %v5776_v12 }
 0x8c7   : > { %v7912_v0 = vpop.f32.mrf.mxu1 }
 0x8c8   : > { %6161 = vst [vmem:[#allocation2 + $0x1c0] sm:$0xff] %v6129_v45  ;;  %v7913_v54 = vadd.f32 %v7912_v0, %v7911_v55 }
 0x8c9   : > { %v7914_v23 = vpop.f32.mrf.mxu1 }
 0x8ca   : > { %v6130_v2 = vadd.f32 %v7913_v54, %v5777_v7 }
 0x8cb   : > { %v7915_v29 = vpop.f32.mrf.mxu1 }
 0x8cc   : > { %6162 = vst [vmem:[#allocation2 + $0x158] sm:$0xff] %v6130_v2  ;;  %v7916_v50 = vadd.f32 %v7915_v29, %v7914_v23 }
 0x8cd   : > { %v7917_v59 = vpop.f32.mrf.mxu1 }
 0x8ce   : > { %v6131_v38 = vadd.f32 %v7916_v50, %v5778_v34 }
 0x8cf   : > { %v7918_v21 = vpop.f32.mrf.mxu1 }
 0x8d0   : > { %6163 = vst [vmem:[#allocation2 + $0x10] sm:$0xff] %v6131_v38  ;;  %v7919_v42 = vadd.f32 %v7918_v21, %v7917_v59 }
 0x8d1   : > { %v7920_v44 = vpop.f32.mrf.mxu1 }
 0x8d2   : > { %v6132_v48 = vadd.f32 %v7919_v42, %v5779_v37 }
 0x8d3   : > { %v7921_v9 = vpop.f32.mrf.mxu1 }
 0x8d4   : > { %6164 = vst [vmem:[#allocation2 + $0x58] sm:$0xff] %v6132_v48  ;;  %v7922_v25 = vadd.f32 %v7921_v9, %v7920_v44 }
 0x8d6   : > { %v6133_v19 = vadd.f32 %v7922_v25, %v5780_v11 }
 0x8d8   : > { %6165 = vst [vmem:[#allocation2 + $0xa0] sm:$0xff] %v6133_v19 }
 0x8d9 PF: > { %p7691_p8 = scmp.ne.s32.totalorder %s8670_s10, 1 }
 0x8db   : > { %6201 = sbr.rel (%p7691_p8) target bundleno = 2567 (0xa07), region = 79 }
 0x8e0   : > { %v6236_v8 = vld [vmem:[#allocation4 + $0x10] sm:$0xff]  ;;  %v8699_v46 = vmov 0   ;;  %v6234_v13 = vld [vmem:[#allocation4] sm:$0xff]  ;;  %v6237_v43 = vld [vmem:[#allocation4 + $0x18] sm:$0xff] }
 0x8e1   : > { %8295 = vset.pattern.permute.xlu1 %v8699_v46  ;;  %8294 = vset.pattern.permute.xlu0 %v8699_v46  ;;  %v6268_v57 = vsub.f32 0.0, %v6236_v8  ;;  %v6266_v53 = vsub.f32 0.0, %v6234_v13  ;;  %v6269_v22 = vsub.f32 0.0, %v6237_v43  ;;  %v6235_v33 = vld [vmem:[#allocation4 + $0x8] sm:$0xff]  ;;  %v6238_v52 = vld [vmem:[#allocation4 + $0x20] sm:$0xff]  ;;  %v6241_v32 = vld [vmem:[#allocation4 + $0x38] sm:$0xff] }
 0x8e2   : > { %v6267_v56 = vsub.f32 0.0, %v6235_v33  ;;  %v6239_v62 = vld [vmem:[#allocation4 + $0x28] sm:$0xff]  ;;  %v6270_v14 = vsub.f32 0.0, %v6238_v52  ;;  %v6273_v26 = vsub.f32 0.0, %v6241_v32  ;;  %v6240_v40 = vld [vmem:[#allocation4 + $0x30] sm:$0xff]  ;;  %v6242_v31 = vld [vmem:[#allocation4 + $0x40] sm:$0xff] }
 0x8e3   : > { %v6302_v61 = vmul.f32 1.442695, %v6268_v57  ;;  %v6298_v4 = vmul.f32 1.442695, %v6266_v53  ;;  %v6304_v41 = vmul.f32 1.442695, %v6269_v22 }
 0x8e4   : > { %v6271_v6 = vsub.f32 0.0, %v6239_v62  ;;  %v6300_v58 = vmul.f32 1.442695, %v6267_v56  ;;  %v6306_v10 = vmul.f32 1.442695, %v6270_v14  ;;  %v6272_v28 = vsub.f32 0.0, %v6240_v40 }
 0x8e5   : > { %8296 = vpow2.f32 %v6302_v61  ;;  %v6243_v30 = vld [vmem:[#allocation4 + $0x48] sm:$0xff]  ;;  %v6312_v36 = vmul.f32 1.442695, %v6273_v26  ;;  %v6245_v18 = vld [vmem:[#allocation4 + $0x58] sm:$0xff]  ;;  %v6274_v1 = vsub.f32 0.0, %v6242_v31  ;;  %v6244_v17 = vld [vmem:[#allocation4 + $0x50] sm:$0xff] }
 0x8e6   : > { %8298 = vpow2.f32 %v6298_v4  ;;  %v6308_v47 = vmul.f32 1.442695, %v6271_v6  ;;  %v6275_v49 = vsub.f32 0.0, %v6243_v30  ;;  %v6310_v16 = vmul.f32 1.442695, %v6272_v28  ;;  %v6247_v3 = vld [vmem:[#allocation4 + $0x68] sm:$0xff] }
 0x8e7   : > { %8300 = vpow2.f32 %v6304_v41  ;;  %v6277_v20 = vsub.f32 0.0, %v6245_v18  ;;  %v6276_v27 = vsub.f32 0.0, %v6244_v17  ;;  %v6314_v15 = vmul.f32 1.442695, %v6274_v1  ;;  %v6246_v51 = vld [vmem:[#allocation4 + $0x60] sm:$0xff]  ;;  %v6249_v24 = vld [vmem:[#allocation4 + $0x78] sm:$0xff] }
 0x8e8   : > { %8302 = vpow2.f32 %v6300_v58  ;;  %v6316_v35 = vmul.f32 1.442695, %v6275_v49  ;;  %v6279_v60 = vsub.f32 0.0, %v6247_v3  ;;  %v6278_v12 = vsub.f32 0.0, %v6246_v51  ;;  %v6248_v45 = vld [vmem:[#allocation4 + $0x70] sm:$0xff]  ;;  %v6251_v7 = vld [vmem:[#allocation4 + $0x88] sm:$0xff] }
 0x8e9   : > { %8304 = vpow2.f32 %v6308_v47  ;;  %v6320_v39 = vmul.f32 1.442695, %v6277_v20  ;;  %v6318_v5 = vmul.f32 1.442695, %v6276_v27  ;;  %v6281_v55 = vsub.f32 0.0, %v6249_v24  ;;  %v6250_v2 = vld [vmem:[#allocation4 + $0x80] sm:$0xff] }
 0x8ea   : > { %8306 = vpow2.f32 %v6306_v10  ;;  %v6324_v63 = vmul.f32 1.442695, %v6279_v60  ;;  %v6322_v0 = vmul.f32 1.442695, %v6278_v12  ;;  %v6280_v54 = vsub.f32 0.0, %v6248_v45  ;;  %v6253_v50 = vld [vmem:[#allocation4 + $0x98] sm:$0xff] }
 0x8eb   : > { %8308 = vpow2.f32 %v6312_v36  ;;  %v6283_v23 = vsub.f32 0.0, %v6251_v7  ;;  %v6328_v34 = vmul.f32 1.442695, %v6281_v55  ;;  %v6282_v29 = vsub.f32 0.0, %v6250_v2  ;;  %v6252_v37 = vld [vmem:[#allocation4 + $0x90] sm:$0xff]  ;;  %v6255_v48 = vld [vmem:[#allocation4 + $0xa8] sm:$0xff] }
 0x8ec   : > { %8310 = vpow2.f32 %v6310_v16  ;;  %v6326_v59 = vmul.f32 1.442695, %v6280_v54  ;;  %v6285_v38 = vsub.f32 0.0, %v6253_v50  ;;  %v6204_v21 = vld [vmem:[#allocation3 + $0x10] sm:$0xff]  ;;  %v6284_v44 = vsub.f32 0.0, %v6252_v37  ;;  %v6202_v9 = vld [vmem:[#allocation3] sm:$0xff] }
 0x8ed   : > { %8312 = vpow2.f32 %v6316_v35  ;;  %v6332_v42 = vmul.f32 1.442695, %v6283_v23  ;;  %v6330_v25 = vmul.f32 1.442695, %v6282_v29  ;;  %v6287_v19 = vsub.f32 0.0, %v6255_v48  ;;  %v6254_v8 = vld [vmem:[#allocation4 + $0xa0] sm:$0xff] }
 0x8ee   : > { %8314 = vpow2.f32 %v6314_v15  ;;  %v12574_v46 = vld [vmem:[#allocation4 + $0xb8] sm:$0xff]  ;;  %v6336_v53 = vmul.f32 1.442695, %v6285_v38  ;;  %v6286_v22 = vsub.f32 0.0, %v6254_v8  ;;  %v6334_v56 = vmul.f32 1.442695, %v6284_v44 }
 0x8ef   : > { %8316 = vpow2.f32 %v6320_v39  ;;  %v6205_v43 = vld [vmem:[#allocation3 + $0x18] sm:$0xff]  ;;  %v12576_v62 = vmul.f32 1.442695, %v6287_v19  ;;  %v6203_v6 = vld [vmem:[#allocation3 + $0x8] sm:$0xff]  ;;  %v6289_v14 = vsub.f32 0.0, %v12574_v46  ;;  %v6206_v49 = vld [vmem:[#allocation3 + $0x20] sm:$0xff] }
 0x8f0   : > { %8318 = vpow2.f32 %v6318_v5  ;;  %v6207_v10 = vld [vmem:[#allocation3 + $0x28] sm:$0xff]  ;;  %v12579_v26 = vmul.f32 1.442695, %v6286_v22  ;;  %v6209_v20 = vld [vmem:[#allocation3 + $0x38] sm:$0xff]  ;;  %v6208_v15 = vld [vmem:[#allocation3 + $0x30] sm:$0xff] }
 0x8f1   : > { %8320 = vpow2.f32 %v6324_v63  ;;  %v6211_v12 = vld [vmem:[#allocation3 + $0x48] sm:$0xff]  ;;  %v6210_v7 = vld [vmem:[#allocation3 + $0x40] sm:$0xff]  ;;  %v6212_v37 = vld [vmem:[#allocation3 + $0x50] sm:$0xff] }
 0x8f2   : > { %v8297_v11 = vpop.eup %8296  ;;  %8322 = vpow2.f32 %v6322_v0 }
 0x8f3   : > { %v8299_v57 = vpop.eup %8298  ;;  %v6364_v13 = vmul.f32 1e-10, %v8297_v11  ;;  %8324 = vpow2.f32 %v6328_v34  ;;  %v6213_v34 = vld [vmem:[#allocation3 + $0x58] sm:$0xff]  ;;  %v6215_v11 = vld [vmem:[#allocation3 + $0x68] sm:$0xff] }
 0x8f4   : > { %v8301_v33 = vpop.eup %8300  ;;  %v6362_v61 = vmul.f32 1e-10, %v8299_v57  ;;  %8326 = vpow2.f32 %v6326_v59  ;;  %v6214_v57 = vld [vmem:[#allocation3 + $0x60] sm:$0xff] }
 0x8f5   : > { %v8303_v52 = vpop.eup %8302  ;;  %v6396_v4 = vadd.f32 %v6364_v13, %v6204_v21  ;;  %v6365_v41 = vmul.f32 1e-10, %v8301_v33  ;;  %8328 = vpow2.f32 %v6332_v42  ;;  %v6217_v33 = vld [vmem:[#allocation3 + $0x78] sm:$0xff] }
 0x8f6   : > { %v8305_v58 = vpop.eup %8304  ;;  %v6394_v32 = vadd.f32 %v6362_v61, %v6202_v9  ;;  %v6363_v47 = vmul.f32 1e-10, %v8303_v52  ;;  %8330 = vpow2.f32 %v6330_v25 }
 0x8f7   : > { %v8307_v40 = vpop.eup %8306  ;;  %v6428_v28 = vmax.f32 %v6396_v4, 1e-30  ;;  %v6397_v30 = vadd.f32 %v6365_v41, %v6205_v43  ;;  %v6367_v36 = vmul.f32 1e-10, %v8305_v58  ;;  %8332 = vpow2.f32 %v6336_v53  ;;  %v6216_v41 = vld [vmem:[#allocation3 + $0x70] sm:$0xff] }
 0x8f8   : > { %v8309_v31 = vpop.eup %8308  ;;  %v6426_v18 = vmax.f32 %v6394_v32, 1e-30  ;;  %v6395_v16 = vadd.f32 %v6363_v47, %v6203_v6  ;;  %v6366_v1 = vmul.f32 1e-10, %v8307_v40  ;;  %8334 = vpow2.f32 %v6334_v56 }
 0x8f9   : > { %v8311_v17 = vpop.eup %8310  ;;  %8336 = vrcp.f32 %v6428_v28  ;;  %v6429_v35 = vmax.f32 %v6397_v30, 1e-30  ;;  %v6399_v27 = vadd.f32 %v6367_v36, %v6207_v10  ;;  %v6369_v3 = vmul.f32 1e-10, %v8309_v31  ;;  %v6219_v10 = vld [vmem:[#allocation3 + $0x88] sm:$0xff] }
 0x8fa   : > { %v8313_v39 = vpop.eup %8312  ;;  %8338 = vrcp.f32 %v6426_v18  ;;  %v6427_v60 = vmax.f32 %v6395_v16, 1e-30  ;;  %v6398_v51 = vadd.f32 %v6366_v1, %v6206_v49  ;;  %v6368_v5 = vmul.f32 1e-10, %v8311_v17  ;;  %v6218_v49 = vld [vmem:[#allocation3 + $0x80] sm:$0xff] }
 0x8fb   : > { %v8315_v24 = vpop.eup %8314  ;;  %8340 = vrcp.f32 %v6429_v35  ;;  %v6431_v63 = vmax.f32 %v6399_v27, 1e-30  ;;  %v6401_v55 = vadd.f32 %v6369_v3, %v6209_v20  ;;  %v6371_v45 = vmul.f32 1e-10, %v8313_v39  ;;  %v6221_v20 = vld [vmem:[#allocation3 + $0x98] sm:$0xff] }
 0x8fc   : > { %v8317_v0 = vpop.eup %8316  ;;  %8342 = vrcp.f32 %v6427_v60  ;;  %v6430_v54 = vmax.f32 %v6398_v51, 1e-30  ;;  %v6400_v23 = vadd.f32 %v6368_v5, %v6208_v15  ;;  %v6370_v2 = vmul.f32 1e-10, %v8315_v24  ;;  %v6220_v15 = vld [vmem:[#allocation3 + $0x90] sm:$0xff] }
 0x8fd   : > { %v8319_v29 = vpop.eup %8318  ;;  %8344 = vrcp.f32 %v6431_v63  ;;  %v6433_v50 = vmax.f32 %v6401_v55, 1e-30  ;;  %v6403_v59 = vadd.f32 %v6371_v45, %v6211_v12  ;;  %v6373_v38 = vmul.f32 1e-10, %v8317_v0  ;;  %v6256_v12 = vld [vmem:[#allocation4 + $0xb0] sm:$0xff] }
 0x8fe   : > { %v8321_v21 = vpop.eup %8320  ;;  %8346 = vrcp.f32 %v6430_v54  ;;  %v6432_v42 = vmax.f32 %v6400_v23, 1e-30  ;;  %v6402_v44 = vadd.f32 %v6370_v2, %v6210_v7  ;;  %v6372_v48 = vmul.f32 1e-10, %v8319_v29  ;;  %v6259_v7 = vld [vmem:[#allocation4 + $0xc8] sm:$0xff] }
 0x8ff   : > { %v8323_v9 = vpop.eup %8322  ;;  %8348 = vrcp.f32 %v6433_v50  ;;  %v6435_v25 = vmax.f32 %v6403_v59, 1e-30  ;;  %v6405_v19 = vadd.f32 %v6373_v38, %v6213_v34  ;;  %v6375_v8 = vmul.f32 1e-10, %v8321_v21  ;;  %v6258_v34 = vld [vmem:[#allocation4 + $0xc0] sm:$0xff] }
 0x900   : > { %v8325_v13 = vpop.eup %8324  ;;  %8350 = vrcp.f32 %v6432_v42  ;;  %v6434_v43 = vmax.f32 %v6402_v44, 1e-30  ;;  %v6404_v53 = vadd.f32 %v6372_v48, %v6212_v37  ;;  %v6374_v22 = vmul.f32 1e-10, %v8323_v9  ;;  %v6261_v37 = vld [vmem:[#allocation4 + $0xd8] sm:$0xff] }
 0x901   : > { %v8327_v61 = vpop.eup %8326  ;;  %8352 = vrcp.f32 %v6435_v25  ;;  %v6437_v56 = vmax.f32 %v6405_v19, 1e-30  ;;  %v6407_v52 = vadd.f32 %v6375_v8, %v6215_v11  ;;  %v6377_v4 = vmul.f32 1e-10, %v8325_v13  ;;  %v6260_v11 = vld [vmem:[#allocation4 + $0xd0] sm:$0xff] }
 0x902   : > { %v8329_v6 = vpop.eup %8328  ;;  %8354 = vrcp.f32 %v6434_v43  ;;  %v6436_v58 = vmax.f32 %v6404_v53, 1e-30  ;;  %v6406_v32 = vadd.f32 %v6374_v22, %v6214_v57  ;;  %v6376_v47 = vmul.f32 1e-10, %v8327_v61  ;;  %v6263_v57 = vld [vmem:[#allocation4 + $0xe8] sm:$0xff] }
 0x903   : > { %v8331_v40 = vpop.eup %8330  ;;  %8356 = vrcp.f32 %v6437_v56  ;;  %v6439_v28 = vmax.f32 %v6407_v52, 1e-30  ;;  %v6409_v30 = vadd.f32 %v6377_v4, %v6217_v33  ;;  %v6379_v36 = vmul.f32 1e-10, %v8329_v6  ;;  %v6262_v33 = vld [vmem:[#allocation4 + $0xe0] sm:$0xff] }
 0x904   : > { %v8333_v31 = vpop.eup %8332  ;;  %8358 = vrcp.f32 %v6436_v58  ;;  %v6438_v18 = vmax.f32 %v6406_v32, 1e-30  ;;  %v6408_v16 = vadd.f32 %v6376_v47, %v6216_v41  ;;  %v6378_v1 = vmul.f32 1e-10, %v8331_v40  ;;  %v6265_v41 = vld [vmem:[#allocation4 + $0xf8] sm:$0xff]  ;;  %v6264_v32 = vld [vmem:[#allocation4 + $0xf0] sm:$0xff] }
 0x905   : > { %v8335_v17 = vpop.eup %8334  ;;  %8360 = vrcp.f32 %v6439_v28  ;;  %v6441_v35 = vmax.f32 %v6409_v30, 1e-30  ;;  %v6411_v27 = vadd.f32 %v6379_v36, %v6219_v10  ;;  %v6381_v3 = vmul.f32 1e-10, %v8333_v31  ;;  %v6813_v30 = vld [vmem:[#allocation4 + $0x108] sm:$0xff] }
 0x906   : > { %v8337_v39 = vpop.eup %8336  ;;  %8362 = vrcp.f32 %v6438_v18  ;;  %v6440_v60 = vmax.f32 %v6408_v16, 1e-30  ;;  %v6410_v51 = vadd.f32 %v6378_v1, %v6218_v49  ;;  %v6380_v5 = vmul.f32 1e-10, %v8335_v17  ;;  %v6812_v18 = vld [vmem:[#allocation4 + $0x100] sm:$0xff]  ;;  %v6815_v17 = vld [vmem:[#allocation4 + $0x118] sm:$0xff] }
 0x907   : > { %v8339_v24 = vpop.eup %8338  ;;  %v6495_v63 = vmul.f32 0.5, %v8337_v39  ;;  %8364 = vrcp.f32 %v6441_v35  ;;  %v6443_v55 = vmax.f32 %v6411_v27, 1e-30  ;;  %v6413_v45 = vadd.f32 %v6381_v3, %v6221_v20  ;;  %v6814_v39 = vld [vmem:[#allocation4 + $0x110] sm:$0xff] }
 0x908   : > { %v8341_v0 = vpop.eup %8340  ;;  %v6491_v54 = vmul.f32 0.5, %v8339_v24  ;;  %8366 = vrcp.f32 %v6440_v60  ;;  %v6442_v23 = vmax.f32 %v6410_v51, 1e-30  ;;  %v6412_v2 = vadd.f32 %v6380_v5, %v6220_v15  ;;  %v6817_v24 = vld [vmem:[#allocation4 + $0x128] sm:$0xff] }
 0x909   : > { %v8343_v29 = vpop.eup %8342  ;;  %6566 = vperm.xlu1 %8295, %v6495_v63   ;;  %v6497_v50 = vmul.f32 0.5, %v8341_v0  ;;  %8368 = vrcp.f32 %v6443_v55  ;;  %v6445_v59 = vmax.f32 %v6413_v45, 1e-30  ;;  %v6288_v38 = vsub.f32 0.0, %v6256_v12  ;;  %v6816_v0 = vld [vmem:[#allocation4 + $0x120] sm:$0xff] }
 0x90a   : > { %v8345_v21 = vpop.eup %8344  ;;  %6556 = vperm.xlu0 %8294, %v6491_v54   ;;  %v6493_v42 = vmul.f32 0.5, %v8343_v29  ;;  %8370 = vrcp.f32 %v6442_v23  ;;  %v6444_v44 = vmax.f32 %v6412_v2, 1e-30  ;;  %v6291_v48 = vsub.f32 0.0, %v6259_v7  ;;  %v6819_v29 = vld [vmem:[#allocation4 + $0x138] sm:$0xff] }
 0x90b   : > { %v8347_v9 = vpop.eup %8346  ;;  %v6501_v25 = vmul.f32 0.5, %v8345_v21  ;;  %8372 = vrcp.f32 %v6445_v59  ;;  %v6344_v19 = vmul.f32 1.442695, %v6289_v14  ;;  %v6290_v8 = vsub.f32 0.0, %v6258_v34  ;;  %v6818_v21 = vld [vmem:[#allocation4 + $0x130] sm:$0xff] }
 0x90c   : > { %v8349_v13 = vpop.eup %8348  ;;  %v6499_v43 = vmul.f32 0.5, %v8347_v9  ;;  %8374 = vrcp.f32 %v6444_v44  ;;  %v6342_v53 = vmul.f32 1.442695, %v6288_v38  ;;  %v6293_v22 = vsub.f32 0.0, %v6261_v37  ;;  %v6821_v9 = vld [vmem:[#allocation4 + $0x148] sm:$0xff] }
 0x90d   : > { %v8351_v61 = vpop.eup %8350  ;;  %6571 = vperm.xlu1 %8295, %v6497_v50   ;;  %v6505_v56 = vmul.f32 0.5, %v8349_v13  ;;  %8376 = vpow2.f32 %v12576_v62  ;;  %v6348_v52 = vmul.f32 1.442695, %v6291_v48  ;;  %v6292_v4 = vsub.f32 0.0, %v6260_v11  ;;  %v6820_v13 = vld [vmem:[#allocation4 + $0x140] sm:$0xff] }
 0x90e   : > { %v8353_v6 = vpop.eup %8352  ;;  %6561 = vperm.xlu0 %8294, %v6493_v42   ;;  %v6503_v46 = vmul.f32 0.5, %v8351_v61  ;;  %8378 = vpow2.f32 %v12579_v26  ;;  %v6346_v14 = vmul.f32 1.442695, %v6290_v8  ;;  %v6295_v58 = vsub.f32 0.0, %v6263_v57 }
 0x90f   : > { %v8355_v47 = vpop.eup %8354  ;;  %v12585_v10 = vmul.f32 0.5, %v8353_v6  ;;  %8380 = vpow2.f32 %v6344_v19  ;;  %v6352_v40 = vmul.f32 1.442695, %v6293_v22  ;;  %v6294_v28 = vsub.f32 0.0, %v6262_v33  ;;  %v6223_v22 = vld [vmem:[#allocation3 + $0xa8] sm:$0xff] }
 0x910   : > { %v8357_v36 = vpop.eup %8356  ;;  %v12587_v62 = vmul.f32 0.5, %v8355_v47  ;;  %8382 = vpow2.f32 %v6342_v53  ;;  %v6350_v49 = vmul.f32 1.442695, %v6292_v4  ;;  %v6297_v31 = vsub.f32 0.0, %v6265_v41  ;;  %v6222_v4 = vld [vmem:[#allocation3 + $0xa0] sm:$0xff] }
 0x911   : > { %v8359_v16 = vpop.eup %8358  ;;  %6581 = vperm.xlu1 %8295, %v6501_v25   ;;  %v12589_v26 = vmul.f32 0.5, %v8357_v36  ;;  %8384 = vpow2.f32 %v6348_v52  ;;  %v6356_v1 = vmul.f32 1.442695, %v6295_v58  ;;  %v6296_v20 = vsub.f32 0.0, %v6264_v32  ;;  %v6225_v32 = vld [vmem:[#allocation3 + $0xb8] sm:$0xff] }
 0x912   : > { %v8361_v35 = vpop.eup %8360  ;;  %6576 = vperm.xlu0 %8294, %v6499_v43   ;;  %v12591_v27 = vmul.f32 0.5, %v8359_v16  ;;  %8386 = vpow2.f32 %v6346_v14  ;;  %v6354_v3 = vmul.f32 1.442695, %v6294_v28  ;;  %v6845_v15 = vsub.f32 0.0, %v6813_v30 }
 0x913   : > { %v8363_v60 = vpop.eup %8362  ;;  %v12593_v51 = vmul.f32 0.5, %v8361_v35  ;;  %8388 = vpow2.f32 %v6352_v40  ;;  %v6360_v5 = vmul.f32 1.442695, %v6297_v31  ;;  %v6844_v12 = vsub.f32 0.0, %v6812_v18  ;;  %v6224_v18 = vld [vmem:[#allocation3 + $0xb0] sm:$0xff]  ;;  %v6227_v35 = vld [vmem:[#allocation3 + $0xc8] sm:$0xff] }
 0x914   : > { %v8365_v63 = vpop.eup %8364  ;;  %v12595_v55 = vmul.f32 0.5, %v8363_v60  ;;  %8390 = vpow2.f32 %v6350_v49  ;;  %v6358_v45 = vmul.f32 1.442695, %v6296_v20  ;;  %v6847_v7 = vsub.f32 0.0, %v6815_v17 }
 0x915   : > { %v8367_v54 = vpop.eup %8366  ;;  %6591 = vperm.xlu1 %8295, %v6505_v56   ;;  %v12597_v23 = vmul.f32 0.5, %v8365_v63  ;;  %8392 = vpow2.f32 %v6356_v1  ;;  %v6878_v2 = vmul.f32 1.442695, %v6845_v15  ;;  %v6846_v34 = vsub.f32 0.0, %v6814_v39 }
 0x916   : > { %v8369_v50 = vpop.eup %8368  ;;  %6586 = vperm.xlu0 %8294, %v6503_v46   ;;  %v12599_v59 = vmul.f32 0.5, %v8367_v54  ;;  %8394 = vpow2.f32 %v6354_v3  ;;  %v6876_v38 = vmul.f32 1.442695, %v6844_v12  ;;  %v6849_v37 = vsub.f32 0.0, %v6817_v24  ;;  %v12611_v46 = vld [vmem:[#allocation4 + $0x158] sm:$0xff] }
 0x917   : > { %v8371_v42 = vpop.eup %8370  ;;  %v12601_v44 = vmul.f32 0.5, %v8369_v50  ;;  %8396 = vpow2.f32 %v6360_v5  ;;  %v6882_v48 = vmul.f32 1.442695, %v6847_v7  ;;  %v6848_v11 = vsub.f32 0.0, %v6816_v0  ;;  %v6229_v7 = vld [vmem:[#allocation3 + $0xd8] sm:$0xff] }
 0x918   : > { %v8373_v25 = vpop.eup %8372  ;;  %v12603_v19 = vmul.f32 0.5, %v8371_v42  ;;  %8398 = vpow2.f32 %v6358_v45  ;;  %v6880_v8 = vmul.f32 1.442695, %v6846_v34  ;;  %v6851_v57 = vsub.f32 0.0, %v6819_v29  ;;  %v6228_v34 = vld [vmem:[#allocation3 + $0xd0] sm:$0xff] }
 0x919   : > { %v8375_v43 = vpop.eup %8374  ;;  %6601 = vperm.xlu1 %8295, %v12585_v10   ;;  %v12606_v53 = vmul.f32 0.5, %v8373_v25  ;;  %8400 = vpow2.f32 %v6878_v2  ;;  %v6886_v33 = vmul.f32 1.442695, %v6849_v37  ;;  %v6850_v61 = vsub.f32 0.0, %v6818_v21  ;;  %v6231_v21 = vld [vmem:[#allocation3 + $0xe8] sm:$0xff]  ;;  %v6230_v25 = vld [vmem:[#allocation3 + $0xe0] sm:$0xff] }
 0x91a   : > { %v8377_v56 = vpop.eup %8376  ;;  %6596 = vperm.xlu0 %8294, %v12587_v62   ;;  %v12609_v52 = vmul.f32 0.5, %v8375_v43  ;;  %8402 = vpow2.f32 %v6876_v38  ;;  %v6884_v41 = vmul.f32 1.442695, %v6848_v11  ;;  %v6853_v6 = vsub.f32 0.0, %v6821_v9  ;;  %v6233_v43 = vld [vmem:[#allocation3 + $0xf8] sm:$0xff] }
 0x91b   : > { %v8379_v14 = vpop.eup %8378  ;;  %v6383_v58 = vmul.f32 1e-10, %v8377_v56  ;;  %8404 = vpow2.f32 %v6882_v48  ;;  %v6890_v47 = vmul.f32 1.442695, %v6851_v57  ;;  %v6852_v10 = vsub.f32 0.0, %v6820_v13  ;;  %v6232_v56 = vld [vmem:[#allocation3 + $0xf0] sm:$0xff] }
 0x91c   : > { %v8381_v40 = vpop.eup %8380  ;;  %v6382_v28 = vmul.f32 1e-10, %v8379_v14  ;;  %8406 = vpow2.f32 %v6880_v8  ;;  %v6888_v30 = vmul.f32 1.442695, %v6850_v61  ;;  %v12613_v36 = vmul.f32 1.442695, %v6853_v6 }
 0x91d   : > { %v8383_v62 = vpop.eup %8382  ;;  %6611 = vperm.xlu1 %8295, %v12589_v26   ;;  %v6415_v49 = vadd.f32 %v6383_v58, %v6223_v22  ;;  %v6385_v31 = vmul.f32 1e-10, %v8381_v40  ;;  %8408 = vpow2.f32 %v6886_v33  ;;  %v6855_v16 = vsub.f32 0.0, %v12611_v46  ;;  %v6226_v26 = vld [vmem:[#allocation3 + $0xc0] sm:$0xff]  ;;  %v6780_v58 = vld [vmem:[#allocation3 + $0x108] sm:$0xff] }
 0x91e   : > { %v8385_v1 = vpop.eup %8384  ;;  %6606 = vperm.xlu0 %8294, %v12591_v27   ;;  %v6414_v20 = vadd.f32 %v6382_v28, %v6222_v4  ;;  %v6384_v17 = vmul.f32 1e-10, %v8383_v62  ;;  %8410 = vpow2.f32 %v6884_v41  ;;  %v12618_v3 = vmul.f32 1.442695, %v6852_v10  ;;  %v6779_v28 = vld [vmem:[#allocation3 + $0x100] sm:$0xff] }
 0x91f   : > { %v8387_v15 = vpop.eup %8386  ;;  %v6447_v39 = vmax.f32 %v6415_v49, 1e-30  ;;  %v6417_v60 = vadd.f32 %v6385_v31, %v6225_v32  ;;  %v6387_v5 = vmul.f32 1e-10, %v8385_v1  ;;  %8412 = vpow2.f32 %v6890_v47  ;;  %v6782_v31 = vld [vmem:[#allocation3 + $0x118] sm:$0xff] }
 0x920   : > { %v8389_v12 = vpop.eup %8388  ;;  %v6446_v24 = vmax.f32 %v6414_v20, 1e-30  ;;  %v6416_v63 = vadd.f32 %v6384_v17, %v6224_v18  ;;  %v6386_v45 = vmul.f32 1e-10, %v8387_v15  ;;  %8414 = vpow2.f32 %v6888_v30  ;;  %v6781_v17 = vld [vmem:[#allocation3 + $0x110] sm:$0xff] }
 0x921   : > { %v8391_v0 = vpop.eup %8390  ;;  %6621 = vperm.xlu1 %8295, %v12593_v51   ;;  %8416 = vrcp.f32 %v6447_v39  ;;  %v6449_v27 = vmax.f32 %v6417_v60, 1e-30  ;;  %v6419_v54 = vadd.f32 %v6387_v5, %v6227_v35  ;;  %v6389_v2 = vmul.f32 1e-10, %v8389_v12  ;;  %v6784_v5 = vld [vmem:[#allocation3 + $0x128] sm:$0xff] }
 0x922   : > { %v8393_v29 = vpop.eup %8392  ;;  %6616 = vperm.xlu0 %8294, %v12595_v55   ;;  %8418 = vrcp.f32 %v6446_v24  ;;  %v6448_v50 = vmax.f32 %v6416_v63, 1e-30  ;;  %v6418_v38 = vadd.f32 %v6386_v45, %v6226_v26  ;;  %v6388_v37 = vmul.f32 1e-10, %v8391_v0  ;;  %v6783_v45 = vld [vmem:[#allocation3 + $0x120] sm:$0xff] }
 0x923   : > { %v8395_v42 = vpop.eup %8394  ;;  %8420 = vrcp.f32 %v6449_v27  ;;  %v6451_v48 = vmax.f32 %v6419_v54, 1e-30  ;;  %v6421_v11 = vadd.f32 %v6389_v2, %v6229_v7  ;;  %v6391_v9 = vmul.f32 1e-10, %v8393_v29  ;;  %v6786_v54 = vld [vmem:[#allocation3 + $0x138] sm:$0xff] }
 0x924   : > { %v8397_v51 = vpop.eup %8396  ;;  %8422 = vrcp.f32 %v6448_v50  ;;  %v6450_v8 = vmax.f32 %v6418_v38, 1e-30  ;;  %v6420_v57 = vadd.f32 %v6388_v37, %v6228_v34  ;;  %v6390_v13 = vmul.f32 1e-10, %v8395_v42  ;;  %v6785_v50 = vld [vmem:[#allocation3 + $0x130] sm:$0xff] }
 0x925   : > { %v8399_v22 = vpop.eup %8398  ;;  %6631 = vperm.xlu1 %8295, %v12597_v23   ;;  %8424 = vrcp.f32 %v6451_v48  ;;  %v6453_v55 = vmax.f32 %v6421_v11, 1e-30  ;;  %v6423_v33 = vadd.f32 %v6391_v9, %v6231_v21  ;;  %v6393_v61 = vmul.f32 1e-10, %v8397_v51  ;;  %v6822_v48 = vld [vmem:[#allocation4 + $0x150] sm:$0xff] }
 0x926   : > { %v8401_v4 = vpop.eup %8400  ;;  %6626 = vperm.xlu0 %8294, %v12599_v59   ;;  %8426 = vrcp.f32 %v6450_v8  ;;  %v6452_v41 = vmax.f32 %v6420_v57, 1e-30  ;;  %v6422_v6 = vadd.f32 %v6390_v13, %v6230_v25  ;;  %v6392_v14 = vmul.f32 1e-10, %v8399_v22  ;;  %v6825_v8 = vld [vmem:[#allocation4 + $0x168] sm:$0xff]  ;;  %v6824_v22 = vld [vmem:[#allocation4 + $0x160] sm:$0xff] }
 0x927   : > { %v8403_v32 = vpop.eup %8402  ;;  %8428 = vrcp.f32 %v6453_v55  ;;  %v6455_v47 = vmax.f32 %v6423_v33, 1e-30  ;;  %v6425_v10 = vadd.f32 %v6393_v61, %v6233_v43  ;;  %v6941_v40 = vmul.f32 1e-10, %v8401_v4 }
 0x928   : > { %v8405_v23 = vpop.eup %8404  ;;  %8430 = vrcp.f32 %v6452_v41  ;;  %v6454_v30 = vmax.f32 %v6422_v6, 1e-30  ;;  %v6424_v62 = vadd.f32 %v6392_v14, %v6232_v56  ;;  %v6940_v49 = vmul.f32 1e-10, %v8403_v32  ;;  %v6827_v56 = vld [vmem:[#allocation4 + $0x178] sm:$0xff] }
 0x929   : > { %v8407_v18 = vpop.eup %8406  ;;  %6641 = vperm.xlu1 %8295, %v12601_v44   ;;  %8432 = vrcp.f32 %v6455_v47  ;;  %v6457_v59 = vmax.f32 %v6425_v10, 1e-30  ;;  %v6973_v1 = vadd.f32 %v6941_v40, %v6780_v58  ;;  %v6943_v20 = vmul.f32 1e-10, %v8405_v23  ;;  %v6826_v58 = vld [vmem:[#allocation4 + $0x170] sm:$0xff]  ;;  %v6829_v40 = vld [vmem:[#allocation4 + $0x188] sm:$0xff] }
 0x92a   : > { %v8409_v35 = vpop.eup %8408  ;;  %6636 = vperm.xlu0 %8294, %v12603_v19   ;;  %8434 = vrcp.f32 %v6454_v30  ;;  %v6456_v15 = vmax.f32 %v6424_v62, 1e-30  ;;  %v6972_v39 = vadd.f32 %v6940_v49, %v6779_v28  ;;  %v6942_v60 = vmul.f32 1e-10, %v8407_v18  ;;  %v6828_v62 = vld [vmem:[#allocation4 + $0x180] sm:$0xff] }
 0x92b   : > { %v8411_v26 = vpop.eup %8410  ;;  %8436 = vrcp.f32 %v6457_v59  ;;  %v7005_v12 = vmax.f32 %v6973_v1, 1e-30  ;;  %v6975_v24 = vadd.f32 %v6943_v20, %v6782_v31  ;;  %v6945_v63 = vmul.f32 1e-10, %v8409_v35  ;;  %v6831_v1 = vld [vmem:[#allocation4 + $0x198] sm:$0xff]  ;;  %v6830_v35 = vld [vmem:[#allocation4 + $0x190] sm:$0xff] }
 0x92c   : > { %v8413_v44 = vpop.eup %8412  ;;  %8438 = vrcp.f32 %v6456_v15  ;;  %v7004_v7 = vmax.f32 %v6972_v39, 1e-30  ;;  %v6974_v0 = vadd.f32 %v6942_v60, %v6781_v17  ;;  %v6944_v27 = vmul.f32 1e-10, %v8411_v26 }
 0x92d   : > { %v8415_v2 = vpop.eup %8414  ;;  %6651 = vperm.xlu1 %8295, %v12606_v53   ;;  %8440 = vrcp.f32 %v7005_v12  ;;  %v7007_v19 = vmax.f32 %v6975_v24, 1e-30  ;;  %v6977_v34 = vadd.f32 %v6945_v63, %v6784_v5  ;;  %v6947_v29 = vmul.f32 1e-10, %v8413_v44  ;;  %v6833_v5 = vld [vmem:[#allocation4 + $0x1a8] sm:$0xff]  ;;  %v6832_v24 = vld [vmem:[#allocation4 + $0x1a0] sm:$0xff] }
 0x92e   : > { %v8417_v38 = vpop.eup %8416  ;;  %6646 = vperm.xlu0 %8294, %v12609_v52   ;;  %8442 = vrcp.f32 %v7004_v7  ;;  %v7006_v37 = vmax.f32 %v6974_v0, 1e-30  ;;  %v6976_v21 = vadd.f32 %v6944_v27, %v6783_v45  ;;  %v6946_v42 = vmul.f32 1e-10, %v8415_v2 }
 0x92f   : > { %v8419_v11 = vpop.eup %8418  ;;  %v6533_v9 = vmul.f32 0.5, %v8417_v38  ;;  %8444 = vrcp.f32 %v7007_v19  ;;  %v7009_v25 = vmax.f32 %v6977_v34, 1e-30  ;;  %v6979_v51 = vadd.f32 %v6947_v29, %v6786_v54  ;;  %v6834_v19 = vld [vmem:[#allocation4 + $0x1b0] sm:$0xff]  ;;  %v6837_v38 = vld [vmem:[#allocation4 + $0x1c8] sm:$0xff] }
 0x930   : > { %v8421_v53 = vpop.eup %8420  ;;  %v6531_v57 = vmul.f32 0.5, %v8419_v11  ;;  %8446 = vrcp.f32 %v7006_v37  ;;  %v7008_v13 = vmax.f32 %v6976_v21, 1e-30  ;;  %v6978_v43 = vadd.f32 %v6946_v42, %v6785_v50 }
 0x931   : > { %v8423_v55 = vpop.eup %8422  ;;  %6661 = vperm.xlu1 %8295, %v6533_v9   ;;  %v6537_v52 = vmul.f32 0.5, %v8421_v53  ;;  %8448 = vrcp.f32 %v7009_v25  ;;  %v7011_v33 = vmax.f32 %v6979_v51, 1e-30  ;;  %v6854_v61 = vsub.f32 0.0, %v6822_v48  ;;  %v6836_v48 = vld [vmem:[#allocation4 + $0x1c0] sm:$0xff] }
 0x932   : > { %v8425_v4 = vpop.eup %8424  ;;  %6656 = vperm.xlu0 %8294, %v6531_v57   ;;  %v6535_v41 = vmul.f32 0.5, %v8423_v55  ;;  %8450 = vrcp.f32 %v7008_v13  ;;  %v7010_v6 = vmax.f32 %v6978_v43, 1e-30  ;;  %v6857_v14 = vsub.f32 0.0, %v6825_v8  ;;  %v6839_v8 = vld [vmem:[#allocation4 + $0x1d8] sm:$0xff] }
 0x933   : > { %v8427_v32 = vpop.eup %8426  ;;  %8452 = vrcp.f32 %v7011_v33  ;;  %v6898_v47 = vmul.f32 1.442695, %v6855_v16  ;;  %v6856_v10 = vsub.f32 0.0, %v6824_v22  ;;  %v6896_v23 = vmul.f32 1.442695, %v6854_v61  ;;  %v6838_v22 = vld [vmem:[#allocation4 + $0x1d0] sm:$0xff] }
 0x934   : > { %v8429_v28 = vpop.eup %8428  ;;  %8454 = vrcp.f32 %v7010_v6  ;;  %v6859_v30 = vsub.f32 0.0, %v6827_v56  ;;  %v6541_v31 = vmul.f32 0.5, %v8425_v4  ;;  %v6902_v18 = vmul.f32 1.442695, %v6857_v14 }
 0x935   : > { %v8431_v49 = vpop.eup %8430  ;;  %6671 = vperm.xlu1 %8295, %v6537_v52   ;;  %8456 = vpow2.f32 %v12613_v36  ;;  %v6858_v59 = vsub.f32 0.0, %v6826_v58  ;;  %v6539_v17 = vmul.f32 0.5, %v8427_v32  ;;  %v6900_v46 = vmul.f32 1.442695, %v6856_v10 }
 0x936   : > { %v8433_v20 = vpop.eup %8432  ;;  %6666 = vperm.xlu0 %8294, %v6535_v41   ;;  %8458 = vpow2.f32 %v12618_v3  ;;  %v6861_v16 = vsub.f32 0.0, %v6829_v40  ;;  %v6906_v39 = vmul.f32 1.442695, %v6859_v30  ;;  %v6860_v60 = vsub.f32 0.0, %v6828_v62  ;;  %v6835_v3 = vld [vmem:[#allocation4 + $0x1b8] sm:$0xff] }
 0x937   : > { %v8435_v15 = vpop.eup %8434  ;;  %8460 = vpow2.f32 %v6898_v47  ;;  %v6904_v12 = vmul.f32 1.442695, %v6858_v59  ;;  %v6863_v36 = vsub.f32 0.0, %v6831_v1  ;;  %v6545_v45 = vmul.f32 0.5, %v8429_v28  ;;  %v6788_v28 = vld [vmem:[#allocation3 + $0x148] sm:$0xff] }
 0x938   : > { %v8437_v26 = vpop.eup %8436  ;;  %8462 = vpow2.f32 %v6896_v23  ;;  %v6910_v44 = vmul.f32 1.442695, %v6861_v16  ;;  %v6862_v7 = vsub.f32 0.0, %v6830_v35  ;;  %v6543_v27 = vmul.f32 0.5, %v8431_v49 }
 0x939   : > { %v8439_v63 = vpop.eup %8438  ;;  %6681 = vperm.xlu1 %8295, %v6541_v31   ;;  %8464 = vpow2.f32 %v6902_v18  ;;  %v6908_v54 = vmul.f32 1.442695, %v6860_v60  ;;  %v6865_v2 = vsub.f32 0.0, %v6833_v5  ;;  %v6914_v29 = vmul.f32 1.442695, %v6863_v36  ;;  %v6787_v31 = vld [vmem:[#allocation3 + $0x140] sm:$0xff] }
 0x93a   : > { %v8441_v0 = vpop.eup %8440  ;;  %6676 = vperm.xlu0 %8294, %v6539_v17   ;;  %8466 = vpow2.f32 %v6900_v46  ;;  %v6864_v50 = vsub.f32 0.0, %v6832_v24  ;;  %v6912_v21 = vmul.f32 1.442695, %v6862_v7  ;;  %v6867_v42 = vsub.f32 0.0, %v6835_v3  ;;  %v6790_v17 = vld [vmem:[#allocation3 + $0x158] sm:$0xff]  ;;  %v6789_v60 = vld [vmem:[#allocation3 + $0x150] sm:$0xff] }
 0x93b   : > { %v8443_v34 = vpop.eup %8442  ;;  %8468 = vpow2.f32 %v6906_v39  ;;  %v6549_v9 = vmul.f32 0.5, %v8433_v20  ;;  %v6918_v25 = vmul.f32 1.442695, %v6865_v2  ;;  %v6866_v51 = vsub.f32 0.0, %v6834_v19  ;;  %v6792_v24 = vld [vmem:[#allocation3 + $0x168] sm:$0xff]  ;;  %v6791_v3 = vld [vmem:[#allocation3 + $0x160] sm:$0xff] }
 0x93c   : > { %v8445_v37 = vpop.eup %8444  ;;  %8470 = vpow2.f32 %v6904_v12  ;;  %v6547_v57 = vmul.f32 0.5, %v8435_v15  ;;  %v6916_v13 = vmul.f32 1.442695, %v6864_v50  ;;  %v6869_v43 = vsub.f32 0.0, %v6837_v38  ;;  %v6794_v19 = vld [vmem:[#allocation3 + $0x178] sm:$0xff] }
 0x93d   : > { %v8447_v11 = vpop.eup %8446  ;;  %6691 = vperm.xlu1 %8295, %v6545_v45   ;;  %8472 = vpow2.f32 %v6910_v44  ;;  %v6922_v52 = vmul.f32 1.442695, %v6867_v42  ;;  %v6868_v33 = vsub.f32 0.0, %v6836_v48  ;;  %v6553_v56 = vmul.f32 0.5, %v8437_v26 }
 0x93e   : > { %v8449_v53 = vpop.eup %8448  ;;  %6686 = vperm.xlu0 %8294, %v6543_v27   ;;  %8474 = vpow2.f32 %v6908_v54  ;;  %v6920_v4 = vmul.f32 1.442695, %v6866_v51  ;;  %v6871_v41 = vsub.f32 0.0, %v6839_v8  ;;  %v6551_v14 = vmul.f32 0.5, %v8439_v63 }
 0x93f   : > { %v8451_v55 = vpop.eup %8450  ;;  %8476 = vpow2.f32 %v6914_v29  ;;  %v6926_v58 = vmul.f32 1.442695, %v6869_v43  ;;  %v6870_v32 = vsub.f32 0.0, %v6838_v22  ;;  %v7072_v10 = vmul.f32 0.5, %v8441_v0 }
 0x940   : > { %v12632_v61 = vpop.eup %8452  ;;  %8478 = vpow2.f32 %v6912_v21  ;;  %v7070_v40 = vmul.f32 0.5, %v8443_v34  ;;  %v6924_v23 = vmul.f32 1.442695, %v6868_v33  ;;  %v7076_v62 = vmul.f32 0.5, %v8445_v37  ;;  %v6793_v37 = vld [vmem:[#allocation3 + $0x170] sm:$0xff] }
 0x941   : > { %v12634_v6 = vpop.eup %8454  ;;  %6701 = vperm.xlu1 %8295, %v6549_v9   ;;  %8480 = vpow2.f32 %v6918_v25  ;;  %v6930_v18 = vmul.f32 1.442695, %v6871_v41  ;;  %v7074_v1 = vmul.f32 0.5, %v8447_v11  ;;  %v6928_v46 = vmul.f32 1.442695, %v6870_v32  ;;  %v6796_v9 = vld [vmem:[#allocation3 + $0x188] sm:$0xff] }
 0x942   : > { %v8457_v47 = vpop.eup %8456  ;;  %6696 = vperm.xlu0 %8294, %v6547_v57   ;;  %8482 = vpow2.f32 %v6916_v13  ;;  %v12636_v35 = vmul.f32 0.5, %v8449_v53  ;;  %v12638_v26 = vmul.f32 0.5, %v8451_v55  ;;  %v6795_v57 = vld [vmem:[#allocation3 + $0x180] sm:$0xff]  ;;  %v6798_v32 = vld [vmem:[#allocation3 + $0x198] sm:$0xff] }
 0x943   : > { %v8459_v30 = vpop.eup %8458  ;;  %v6949_v49 = vmul.f32 1e-10, %v8457_v47  ;;  %8484 = vpow2.f32 %v6922_v52 }
 0x944   : > { %v8461_v59 = vpop.eup %8460  ;;  %v6948_v20 = vmul.f32 1e-10, %v8459_v30  ;;  %8486 = vpow2.f32 %v6920_v4  ;;  %v6800_v30 = vld [vmem:[#allocation3 + $0x1a8] sm:$0xff] }
 0x945   : > { %v8463_v16 = vpop.eup %8462  ;;  %6711 = vperm.xlu1 %8295, %v6553_v56   ;;  %v6981_v15 = vadd.f32 %v6949_v49, %v6788_v28  ;;  %v6951_v39 = vmul.f32 1e-10, %v8461_v59  ;;  %8488 = vpow2.f32 %v6926_v58 }
 0x946   : > { %v8465_v5 = vpop.eup %8464  ;;  %6706 = vperm.xlu0 %8294, %v6551_v14   ;;  %v6980_v12 = vadd.f32 %v6948_v20, %v6787_v31  ;;  %v6950_v36 = vmul.f32 1e-10, %v8463_v16  ;;  %8490 = vpow2.f32 %v6924_v23  ;;  %v6841_v31 = vld [vmem:[#allocation4 + $0x1e8] sm:$0xff]  ;;  %v6799_v20 = vld [vmem:[#allocation3 + $0x1a0] sm:$0xff] }
 0x947   : > { %v8467_v63 = vpop.eup %8466  ;;  %v7013_v45 = vmax.f32 %v6981_v15, 1e-30  ;;  %v6983_v44 = vadd.f32 %v6951_v39, %v6790_v17  ;;  %v6953_v7 = vmul.f32 1e-10, %v8465_v5  ;;  %8492 = vpow2.f32 %v6930_v18 }
 0x948   : > { %v8469_v0 = vpop.eup %8468  ;;  %v7012_v27 = vmax.f32 %v6980_v12, 1e-30  ;;  %v6982_v54 = vadd.f32 %v6950_v36, %v6789_v60  ;;  %v6952_v2 = vmul.f32 1e-10, %v8467_v63  ;;  %8494 = vpow2.f32 %v6928_v46  ;;  %v6840_v12 = vld [vmem:[#allocation4 + $0x1e0] sm:$0xff] }
 0x949   : > { %v8471_v34 = vpop.eup %8470  ;;  %7140 = vperm.xlu1 %8295, %v7072_v10   ;;  %8496 = vrcp.f32 %v7013_v45  ;;  %v7015_v29 = vmax.f32 %v6983_v44, 1e-30  ;;  %v6985_v50 = vadd.f32 %v6953_v7, %v6792_v24  ;;  %v6955_v38 = vmul.f32 1e-10, %v8469_v0  ;;  %v6802_v44 = vld [vmem:[#allocation3 + $0x1b8] sm:$0xff] }
 0x94a   : > { %v8473_v21 = vpop.eup %8472  ;;  %7135 = vperm.xlu0 %8294, %v7070_v40   ;;  %8498 = vrcp.f32 %v7012_v27  ;;  %v7014_v42 = vmax.f32 %v6982_v54, 1e-30  ;;  %v6984_v48 = vadd.f32 %v6952_v2, %v6791_v3  ;;  %v6954_v11 = vmul.f32 1e-10, %v8471_v34  ;;  %v6797_v40 = vld [vmem:[#allocation3 + $0x190] sm:$0xff] }
 0x94b   : > { %v8475_v25 = vpop.eup %8474  ;;  %8500 = vrcp.f32 %v7015_v29  ;;  %v7017_v51 = vmax.f32 %v6985_v50, 1e-30  ;;  %v6987_v8 = vadd.f32 %v6955_v38, %v6794_v19  ;;  %v6957_v53 = vmul.f32 1e-10, %v8473_v21  ;;  %v6801_v3 = vld [vmem:[#allocation3 + $0x1b0] sm:$0xff] }
 0x94c   : > { %v8477_v13 = vpop.eup %8476  ;;  %8502 = vrcp.f32 %v7014_v42  ;;  %v7016_v43 = vmax.f32 %v6984_v48, 1e-30  ;;  %v6986_v22 = vadd.f32 %v6954_v11, %v6793_v37  ;;  %v6956_v55 = vmul.f32 1e-10, %v8475_v25  ;;  %v6842_v27 = vld [vmem:[#allocation4 + $0x1f0] sm:$0xff]  ;;  %v6804_v25 = vld [vmem:[#allocation3 + $0x1c8] sm:$0xff] }
 0x94d   : > { %v8479_v52 = vpop.eup %8478  ;;  %7150 = vperm.xlu1 %8295, %v7076_v62   ;;  %8504 = vrcp.f32 %v7017_v51  ;;  %v7019_v33 = vmax.f32 %v6987_v8, 1e-30  ;;  %v6989_v56 = vadd.f32 %v6957_v53, %v6796_v9  ;;  %v6959_v4 = vmul.f32 1e-10, %v8477_v13 }
 0x94e   : > { %v8481_v41 = vpop.eup %8480  ;;  %7145 = vperm.xlu0 %8294, %v7074_v1   ;;  %8506 = vrcp.f32 %v7016_v43  ;;  %v7018_v14 = vmax.f32 %v6986_v22, 1e-30  ;;  %v6988_v58 = vadd.f32 %v6956_v55, %v6795_v57  ;;  %v6958_v47 = vmul.f32 1e-10, %v8479_v52  ;;  %v6803_v22 = vld [vmem:[#allocation3 + $0x1c0] sm:$0xff] }
 0x94f   : > { %v8483_v10 = vpop.eup %8482  ;;  %v6961_v28 = vmul.f32 1e-10, %v8481_v41  ;;  %v7084_v62 = vmul.f32 0.5, %v12632_v61  ;;  %8508 = vrcp.f32 %v7019_v33  ;;  %v7021_v59 = vmax.f32 %v6989_v56, 1e-30  ;;  %v6843_v61 = vld [vmem:[#allocation4 + $0x1f8] sm:$0xff] }
 0x950   : > { %v8485_v23 = vpop.eup %8484  ;;  %v6960_v49 = vmul.f32 1e-10, %v8483_v10  ;;  %v6991_v1 = vadd.f32 %v6959_v4, %v6798_v32  ;;  %v7082_v46 = vmul.f32 0.5, %v12634_v6  ;;  %8510 = vrcp.f32 %v7018_v14  ;;  %v6806_v10 = vld [vmem:[#allocation3 + $0x1d8] sm:$0xff] }
 0x951   : > { %v8487_v18 = vpop.eup %8486  ;;  %7160 = vperm.xlu1 %8295, %v12636_v35   ;;  %v7020_v16 = vmax.f32 %v6988_v58, 1e-30  ;;  %v6990_v15 = vadd.f32 %v6958_v47, %v6797_v40  ;;  %v6993_v60 = vadd.f32 %v6961_v28, %v6800_v30  ;;  %v6873_v5 = vsub.f32 0.0, %v6841_v31 }
 0x952   : > { %v8489_v17 = vpop.eup %8488  ;;  %7155 = vperm.xlu0 %8294, %v12638_v26   ;;  %v6992_v35 = vadd.f32 %v6960_v49, %v6799_v20  ;;  %v6963_v24 = vmul.f32 1e-10, %v8485_v23  ;;  %8512 = vrcp.f32 %v7021_v59  ;;  %v7023_v45 = vmax.f32 %v6991_v1, 1e-30  ;;  %v6805_v23 = vld [vmem:[#allocation3 + $0x1d0] sm:$0xff] }
 0x953   : > { %v8491_v39 = vpop.eup %8490  ;;  %v6962_v7 = vmul.f32 1e-10, %v8487_v18  ;;  %8514 = vrcp.f32 %v7020_v16  ;;  %v7022_v6 = vmax.f32 %v6990_v15, 1e-30  ;;  %v6872_v0 = vsub.f32 0.0, %v6840_v12 }
 0x954   : > { %v8493_v36 = vpop.eup %8492  ;;  %v7025_v19 = vmax.f32 %v6993_v60, 1e-30  ;;  %v6934_v34 = vmul.f32 1.442695, %v6873_v5  ;;  %v6875_v29 = vsub.f32 0.0, %v6843_v61  ;;  %v6995_v21 = vadd.f32 %v6963_v24, %v6802_v44  ;;  %v6808_v61 = vld [vmem:[#allocation3 + $0x1e8] sm:$0xff] }
 0x955   : > { %v8495_v63 = vpop.eup %8494  ;;  %7170 = vperm.xlu1 %8295, %v7084_v62   ;;  %v7024_v37 = vmax.f32 %v6992_v35, 1e-30  ;;  %v6965_v42 = vmul.f32 1e-10, %v8489_v17  ;;  %8516 = vrcp.f32 %v7023_v45  ;;  %v6994_v9 = vadd.f32 %v6962_v7, %v6801_v3  ;;  %v6807_v44 = vld [vmem:[#allocation3 + $0x1e0] sm:$0xff] }
 0x956   : > { %v8497_v26 = vpop.eup %8496  ;;  %7165 = vperm.xlu0 %8294, %v7082_v46   ;;  %v6874_v51 = vsub.f32 0.0, %v6842_v27  ;;  %8518 = vrcp.f32 %v7022_v6  ;;  %v6964_v57 = vmul.f32 1e-10, %v8491_v39  ;;  %v6932_v13 = vmul.f32 1.442695, %v6872_v0  ;;  %v6810_v6 = vld [vmem:[#allocation3 + $0x1f8] sm:$0xff] }
 0x957   : > { %v8499_v54 = vpop.eup %8498  ;;  %v7088_v2 = vmul.f32 0.5, %v8497_v26  ;;  %8520 = vrcp.f32 %v7025_v19  ;;  %v6938_v55 = vmul.f32 1.442695, %v6875_v29  ;;  %v7027_v52 = vmax.f32 %v6995_v21, 1e-30 }
 0x958   : > { %v8501_v50 = vpop.eup %8500  ;;  %v7086_v38 = vmul.f32 0.5, %v8499_v54  ;;  %8522 = vrcp.f32 %v7024_v37  ;;  %v6997_v33 = vadd.f32 %v6965_v42, %v6804_v25  ;;  %v6936_v56 = vmul.f32 1.442695, %v6874_v51 }
 0x959   : > { %v8503_v48 = vpop.eup %8502  ;;  %7180 = vperm.xlu1 %8295, %v7088_v2   ;;  %v7092_v11 = vmul.f32 0.5, %v8501_v50  ;;  %v7026_v41 = vmax.f32 %v6994_v9, 1e-30  ;;  %v6967_v14 = vmul.f32 1e-10, %v8493_v36  ;;  %8524 = vpow2.f32 %v6934_v34  ;;  %v6809_v2 = vld [vmem:[#allocation3 + $0x1f0] sm:$0xff] }
 0x95a   : > { %v8505_v8 = vpop.eup %8504  ;;  %7175 = vperm.xlu0 %8294, %v7086_v38   ;;  %v7090_v53 = vmul.f32 0.5, %v8503_v48  ;;  %v6996_v47 = vadd.f32 %v6964_v57, %v6803_v22  ;;  %v6966_v40 = vmul.f32 1e-10, %v8495_v63  ;;  %8526 = vpow2.f32 %v6932_v13 }
 0x95b   : > { %v8507_v43 = vpop.eup %8506  ;;  %v7096_v4 = vmul.f32 0.5, %v8505_v8  ;;  %8528 = vpow2.f32 %v6938_v55  ;;  %v7029_v49 = vmax.f32 %v6997_v33, 1e-30  ;;  %v6999_v31 = vadd.f32 %v6967_v14, %v6806_v10 }
 0x95c   : > { %v8509_v58 = vpop.eup %8508  ;;  %v7094_v32 = vmul.f32 0.5, %v8507_v43  ;;  %8530 = vpow2.f32 %v6936_v56  ;;  %v7028_v59 = vmax.f32 %v6996_v47, 1e-30  ;;  %v6998_v1 = vadd.f32 %v6966_v40, %v6805_v23 }
 0x95d   : > { %7190 = vperm.xlu1 %8295, %v7092_v11   ;;  %v8511_v28 = vpop.eup %8510  ;;  %v7100_v30 = vmul.f32 0.5, %v8509_v58  ;;  %8532 = vrcp.f32 %v7027_v52  ;;  %v7031_v46 = vmax.f32 %v6999_v31, 1e-30 }
 0x95e   : > { %7185 = vperm.xlu0 %8294, %v7090_v53   ;;  %v7098_v62 = vmul.f32 0.5, %v8511_v28  ;;  %8534 = vrcp.f32 %v7026_v41  ;;  %v7030_v39 = vmax.f32 %v6998_v1, 1e-30 }
 0x95f   : > { %v8513_v18 = vpop.eup %8512  ;;  %8536 = vrcp.f32 %v7029_v49 }
 0x960   : > { %v8515_v20 = vpop.eup %8514  ;;  %v7104_v17 = vmul.f32 0.5, %v8513_v18  ;;  %8538 = vrcp.f32 %v7028_v59 }
 0x961   : > { %7200 = vperm.xlu1 %8295, %v7096_v4   ;;  %v7102_v15 = vmul.f32 0.5, %v8515_v20  ;;  %8540 = vrcp.f32 %v7031_v46 }
 0x962   : > { %7195 = vperm.xlu0 %8294, %v7094_v32   ;;  %v8517_v16 = vpop.eup %8516  ;;  %8542 = vrcp.f32 %v7030_v39 }
 0x963   : > { %v8519_v60 = vpop.eup %8518  ;;  %v7108_v36 = vmul.f32 0.5, %v8517_v16 }
 0x964   : > { %v8521_v5 = vpop.eup %8520  ;;  %v7106_v24 = vmul.f32 0.5, %v8519_v60 }
 0x965   : > { %7210 = vperm.xlu1 %8295, %v7100_v30   ;;  %v8523_v12 = vpop.eup %8522  ;;  %v7112_v0 = vmul.f32 0.5, %v8521_v5 }
 0x966   : > { %7205 = vperm.xlu0 %8294, %v7098_v62   ;;  %v8525_v35 = vpop.eup %8524  ;;  %v7110_v34 = vmul.f32 0.5, %v8523_v12 }
 0x967   : > { %v8527_v63 = vpop.eup %8526  ;;  %v6969_v45 = vmul.f32 1e-10, %v8525_v35 }
 0x968   : > { %v8529_v7 = vpop.eup %8528  ;;  %v6968_v26 = vmul.f32 1e-10, %v8527_v63 }
 0x969   : > { %7220 = vperm.xlu1 %8295, %v7104_v17   ;;  %v8531_v3 = vpop.eup %8530  ;;  %v7001_v27 = vadd.f32 %v6969_v45, %v6808_v61  ;;  %v6971_v54 = vmul.f32 1e-10, %v8529_v7 }
 0x96a   : > { %7215 = vperm.xlu0 %8294, %v7102_v15   ;;  %v8533_v19 = vpop.eup %8532  ;;  %v7000_v29 = vadd.f32 %v6968_v26, %v6807_v44  ;;  %v6970_v50 = vmul.f32 1e-10, %v8531_v3 }
 0x96b   : > { %v8535_v38 = vpop.eup %8534  ;;  %v7033_v37 = vmax.f32 %v7001_v27, 1e-30  ;;  %v7003_v21 = vadd.f32 %v6971_v54, %v6810_v6  ;;  %v7116_v11 = vmul.f32 0.5, %v8533_v19  ;;  %v6459_v27 = vld [vmem:[#allocation2 + $0x1b0] sm:$0xff]  ;;  %v7037_v19 = vld [vmem:[#allocation2 + $0x148] sm:$0xff] }
 0x96c   : > { %v7032_v42 = vmax.f32 %v7000_v29, 1e-30  ;;  %v7002_v48 = vadd.f32 %v6970_v50, %v6809_v2  ;;  %v8537_v25 = vpop.eup %8536  ;;  %v7114_v51 = vmul.f32 0.5, %v8535_v38  ;;  %v7038_v54 = vld [vmem:[#allocation2 + $0x1d0] sm:$0xff] }
 0x96d   : > { %7230 = vperm.xlu1 %8295, %v7108_v36   ;;  %8544 = vrcp.f32 %v7033_v37  ;;  %v7035_v9 = vmax.f32 %v7003_v21, 1e-30  ;;  %v8539_v53 = vpop.eup %8538  ;;  %v7120_v57 = vmul.f32 0.5, %v8537_v25  ;;  %v6458_v2 = vld [vmem:[#allocation2 + $0xb0] sm:$0xff]  ;;  %v6461_v21 = vld [vmem:[#allocation2 + $0x18] sm:$0xff]  ;;  %v7039_v25 = vld [vmem:[#allocation2 + $0x100] sm:$0xff] }
 0x96e   : > { %7225 = vperm.xlu0 %8294, %v7106_v24   ;;  %8546 = vrcp.f32 %v7032_v42  ;;  %v7034_v8 = vmax.f32 %v7002_v48, 1e-30  ;;  %v8541_v13 = vpop.eup %8540  ;;  %v7118_v43 = vmul.f32 0.5, %v8539_v53  ;;  %v7040_v48 = vld [vmem:[#allocation2 + $0xc8] sm:$0xff] }
 0x96f   : > { %8548 = vrcp.f32 %v7035_v9  ;;  %v8543_v22 = vpop.eup %8542  ;;  %v7124_v55 = vmul.f32 0.5, %v8541_v13 }
 0x970   : > { %8550 = vrcp.f32 %v7034_v8  ;;  %v7122_v52 = vmul.f32 0.5, %v8543_v22  ;;  %v6463_v22 = vld [vmem:[#allocation2 + $0x168] sm:$0xff] }
 0x971   : > { %7240 = vperm.xlu1 %8295, %v7112_v0  }
 0x972   : > { %7235 = vperm.xlu0 %8294, %v7110_v34  }
 0x975   : > { %7250 = vperm.xlu1 %8295, %v7116_v11   ;;  %v6460_v11 = vld [vmem:[#allocation2 + $0xd8] sm:$0xff] }
 0x976   : > { %7245 = vperm.xlu0 %8294, %v7114_v51  }
 0x979   : > { %7260 = vperm.xlu1 %8295, %v7120_v57  }
 0x97a   : > { %7255 = vperm.xlu0 %8294, %v7118_v43   ;;  %v8545_v33 = vpop.eup %8544 }
 0x97b   : > { %v8547_v56 = vpop.eup %8546  ;;  %v7128_v4 = vmul.f32 0.5, %v8545_v33  ;;  %v6462_v33 = vld [vmem:[#allocation2 + $0x50] sm:$0xff] }
 0x97c   : > { %v8549_v41 = vpop.eup %8548  ;;  %v7126_v14 = vmul.f32 0.5, %v8547_v56 }
 0x97d   : > { %7270 = vperm.xlu1 %8295, %v7124_v55   ;;  %v8551_v58 = vpop.eup %8550  ;;  %v7132_v32 = vmul.f32 0.5, %v8549_v41 }
 0x97e   : > { %7265 = vperm.xlu0 %8294, %v7122_v52   ;;  %v7130_v47 = vmul.f32 0.5, %v8551_v58  ;;  %v7042_v52 = vld [vmem:[#allocation2 + $0x1f8] sm:$0xff] }
 0x981   : > { %7280 = vperm.xlu1 %8295, %v7128_v4   ;;  %v7041_v4 = vld [vmem:[#allocation2 + $0x40] sm:$0xff] }
 0x982   : > { %7275 = vperm.xlu0 %8294, %v7126_v14  }
 0x984   : > { %v6567_v10 = vpop.permute.xlu1 %6566 }
 0x985   : > { %v6557_v40 = vpop.permute.xlu0 %6556  ;;  %7290 = vperm.xlu1 %8295, %v7132_v32   ;;  %v6716_v43 = vmul.f32 %v6567_v10, %v6460_v11  ;;  %v7045_v11 = vld [vmem:[#allocation2 + $0x1a0] sm:$0xff] }
 0x986   : > { %7285 = vperm.xlu0 %8294, %v7130_v47   ;;  %v6714_v37 = vmul.f32 %v6557_v40, %v6458_v2  ;;  %v7043_v2 = vld [vmem:[#allocation2 + $0x20] sm:$0xff] }
 0x988   : > { %v6572_v28 = vpop.permute.xlu1 %6571 }
 0x989   : > { %v6562_v23 = vpop.permute.xlu0 %6561  ;;  %v6717_v53 = vmul.f32 %v6572_v28, %v6461_v21  ;;  %v6465_v28 = vld [vmem:[#allocation2 + $0x48] sm:$0xff]  ;;  %v7046_v21 = vld [vmem:[#allocation2 + $0x1f0] sm:$0xff] }
 0x98a   : > { %v6715_v29 = vmul.f32 %v6562_v23, %v6459_v27  ;;  %v7044_v23 = vld [vmem:[#allocation2 + $0x128] sm:$0xff]  ;;  %v6464_v27 = vld [vmem:[#allocation2 + $0x130] sm:$0xff] }
 0x98c   : > { %v6582_v30 = vpop.permute.xlu1 %6581 }
 0x98d   : > { %v6577_v49 = vpop.permute.xlu0 %6576  ;;  %v6719_v58 = vmul.f32 %v6582_v30, %v6463_v22 }
 0x98e   : > { %v6718_v40 = vmul.f32 %v6577_v49, %v6462_v33  ;;  %v6467_v49 = vld [vmem:[#allocation2 + $0x110] sm:$0xff] }
 0x990   : > { %v12644_v31 = vpop.permute.xlu1 %6591 }
 0x991   : > { %v12646_v18 = vpop.permute.xlu0 %6586 }
 0x994   : > { %v12648_v62 = vpop.permute.xlu1 %6601 }
 0x995   : > { %v12650_v59 = vpop.permute.xlu0 %6596 }
 0x998   : > { %v12652_v1 = vpop.permute.xlu1 %6611 }
 0x999   : > { %v12654_v20 = vpop.permute.xlu0 %6606 }
 0x99c   : > { %v12656_v17 = vpop.permute.xlu1 %6621 }
 0x99d   : > { %v12658_v46 = vpop.permute.xlu0 %6616 }
 0x9a0   : > { %v12660_v16 = vpop.permute.xlu1 %6631 }
 0x9a1   : > { %v12662_v15 = vpop.permute.xlu0 %6626 }
 0x9a4   : > { %v12664_v39 = vpop.permute.xlu1 %6641 }
 0x9a5   : > { %v12666_v60 = vpop.permute.xlu0 %6636 }
 0x9a8   : > { %v12668_v5 = vpop.permute.xlu1 %6651 }
 0x9a9   : > { %v12670_v12 = vpop.permute.xlu0 %6646 }
 0x9ac   : > { %v12672_v36 = vpop.permute.xlu1 %6661 }
 0x9ad   : > { %v12674_v35 = vpop.permute.xlu0 %6656 }
 0x9b0   : > { %v12676_v24 = vpop.permute.xlu1 %6671 }
 0x9b1   : > { %v12678_v61 = vpop.permute.xlu0 %6666 }
 0x9b4   : > { %v12680_v63 = vpop.permute.xlu1 %6681 }
 0x9b5   : > { %v12682_v45 = vpop.permute.xlu0 %6676 }
 0x9b8   : > { %v12684_v44 = vpop.permute.xlu1 %6691 }
 0x9b9   : > { %v12686_v7 = vpop.permute.xlu0 %6686 }
 0x9bc   : > { %v12688_v26 = vpop.permute.xlu1 %6701 }
 0x9bd   : > { %v12690_v6 = vpop.permute.xlu0 %6696 }
 0x9c0   : > { %v12692_v3 = vpop.permute.xlu1 %6711 }
 0x9c1   : > { %v12694_v0 = vpop.permute.xlu0 %6706 }
 0x9c4   : > { %v7141_v34 = vpop.permute.xlu1 %7140 }
 0x9c5   : > { %v7294_v50 = vmul.f32 %v7141_v34, %v7038_v54  ;;  %v7136_v38 = vpop.permute.xlu0 %7135 }
 0x9c6   : > { %v7293_v42 = vmul.f32 %v7136_v38, %v7037_v19  ;;  %v6720_v38 = vmul.f32 %v12646_v18, %v6464_v27  ;;  %v6469_v18 = vld [vmem:[#allocation2 + $0x98] sm:$0xff] }
 0x9c7   : > { %v7326_v9 = vadd.f32 %v7294_v50, %v6715_v29  ;;  %v6721_v29 = vmul.f32 %v12644_v31, %v6465_v28 }
 0x9c8   : > { %v7325_v51 = vadd.f32 %v7293_v42, %v6714_v37  ;;  %v7151_v8 = vpop.permute.xlu1 %7150  ;;  %v6466_v42 = vld [vmem:[#allocation2 + $0x180] sm:$0xff] }
 0x9c9   : > { %7358 = vst [vmem:[%s8893_s21 + $0x8] sm:$0xff] %v7326_v9  ;;  %v7296_v57 = vmul.f32 %v7151_v8, %v7040_v48  ;;  %v7146_v13 = vpop.permute.xlu0 %7145 }
 0x9ca   : > { %7357 = vst [vmem:[%s8893_s21] sm:$0xff] %v7325_v51  ;;  %v7295_v55 = vmul.f32 %v7146_v13, %v7039_v25  ;;  %v6723_v51 = vmul.f32 %v12648_v62, %v6467_v49  ;;  %v7048_v13 = vld [vmem:[#allocation2 + $0x78] sm:$0xff] }
 0x9cb   : > { %v7328_v56 = vadd.f32 %v7296_v57, %v6717_v53  ;;  %v6722_v53 = vmul.f32 %v12650_v59, %v6466_v42  ;;  %v6471_v59 = vld [vmem:[#allocation2 + $0x150] sm:$0xff] }
 0x9cc   : > { %v7327_v41 = vadd.f32 %v7295_v55, %v6716_v43  ;;  %v7161_v14 = vpop.permute.xlu1 %7160  ;;  %v6468_v43 = vld [vmem:[#allocation2 + $0x118] sm:$0xff]  ;;  %v7047_v55 = vld [vmem:[#allocation2 + $0xe8] sm:$0xff] }
 0x9cd   : > { %7360 = vst [vmem:[%s8893_s21 + $0x18] sm:$0xff] %v7328_v56  ;;  %v7298_v32 = vmul.f32 %v7161_v14, %v7042_v52  ;;  %v7156_v47 = vpop.permute.xlu0 %7155  ;;  %v6725_v56 = vmul.f32 %v12652_v1, %v6469_v18 }
 0x9ce   : > { %7359 = vst [vmem:[%s8893_s21 + $0x10] sm:$0xff] %v7327_v41  ;;  %v7297_v10 = vmul.f32 %v7156_v47, %v7041_v4  ;;  %v6724_v41 = vmul.f32 %v12654_v20, %v6468_v43  ;;  %v6473_v20 = vld [vmem:[#allocation2 + $0x60] sm:$0xff]  ;;  %v6476_v43 = vld [vmem:[#allocation2 + $0x138] sm:$0xff] }
 0x9cf   : > { %v7330_v54 = vadd.f32 %v7298_v32, %v6719_v58  ;;  %v7050_v58 = vld [vmem:[#allocation2 + $0x90] sm:$0xff]  ;;  %v6470_v32 = vld [vmem:[#allocation2 + $0x120] sm:$0xff]  ;;  %v6729_v49 = vmul.f32 %v12660_v16, %v6473_v20 }
 0x9d0   : > { %v7329_v19 = vadd.f32 %v7297_v10, %v6718_v40  ;;  %v7171_v34 = vpop.permute.xlu1 %7170  ;;  %v7049_v40 = vld [vmem:[#allocation2 + $0x70] sm:$0xff] }
 0x9d1   : > { %7362 = vst [vmem:[%s8893_s21 + $0x28] sm:$0xff] %v7330_v54  ;;  %v7300_v50 = vmul.f32 %v7171_v34, %v7044_v23  ;;  %v7166_v30 = vpop.permute.xlu0 %7165  ;;  %v6727_v23 = vmul.f32 %v12656_v17, %v6471_v59  ;;  %v6726_v54 = vmul.f32 %v12658_v46, %v6470_v32  ;;  %v6472_v34 = vld [vmem:[#allocation2 + $0x108] sm:$0xff]  ;;  %v7058_v59 = vld [vmem:[#allocation2 + $0x178] sm:$0xff]  ;;  %v7057_v32 = vld [vmem:[#allocation2 + $0x170] sm:$0xff] }
 0x9d2   : > { %7361 = vst [vmem:[%s8893_s21 + $0x20] sm:$0xff] %v7329_v19  ;;  %v7299_v37 = vmul.f32 %v7166_v30, %v7043_v2  ;;  %v7052_v19 = vld [vmem:[#allocation2 + $0xd0] sm:$0xff]  ;;  %v6475_v46 = vld [vmem:[#allocation2 + $0x188] sm:$0xff] }
 0x9d3   : > { %v7332_v48 = vadd.f32 %v7300_v50, %v6721_v29  ;;  %v7051_v50 = vld [vmem:[#allocation2 + $0x1d8] sm:$0xff] }
 0x9d4   : > { %v7331_v9 = vadd.f32 %v7299_v37, %v6720_v38  ;;  %v7181_v25 = vpop.permute.xlu1 %7180 }
 0x9d5   : > { %7364 = vst [vmem:[%s8893_s21 + $0x38] sm:$0xff] %v7332_v48  ;;  %v7302_v31 = vmul.f32 %v7181_v25, %v7046_v21  ;;  %v7176_v8 = vpop.permute.xlu0 %7175  ;;  %v6728_v21 = vmul.f32 %v12662_v15, %v6472_v34  ;;  %v7054_v48 = vld [vmem:[#allocation2 + $0x88] sm:$0xff]  ;;  %v7053_v25 = vld [vmem:[#allocation2 + $0xb8] sm:$0xff]  ;;  %v6477_v15 = vld [vmem:[#allocation2 + $0x140] sm:$0xff] }
 0x9d6   : > { %7363 = vst [vmem:[%s8893_s21 + $0x30] sm:$0xff] %v7331_v9  ;;  %v7301_v57 = vmul.f32 %v7176_v8, %v7045_v11  ;;  %v6474_v11 = vld [vmem:[#allocation2 + $0xe0] sm:$0xff]  ;;  %v6731_v8 = vmul.f32 %v12664_v39, %v6475_v46 }
 0x9d7   : > { %v7334_v22 = vadd.f32 %v7302_v31, %v6723_v51  ;;  %v6730_v18 = vmul.f32 %v12666_v60, %v6474_v11  ;;  %v6479_v60 = vld [vmem:[#allocation2 + $0x1a8] sm:$0xff] }
 0x9d8   : > { %v7333_v52 = vadd.f32 %v7301_v57, %v6722_v53  ;;  %v7191_v33 = vpop.permute.xlu1 %7190 }
 0x9d9   : > { %7366 = vst [vmem:[%s8893_s21 + $0x48] sm:$0xff] %v7334_v22  ;;  %v7304_v62 = vmul.f32 %v7191_v33, %v7048_v13  ;;  %v7186_v4 = vpop.permute.xlu0 %7185  ;;  %v7056_v13 = vld [vmem:[#allocation2 + $0x1c8] sm:$0xff] }
 0x9da   : > { %7365 = vst [vmem:[%s8893_s21 + $0x40] sm:$0xff] %v7333_v52  ;;  %v7303_v14 = vmul.f32 %v7186_v4, %v7047_v55  ;;  %v7055_v55 = vld [vmem:[#allocation2 + $0xa8] sm:$0xff]  ;;  %v6732_v4 = vmul.f32 %v12670_v12, %v6476_v43 }
 0x9db   : > { %v7336_v47 = vadd.f32 %v7304_v62, %v6725_v56  ;;  %v6733_v56 = vmul.f32 %v12668_v5, %v6477_v15  ;;  %v6481_v12 = vld [vmem:[#allocation2 + $0x28] sm:$0xff] }
 0x9dc   : > { %v7335_v28 = vadd.f32 %v7303_v14, %v6724_v41  ;;  %v7201_v10 = vpop.permute.xlu1 %7200  ;;  %v6478_v14 = vld [vmem:[#allocation2 + $0x80] sm:$0xff] }
 0x9dd   : > { %7368 = vst [vmem:[%s8893_s21 + $0x58] sm:$0xff] %v7336_v47  ;;  %v7306_v1 = vmul.f32 %v7201_v10, %v7050_v58  ;;  %v7196_v27 = vpop.permute.xlu0 %7195 }
 0x9de   : > { %7367 = vst [vmem:[%s8893_s21 + $0x50] sm:$0xff] %v7335_v28  ;;  %v7305_v2 = vmul.f32 %v7196_v27, %v7049_v40  ;;  %v6735_v28 = vmul.f32 %v12672_v36, %v6479_v60  ;;  %v7060_v27 = vld [vmem:[#allocation2 + $0x190] sm:$0xff] }
 0x9df   : > { %v7338_v29 = vadd.f32 %v7306_v1, %v6727_v23  ;;  %v6734_v23 = vmul.f32 %v12674_v35, %v6478_v14  ;;  %v6483_v35 = vld [vmem:[#allocation2 + $0xf8] sm:$0xff]  ;;  %v6488_v14 = vld [vmem:[#allocation2 + $0xf0] sm:$0xff] }
 0x9e0   : > { %v7337_v30 = vadd.f32 %v7305_v2, %v6726_v54  ;;  %v7211_v38 = vpop.permute.xlu1 %7210  ;;  %v6480_v54 = vld [vmem:[#allocation2 + $0x1b8] sm:$0xff]  ;;  %v7059_v2 = vld [vmem:[#allocation2 + $0x68] sm:$0xff] }
 0x9e1   : > { %7370 = vst [vmem:[%s8893_s21 + $0x68] sm:$0xff] %v7338_v29  ;;  %v7308_v17 = vmul.f32 %v7211_v38, %v7052_v19  ;;  %v7206_v37 = vpop.permute.xlu0 %7205  ;;  %v6737_v29 = vmul.f32 %v12676_v24, %v6481_v12 }
 0x9e2   : > { %7369 = vst [vmem:[%s8893_s21 + $0x60] sm:$0xff] %v7337_v30  ;;  %v7307_v42 = vmul.f32 %v7206_v37, %v7051_v50  ;;  %v6736_v30 = vmul.f32 %v12678_v61, %v6480_v54  ;;  %v6485_v61 = vld [vmem:[#allocation2 + $0x30] sm:$0xff] }
 0x9e3   : > { %v7340_v9 = vadd.f32 %v7308_v17, %v6729_v49  ;;  %v7062_v49 = vld [vmem:[#allocation2 + $0x38] sm:$0xff]  ;;  %v6482_v17 = vld [vmem:[#allocation2 + $0x1e8] sm:$0xff]  ;;  %v6741_v15 = vmul.f32 %v12684_v44, %v6485_v61 }
 0x9e4   : > { %v7339_v51 = vadd.f32 %v7307_v42, %v6728_v21  ;;  %v7221_v31 = vpop.permute.xlu1 %7220  ;;  %v7061_v21 = vld [vmem:[#allocation2 + $0x198] sm:$0xff] }
 0x9e5   : > { %7372 = vst [vmem:[%s8893_s21 + $0x78] sm:$0xff] %v7340_v9  ;;  %v7310_v16 = vmul.f32 %v7221_v31, %v7054_v48  ;;  %v7216_v53 = vpop.permute.xlu0 %7215  ;;  %v6739_v48 = vmul.f32 %v12680_v63, %v6483_v35  ;;  %v6738_v9 = vmul.f32 %v12682_v45, %v6482_v17  ;;  %v6484_v31 = vld [vmem:[#allocation2 + $0x160] sm:$0xff] }
 0x9e6   : > { %7371 = vst [vmem:[%s8893_s21 + $0x70] sm:$0xff] %v7339_v51  ;;  %v7309_v57 = vmul.f32 %v7216_v53, %v7053_v25  ;;  %v7064_v51 = vld [vmem:[#allocation2 + $0x1c0] sm:$0xff] }
 0x9e7   : > { %v7342_v22 = vadd.f32 %v7310_v16, %v6731_v8  ;;  %v7063_v16 = vld [vmem:[#allocation2 + $0xc0] sm:$0xff] }
 0x9e8   : > { %v7341_v52 = vadd.f32 %v7309_v57, %v6730_v18  ;;  %v7231_v33 = vpop.permute.xlu1 %7230  ;;  %v6487_v45 = vld [vmem:[#allocation2] sm:$0xff] }
 0x9e9   : > { %7374 = vst [vmem:[%s8893_s21 + $0x88] sm:$0xff] %v7342_v22  ;;  %v7312_v39 = vmul.f32 %v7231_v33, %v7056_v13  ;;  %v7226_v62 = vpop.permute.xlu0 %7225  ;;  %v6740_v13 = vmul.f32 %v12686_v7, %v6484_v31  ;;  %v7066_v22 = vld [vmem:[#allocation2 + $0x10] sm:$0xff]  ;;  %v7065_v33 = vld [vmem:[#allocation2 + $0x158] sm:$0xff]  ;;  %v6489_v7 = vld [vmem:[#allocation2 + $0x8] sm:$0xff] }
 0x9ea   : > { %7373 = vst [vmem:[%s8893_s21 + $0x80] sm:$0xff] %v7341_v52  ;;  %v7311_v41 = vmul.f32 %v7226_v62, %v7055_v55  ;;  %v6486_v55 = vld [vmem:[#allocation2 + $0x1e0] sm:$0xff]  ;;  %v6743_v62 = vmul.f32 %v12688_v26, %v6487_v45 }
 0x9eb   : > { %v7344_v58 = vadd.f32 %v7312_v39, %v6733_v56  ;;  %v6742_v60 = vmul.f32 %v12690_v6, %v6486_v55 }
 0x9ec   : > { %v7343_v47 = vadd.f32 %v7311_v41, %v6732_v4  ;;  %v7241_v40 = vpop.permute.xlu1 %7240 }
 0x9ed   : > { %7376 = vst [vmem:[%s8893_s21 + $0x98] sm:$0xff] %v7344_v58  ;;  %v7314_v5 = vmul.f32 %v7241_v40, %v7058_v59  ;;  %v7236_v10 = vpop.permute.xlu0 %7235  ;;  %v7068_v59 = vld [vmem:[#allocation2 + $0xa0] sm:$0xff] }
 0x9ee   : > { %7375 = vst [vmem:[%s8893_s21 + $0x90] sm:$0xff] %v7343_v47  ;;  %v7313_v1 = vmul.f32 %v7236_v10, %v7057_v32  ;;  %v7067_v32 = vld [vmem:[#allocation2 + $0x58] sm:$0xff]  ;;  %v6744_v10 = vmul.f32 %v12694_v0, %v6488_v14 }
 0x9ef   : > { %v7346_v20 = vadd.f32 %v7314_v5, %v6735_v28  ;;  %v6745_v28 = vmul.f32 %v12692_v3, %v6489_v7 }
 0x9f0   : > { %v7345_v19 = vadd.f32 %v7313_v1, %v6734_v23  ;;  %v7251_v34 = vpop.permute.xlu1 %7250 }
 0x9f1   : > { %7378 = vst [vmem:[%s8893_s21 + $0xa8] sm:$0xff] %v7346_v20  ;;  %v7316_v36 = vmul.f32 %v7251_v34, %v7060_v27  ;;  %v7246_v50 = vpop.permute.xlu0 %7245 }
 0x9f2   : > { %7377 = vst [vmem:[%s8893_s21 + $0xa0] sm:$0xff] %v7345_v19  ;;  %v7315_v38 = vmul.f32 %v7246_v50, %v7059_v2 }
 0x9f3   : > { %v7348_v37 = vadd.f32 %v7316_v36, %v6737_v29 }
 0x9f4   : > { %v7347_v46 = vadd.f32 %v7315_v38, %v6736_v30  ;;  %v7261_v42 = vpop.permute.xlu1 %7260 }
 0x9f5   : > { %7380 = vst [vmem:[%s8893_s21 + $0xb8] sm:$0xff] %v7348_v37  ;;  %v7318_v24 = vmul.f32 %v7261_v42, %v7062_v49  ;;  %v7256_v11 = vpop.permute.xlu0 %7255 }
 0x9f6   : > { %7379 = vst [vmem:[%s8893_s21 + $0xb0] sm:$0xff] %v7347_v46  ;;  %v7317_v25 = vmul.f32 %v7256_v11, %v7061_v21 }
 0x9f7   : > { %v7350_v8 = vadd.f32 %v7318_v24, %v6739_v48 }
 0x9f8   : > { %v7349_v53 = vadd.f32 %v7317_v25, %v6738_v9  ;;  %v7271_v18 = vpop.permute.xlu1 %7270 }
 0x9f9   : > { %7382 = vst [vmem:[%s8893_s21 + $0xc8] sm:$0xff] %v7350_v8  ;;  %v7320_v63 = vmul.f32 %v7271_v18, %v7064_v51  ;;  %v7266_v57 = vpop.permute.xlu0 %7265 }
 0x9fa   : > { %7381 = vst [vmem:[%s8893_s21 + $0xc0] sm:$0xff] %v7349_v53  ;;  %v7319_v43 = vmul.f32 %v7266_v57, %v7063_v16 }
 0x9fb   : > { %v7352_v52 = vadd.f32 %v7320_v63, %v6741_v15 }
 0x9fc   : > { %v7351_v56 = vadd.f32 %v7319_v43, %v6740_v13  ;;  %v7281_v39 = vpop.permute.xlu1 %7280 }
 0x9fd   : > { %7384 = vst [vmem:[%s8893_s21 + $0xd8] sm:$0xff] %v7352_v52  ;;  %v7322_v44 = vmul.f32 %v7281_v39, %v7066_v22  ;;  %v7276_v4 = vpop.permute.xlu0 %7275 }
 0x9fe   : > { %7383 = vst [vmem:[%s8893_s21 + $0xd0] sm:$0xff] %v7351_v56  ;;  %v7321_v41 = vmul.f32 %v7276_v4, %v7065_v33 }
 0x9ff   : > { %v7354_v58 = vadd.f32 %v7322_v44, %v6743_v62 }
 0xa00   : > { %v7353_v47 = vadd.f32 %v7321_v41, %v6742_v60  ;;  %v7291_v40 = vpop.permute.xlu1 %7290 }
 0xa01   : > { %7386 = vst [vmem:[%s8893_s21 + $0xe8] sm:$0xff] %v7354_v58  ;;  %v7324_v26 = vmul.f32 %v7291_v40, %v7068_v59  ;;  %v7286_v5 = vpop.permute.xlu0 %7285 }
 0xa02   : > { %7385 = vst [vmem:[%s8893_s21 + $0xe0] sm:$0xff] %v7353_v47  ;;  %v7323_v6 = vmul.f32 %v7286_v5, %v7067_v32 }
 0xa03   : > { %v7356_v23 = vadd.f32 %v7324_v26, %v6745_v28 }
 0xa04   : > { %v7355_v12 = vadd.f32 %v7323_v6, %v6744_v10 }
 0xa05   : > { %7388 = vst [vmem:[%s8893_s21 + $0xf8] sm:$0xff] %v7356_v23 }
 0xa06   : > { %7387 = vst [vmem:[%s8893_s21 + $0xf0] sm:$0xff] %v7355_v12 }
 0xa07 PF: > { %s7698_s10 = sshll.u32 %s8674_s11, 12  ;;  %s7403_s26 = sshll.u32 %s8893_s21, 4  ;;  %s12761_s26 = int_to_ptr.vmem [resolvable:$true] %s7403_s26 }
 0xa08   : > { %s12758_s24 = scalar_lea.hbm %s12827_s6, %s7698_s10  ;;  %s13944_s25 = sand.u32 1, %s8654_s30  }
 0xa09   : > { %s12765_s8 = scalar_lea.sflag [#allocation10], %s13944_s25  ;;  %s8576_s27 = scalar_lea.vmem %s12761_s26, 4096 }
 0xa0a   : > { %p8577_p9 = scmp.ne.s32.totalorder %s12761_s26, %s8576_s27  ;;  %s8700_s11 = smov [#allocation9]  }
 0xa0b   : > { %s8580_s12 = sshll.u32 %s8700_s11, 4  ;;  %s8581_s12 = int_to_ptr.vmem [resolvable:$false] %s8580_s12 }
 0xa0c   : > { %p8578_p10 = pnand %p8577_p9, %p8819_p4  ;;  %s8582_s20 = scalar_lea.vmem %s8581_s12, 8192 }
 0xa0d   : > { %p8583_p12 = scmp.lt.s32.totalorder %s12761_s26, %s8581_s12  ;;  %p8584_p13 = scmp.lt.s32.totalorder %s8582_s20, %s8576_s27 }
 0xa0e   : > { %p8579_p11 = pneg %p8578_p10 }
 0xa0f   : > { %p8585_p0 = por %p8584_p13, %p8583_p12 }
 0xa11   : > { %p8586_p1 = pnand %p8585_p0, %p8579_p11 }
 0xa13   : > { %8589 = shalt.err (!%p8586_p1)
}
 0xa14   : > { %s8590_s16 = scalar_lea.hbm %s12758_s24, 4096  ;;  %s8594_s21 = scalar_lea.hbm %s12827_s6, 8192 }
 0xa15   : > { %p8591_p2 = scmp.ne.s32.totalorder %s12758_s24, %s8590_s16  ;;  %p8595_p6 = scmp.lt.s32.totalorder %s12758_s24, %s12827_s6 }
 0xa16   : > { %p8596_p8 = scmp.lt.s32.totalorder %s8594_s21, %s8590_s16 }
 0xa17   : > { %p8592_p3 = pnand %p8591_p2, %p8819_p4 }
 0xa18   : > { %p8597_p9 = por %p8596_p8, %p8595_p6 }
 0xa19   : > { %p8593_p5 = pneg %p8592_p3 }
 0xa1b   : > { %p8598_p10 = pnand %p8597_p9, %p8593_p5 }
 0xa1d   : > { %8601 = shalt.err (!%p8598_p10)
}
 0xa1e   : > { %s8701_s17 = smov 128   ;;  %s8702_s23 = smov 8  }
 0xa1f   : > { %7927 = dma.vmem_to_hbm [thread:$0]  (%p8819_p4), %s12761_s26, 4096, %s12758_s24, %s12765_s8, %s8701_s17, %s8701_s17, %s8702_s23  }
 0xa20 PF: > { %p7933_p11 = scmp.ge.s32.totalorder %s8686_s14, 2  ;;  %s7418_s29 = sand.u32 1, %s8650_s1  }
 0xa21   : > { %s7419_s10 = scalar_lea.sflag [#allocation10], %s7418_s29 }
 0xa22   : > { %p7930_p12 = pnand %p7933_p11, %p8828_p7 }
 0xa24   : > { %p7931_p13 = pneg %p7930_p12 }
 0xa26   : > { %8645 = dma.done.wait (%p7931_p13), %s7419_s10, 4096  }
 0xa27   : > { %8647 = vsyncadd (%p7931_p13), %s7419_s10, 4294963200  ;;  %s29_s14 = sadd.s32 1, %s8686_s14   ;;  %s13945_s18 = sld [smem:[#allocation17_spill]] }
 0xa28   : > { %p26_p0 = scmp.ge.s32.totalorder %s29_s14, 6   ;;  %s13946_s28 = sld [smem:[#allocation18_spill]] }
 0xa29   : > { %s13947_s10 = sld [smem:[#allocation13_spill]]  ;;  %s13951_s1 = smov %s8654_s30 }
 0xa2a   : > { %s13948_s11 = sld [smem:[#allocation14_spill]]  ;;  %s13952_s30 = smov %s8658_s7 }
 0xa2b   : > { %s13949_s12 = sld [smem:[#allocation15_spill]]  ;;  %s13954_s8 = smov %s8666_s9 }
 0xa2c   : > { %s13950_s13 = sld [smem:[#allocation16_spill]]  ;;  %28 = sbr.rel (!%p26_p0) target bundleno = 32 (0x20), region = 135 }
 0xa2d   : > { %s13953_s7 = smov %s13945_s18 }
 0xa2e   : > { %s13955_s9 = smov %s13946_s28 }
 0xa31   :  { %7424 = vsyncpa [#allocation10], 1 }
 0xa32   :  { %7426 = vsyncpa [#allocation10 + $0x1], 1 }

</bundles_post_ra>
